<compile_context>
chip_gen: v7x
topology: tpu7x:2x2x1
jax: 0.10.0
libtpu: 0.0.40
codegen_flags: <defaults>
</compile_context>

<pallas_src>
import functools

import jax
import jax.numpy as jnp
import numpy as np
from jax.experimental import pallas as pl
from jax.experimental.pallas import tpu as pltpu

BN_EPS = 1e-5
_VMEM_LIMIT = 48 * 1024 * 1024      # explicit; comfortably under v7x's 64 MiB
_M_CAP = 512                        # max stacked MXU rows (M) per grid step


# ----------------------------- Pallas kernels ------------------------------

def _conv_kernel(x_ref, w_ref, *rest, KH, KW, Wc, pv, ph, rb, mode):
    """Fused Conv2d (+bias+ReLU+MaxPool | +BN-stats) for rb pooled rows of one image.

    x_ref : (1, Hp, Wk, Ck) bf16   whole padded image (resident per batch element)
    w_ref : (KH, ph, K, Cout) bf16 folded weights (K = KW*Cin, or (KW+1)*Cin if ph==2)
    mode == "bias":  rest = (b_ref (1,Cout) f32, out_ref (1, rb, Wo, Cout))
    mode == "stats": rest = (y_ref (1, rb, Wc, Cout), stats_ref (1, 1, 2, Cout) f32)
    """
    if mode == "bias":
        b_ref, out_ref = rest
    else:
        y_ref, stats_ref = rest

    i = pl.program_id(1)
    R = pv * rb                       # pre-pool conv rows handled this step
    Wrow = Wc // ph                   # pooled output width
    row0 = i * R                      # first padded input row of this block

    # KH bf16 MXU matmuls: K folded over (taps, Cin), M = R*Wrow stacked rows,
    # f32 accumulation on the result.
    accs = [None] * ph
    for kh in range(KH):
        slab = x_ref[0, pl.ds(row0 + kh, R), :, :]            # (R, Wk, Ck) bf16
        if ph == 1:
            lhs3 = jnp.concatenate(
                [slab[:, kw:kw + Wc, :] for kw in range(KW)], axis=-1)
        else:
            # channel-paired input: column u holds original columns (2u, 2u+1);
            # the pooled pair at x' needs original columns 2x'..2x'+3.
            lhs3 = jnp.concatenate(
                [slab[:, 0:Wrow, :], slab[:, 1:Wrow + 1, :]], axis=-1)
        lhs = lhs3.reshape(R * Wrow, lhs3.shape[-1])           # (M, K) bf16
        for p in range(ph):
            t = jnp.dot(lhs, w_ref[kh, p],
                        preferred_element_type=jnp.float32)    # (M, Cout) f32
            accs[p] = t if accs[p] is None else accs[p] + t

    # Horizontal max-pool (bias add and ReLU commute with max -> applied after).
    acc = accs[0] if ph == 1 else jnp.maximum(accs[0], accs[1])

    if mode == "bias":
        bias = b_ref[...]                                      # (1, Cout) f32
        for j in range(rb):                                    # vertical pool + epilogue
            blk = acc[j * pv * Wrow:(j * pv + 1) * Wrow, :]
            for v in range(1, pv):
                blk = jnp.maximum(
                    blk, acc[(j * pv + v) * Wrow:(j * pv + v + 1) * Wrow, :])
            out_ref[0, j] = jnp.maximum(blk + bias, 0.0).astype(out_ref.dtype)
    else:                                                      # stats: pv == ph == 1
        for j in range(rb):
            y_ref[0, j] = acc[j * Wrow:(j + 1) * Wrow, :].astype(y_ref.dtype)
        # One (2, Cout) partial per grid step, computed from the f32 accumulator.
        stats_ref[0, 0, 0:1, :] = jnp.sum(acc, axis=0, keepdims=True)
        stats_ref[0, 0, 1:2, :] = jnp.sum(acc * acc, axis=0, keepdims=True)


def _bn_apply_kernel(y_ref, sc_ref, sh_ref, out_ref, *, pv, rb):
    """out = maxpool_v( relu(y * scale + shift) ) over rb pooled rows."""
    scale = sc_ref[...]                                        # (1, C) f32, resident
    shift = sh_ref[...]
    for j in range(rb):
        t = None
        for v in range(pv):
            z = y_ref[0, j * pv + v].astype(jnp.float32) * scale + shift
            z = jnp.maximum(z, 0.0)
            t = z if t is None else jnp.maximum(t, z)
        out_ref[0, j] = t.astype(out_ref.dtype)


# ------------------------------ call wrappers -------------------------------

def _compiler_params():
    return pltpu.CompilerParams(
        dimension_semantics=("parallel", "parallel"),
        vmem_limit_bytes=_VMEM_LIMIT)


def _pick_rb(n_out_rows, pv, w_row, n_batch, m_cap=_M_CAP):
    """Largest row block dividing n_out_rows with M = pv*rb*w_row <= m_cap,
    keeping >=2 grid iterations overall (v7x has 2 TensorCores)."""
    best = 1
    for rb in range(2, n_out_rows + 1):
        if n_out_rows % rb:
            continue
        if pv * rb * w_row > m_cap:
            continue
        if n_batch == 1 and rb == n_out_rows and n_out_rows > 1:
            continue
        best = rb
    return best


def _conv_layer(x, w, *, pad, bias=None, pool_h=1, pool_w=1, mode="bias",
                out_dtype=jnp.bfloat16):
    """Fused Conv2d(stride=1) [+bias+ReLU+MaxPool | +BN-stats] as one pallas_call.

    x: (N, H, W, Cin), w: (KH, KW, Cin, Cout) f32.
    bias mode  -> (N, Ho//pool_h, Wo//pool_w, Cout) out_dtype
    stats mode -> (y: (N, Ho, Wo, Cout) out_dtype, stats: (N, nblk, 2, Cout) f32)
    """
    KH, KW, Cin, Cout = w.shape
    N, H, W, _ = x.shape
    pv, ph = pool_h, pool_w
    if mode == "stats":
        assert pv == 1 and ph == 1
    assert ph in (1, 2) and (ph == 1 or KW == 3)

    xp = jnp.pad(x, ((0, 0), (pad, pad), (pad, pad), (0, 0))).astype(jnp.bfloat16)
    Hp, Wp = H + 2 * pad, W + 2 * pad
    Hc, Wc = Hp - KH + 1, Wp - KW + 1                 # conv output size
    assert Hc % pv == 0 and Wc % ph == 0
    Ho, Wo = Hc // pv, Wc // ph                       # pooled output size

    # Horizontal-pool fusion: pair adjacent padded columns into channels with a
    # FREE reshape; the kernel then never needs strided column access.
    if ph == 2:
        assert Wp % 2 == 0
        xk = xp.reshape(N, Hp, Wp // 2, 2 * Cin)
    else:
        xk = xp
    Wk, Ck = xk.shape[2], xk.shape[3]

    # Weights: (KH, ph, K, Cout) bf16.  K = KW*Cin (ph==1) or (KW+1)*Cin (ph==2,
    # zero-padded even/odd copies so both pool phases share one LHS).
    wk = w.reshape(KH, KW * Cin, Cout)
    if ph == 2:
        z = jnp.zeros((KH, Cin, Cout), w.dtype)
        w_eff = jnp.stack([jnp.concatenate([wk, z], axis=1),
                           jnp.concatenate([z, wk], axis=1)], axis=1)
    else:
        w_eff = wk[:, None]
    w_eff = w_eff.astype(jnp.bfloat16)
    Kdim = w_eff.shape[2]

    rb = _pick_rb(Ho, pv, Wo, N)
    grid = (N, Ho // rb)

    in_specs = [
        pl.BlockSpec((1, Hp, Wk, Ck), lambda n, i: (n, 0, 0, 0)),       # resident / batch
        pl.BlockSpec((KH, ph, Kdim, Cout), lambda n, i: (0, 0, 0, 0)),  # resident weights
    ]
    operands = [xk, w_eff]

    if mode == "bias":
        operands.append(bias.reshape(1, Cout).astype(jnp.float32))
        in_specs.append(pl.BlockSpec((1, Cout), lambda n, i: (0, 0)))
        out_shape = jax.ShapeDtypeStruct((N, Ho, Wo, Cout), out_dtype)
        out_specs = pl.BlockSpec((1, rb, Wo, Cout), lambda n, i: (n, i, 0, 0))
        out_bytes = N * Ho * Wo * Cout * jnp.dtype(out_dtype).itemsize
    else:
        nblk = Ho // rb
        out_shape = (jax.ShapeDtypeStruct((N, Ho, Wo, Cout), out_dtype),
                     jax.ShapeDtypeStruct((N, nblk, 2, Cout), jnp.float32))
        out_specs = (pl.BlockSpec((1, rb, Wo, Cout), lambda n, i: (n, i, 0, 0)),
                     pl.BlockSpec((1, 1, 2, Cout), lambda n, i: (n, i, 0, 0)))
        out_bytes = (N * Ho * Wo * Cout * jnp.dtype(out_dtype).itemsize
                     + N * nblk * 2 * Cout * 4)

    kernel = functools.partial(_conv_kernel, KH=KH, KW=KW, Wc=Wc,
                               pv=pv, ph=ph, rb=rb, mode=mode)

    flops = 2 * N * Hc * Wc * KH * KW * Cin * Cout
    in_bytes = N * Hp * Wk * Ck * 2 + KH * ph * Kdim * Cout * 2 + Cout * 4

    return pl.pallas_call(
        kernel,
        out_shape=out_shape,
        grid=grid,
        in_specs=in_specs,
        out_specs=out_specs,
        compiler_params=_compiler_params(),
        cost_estimate=pl.CostEstimate(flops=flops, transcendentals=0,
                                      bytes_accessed=int(in_bytes + out_bytes)),
    )(*operands)


def conv_relu_pool(x, w, b, *, pad, pool_h=1, pool_w=1, out_dtype=jnp.bfloat16):
    return _conv_layer(x, w, pad=pad, bias=b, pool_h=pool_h, pool_w=pool_w,
                       mode="bias", out_dtype=out_dtype)


def conv_bn_relu_pool(x, w, gamma, beta, *, pad, pool_h=1, out_dtype=jnp.bfloat16):
    """Conv(bias=False) + train-mode BatchNorm + ReLU (+MaxPool(pool_h,1))."""
    y, stats = _conv_layer(x, w, pad=pad, mode="stats")
    N, Hc, Wc, C = y.shape

    # Global batch statistics from the per-step partial sums (f32 accumulator).
    # TODO(synk): E[x^2]-E[x]^2 is cancellation-prone for large-mean activations;
    # a shifted/two-pass variance would be safer at production scale.
    cnt = float(N * Hc * Wc)
    s = jnp.sum(stats[:, :, 0, :], axis=(0, 1))
    ss = jnp.sum(stats[:, :, 1, :], axis=(0, 1))
    mean = s / cnt
    var = jnp.maximum(ss / cnt - mean * mean, 0.0)        # biased var (train mode)
    inv = jax.lax.rsqrt(var + BN_EPS)
    scale = (gamma * inv).reshape(1, C).astype(jnp.float32)
    shift = (beta - mean * gamma * inv).reshape(1, C).astype(jnp.float32)

    pv = pool_h
    assert Hc % pv == 0
    Ho = Hc // pv
    rb = _pick_rb(Ho, pv, Wc, N, m_cap=1024)
    grid = (N, Ho // rb)
    return pl.pallas_call(
        functools.partial(_bn_apply_kernel, pv=pv, rb=rb),
        out_shape=jax.ShapeDtypeStruct((N, Ho, Wc, C), out_dtype),
        grid=grid,
        in_specs=[pl.BlockSpec((1, rb * pv, Wc, C), lambda n, i: (n, i, 0, 0)),
                  pl.BlockSpec((1, C), lambda n, i: (0, 0)),
                  pl.BlockSpec((1, C), lambda n, i: (0, 0))],
        out_specs=pl.BlockSpec((1, rb, Wc, C), lambda n, i: (n, i, 0, 0)),
        compiler_params=_compiler_params(),
    )(y, scale, shift)


# ---------------------------- model definition ------------------------------

def init_params(key, input_channel, output_channel):
    oc = [output_channel // 8, output_channel // 4,
          output_channel // 2, output_channel]
    keys = jax.random.split(key, 16)

    def w(k, kh, kw, cin, cout):
        return 0.1 * jax.random.normal(k, (kh, kw, cin, cout), jnp.float32)

    def b(k, cout):
        return 0.1 * jax.random.normal(k, (cout,), jnp.float32)

    return {
        "w1": w(keys[0], 3, 3, input_channel, oc[0]), "b1": b(keys[1], oc[0]),
        "w2": w(keys[2], 3, 3, oc[0], oc[1]),         "b2": b(keys[3], oc[1]),
        "w3": w(keys[4], 3, 3, oc[1], oc[2]),         "b3": b(keys[5], oc[2]),
        "w4": w(keys[6], 3, 3, oc[2], oc[2]),         "b4": b(keys[7], oc[2]),
        "w5": w(keys[8], 3, 3, oc[2], oc[3]),
        "g5": 1.0 + 0.05 * jax.random.normal(keys[9], (oc[3],), jnp.float32),
        "be5": 0.05 * jax.random.normal(keys[10], (oc[3],), jnp.float32),
        "w6": w(keys[11], 3, 3, oc[3], oc[3]),
        "g6": 1.0 + 0.05 * jax.random.normal(keys[12], (oc[3],), jnp.float32),
        "be6": 0.05 * jax.random.normal(keys[13], (oc[3],), jnp.float32),
        "w7": w(keys[14], 2, 2, oc[3], oc[3]),        "b7": b(keys[15], oc[3]),
    }


def vgg_feature_extractor(x_nchw, params):
    x = jnp.transpose(x_nchw, (0, 2, 3, 1)).astype(jnp.float32)   # NCHW -> NHWC
    x = conv_relu_pool(x, params["w1"], params["b1"], pad=1, pool_h=2, pool_w=2)
    x = conv_relu_pool(x, params["w2"], params["b2"], pad=1, pool_h=2, pool_w=2)
    x = conv_relu_pool(x, params["w3"], params["b3"], pad=1)
    x = conv_relu_pool(x, params["w4"], params["b4"], pad=1, pool_h=2)
    x = conv_bn_relu_pool(x, params["w5"], params["g5"], params["be5"], pad=1)
    x = conv_bn_relu_pool(x, params["w6"], params["g6"], params["be6"], pad=1,
                          pool_h=2)
    x = conv_relu_pool(x, params["w7"], params["b7"], pad=0,
                       out_dtype=jnp.float32)
    return jnp.transpose(x, (0, 3, 1, 2))                         # NHWC -> NCHW


# ---------------------------- pure-JAX reference ----------------------------

def reference_forward(x_nchw, params):
    x = jnp.transpose(x_nchw, (0, 2, 3, 1)).astype(jnp.float32)

    def conv(v, w, b, pad):
        y = jax.lax.conv_general_dilated(
            v, w, window_strides=(1, 1),
            padding=[(pad, pad), (pad, pad)],
            dimension_numbers=("NHWC", "HWIO", "NHWC"))
        return y if b is None else y + b

    def pool(v, ph, pw):
        return jax.lax.reduce_window(v, -jnp.inf, jax.lax.max,
                                     (1, ph, pw, 1), (1, ph, pw, 1), "VALID")

    def bn(v, gamma, beta):
        mean = jnp.mean(v, axis=(0, 1, 2))
        var = jnp.mean((v - mean) ** 2, axis=(0, 1, 2))
        return (v - mean) * jax.lax.rsqrt(var + BN_EPS) * gamma + beta

    relu = lambda v: jnp.maximum(v, 0.0)
    x = pool(relu(conv(x, params["w1"], params["b1"], 1)), 2, 2)
    x = pool(relu(conv(x, params["w2"], params["b2"], 1)), 2, 2)
    x = relu(conv(x, params["w3"], params["b3"], 1))
    x = pool(relu(conv(x, params["w4"], params["b4"], 1)), 2, 1)
    x = relu(bn(conv(x, params["w5"], None, 1), params["g5"], params["be5"]))
    x = pool(relu(bn(conv(x, params["w6"], None, 1),
                     params["g6"], params["be6"])), 2, 1)
    x = relu(conv(x, params["w7"], params["b7"], 0))
    return jnp.transpose(x, (0, 3, 1, 2))


# --------------------------------- main -------------------------------------

if __name__ == "__main__":
    key = jax.random.PRNGKey(0)
    k_x, k_p = jax.random.split(key)

    # Small shapes consistent with the module: the stack needs H >= 32 for a
    # non-empty output (H/16 - 1).  Input is NCHW like the PyTorch module.
    N, C_IN, H, W = 2, 4, 32, 16
    OUTPUT_CHANNEL = 32

    x = jax.random.normal(k_x, (N, C_IN, H, W), jnp.float32)
    params = init_params(k_p, C_IN, OUTPUT_CHANNEL)

    fwd = jax.jit(vgg_feature_extractor)
    out = jax.block_until_ready(fwd(x, params))

    expected = (N, OUTPUT_CHANNEL, H // 16 - 1, W // 4 - 1)   # (2, 32, 1, 3)
    assert out.shape == expected, (out.shape, expected)
    assert bool(jnp.all(jnp.isfinite(out)))

    # Correctness vs. plain-XLA f32 reference (tolerance covers the intentional
    # bf16 MXU operands / bf16 inter-layer activations across 7 layers + BN).
    ref = jax.block_until_ready(reference_forward(x, params))
    np.testing.assert_allclose(np.asarray(out), np.asarray(ref),
                               rtol=0.1, atol=0.1)

    print("KERNEL_OK")
</pallas_src>

<mosaic_0001>
module attributes {stable_mosaic.version = 11 : i64} {
  func.func @_conv_kernel(%arg0: i32, %arg1: i32, %arg2: memref<1x34x9x8xbf16, #tpu.memory_space<vmem>>, %arg3: memref<3x2x16x4xbf16, #tpu.memory_space<vmem>>, %arg4: memref<1x4xf32, #tpu.memory_space<vmem>>, %arg5: memref<1x16x8x4xbf16, #tpu.memory_space<vmem>>) attributes {dimension_semantics = [#tpu.dimension_semantics<parallel>, #tpu.dimension_semantics<parallel>], iteration_bounds = array<i64: 2, 1>, scalar_prefetch = 0 : i64, scratch_operands = 0 : i64, tpu.core_type = #tpu.core_type<tc>, window_params = [{transform_indices = @transform_0, window_bounds = array<i64: 1, 34, 9, 8>}, {pipeline_mode = #tpu.pipeline_mode<synchronous>, transform_indices = @transform_1, window_bounds = array<i64: 3, 2, 16, 4>}, {pipeline_mode = #tpu.pipeline_mode<synchronous>, transform_indices = @transform_2, window_bounds = array<i64: 1, 4>}, {transform_indices = @transform_3, window_bounds = array<i64: 1, 16, 8, 4>}]} {
    %c32_i32 = arith.constant 32 : i32
    %0 = arith.muli %arg1, %c32_i32 : i32
    %c0_i32 = arith.constant 0 : i32
    %1 = arith.addi %0, %c0_i32 : i32
    %c0 = arith.constant 0 : index
    %2 = arith.index_cast %1 : i32 to index
    %c0_0 = arith.constant 0 : index
    %c0_1 = arith.constant 0 : index
    %3 = vector.load %arg2[%c0, %2, %c0_0, %c0_1] : memref<1x34x9x8xbf16, #tpu.memory_space<vmem>>, vector<1x32x9x8xbf16>
    %4 = vector.shape_cast %3 : vector<1x32x9x8xbf16> to vector<32x9x8xbf16>
    %5 = vector.extract_strided_slice %4 {offsets = [0, 0, 0], sizes = [32, 8, 8], strides = [1, 1, 1]} : vector<32x9x8xbf16> to vector<32x8x8xbf16>
    %6 = vector.extract_strided_slice %4 {offsets = [0, 1, 0], sizes = [32, 8, 8], strides = [1, 1, 1]} : vector<32x9x8xbf16> to vector<32x8x8xbf16>
    %7 = tpu.concatenate %5, %6 in 2 : vector<32x8x8xbf16>, vector<32x8x8xbf16> -> vector<32x8x16xbf16>
    %8 = vector.shape_cast %7 : vector<32x8x16xbf16> to vector<256x16xbf16>
    %c0_2 = arith.constant 0 : index
    %c0_3 = arith.constant 0 : index
    %c0_4 = arith.constant 0 : index
    %c0_5 = arith.constant 0 : index
    %9 = vector.load %arg3[%c0_2, %c0_3, %c0_4, %c0_5] : memref<3x2x16x4xbf16, #tpu.memory_space<vmem>>, vector<1x1x16x4xbf16>
    %10 = vector.shape_cast %9 : vector<1x1x16x4xbf16> to vector<16x4xbf16>
    %cst = arith.constant dense<0.000000e+00> : vector<256x4xf32>
    %11 = tpu.matmul %8, %10, %cst {dimension_numbers = #tpu.dot_dimension_numbers<[1], [0], [0], [1], [0, 0, 1, 1], [], []>} : vector<256x16xbf16>, vector<16x4xbf16>, vector<256x4xf32> -> vector<256x4xf32>
    %c0_6 = arith.constant 0 : index
    %c1 = arith.constant 1 : index
    %c0_7 = arith.constant 0 : index
    %c0_8 = arith.constant 0 : index
    %12 = vector.load %arg3[%c0_6, %c1, %c0_7, %c0_8] : memref<3x2x16x4xbf16, #tpu.memory_space<vmem>>, vector<1x1x16x4xbf16>
    %13 = vector.shape_cast %12 : vector<1x1x16x4xbf16> to vector<16x4xbf16>
    %cst_9 = arith.constant dense<0.000000e+00> : vector<256x4xf32>
    %14 = tpu.matmul %8, %13, %cst_9 {dimension_numbers = #tpu.dot_dimension_numbers<[1], [0], [0], [1], [0, 0, 1, 1], [], []>} : vector<256x16xbf16>, vector<16x4xbf16>, vector<256x4xf32> -> vector<256x4xf32>
    %c1_i32 = arith.constant 1 : i32
    %15 = arith.addi %0, %c1_i32 : i32
    %c0_10 = arith.constant 0 : index
    %16 = arith.index_cast %15 : i32 to index
    %c0_11 = arith.constant 0 : index
    %c0_12 = arith.constant 0 : index
    %17 = vector.load %arg2[%c0_10, %16, %c0_11, %c0_12] : memref<1x34x9x8xbf16, #tpu.memory_space<vmem>>, vector<1x32x9x8xbf16>
    %18 = vector.shape_cast %17 : vector<1x32x9x8xbf16> to vector<32x9x8xbf16>
    %19 = vector.extract_strided_slice %18 {offsets = [0, 0, 0], sizes = [32, 8, 8], strides = [1, 1, 1]} : vector<32x9x8xbf16> to vector<32x8x8xbf16>
    %20 = vector.extract_strided_slice %18 {offsets = [0, 1, 0], sizes = [32, 8, 8], strides = [1, 1, 1]} : vector<32x9x8xbf16> to vector<32x8x8xbf16>
    %21 = tpu.concatenate %19, %20 in 2 : vector<32x8x8xbf16>, vector<32x8x8xbf16> -> vector<32x8x16xbf16>
    %22 = vector.shape_cast %21 : vector<32x8x16xbf16> to vector<256x16xbf16>
    %c1_13 = arith.constant 1 : index
    %c0_14 = arith.constant 0 : index
    %c0_15 = arith.constant 0 : index
    %c0_16 = arith.constant 0 : index
    %23 = vector.load %arg3[%c1_13, %c0_14, %c0_15, %c0_16] : memref<3x2x16x4xbf16, #tpu.memory_space<vmem>>, vector<1x1x16x4xbf16>
    %24 = vector.shape_cast %23 : vector<1x1x16x4xbf16> to vector<16x4xbf16>
    %cst_17 = arith.constant dense<0.000000e+00> : vector<256x4xf32>
    %25 = tpu.matmul %22, %24, %cst_17 {dimension_numbers = #tpu.dot_dimension_numbers<[1], [0], [0], [1], [0, 0, 1, 1], [], []>} : vector<256x16xbf16>, vector<16x4xbf16>, vector<256x4xf32> -> vector<256x4xf32>
    %26 = arith.addf %11, %25 : vector<256x4xf32>
    %c1_18 = arith.constant 1 : index
    %c1_19 = arith.constant 1 : index
    %c0_20 = arith.constant 0 : index
    %c0_21 = arith.constant 0 : index
    %27 = vector.load %arg3[%c1_18, %c1_19, %c0_20, %c0_21] : memref<3x2x16x4xbf16, #tpu.memory_space<vmem>>, vector<1x1x16x4xbf16>
    %28 = vector.shape_cast %27 : vector<1x1x16x4xbf16> to vector<16x4xbf16>
    %cst_22 = arith.constant dense<0.000000e+00> : vector<256x4xf32>
    %29 = tpu.matmul %22, %28, %cst_22 {dimension_numbers = #tpu.dot_dimension_numbers<[1], [0], [0], [1], [0, 0, 1, 1], [], []>} : vector<256x16xbf16>, vector<16x4xbf16>, vector<256x4xf32> -> vector<256x4xf32>
    %30 = arith.addf %14, %29 : vector<256x4xf32>
    %c2_i32 = arith.constant 2 : i32
    %31 = arith.addi %0, %c2_i32 : i32
    %c0_23 = arith.constant 0 : index
    %32 = arith.index_cast %31 : i32 to index
    %c0_24 = arith.constant 0 : index
    %c0_25 = arith.constant 0 : index
    %33 = vector.load %arg2[%c0_23, %32, %c0_24, %c0_25] : memref<1x34x9x8xbf16, #tpu.memory_space<vmem>>, vector<1x32x9x8xbf16>
    %34 = vector.shape_cast %33 : vector<1x32x9x8xbf16> to vector<32x9x8xbf16>
    %35 = vector.extract_strided_slice %34 {offsets = [0, 0, 0], sizes = [32, 8, 8], strides = [1, 1, 1]} : vector<32x9x8xbf16> to vector<32x8x8xbf16>
    %36 = vector.extract_strided_slice %34 {offsets = [0, 1, 0], sizes = [32, 8, 8], strides = [1, 1, 1]} : vector<32x9x8xbf16> to vector<32x8x8xbf16>
    %37 = tpu.concatenate %35, %36 in 2 : vector<32x8x8xbf16>, vector<32x8x8xbf16> -> vector<32x8x16xbf16>
    %38 = vector.shape_cast %37 : vector<32x8x16xbf16> to vector<256x16xbf16>
    %c2 = arith.constant 2 : index
    %c0_26 = arith.constant 0 : index
    %c0_27 = arith.constant 0 : index
    %c0_28 = arith.constant 0 : index
    %39 = vector.load %arg3[%c2, %c0_26, %c0_27, %c0_28] : memref<3x2x16x4xbf16, #tpu.memory_space<vmem>>, vector<1x1x16x4xbf16>
    %40 = vector.shape_cast %39 : vector<1x1x16x4xbf16> to vector<16x4xbf16>
    %cst_29 = arith.constant dense<0.000000e+00> : vector<256x4xf32>
    %41 = tpu.matmul %38, %40, %cst_29 {dimension_numbers = #tpu.dot_dimension_numbers<[1], [0], [0], [1], [0, 0, 1, 1], [], []>} : vector<256x16xbf16>, vector<16x4xbf16>, vector<256x4xf32> -> vector<256x4xf32>
    %42 = arith.addf %26, %41 : vector<256x4xf32>
    %c2_30 = arith.constant 2 : index
    %c1_31 = arith.constant 1 : index
    %c0_32 = arith.constant 0 : index
    %c0_33 = arith.constant 0 : index
    %43 = vector.load %arg3[%c2_30, %c1_31, %c0_32, %c0_33] : memref<3x2x16x4xbf16, #tpu.memory_space<vmem>>, vector<1x1x16x4xbf16>
    %44 = vector.shape_cast %43 : vector<1x1x16x4xbf16> to vector<16x4xbf16>
    %cst_34 = arith.constant dense<0.000000e+00> : vector<256x4xf32>
    %45 = tpu.matmul %38, %44, %cst_34 {dimension_numbers = #tpu.dot_dimension_numbers<[1], [0], [0], [1], [0, 0, 1, 1], [], []>} : vector<256x16xbf16>, vector<16x4xbf16>, vector<256x4xf32> -> vector<256x4xf32>
    %46 = arith.addf %30, %45 : vector<256x4xf32>
    %47 = arith.maximumf %42, %46 : vector<256x4xf32>
    %c0_35 = arith.constant 0 : index
    %c0_36 = arith.constant 0 : index
    %48 = vector.load %arg4[%c0_35, %c0_36] : memref<1x4xf32, #tpu.memory_space<vmem>>, vector<1x4xf32>
    %49 = vector.extract_strided_slice %47 {offsets = [0, 0], sizes = [8, 4], strides = [1, 1]} : vector<256x4xf32> to vector<8x4xf32>
    %50 = vector.extract_strided_slice %47 {offsets = [8, 0], sizes = [8, 4], strides = [1, 1]} : vector<256x4xf32> to vector<8x4xf32>
    %51 = arith.maximumf %49, %50 : vector<8x4xf32>
    %52 = vector.broadcast %48 : vector<1x4xf32> to vector<8x4xf32>
    %53 = arith.addf %51, %52 : vector<8x4xf32>
    %cst_37 = arith.constant 0.000000e+00 : f32
    %54 = vector.broadcast %cst_37 : f32 to vector<8x4xf32>
    %55 = arith.maximumf %53, %54 : vector<8x4xf32>
    %56 = arith.truncf %55 : vector<8x4xf32> to vector<8x4xbf16>
    %c0_38 = arith.constant 0 : index
    %c0_39 = arith.constant 0 : index
    %c0_40 = arith.constant 0 : index
    %c0_41 = arith.constant 0 : index
    %57 = vector.load %arg5[%c0_38, %c0_39, %c0_40, %c0_41] : memref<1x16x8x4xbf16, #tpu.memory_space<vmem>>, vector<1x1x8x4xbf16>
    %58 = vector.shape_cast %57 : vector<1x1x8x4xbf16> to vector<8x4xbf16>
    %59 = vector.shape_cast %56 : vector<8x4xbf16> to vector<1x1x8x4xbf16>
    tpu.vector_store %arg5[%c0_38, %c0_39, %c0_40, %c0_41], %59 {strides = array<i32>} : memref<1x16x8x4xbf16, #tpu.memory_space<vmem>>, vector<1x1x8x4xbf16>,
    %60 = vector.extract_strided_slice %47 {offsets = [16, 0], sizes = [8, 4], strides = [1, 1]} : vector<256x4xf32> to vector<8x4xf32>
    %61 = vector.extract_strided_slice %47 {offsets = [24, 0], sizes = [8, 4], strides = [1, 1]} : vector<256x4xf32> to vector<8x4xf32>
    %62 = arith.maximumf %60, %61 : vector<8x4xf32>
    %63 = vector.broadcast %48 : vector<1x4xf32> to vector<8x4xf32>
    %64 = arith.addf %62, %63 : vector<8x4xf32>
    %cst_42 = arith.constant 0.000000e+00 : f32
    %65 = vector.broadcast %cst_42 : f32 to vector<8x4xf32>
    %66 = arith.maximumf %64, %65 : vector<8x4xf32>
    %67 = arith.truncf %66 : vector<8x4xf32> to vector<8x4xbf16>
    %c0_43 = arith.constant 0 : index
    %c1_44 = arith.constant 1 : index
    %c0_45 = arith.constant 0 : index
    %c0_46 = arith.constant 0 : index
    %68 = vector.load %arg5[%c0_43, %c1_44, %c0_45, %c0_46] : memref<1x16x8x4xbf16, #tpu.memory_space<vmem>>, vector<1x1x8x4xbf16>
    %69 = vector.shape_cast %68 : vector<1x1x8x4xbf16> to vector<8x4xbf16>
    %70 = vector.shape_cast %67 : vector<8x4xbf16> to vector<1x1x8x4xbf16>
    tpu.vector_store %arg5[%c0_43, %c1_44, %c0_45, %c0_46], %70 {strides = array<i32>} : memref<1x16x8x4xbf16, #tpu.memory_space<vmem>>, vector<1x1x8x4xbf16>,
    %71 = vector.extract_strided_slice %47 {offsets = [32, 0], sizes = [8, 4], strides = [1, 1]} : vector<256x4xf32> to vector<8x4xf32>
    %72 = vector.extract_strided_slice %47 {offsets = [40, 0], sizes = [8, 4], strides = [1, 1]} : vector<256x4xf32> to vector<8x4xf32>
    %73 = arith.maximumf %71, %72 : vector<8x4xf32>
    %74 = vector.broadcast %48 : vector<1x4xf32> to vector<8x4xf32>
    %75 = arith.addf %73, %74 : vector<8x4xf32>
    %cst_47 = arith.constant 0.000000e+00 : f32
    %76 = vector.broadcast %cst_47 : f32 to vector<8x4xf32>
    %77 = arith.maximumf %75, %76 : vector<8x4xf32>
    %78 = arith.truncf %77 : vector<8x4xf32> to vector<8x4xbf16>
    %c0_48 = arith.constant 0 : index
    %c2_49 = arith.constant 2 : index
    %c0_50 = arith.constant 0 : index
    %c0_51 = arith.constant 0 : index
    %79 = vector.load %arg5[%c0_48, %c2_49, %c0_50, %c0_51] : memref<1x16x8x4xbf16, #tpu.memory_space<vmem>>, vector<1x1x8x4xbf16>
    %80 = vector.shape_cast %79 : vector<1x1x8x4xbf16> to vector<8x4xbf16>
    %81 = vector.shape_cast %78 : vector<8x4xbf16> to vector<1x1x8x4xbf16>
    tpu.vector_store %arg5[%c0_48, %c2_49, %c0_50, %c0_51], %81 {strides = array<i32>} : memref<1x16x8x4xbf16, #tpu.memory_space<vmem>>, vector<1x1x8x4xbf16>,
    %82 = vector.extract_strided_slice %47 {offsets = [48, 0], sizes = [8, 4], strides = [1, 1]} : vector<256x4xf32> to vector<8x4xf32>
    %83 = vector.extract_strided_slice %47 {offsets = [56, 0], sizes = [8, 4], strides = [1, 1]} : vector<256x4xf32> to vector<8x4xf32>
    %84 = arith.maximumf %82, %83 : vector<8x4xf32>
    %85 = vector.broadcast %48 : vector<1x4xf32> to vector<8x4xf32>
    %86 = arith.addf %84, %85 : vector<8x4xf32>
    %cst_52 = arith.constant 0.000000e+00 : f32
    %87 = vector.broadcast %cst_52 : f32 to vector<8x4xf32>
    %88 = arith.maximumf %86, %87 : vector<8x4xf32>
    %89 = arith.truncf %88 : vector<8x4xf32> to vector<8x4xbf16>
    %c0_53 = arith.constant 0 : index
    %c3 = arith.constant 3 : index
    %c0_54 = arith.constant 0 : index
    %c0_55 = arith.constant 0 : index
    %90 = vector.load %arg5[%c0_53, %c3, %c0_54, %c0_55] : memref<1x16x8x4xbf16, #tpu.memory_space<vmem>>, vector<1x1x8x4xbf16>
    %91 = vector.shape_cast %90 : vector<1x1x8x4xbf16> to vector<8x4xbf16>
    %92 = vector.shape_cast %89 : vector<8x4xbf16> to vector<1x1x8x4xbf16>
    tpu.vector_store %arg5[%c0_53, %c3, %c0_54, %c0_55], %92 {strides = array<i32>} : memref<1x16x8x4xbf16, #tpu.memory_space<vmem>>, vector<1x1x8x4xbf16>,
    %93 = vector.extract_strided_slice %47 {offsets = [64, 0], sizes = [8, 4], strides = [1, 1]} : vector<256x4xf32> to vector<8x4xf32>
    %94 = vector.extract_strided_slice %47 {offsets = [72, 0], sizes = [8, 4], strides = [1, 1]} : vector<256x4xf32> to vector<8x4xf32>
    %95 = arith.maximumf %93, %94 : vector<8x4xf32>
    %96 = vector.broadcast %48 : vector<1x4xf32> to vector<8x4xf32>
    %97 = arith.addf %95, %96 : vector<8x4xf32>
    %cst_56 = arith.constant 0.000000e+00 : f32
    %98 = vector.broadcast %cst_56 : f32 to vector<8x4xf32>
    %99 = arith.maximumf %97, %98 : vector<8x4xf32>
    %100 = arith.truncf %99 : vector<8x4xf32> to vector<8x4xbf16>
    %c0_57 = arith.constant 0 : index
    %c4 = arith.constant 4 : index
    %c0_58 = arith.constant 0 : index
    %c0_59 = arith.constant 0 : index
    %101 = vector.load %arg5[%c0_57, %c4, %c0_58, %c0_59] : memref<1x16x8x4xbf16, #tpu.memory_space<vmem>>, vector<1x1x8x4xbf16>
    %102 = vector.shape_cast %101 : vector<1x1x8x4xbf16> to vector<8x4xbf16>
    %103 = vector.shape_cast %100 : vector<8x4xbf16> to vector<1x1x8x4xbf16>
    tpu.vector_store %arg5[%c0_57, %c4, %c0_58, %c0_59], %103 {strides = array<i32>} : memref<1x16x8x4xbf16, #tpu.memory_space<vmem>>, vector<1x1x8x4xbf16>,
    %104 = vector.extract_strided_slice %47 {offsets = [80, 0], sizes = [8, 4], strides = [1, 1]} : vector<256x4xf32> to vector<8x4xf32>
    %105 = vector.extract_strided_slice %47 {offsets = [88, 0], sizes = [8, 4], strides = [1, 1]} : vector<256x4xf32> to vector<8x4xf32>
    %106 = arith.maximumf %104, %105 : vector<8x4xf32>
    %107 = vector.broadcast %48 : vector<1x4xf32> to vector<8x4xf32>
    %108 = arith.addf %106, %107 : vector<8x4xf32>
    %cst_60 = arith.constant 0.000000e+00 : f32
    %109 = vector.broadcast %cst_60 : f32 to vector<8x4xf32>
    %110 = arith.maximumf %108, %109 : vector<8x4xf32>
    %111 = arith.truncf %110 : vector<8x4xf32> to vector<8x4xbf16>
    %c0_61 = arith.constant 0 : index
    %c5 = arith.constant 5 : index
    %c0_62 = arith.constant 0 : index
    %c0_63 = arith.constant 0 : index
    %112 = vector.load %arg5[%c0_61, %c5, %c0_62, %c0_63] : memref<1x16x8x4xbf16, #tpu.memory_space<vmem>>, vector<1x1x8x4xbf16>
    %113 = vector.shape_cast %112 : vector<1x1x8x4xbf16> to vector<8x4xbf16>
    %114 = vector.shape_cast %111 : vector<8x4xbf16> to vector<1x1x8x4xbf16>
    tpu.vector_store %arg5[%c0_61, %c5, %c0_62, %c0_63], %114 {strides = array<i32>} : memref<1x16x8x4xbf16, #tpu.memory_space<vmem>>, vector<1x1x8x4xbf16>,
    %115 = vector.extract_strided_slice %47 {offsets = [96, 0], sizes = [8, 4], strides = [1, 1]} : vector<256x4xf32> to vector<8x4xf32>
    %116 = vector.extract_strided_slice %47 {offsets = [104, 0], sizes = [8, 4], strides = [1, 1]} : vector<256x4xf32> to vector<8x4xf32>
    %117 = arith.maximumf %115, %116 : vector<8x4xf32>
    %118 = vector.broadcast %48 : vector<1x4xf32> to vector<8x4xf32>
    %119 = arith.addf %117, %118 : vector<8x4xf32>
    %cst_64 = arith.constant 0.000000e+00 : f32
    %120 = vector.broadcast %cst_64 : f32 to vector<8x4xf32>
    %121 = arith.maximumf %119, %120 : vector<8x4xf32>
    %122 = arith.truncf %121 : vector<8x4xf32> to vector<8x4xbf16>
    %c0_65 = arith.constant 0 : index
    %c6 = arith.constant 6 : index
    %c0_66 = arith.constant 0 : index
    %c0_67 = arith.constant 0 : index
    %123 = vector.load %arg5[%c0_65, %c6, %c0_66, %c0_67] : memref<1x16x8x4xbf16, #tpu.memory_space<vmem>>, vector<1x1x8x4xbf16>
    %124 = vector.shape_cast %123 : vector<1x1x8x4xbf16> to vector<8x4xbf16>
    %125 = vector.shape_cast %122 : vector<8x4xbf16> to vector<1x1x8x4xbf16>
    tpu.vector_store %arg5[%c0_65, %c6, %c0_66, %c0_67], %125 {strides = array<i32>} : memref<1x16x8x4xbf16, #tpu.memory_space<vmem>>, vector<1x1x8x4xbf16>,
    %126 = vector.extract_strided_slice %47 {offsets = [112, 0], sizes = [8, 4], strides = [1, 1]} : vector<256x4xf32> to vector<8x4xf32>
    %127 = vector.extract_strided_slice %47 {offsets = [120, 0], sizes = [8, 4], strides = [1, 1]} : vector<256x4xf32> to vector<8x4xf32>
    %128 = arith.maximumf %126, %127 : vector<8x4xf32>
    %129 = vector.broadcast %48 : vector<1x4xf32> to vector<8x4xf32>
    %130 = arith.addf %128, %129 : vector<8x4xf32>
    %cst_68 = arith.constant 0.000000e+00 : f32
    %131 = vector.broadcast %cst_68 : f32 to vector<8x4xf32>
    %132 = arith.maximumf %130, %131 : vector<8x4xf32>
    %133 = arith.truncf %132 : vector<8x4xf32> to vector<8x4xbf16>
    %c0_69 = arith.constant 0 : index
    %c7 = arith.constant 7 : index
    %c0_70 = arith.constant 0 : index
    %c0_71 = arith.constant 0 : index
    %134 = vector.load %arg5[%c0_69, %c7, %c0_70, %c0_71] : memref<1x16x8x4xbf16, #tpu.memory_space<vmem>>, vector<1x1x8x4xbf16>
    %135 = vector.shape_cast %134 : vector<1x1x8x4xbf16> to vector<8x4xbf16>
    %136 = vector.shape_cast %133 : vector<8x4xbf16> to vector<1x1x8x4xbf16>
    tpu.vector_store %arg5[%c0_69, %c7, %c0_70, %c0_71], %136 {strides = array<i32>} : memref<1x16x8x4xbf16, #tpu.memory_space<vmem>>, vector<1x1x8x4xbf16>,
    %137 = vector.extract_strided_slice %47 {offsets = [128, 0], sizes = [8, 4], strides = [1, 1]} : vector<256x4xf32> to vector<8x4xf32>
    %138 = vector.extract_strided_slice %47 {offsets = [136, 0], sizes = [8, 4], strides = [1, 1]} : vector<256x4xf32> to vector<8x4xf32>
    %139 = arith.maximumf %137, %138 : vector<8x4xf32>
    %140 = vector.broadcast %48 : vector<1x4xf32> to vector<8x4xf32>
    %141 = arith.addf %139, %140 : vector<8x4xf32>
    %cst_72 = arith.constant 0.000000e+00 : f32
    %142 = vector.broadcast %cst_72 : f32 to vector<8x4xf32>
    %143 = arith.maximumf %141, %142 : vector<8x4xf32>
    %144 = arith.truncf %143 : vector<8x4xf32> to vector<8x4xbf16>
    %c0_73 = arith.constant 0 : index
    %c8 = arith.constant 8 : index
    %c0_74 = arith.constant 0 : index
    %c0_75 = arith.constant 0 : index
    %145 = vector.load %arg5[%c0_73, %c8, %c0_74, %c0_75] : memref<1x16x8x4xbf16, #tpu.memory_space<vmem>>, vector<1x1x8x4xbf16>
    %146 = vector.shape_cast %145 : vector<1x1x8x4xbf16> to vector<8x4xbf16>
    %147 = vector.shape_cast %144 : vector<8x4xbf16> to vector<1x1x8x4xbf16>
    tpu.vector_store %arg5[%c0_73, %c8, %c0_74, %c0_75], %147 {strides = array<i32>} : memref<1x16x8x4xbf16, #tpu.memory_space<vmem>>, vector<1x1x8x4xbf16>,
    %148 = vector.extract_strided_slice %47 {offsets = [144, 0], sizes = [8, 4], strides = [1, 1]} : vector<256x4xf32> to vector<8x4xf32>
    %149 = vector.extract_strided_slice %47 {offsets = [152, 0], sizes = [8, 4], strides = [1, 1]} : vector<256x4xf32> to vector<8x4xf32>
    %150 = arith.maximumf %148, %149 : vector<8x4xf32>
    %151 = vector.broadcast %48 : vector<1x4xf32> to vector<8x4xf32>
    %152 = arith.addf %150, %151 : vector<8x4xf32>
    %cst_76 = arith.constant 0.000000e+00 : f32
    %153 = vector.broadcast %cst_76 : f32 to vector<8x4xf32>
    %154 = arith.maximumf %152, %153 : vector<8x4xf32>
    %155 = arith.truncf %154 : vector<8x4xf32> to vector<8x4xbf16>
    %c0_77 = arith.constant 0 : index
    %c9 = arith.constant 9 : index
    %c0_78 = arith.constant 0 : index
    %c0_79 = arith.constant 0 : index
    %156 = vector.load %arg5[%c0_77, %c9, %c0_78, %c0_79] : memref<1x16x8x4xbf16, #tpu.memory_space<vmem>>, vector<1x1x8x4xbf16>
    %157 = vector.shape_cast %156 : vector<1x1x8x4xbf16> to vector<8x4xbf16>
    %158 = vector.shape_cast %155 : vector<8x4xbf16> to vector<1x1x8x4xbf16>
    tpu.vector_store %arg5[%c0_77, %c9, %c0_78, %c0_79], %158 {strides = array<i32>} : memref<1x16x8x4xbf16, #tpu.memory_space<vmem>>, vector<1x1x8x4xbf16>,
    %159 = vector.extract_strided_slice %47 {offsets = [160, 0], sizes = [8, 4], strides = [1, 1]} : vector<256x4xf32> to vector<8x4xf32>
    %160 = vector.extract_strided_slice %47 {offsets = [168, 0], sizes = [8, 4], strides = [1, 1]} : vector<256x4xf32> to vector<8x4xf32>
    %161 = arith.maximumf %159, %160 : vector<8x4xf32>
    %162 = vector.broadcast %48 : vector<1x4xf32> to vector<8x4xf32>
    %163 = arith.addf %161, %162 : vector<8x4xf32>
    %cst_80 = arith.constant 0.000000e+00 : f32
    %164 = vector.broadcast %cst_80 : f32 to vector<8x4xf32>
    %165 = arith.maximumf %163, %164 : vector<8x4xf32>
    %166 = arith.truncf %165 : vector<8x4xf32> to vector<8x4xbf16>
    %c0_81 = arith.constant 0 : index
    %c10 = arith.constant 10 : index
    %c0_82 = arith.constant 0 : index
    %c0_83 = arith.constant 0 : index
    %167 = vector.load %arg5[%c0_81, %c10, %c0_82, %c0_83] : memref<1x16x8x4xbf16, #tpu.memory_space<vmem>>, vector<1x1x8x4xbf16>
    %168 = vector.shape_cast %167 : vector<1x1x8x4xbf16> to vector<8x4xbf16>
    %169 = vector.shape_cast %166 : vector<8x4xbf16> to vector<1x1x8x4xbf16>
    tpu.vector_store %arg5[%c0_81, %c10, %c0_82, %c0_83], %169 {strides = array<i32>} : memref<1x16x8x4xbf16, #tpu.memory_space<vmem>>, vector<1x1x8x4xbf16>,
    %170 = vector.extract_strided_slice %47 {offsets = [176, 0], sizes = [8, 4], strides = [1, 1]} : vector<256x4xf32> to vector<8x4xf32>
    %171 = vector.extract_strided_slice %47 {offsets = [184, 0], sizes = [8, 4], strides = [1, 1]} : vector<256x4xf32> to vector<8x4xf32>
    %172 = arith.maximumf %170, %171 : vector<8x4xf32>
    %173 = vector.broadcast %48 : vector<1x4xf32> to vector<8x4xf32>
    %174 = arith.addf %172, %173 : vector<8x4xf32>
    %cst_84 = arith.constant 0.000000e+00 : f32
    %175 = vector.broadcast %cst_84 : f32 to vector<8x4xf32>
    %176 = arith.maximumf %174, %175 : vector<8x4xf32>
    %177 = arith.truncf %176 : vector<8x4xf32> to vector<8x4xbf16>
    %c0_85 = arith.constant 0 : index
    %c11 = arith.constant 11 : index
    %c0_86 = arith.constant 0 : index
    %c0_87 = arith.constant 0 : index
    %178 = vector.load %arg5[%c0_85, %c11, %c0_86, %c0_87] : memref<1x16x8x4xbf16, #tpu.memory_space<vmem>>, vector<1x1x8x4xbf16>
    %179 = vector.shape_cast %178 : vector<1x1x8x4xbf16> to vector<8x4xbf16>
    %180 = vector.shape_cast %177 : vector<8x4xbf16> to vector<1x1x8x4xbf16>
    tpu.vector_store %arg5[%c0_85, %c11, %c0_86, %c0_87], %180 {strides = array<i32>} : memref<1x16x8x4xbf16, #tpu.memory_space<vmem>>, vector<1x1x8x4xbf16>,
    %181 = vector.extract_strided_slice %47 {offsets = [192, 0], sizes = [8, 4], strides = [1, 1]} : vector<256x4xf32> to vector<8x4xf32>
    %182 = vector.extract_strided_slice %47 {offsets = [200, 0], sizes = [8, 4], strides = [1, 1]} : vector<256x4xf32> to vector<8x4xf32>
    %183 = arith.maximumf %181, %182 : vector<8x4xf32>
    %184 = vector.broadcast %48 : vector<1x4xf32> to vector<8x4xf32>
    %185 = arith.addf %183, %184 : vector<8x4xf32>
    %cst_88 = arith.constant 0.000000e+00 : f32
    %186 = vector.broadcast %cst_88 : f32 to vector<8x4xf32>
    %187 = arith.maximumf %185, %186 : vector<8x4xf32>
    %188 = arith.truncf %187 : vector<8x4xf32> to vector<8x4xbf16>
    %c0_89 = arith.constant 0 : index
    %c12 = arith.constant 12 : index
    %c0_90 = arith.constant 0 : index
    %c0_91 = arith.constant 0 : index
    %189 = vector.load %arg5[%c0_89, %c12, %c0_90, %c0_91] : memref<1x16x8x4xbf16, #tpu.memory_space<vmem>>, vector<1x1x8x4xbf16>
    %190 = vector.shape_cast %189 : vector<1x1x8x4xbf16> to vector<8x4xbf16>
    %191 = vector.shape_cast %188 : vector<8x4xbf16> to vector<1x1x8x4xbf16>
    tpu.vector_store %arg5[%c0_89, %c12, %c0_90, %c0_91], %191 {strides = array<i32>} : memref<1x16x8x4xbf16, #tpu.memory_space<vmem>>, vector<1x1x8x4xbf16>,
    %192 = vector.extract_strided_slice %47 {offsets = [208, 0], sizes = [8, 4], strides = [1, 1]} : vector<256x4xf32> to vector<8x4xf32>
    %193 = vector.extract_strided_slice %47 {offsets = [216, 0], sizes = [8, 4], strides = [1, 1]} : vector<256x4xf32> to vector<8x4xf32>
    %194 = arith.maximumf %192, %193 : vector<8x4xf32>
    %195 = vector.broadcast %48 : vector<1x4xf32> to vector<8x4xf32>
    %196 = arith.addf %194, %195 : vector<8x4xf32>
    %cst_92 = arith.constant 0.000000e+00 : f32
    %197 = vector.broadcast %cst_92 : f32 to vector<8x4xf32>
    %198 = arith.maximumf %196, %197 : vector<8x4xf32>
    %199 = arith.truncf %198 : vector<8x4xf32> to vector<8x4xbf16>
    %c0_93 = arith.constant 0 : index
    %c13 = arith.constant 13 : index
    %c0_94 = arith.constant 0 : index
    %c0_95 = arith.constant 0 : index
    %200 = vector.load %arg5[%c0_93, %c13, %c0_94, %c0_95] : memref<1x16x8x4xbf16, #tpu.memory_space<vmem>>, vector<1x1x8x4xbf16>
    %201 = vector.shape_cast %200 : vector<1x1x8x4xbf16> to vector<8x4xbf16>
    %202 = vector.shape_cast %199 : vector<8x4xbf16> to vector<1x1x8x4xbf16>
    tpu.vector_store %arg5[%c0_93, %c13, %c0_94, %c0_95], %202 {strides = array<i32>} : memref<1x16x8x4xbf16, #tpu.memory_space<vmem>>, vector<1x1x8x4xbf16>,
    %203 = vector.extract_strided_slice %47 {offsets = [224, 0], sizes = [8, 4], strides = [1, 1]} : vector<256x4xf32> to vector<8x4xf32>
    %204 = vector.extract_strided_slice %47 {offsets = [232, 0], sizes = [8, 4], strides = [1, 1]} : vector<256x4xf32> to vector<8x4xf32>
    %205 = arith.maximumf %203, %204 : vector<8x4xf32>
    %206 = vector.broadcast %48 : vector<1x4xf32> to vector<8x4xf32>
    %207 = arith.addf %205, %206 : vector<8x4xf32>
    %cst_96 = arith.constant 0.000000e+00 : f32
    %208 = vector.broadcast %cst_96 : f32 to vector<8x4xf32>
    %209 = arith.maximumf %207, %208 : vector<8x4xf32>
    %210 = arith.truncf %209 : vector<8x4xf32> to vector<8x4xbf16>
    %c0_97 = arith.constant 0 : index
    %c14 = arith.constant 14 : index
    %c0_98 = arith.constant 0 : index
    %c0_99 = arith.constant 0 : index
    %211 = vector.load %arg5[%c0_97, %c14, %c0_98, %c0_99] : memref<1x16x8x4xbf16, #tpu.memory_space<vmem>>, vector<1x1x8x4xbf16>
    %212 = vector.shape_cast %211 : vector<1x1x8x4xbf16> to vector<8x4xbf16>
    %213 = vector.shape_cast %210 : vector<8x4xbf16> to vector<1x1x8x4xbf16>
    tpu.vector_store %arg5[%c0_97, %c14, %c0_98, %c0_99], %213 {strides = array<i32>} : memref<1x16x8x4xbf16, #tpu.memory_space<vmem>>, vector<1x1x8x4xbf16>,
    %214 = vector.extract_strided_slice %47 {offsets = [240, 0], sizes = [8, 4], strides = [1, 1]} : vector<256x4xf32> to vector<8x4xf32>
    %215 = vector.extract_strided_slice %47 {offsets = [248, 0], sizes = [8, 4], strides = [1, 1]} : vector<256x4xf32> to vector<8x4xf32>
    %216 = arith.maximumf %214, %215 : vector<8x4xf32>
    %217 = vector.broadcast %48 : vector<1x4xf32> to vector<8x4xf32>
    %218 = arith.addf %216, %217 : vector<8x4xf32>
    %cst_100 = arith.constant 0.000000e+00 : f32
    %219 = vector.broadcast %cst_100 : f32 to vector<8x4xf32>
    %220 = arith.maximumf %218, %219 : vector<8x4xf32>
    %221 = arith.truncf %220 : vector<8x4xf32> to vector<8x4xbf16>
    %c0_101 = arith.constant 0 : index
    %c15 = arith.constant 15 : index
    %c0_102 = arith.constant 0 : index
    %c0_103 = arith.constant 0 : index
    %222 = vector.load %arg5[%c0_101, %c15, %c0_102, %c0_103] : memref<1x16x8x4xbf16, #tpu.memory_space<vmem>>, vector<1x1x8x4xbf16>
    %223 = vector.shape_cast %222 : vector<1x1x8x4xbf16> to vector<8x4xbf16>
    %224 = vector.shape_cast %221 : vector<8x4xbf16> to vector<1x1x8x4xbf16>
    tpu.vector_store %arg5[%c0_101, %c15, %c0_102, %c0_103], %224 {strides = array<i32>} : memref<1x16x8x4xbf16, #tpu.memory_space<vmem>>, vector<1x1x8x4xbf16>,
    return
  }
  func.func @transform_0(%arg0: i32, %arg1: i32) -> (i32, i32, i32, i32) {
    %c0_i32 = arith.constant 0 : i32
    %c0_i32_0 = arith.constant 0 : i32
    %c0_i32_1 = arith.constant 0 : i32
    %c0_i32_2 = arith.constant 0 : i32
    return %arg0, %c0_i32, %c0_i32_0, %c0_i32_1 : i32, i32, i32, i32
  }
  func.func @transform_1(%arg0: i32, %arg1: i32) -> (i32, i32, i32, i32) {
    %c0_i32 = arith.constant 0 : i32
    %c0_i32_0 = arith.constant 0 : i32
    %c0_i32_1 = arith.constant 0 : i32
    %c0_i32_2 = arith.constant 0 : i32
    %c0_i32_3 = arith.constant 0 : i32
    return %c0_i32, %c0_i32_0, %c0_i32_1, %c0_i32_2 : i32, i32, i32, i32
  }
  func.func @transform_2(%arg0: i32, %arg1: i32) -> (i32, i32) {
    %c0_i32 = arith.constant 0 : i32
    %c0_i32_0 = arith.constant 0 : i32
    %c0_i32_1 = arith.constant 0 : i32
    return %c0_i32, %c0_i32_0 : i32, i32
  }
  func.func @transform_3(%arg0: i32, %arg1: i32) -> (i32, i32, i32, i32) {
    %c0_i32 = arith.constant 0 : i32
    %c0_i32_0 = arith.constant 0 : i32
    %c0_i32_1 = arith.constant 0 : i32
    return %arg0, %arg1, %c0_i32, %c0_i32_0 : i32, i32, i32, i32
  }
}

module attributes {stable_mosaic.version = 11 : i64} {
  func.func @_conv_kernel(%arg0: i32, %arg1: i32, %arg2: memref<1x18x5x8xbf16, #tpu.memory_space<vmem>>, %arg3: memref<3x2x16x8xbf16, #tpu.memory_space<vmem>>, %arg4: memref<1x8xf32, #tpu.memory_space<vmem>>, %arg5: memref<1x8x4x8xbf16, #tpu.memory_space<vmem>>) attributes {dimension_semantics = [#tpu.dimension_semantics<parallel>, #tpu.dimension_semantics<parallel>], iteration_bounds = array<i64: 2, 1>, scalar_prefetch = 0 : i64, scratch_operands = 0 : i64, tpu.core_type = #tpu.core_type<tc>, window_params = [{transform_indices = @transform_0, window_bounds = array<i64: 1, 18, 5, 8>}, {pipeline_mode = #tpu.pipeline_mode<synchronous>, transform_indices = @transform_1, window_bounds = array<i64: 3, 2, 16, 8>}, {pipeline_mode = #tpu.pipeline_mode<synchronous>, transform_indices = @transform_2, window_bounds = array<i64: 1, 8>}, {transform_indices = @transform_3, window_bounds = array<i64: 1, 8, 4, 8>}]} {
    %c16_i32 = arith.constant 16 : i32
    %0 = arith.muli %arg1, %c16_i32 : i32
    %c0_i32 = arith.constant 0 : i32
    %1 = arith.addi %0, %c0_i32 : i32
    %c0 = arith.constant 0 : index
    %2 = arith.index_cast %1 : i32 to index
    %c0_0 = arith.constant 0 : index
    %c0_1 = arith.constant 0 : index
    %3 = vector.load %arg2[%c0, %2, %c0_0, %c0_1] : memref<1x18x5x8xbf16, #tpu.memory_space<vmem>>, vector<1x16x5x8xbf16>
    %4 = vector.shape_cast %3 : vector<1x16x5x8xbf16> to vector<16x5x8xbf16>
    %5 = vector.extract_strided_slice %4 {offsets = [0, 0, 0], sizes = [16, 4, 8], strides = [1, 1, 1]} : vector<16x5x8xbf16> to vector<16x4x8xbf16>
    %6 = vector.extract_strided_slice %4 {offsets = [0, 1, 0], sizes = [16, 4, 8], strides = [1, 1, 1]} : vector<16x5x8xbf16> to vector<16x4x8xbf16>
    %7 = tpu.concatenate %5, %6 in 2 : vector<16x4x8xbf16>, vector<16x4x8xbf16> -> vector<16x4x16xbf16>
    %8 = vector.shape_cast %7 : vector<16x4x16xbf16> to vector<64x16xbf16>
    %c0_2 = arith.constant 0 : index
    %c0_3 = arith.constant 0 : index
    %c0_4 = arith.constant 0 : index
    %c0_5 = arith.constant 0 : index
    %9 = vector.load %arg3[%c0_2, %c0_3, %c0_4, %c0_5] : memref<3x2x16x8xbf16, #tpu.memory_space<vmem>>, vector<1x1x16x8xbf16>
    %10 = vector.shape_cast %9 : vector<1x1x16x8xbf16> to vector<16x8xbf16>
    %cst = arith.constant dense<0.000000e+00> : vector<64x8xf32>
    %11 = tpu.matmul %8, %10, %cst {dimension_numbers = #tpu.dot_dimension_numbers<[1], [0], [0], [1], [0, 0, 1, 1], [], []>} : vector<64x16xbf16>, vector<16x8xbf16>, vector<64x8xf32> -> vector<64x8xf32>
    %c0_6 = arith.constant 0 : index
    %c1 = arith.constant 1 : index
    %c0_7 = arith.constant 0 : index
    %c0_8 = arith.constant 0 : index
    %12 = vector.load %arg3[%c0_6, %c1, %c0_7, %c0_8] : memref<3x2x16x8xbf16, #tpu.memory_space<vmem>>, vector<1x1x16x8xbf16>
    %13 = vector.shape_cast %12 : vector<1x1x16x8xbf16> to vector<16x8xbf16>
    %cst_9 = arith.constant dense<0.000000e+00> : vector<64x8xf32>
    %14 = tpu.matmul %8, %13, %cst_9 {dimension_numbers = #tpu.dot_dimension_numbers<[1], [0], [0], [1], [0, 0, 1, 1], [], []>} : vector<64x16xbf16>, vector<16x8xbf16>, vector<64x8xf32> -> vector<64x8xf32>
    %c1_i32 = arith.constant 1 : i32
    %15 = arith.addi %0, %c1_i32 : i32
    %c0_10 = arith.constant 0 : index
    %16 = arith.index_cast %15 : i32 to index
    %c0_11 = arith.constant 0 : index
    %c0_12 = arith.constant 0 : index
    %17 = vector.load %arg2[%c0_10, %16, %c0_11, %c0_12] : memref<1x18x5x8xbf16, #tpu.memory_space<vmem>>, vector<1x16x5x8xbf16>
    %18 = vector.shape_cast %17 : vector<1x16x5x8xbf16> to vector<16x5x8xbf16>
    %19 = vector.extract_strided_slice %18 {offsets = [0, 0, 0], sizes = [16, 4, 8], strides = [1, 1, 1]} : vector<16x5x8xbf16> to vector<16x4x8xbf16>
    %20 = vector.extract_strided_slice %18 {offsets = [0, 1, 0], sizes = [16, 4, 8], strides = [1, 1, 1]} : vector<16x5x8xbf16> to vector<16x4x8xbf16>
    %21 = tpu.concatenate %19, %20 in 2 : vector<16x4x8xbf16>, vector<16x4x8xbf16> -> vector<16x4x16xbf16>
    %22 = vector.shape_cast %21 : vector<16x4x16xbf16> to vector<64x16xbf16>
    %c1_13 = arith.constant 1 : index
    %c0_14 = arith.constant 0 : index
    %c0_15 = arith.constant 0 : index
    %c0_16 = arith.constant 0 : index
    %23 = vector.load %arg3[%c1_13, %c0_14, %c0_15, %c0_16] : memref<3x2x16x8xbf16, #tpu.memory_space<vmem>>, vector<1x1x16x8xbf16>
    %24 = vector.shape_cast %23 : vector<1x1x16x8xbf16> to vector<16x8xbf16>
    %cst_17 = arith.constant dense<0.000000e+00> : vector<64x8xf32>
    %25 = tpu.matmul %22, %24, %cst_17 {dimension_numbers = #tpu.dot_dimension_numbers<[1], [0], [0], [1], [0, 0, 1, 1], [], []>} : vector<64x16xbf16>, vector<16x8xbf16>, vector<64x8xf32> -> vector<64x8xf32>
    %26 = arith.addf %11, %25 : vector<64x8xf32>
    %c1_18 = arith.constant 1 : index
    %c1_19 = arith.constant 1 : index
    %c0_20 = arith.constant 0 : index
    %c0_21 = arith.constant 0 : index
    %27 = vector.load %arg3[%c1_18, %c1_19, %c0_20, %c0_21] : memref<3x2x16x8xbf16, #tpu.memory_space<vmem>>, vector<1x1x16x8xbf16>
    %28 = vector.shape_cast %27 : vector<1x1x16x8xbf16> to vector<16x8xbf16>
    %cst_22 = arith.constant dense<0.000000e+00> : vector<64x8xf32>
    %29 = tpu.matmul %22, %28, %cst_22 {dimension_numbers = #tpu.dot_dimension_numbers<[1], [0], [0], [1], [0, 0, 1, 1], [], []>} : vector<64x16xbf16>, vector<16x8xbf16>, vector<64x8xf32> -> vector<64x8xf32>
    %30 = arith.addf %14, %29 : vector<64x8xf32>
    %c2_i32 = arith.constant 2 : i32
    %31 = arith.addi %0, %c2_i32 : i32
    %c0_23 = arith.constant 0 : index
    %32 = arith.index_cast %31 : i32 to index
    %c0_24 = arith.constant 0 : index
    %c0_25 = arith.constant 0 : index
    %33 = vector.load %arg2[%c0_23, %32, %c0_24, %c0_25] : memref<1x18x5x8xbf16, #tpu.memory_space<vmem>>, vector<1x16x5x8xbf16>
    %34 = vector.shape_cast %33 : vector<1x16x5x8xbf16> to vector<16x5x8xbf16>
    %35 = vector.extract_strided_slice %34 {offsets = [0, 0, 0], sizes = [16, 4, 8], strides = [1, 1, 1]} : vector<16x5x8xbf16> to vector<16x4x8xbf16>
    %36 = vector.extract_strided_slice %34 {offsets = [0, 1, 0], sizes = [16, 4, 8], strides = [1, 1, 1]} : vector<16x5x8xbf16> to vector<16x4x8xbf16>
    %37 = tpu.concatenate %35, %36 in 2 : vector<16x4x8xbf16>, vector<16x4x8xbf16> -> vector<16x4x16xbf16>
    %38 = vector.shape_cast %37 : vector<16x4x16xbf16> to vector<64x16xbf16>
    %c2 = arith.constant 2 : index
    %c0_26 = arith.constant 0 : index
    %c0_27 = arith.constant 0 : index
    %c0_28 = arith.constant 0 : index
    %39 = vector.load %arg3[%c2, %c0_26, %c0_27, %c0_28] : memref<3x2x16x8xbf16, #tpu.memory_space<vmem>>, vector<1x1x16x8xbf16>
    %40 = vector.shape_cast %39 : vector<1x1x16x8xbf16> to vector<16x8xbf16>
    %cst_29 = arith.constant dense<0.000000e+00> : vector<64x8xf32>
    %41 = tpu.matmul %38, %40, %cst_29 {dimension_numbers = #tpu.dot_dimension_numbers<[1], [0], [0], [1], [0, 0, 1, 1], [], []>} : vector<64x16xbf16>, vector<16x8xbf16>, vector<64x8xf32> -> vector<64x8xf32>
    %42 = arith.addf %26, %41 : vector<64x8xf32>
    %c2_30 = arith.constant 2 : index
    %c1_31 = arith.constant 1 : index
    %c0_32 = arith.constant 0 : index
    %c0_33 = arith.constant 0 : index
    %43 = vector.load %arg3[%c2_30, %c1_31, %c0_32, %c0_33] : memref<3x2x16x8xbf16, #tpu.memory_space<vmem>>, vector<1x1x16x8xbf16>
    %44 = vector.shape_cast %43 : vector<1x1x16x8xbf16> to vector<16x8xbf16>
    %cst_34 = arith.constant dense<0.000000e+00> : vector<64x8xf32>
    %45 = tpu.matmul %38, %44, %cst_34 {dimension_numbers = #tpu.dot_dimension_numbers<[1], [0], [0], [1], [0, 0, 1, 1], [], []>} : vector<64x16xbf16>, vector<16x8xbf16>, vector<64x8xf32> -> vector<64x8xf32>
    %46 = arith.addf %30, %45 : vector<64x8xf32>
    %47 = arith.maximumf %42, %46 : vector<64x8xf32>
    %c0_35 = arith.constant 0 : index
    %c0_36 = arith.constant 0 : index
    %48 = vector.load %arg4[%c0_35, %c0_36] : memref<1x8xf32, #tpu.memory_space<vmem>>, vector<1x8xf32>
    %49 = vector.extract_strided_slice %47 {offsets = [0, 0], sizes = [4, 8], strides = [1, 1]} : vector<64x8xf32> to vector<4x8xf32>
    %50 = vector.extract_strided_slice %47 {offsets = [4, 0], sizes = [4, 8], strides = [1, 1]} : vector<64x8xf32> to vector<4x8xf32>
    %51 = arith.maximumf %49, %50 : vector<4x8xf32>
    %52 = vector.broadcast %48 : vector<1x8xf32> to vector<4x8xf32>
    %53 = arith.addf %51, %52 : vector<4x8xf32>
    %cst_37 = arith.constant 0.000000e+00 : f32
    %54 = vector.broadcast %cst_37 : f32 to vector<4x8xf32>
    %55 = arith.maximumf %53, %54 : vector<4x8xf32>
    %56 = arith.truncf %55 : vector<4x8xf32> to vector<4x8xbf16>
    %c0_38 = arith.constant 0 : index
    %c0_39 = arith.constant 0 : index
    %c0_40 = arith.constant 0 : index
    %c0_41 = arith.constant 0 : index
    %57 = vector.load %arg5[%c0_38, %c0_39, %c0_40, %c0_41] : memref<1x8x4x8xbf16, #tpu.memory_space<vmem>>, vector<1x1x4x8xbf16>
    %58 = vector.shape_cast %57 : vector<1x1x4x8xbf16> to vector<4x8xbf16>
    %59 = vector.shape_cast %56 : vector<4x8xbf16> to vector<1x1x4x8xbf16>
    tpu.vector_store %arg5[%c0_38, %c0_39, %c0_40, %c0_41], %59 {strides = array<i32>} : memref<1x8x4x8xbf16, #tpu.memory_space<vmem>>, vector<1x1x4x8xbf16>,
    %60 = vector.extract_strided_slice %47 {offsets = [8, 0], sizes = [4, 8], strides = [1, 1]} : vector<64x8xf32> to vector<4x8xf32>
    %61 = vector.extract_strided_slice %47 {offsets = [12, 0], sizes = [4, 8], strides = [1, 1]} : vector<64x8xf32> to vector<4x8xf32>
    %62 = arith.maximumf %60, %61 : vector<4x8xf32>
    %63 = vector.broadcast %48 : vector<1x8xf32> to vector<4x8xf32>
    %64 = arith.addf %62, %63 : vector<4x8xf32>
    %cst_42 = arith.constant 0.000000e+00 : f32
    %65 = vector.broadcast %cst_42 : f32 to vector<4x8xf32>
    %66 = arith.maximumf %64, %65 : vector<4x8xf32>
    %67 = arith.truncf %66 : vector<4x8xf32> to vector<4x8xbf16>
    %c0_43 = arith.constant 0 : index
    %c1_44 = arith.constant 1 : index
    %c0_45 = arith.constant 0 : index
    %c0_46 = arith.constant 0 : index
    %68 = vector.load %arg5[%c0_43, %c1_44, %c0_45, %c0_46] : memref<1x8x4x8xbf16, #tpu.memory_space<vmem>>, vector<1x1x4x8xbf16>
    %69 = vector.shape_cast %68 : vector<1x1x4x8xbf16> to vector<4x8xbf16>
    %70 = vector.shape_cast %67 : vector<4x8xbf16> to vector<1x1x4x8xbf16>
    tpu.vector_store %arg5[%c0_43, %c1_44, %c0_45, %c0_46], %70 {strides = array<i32>} : memref<1x8x4x8xbf16, #tpu.memory_space<vmem>>, vector<1x1x4x8xbf16>,
    %71 = vector.extract_strided_slice %47 {offsets = [16, 0], sizes = [4, 8], strides = [1, 1]} : vector<64x8xf32> to vector<4x8xf32>
    %72 = vector.extract_strided_slice %47 {offsets = [20, 0], sizes = [4, 8], strides = [1, 1]} : vector<64x8xf32> to vector<4x8xf32>
    %73 = arith.maximumf %71, %72 : vector<4x8xf32>
    %74 = vector.broadcast %48 : vector<1x8xf32> to vector<4x8xf32>
    %75 = arith.addf %73, %74 : vector<4x8xf32>
    %cst_47 = arith.constant 0.000000e+00 : f32
    %76 = vector.broadcast %cst_47 : f32 to vector<4x8xf32>
    %77 = arith.maximumf %75, %76 : vector<4x8xf32>
    %78 = arith.truncf %77 : vector<4x8xf32> to vector<4x8xbf16>
    %c0_48 = arith.constant 0 : index
    %c2_49 = arith.constant 2 : index
    %c0_50 = arith.constant 0 : index
    %c0_51 = arith.constant 0 : index
    %79 = vector.load %arg5[%c0_48, %c2_49, %c0_50, %c0_51] : memref<1x8x4x8xbf16, #tpu.memory_space<vmem>>, vector<1x1x4x8xbf16>
    %80 = vector.shape_cast %79 : vector<1x1x4x8xbf16> to vector<4x8xbf16>
    %81 = vector.shape_cast %78 : vector<4x8xbf16> to vector<1x1x4x8xbf16>
    tpu.vector_store %arg5[%c0_48, %c2_49, %c0_50, %c0_51], %81 {strides = array<i32>} : memref<1x8x4x8xbf16, #tpu.memory_space<vmem>>, vector<1x1x4x8xbf16>,
    %82 = vector.extract_strided_slice %47 {offsets = [24, 0], sizes = [4, 8], strides = [1, 1]} : vector<64x8xf32> to vector<4x8xf32>
    %83 = vector.extract_strided_slice %47 {offsets = [28, 0], sizes = [4, 8], strides = [1, 1]} : vector<64x8xf32> to vector<4x8xf32>
    %84 = arith.maximumf %82, %83 : vector<4x8xf32>
    %85 = vector.broadcast %48 : vector<1x8xf32> to vector<4x8xf32>
    %86 = arith.addf %84, %85 : vector<4x8xf32>
    %cst_52 = arith.constant 0.000000e+00 : f32
    %87 = vector.broadcast %cst_52 : f32 to vector<4x8xf32>
    %88 = arith.maximumf %86, %87 : vector<4x8xf32>
    %89 = arith.truncf %88 : vector<4x8xf32> to vector<4x8xbf16>
    %c0_53 = arith.constant 0 : index
    %c3 = arith.constant 3 : index
    %c0_54 = arith.constant 0 : index
    %c0_55 = arith.constant 0 : index
    %90 = vector.load %arg5[%c0_53, %c3, %c0_54, %c0_55] : memref<1x8x4x8xbf16, #tpu.memory_space<vmem>>, vector<1x1x4x8xbf16>
    %91 = vector.shape_cast %90 : vector<1x1x4x8xbf16> to vector<4x8xbf16>
    %92 = vector.shape_cast %89 : vector<4x8xbf16> to vector<1x1x4x8xbf16>
    tpu.vector_store %arg5[%c0_53, %c3, %c0_54, %c0_55], %92 {strides = array<i32>} : memref<1x8x4x8xbf16, #tpu.memory_space<vmem>>, vector<1x1x4x8xbf16>,
    %93 = vector.extract_strided_slice %47 {offsets = [32, 0], sizes = [4, 8], strides = [1, 1]} : vector<64x8xf32> to vector<4x8xf32>
    %94 = vector.extract_strided_slice %47 {offsets = [36, 0], sizes = [4, 8], strides = [1, 1]} : vector<64x8xf32> to vector<4x8xf32>
    %95 = arith.maximumf %93, %94 : vector<4x8xf32>
    %96 = vector.broadcast %48 : vector<1x8xf32> to vector<4x8xf32>
    %97 = arith.addf %95, %96 : vector<4x8xf32>
    %cst_56 = arith.constant 0.000000e+00 : f32
    %98 = vector.broadcast %cst_56 : f32 to vector<4x8xf32>
    %99 = arith.maximumf %97, %98 : vector<4x8xf32>
    %100 = arith.truncf %99 : vector<4x8xf32> to vector<4x8xbf16>
    %c0_57 = arith.constant 0 : index
    %c4 = arith.constant 4 : index
    %c0_58 = arith.constant 0 : index
    %c0_59 = arith.constant 0 : index
    %101 = vector.load %arg5[%c0_57, %c4, %c0_58, %c0_59] : memref<1x8x4x8xbf16, #tpu.memory_space<vmem>>, vector<1x1x4x8xbf16>
    %102 = vector.shape_cast %101 : vector<1x1x4x8xbf16> to vector<4x8xbf16>
    %103 = vector.shape_cast %100 : vector<4x8xbf16> to vector<1x1x4x8xbf16>
    tpu.vector_store %arg5[%c0_57, %c4, %c0_58, %c0_59], %103 {strides = array<i32>} : memref<1x8x4x8xbf16, #tpu.memory_space<vmem>>, vector<1x1x4x8xbf16>,
    %104 = vector.extract_strided_slice %47 {offsets = [40, 0], sizes = [4, 8], strides = [1, 1]} : vector<64x8xf32> to vector<4x8xf32>
    %105 = vector.extract_strided_slice %47 {offsets = [44, 0], sizes = [4, 8], strides = [1, 1]} : vector<64x8xf32> to vector<4x8xf32>
    %106 = arith.maximumf %104, %105 : vector<4x8xf32>
    %107 = vector.broadcast %48 : vector<1x8xf32> to vector<4x8xf32>
    %108 = arith.addf %106, %107 : vector<4x8xf32>
    %cst_60 = arith.constant 0.000000e+00 : f32
    %109 = vector.broadcast %cst_60 : f32 to vector<4x8xf32>
    %110 = arith.maximumf %108, %109 : vector<4x8xf32>
    %111 = arith.truncf %110 : vector<4x8xf32> to vector<4x8xbf16>
    %c0_61 = arith.constant 0 : index
    %c5 = arith.constant 5 : index
    %c0_62 = arith.constant 0 : index
    %c0_63 = arith.constant 0 : index
    %112 = vector.load %arg5[%c0_61, %c5, %c0_62, %c0_63] : memref<1x8x4x8xbf16, #tpu.memory_space<vmem>>, vector<1x1x4x8xbf16>
    %113 = vector.shape_cast %112 : vector<1x1x4x8xbf16> to vector<4x8xbf16>
    %114 = vector.shape_cast %111 : vector<4x8xbf16> to vector<1x1x4x8xbf16>
    tpu.vector_store %arg5[%c0_61, %c5, %c0_62, %c0_63], %114 {strides = array<i32>} : memref<1x8x4x8xbf16, #tpu.memory_space<vmem>>, vector<1x1x4x8xbf16>,
    %115 = vector.extract_strided_slice %47 {offsets = [48, 0], sizes = [4, 8], strides = [1, 1]} : vector<64x8xf32> to vector<4x8xf32>
    %116 = vector.extract_strided_slice %47 {offsets = [52, 0], sizes = [4, 8], strides = [1, 1]} : vector<64x8xf32> to vector<4x8xf32>
    %117 = arith.maximumf %115, %116 : vector<4x8xf32>
    %118 = vector.broadcast %48 : vector<1x8xf32> to vector<4x8xf32>
    %119 = arith.addf %117, %118 : vector<4x8xf32>
    %cst_64 = arith.constant 0.000000e+00 : f32
    %120 = vector.broadcast %cst_64 : f32 to vector<4x8xf32>
    %121 = arith.maximumf %119, %120 : vector<4x8xf32>
    %122 = arith.truncf %121 : vector<4x8xf32> to vector<4x8xbf16>
    %c0_65 = arith.constant 0 : index
    %c6 = arith.constant 6 : index
    %c0_66 = arith.constant 0 : index
    %c0_67 = arith.constant 0 : index
    %123 = vector.load %arg5[%c0_65, %c6, %c0_66, %c0_67] : memref<1x8x4x8xbf16, #tpu.memory_space<vmem>>, vector<1x1x4x8xbf16>
    %124 = vector.shape_cast %123 : vector<1x1x4x8xbf16> to vector<4x8xbf16>
    %125 = vector.shape_cast %122 : vector<4x8xbf16> to vector<1x1x4x8xbf16>
    tpu.vector_store %arg5[%c0_65, %c6, %c0_66, %c0_67], %125 {strides = array<i32>} : memref<1x8x4x8xbf16, #tpu.memory_space<vmem>>, vector<1x1x4x8xbf16>,
    %126 = vector.extract_strided_slice %47 {offsets = [56, 0], sizes = [4, 8], strides = [1, 1]} : vector<64x8xf32> to vector<4x8xf32>
    %127 = vector.extract_strided_slice %47 {offsets = [60, 0], sizes = [4, 8], strides = [1, 1]} : vector<64x8xf32> to vector<4x8xf32>
    %128 = arith.maximumf %126, %127 : vector<4x8xf32>
    %129 = vector.broadcast %48 : vector<1x8xf32> to vector<4x8xf32>
    %130 = arith.addf %128, %129 : vector<4x8xf32>
    %cst_68 = arith.constant 0.000000e+00 : f32
    %131 = vector.broadcast %cst_68 : f32 to vector<4x8xf32>
    %132 = arith.maximumf %130, %131 : vector<4x8xf32>
    %133 = arith.truncf %132 : vector<4x8xf32> to vector<4x8xbf16>
    %c0_69 = arith.constant 0 : index
    %c7 = arith.constant 7 : index
    %c0_70 = arith.constant 0 : index
    %c0_71 = arith.constant 0 : index
    %134 = vector.load %arg5[%c0_69, %c7, %c0_70, %c0_71] : memref<1x8x4x8xbf16, #tpu.memory_space<vmem>>, vector<1x1x4x8xbf16>
    %135 = vector.shape_cast %134 : vector<1x1x4x8xbf16> to vector<4x8xbf16>
    %136 = vector.shape_cast %133 : vector<4x8xbf16> to vector<1x1x4x8xbf16>
    tpu.vector_store %arg5[%c0_69, %c7, %c0_70, %c0_71], %136 {strides = array<i32>} : memref<1x8x4x8xbf16, #tpu.memory_space<vmem>>, vector<1x1x4x8xbf16>,
    return
  }
  func.func @transform_0(%arg0: i32, %arg1: i32) -> (i32, i32, i32, i32) {
    %c0_i32 = arith.constant 0 : i32
    %c0_i32_0 = arith.constant 0 : i32
    %c0_i32_1 = arith.constant 0 : i32
    %c0_i32_2 = arith.constant 0 : i32
    return %arg0, %c0_i32, %c0_i32_0, %c0_i32_1 : i32, i32, i32, i32
  }
  func.func @transform_1(%arg0: i32, %arg1: i32) -> (i32, i32, i32, i32) {
    %c0_i32 = arith.constant 0 : i32
    %c0_i32_0 = arith.constant 0 : i32
    %c0_i32_1 = arith.constant 0 : i32
    %c0_i32_2 = arith.constant 0 : i32
    %c0_i32_3 = arith.constant 0 : i32
    return %c0_i32, %c0_i32_0, %c0_i32_1, %c0_i32_2 : i32, i32, i32, i32
  }
  func.func @transform_2(%arg0: i32, %arg1: i32) -> (i32, i32) {
    %c0_i32 = arith.constant 0 : i32
    %c0_i32_0 = arith.constant 0 : i32
    %c0_i32_1 = arith.constant 0 : i32
    return %c0_i32, %c0_i32_0 : i32, i32
  }
  func.func @transform_3(%arg0: i32, %arg1: i32) -> (i32, i32, i32, i32) {
    %c0_i32 = arith.constant 0 : i32
    %c0_i32_0 = arith.constant 0 : i32
    %c0_i32_1 = arith.constant 0 : i32
    return %arg0, %arg1, %c0_i32, %c0_i32_0 : i32, i32, i32, i32
  }
}

module attributes {stable_mosaic.version = 11 : i64} {
  func.func @_conv_kernel(%arg0: i32, %arg1: i32, %arg2: memref<1x10x6x8xbf16, #tpu.memory_space<vmem>>, %arg3: memref<3x1x24x16xbf16, #tpu.memory_space<vmem>>, %arg4: memref<1x16xf32, #tpu.memory_space<vmem>>, %arg5: memref<1x8x4x16xbf16, #tpu.memory_space<vmem>>) attributes {dimension_semantics = [#tpu.dimension_semantics<parallel>, #tpu.dimension_semantics<parallel>], iteration_bounds = array<i64: 2, 1>, scalar_prefetch = 0 : i64, scratch_operands = 0 : i64, tpu.core_type = #tpu.core_type<tc>, window_params = [{transform_indices = @transform_0, window_bounds = array<i64: 1, 10, 6, 8>}, {pipeline_mode = #tpu.pipeline_mode<synchronous>, transform_indices = @transform_1, window_bounds = array<i64: 3, 1, 24, 16>}, {pipeline_mode = #tpu.pipeline_mode<synchronous>, transform_indices = @transform_2, window_bounds = array<i64: 1, 16>}, {transform_indices = @transform_3, window_bounds = array<i64: 1, 8, 4, 16>}]} {
    %c8_i32 = arith.constant 8 : i32
    %0 = arith.muli %arg1, %c8_i32 : i32
    %c0_i32 = arith.constant 0 : i32
    %1 = arith.addi %0, %c0_i32 : i32
    %c0 = arith.constant 0 : index
    %2 = arith.index_cast %1 : i32 to index
    %c0_0 = arith.constant 0 : index
    %c0_1 = arith.constant 0 : index
    %3 = vector.load %arg2[%c0, %2, %c0_0, %c0_1] : memref<1x10x6x8xbf16, #tpu.memory_space<vmem>>, vector<1x8x6x8xbf16>
    %4 = vector.shape_cast %3 : vector<1x8x6x8xbf16> to vector<8x6x8xbf16>
    %5 = vector.extract_strided_slice %4 {offsets = [0, 0, 0], sizes = [8, 4, 8], strides = [1, 1, 1]} : vector<8x6x8xbf16> to vector<8x4x8xbf16>
    %6 = vector.extract_strided_slice %4 {offsets = [0, 1, 0], sizes = [8, 4, 8], strides = [1, 1, 1]} : vector<8x6x8xbf16> to vector<8x4x8xbf16>
    %7 = vector.extract_strided_slice %4 {offsets = [0, 2, 0], sizes = [8, 4, 8], strides = [1, 1, 1]} : vector<8x6x8xbf16> to vector<8x4x8xbf16>
    %8 = tpu.concatenate %5, %6, %7 in 2 : vector<8x4x8xbf16>, vector<8x4x8xbf16>, vector<8x4x8xbf16> -> vector<8x4x24xbf16>
    %9 = vector.shape_cast %8 : vector<8x4x24xbf16> to vector<32x24xbf16>
    %c0_2 = arith.constant 0 : index
    %c0_3 = arith.constant 0 : index
    %c0_4 = arith.constant 0 : index
    %c0_5 = arith.constant 0 : index
    %10 = vector.load %arg3[%c0_2, %c0_3, %c0_4, %c0_5] : memref<3x1x24x16xbf16, #tpu.memory_space<vmem>>, vector<1x1x24x16xbf16>
    %11 = vector.shape_cast %10 : vector<1x1x24x16xbf16> to vector<24x16xbf16>
    %cst = arith.constant dense<0.000000e+00> : vector<32x16xf32>
    %12 = tpu.matmul %9, %11, %cst {dimension_numbers = #tpu.dot_dimension_numbers<[1], [0], [0], [1], [0, 0, 1, 1], [], []>} : vector<32x24xbf16>, vector<24x16xbf16>, vector<32x16xf32> -> vector<32x16xf32>
    %c1_i32 = arith.constant 1 : i32
    %13 = arith.addi %0, %c1_i32 : i32
    %c0_6 = arith.constant 0 : index
    %14 = arith.index_cast %13 : i32 to index
    %c0_7 = arith.constant 0 : index
    %c0_8 = arith.constant 0 : index
    %15 = vector.load %arg2[%c0_6, %14, %c0_7, %c0_8] : memref<1x10x6x8xbf16, #tpu.memory_space<vmem>>, vector<1x8x6x8xbf16>
    %16 = vector.shape_cast %15 : vector<1x8x6x8xbf16> to vector<8x6x8xbf16>
    %17 = vector.extract_strided_slice %16 {offsets = [0, 0, 0], sizes = [8, 4, 8], strides = [1, 1, 1]} : vector<8x6x8xbf16> to vector<8x4x8xbf16>
    %18 = vector.extract_strided_slice %16 {offsets = [0, 1, 0], sizes = [8, 4, 8], strides = [1, 1, 1]} : vector<8x6x8xbf16> to vector<8x4x8xbf16>
    %19 = vector.extract_strided_slice %16 {offsets = [0, 2, 0], sizes = [8, 4, 8], strides = [1, 1, 1]} : vector<8x6x8xbf16> to vector<8x4x8xbf16>
    %20 = tpu.concatenate %17, %18, %19 in 2 : vector<8x4x8xbf16>, vector<8x4x8xbf16>, vector<8x4x8xbf16> -> vector<8x4x24xbf16>
    %21 = vector.shape_cast %20 : vector<8x4x24xbf16> to vector<32x24xbf16>
    %c1 = arith.constant 1 : index
    %c0_9 = arith.constant 0 : index
    %c0_10 = arith.constant 0 : index
    %c0_11 = arith.constant 0 : index
    %22 = vector.load %arg3[%c1, %c0_9, %c0_10, %c0_11] : memref<3x1x24x16xbf16, #tpu.memory_space<vmem>>, vector<1x1x24x16xbf16>
    %23 = vector.shape_cast %22 : vector<1x1x24x16xbf16> to vector<24x16xbf16>
    %cst_12 = arith.constant dense<0.000000e+00> : vector<32x16xf32>
    %24 = tpu.matmul %21, %23, %cst_12 {dimension_numbers = #tpu.dot_dimension_numbers<[1], [0], [0], [1], [0, 0, 1, 1], [], []>} : vector<32x24xbf16>, vector<24x16xbf16>, vector<32x16xf32> -> vector<32x16xf32>
    %25 = arith.addf %12, %24 : vector<32x16xf32>
    %c2_i32 = arith.constant 2 : i32
    %26 = arith.addi %0, %c2_i32 : i32
    %c0_13 = arith.constant 0 : index
    %27 = arith.index_cast %26 : i32 to index
    %c0_14 = arith.constant 0 : index
    %c0_15 = arith.constant 0 : index
    %28 = vector.load %arg2[%c0_13, %27, %c0_14, %c0_15] : memref<1x10x6x8xbf16, #tpu.memory_space<vmem>>, vector<1x8x6x8xbf16>
    %29 = vector.shape_cast %28 : vector<1x8x6x8xbf16> to vector<8x6x8xbf16>
    %30 = vector.extract_strided_slice %29 {offsets = [0, 0, 0], sizes = [8, 4, 8], strides = [1, 1, 1]} : vector<8x6x8xbf16> to vector<8x4x8xbf16>
    %31 = vector.extract_strided_slice %29 {offsets = [0, 1, 0], sizes = [8, 4, 8], strides = [1, 1, 1]} : vector<8x6x8xbf16> to vector<8x4x8xbf16>
    %32 = vector.extract_strided_slice %29 {offsets = [0, 2, 0], sizes = [8, 4, 8], strides = [1, 1, 1]} : vector<8x6x8xbf16> to vector<8x4x8xbf16>
    %33 = tpu.concatenate %30, %31, %32 in 2 : vector<8x4x8xbf16>, vector<8x4x8xbf16>, vector<8x4x8xbf16> -> vector<8x4x24xbf16>
    %34 = vector.shape_cast %33 : vector<8x4x24xbf16> to vector<32x24xbf16>
    %c2 = arith.constant 2 : index
    %c0_16 = arith.constant 0 : index
    %c0_17 = arith.constant 0 : index
    %c0_18 = arith.constant 0 : index
    %35 = vector.load %arg3[%c2, %c0_16, %c0_17, %c0_18] : memref<3x1x24x16xbf16, #tpu.memory_space<vmem>>, vector<1x1x24x16xbf16>
    %36 = vector.shape_cast %35 : vector<1x1x24x16xbf16> to vector<24x16xbf16>
    %cst_19 = arith.constant dense<0.000000e+00> : vector<32x16xf32>
    %37 = tpu.matmul %34, %36, %cst_19 {dimension_numbers = #tpu.dot_dimension_numbers<[1], [0], [0], [1], [0, 0, 1, 1], [], []>} : vector<32x24xbf16>, vector<24x16xbf16>, vector<32x16xf32> -> vector<32x16xf32>
    %38 = arith.addf %25, %37 : vector<32x16xf32>
    %c0_20 = arith.constant 0 : index
    %c0_21 = arith.constant 0 : index
    %39 = vector.load %arg4[%c0_20, %c0_21] : memref<1x16xf32, #tpu.memory_space<vmem>>, vector<1x16xf32>
    %40 = vector.extract_strided_slice %38 {offsets = [0, 0], sizes = [4, 16], strides = [1, 1]} : vector<32x16xf32> to vector<4x16xf32>
    %41 = vector.broadcast %39 : vector<1x16xf32> to vector<4x16xf32>
    %42 = arith.addf %40, %41 : vector<4x16xf32>
    %cst_22 = arith.constant 0.000000e+00 : f32
    %43 = vector.broadcast %cst_22 : f32 to vector<4x16xf32>
    %44 = arith.maximumf %42, %43 : vector<4x16xf32>
    %45 = arith.truncf %44 : vector<4x16xf32> to vector<4x16xbf16>
    %c0_23 = arith.constant 0 : index
    %c0_24 = arith.constant 0 : index
    %c0_25 = arith.constant 0 : index
    %c0_26 = arith.constant 0 : index
    %46 = vector.load %arg5[%c0_23, %c0_24, %c0_25, %c0_26] : memref<1x8x4x16xbf16, #tpu.memory_space<vmem>>, vector<1x1x4x16xbf16>
    %47 = vector.shape_cast %46 : vector<1x1x4x16xbf16> to vector<4x16xbf16>
    %48 = vector.shape_cast %45 : vector<4x16xbf16> to vector<1x1x4x16xbf16>
    tpu.vector_store %arg5[%c0_23, %c0_24, %c0_25, %c0_26], %48 {strides = array<i32>} : memref<1x8x4x16xbf16, #tpu.memory_space<vmem>>, vector<1x1x4x16xbf16>,
    %49 = vector.extract_strided_slice %38 {offsets = [4, 0], sizes = [4, 16], strides = [1, 1]} : vector<32x16xf32> to vector<4x16xf32>
    %50 = vector.broadcast %39 : vector<1x16xf32> to vector<4x16xf32>
    %51 = arith.addf %49, %50 : vector<4x16xf32>
    %cst_27 = arith.constant 0.000000e+00 : f32
    %52 = vector.broadcast %cst_27 : f32 to vector<4x16xf32>
    %53 = arith.maximumf %51, %52 : vector<4x16xf32>
    %54 = arith.truncf %53 : vector<4x16xf32> to vector<4x16xbf16>
    %c0_28 = arith.constant 0 : index
    %c1_29 = arith.constant 1 : index
    %c0_30 = arith.constant 0 : index
    %c0_31 = arith.constant 0 : index
    %55 = vector.load %arg5[%c0_28, %c1_29, %c0_30, %c0_31] : memref<1x8x4x16xbf16, #tpu.memory_space<vmem>>, vector<1x1x4x16xbf16>
    %56 = vector.shape_cast %55 : vector<1x1x4x16xbf16> to vector<4x16xbf16>
    %57 = vector.shape_cast %54 : vector<4x16xbf16> to vector<1x1x4x16xbf16>
    tpu.vector_store %arg5[%c0_28, %c1_29, %c0_30, %c0_31], %57 {strides = array<i32>} : memref<1x8x4x16xbf16, #tpu.memory_space<vmem>>, vector<1x1x4x16xbf16>,
    %58 = vector.extract_strided_slice %38 {offsets = [8, 0], sizes = [4, 16], strides = [1, 1]} : vector<32x16xf32> to vector<4x16xf32>
    %59 = vector.broadcast %39 : vector<1x16xf32> to vector<4x16xf32>
    %60 = arith.addf %58, %59 : vector<4x16xf32>
    %cst_32 = arith.constant 0.000000e+00 : f32
    %61 = vector.broadcast %cst_32 : f32 to vector<4x16xf32>
    %62 = arith.maximumf %60, %61 : vector<4x16xf32>
    %63 = arith.truncf %62 : vector<4x16xf32> to vector<4x16xbf16>
    %c0_33 = arith.constant 0 : index
    %c2_34 = arith.constant 2 : index
    %c0_35 = arith.constant 0 : index
    %c0_36 = arith.constant 0 : index
    %64 = vector.load %arg5[%c0_33, %c2_34, %c0_35, %c0_36] : memref<1x8x4x16xbf16, #tpu.memory_space<vmem>>, vector<1x1x4x16xbf16>
    %65 = vector.shape_cast %64 : vector<1x1x4x16xbf16> to vector<4x16xbf16>
    %66 = vector.shape_cast %63 : vector<4x16xbf16> to vector<1x1x4x16xbf16>
    tpu.vector_store %arg5[%c0_33, %c2_34, %c0_35, %c0_36], %66 {strides = array<i32>} : memref<1x8x4x16xbf16, #tpu.memory_space<vmem>>, vector<1x1x4x16xbf16>,
    %67 = vector.extract_strided_slice %38 {offsets = [12, 0], sizes = [4, 16], strides = [1, 1]} : vector<32x16xf32> to vector<4x16xf32>
    %68 = vector.broadcast %39 : vector<1x16xf32> to vector<4x16xf32>
    %69 = arith.addf %67, %68 : vector<4x16xf32>
    %cst_37 = arith.constant 0.000000e+00 : f32
    %70 = vector.broadcast %cst_37 : f32 to vector<4x16xf32>
    %71 = arith.maximumf %69, %70 : vector<4x16xf32>
    %72 = arith.truncf %71 : vector<4x16xf32> to vector<4x16xbf16>
    %c0_38 = arith.constant 0 : index
    %c3 = arith.constant 3 : index
    %c0_39 = arith.constant 0 : index
    %c0_40 = arith.constant 0 : index
    %73 = vector.load %arg5[%c0_38, %c3, %c0_39, %c0_40] : memref<1x8x4x16xbf16, #tpu.memory_space<vmem>>, vector<1x1x4x16xbf16>
    %74 = vector.shape_cast %73 : vector<1x1x4x16xbf16> to vector<4x16xbf16>
    %75 = vector.shape_cast %72 : vector<4x16xbf16> to vector<1x1x4x16xbf16>
    tpu.vector_store %arg5[%c0_38, %c3, %c0_39, %c0_40], %75 {strides = array<i32>} : memref<1x8x4x16xbf16, #tpu.memory_space<vmem>>, vector<1x1x4x16xbf16>,
    %76 = vector.extract_strided_slice %38 {offsets = [16, 0], sizes = [4, 16], strides = [1, 1]} : vector<32x16xf32> to vector<4x16xf32>
    %77 = vector.broadcast %39 : vector<1x16xf32> to vector<4x16xf32>
    %78 = arith.addf %76, %77 : vector<4x16xf32>
    %cst_41 = arith.constant 0.000000e+00 : f32
    %79 = vector.broadcast %cst_41 : f32 to vector<4x16xf32>
    %80 = arith.maximumf %78, %79 : vector<4x16xf32>
    %81 = arith.truncf %80 : vector<4x16xf32> to vector<4x16xbf16>
    %c0_42 = arith.constant 0 : index
    %c4 = arith.constant 4 : index
    %c0_43 = arith.constant 0 : index
    %c0_44 = arith.constant 0 : index
    %82 = vector.load %arg5[%c0_42, %c4, %c0_43, %c0_44] : memref<1x8x4x16xbf16, #tpu.memory_space<vmem>>, vector<1x1x4x16xbf16>
    %83 = vector.shape_cast %82 : vector<1x1x4x16xbf16> to vector<4x16xbf16>
    %84 = vector.shape_cast %81 : vector<4x16xbf16> to vector<1x1x4x16xbf16>
    tpu.vector_store %arg5[%c0_42, %c4, %c0_43, %c0_44], %84 {strides = array<i32>} : memref<1x8x4x16xbf16, #tpu.memory_space<vmem>>, vector<1x1x4x16xbf16>,
    %85 = vector.extract_strided_slice %38 {offsets = [20, 0], sizes = [4, 16], strides = [1, 1]} : vector<32x16xf32> to vector<4x16xf32>
    %86 = vector.broadcast %39 : vector<1x16xf32> to vector<4x16xf32>
    %87 = arith.addf %85, %86 : vector<4x16xf32>
    %cst_45 = arith.constant 0.000000e+00 : f32
    %88 = vector.broadcast %cst_45 : f32 to vector<4x16xf32>
    %89 = arith.maximumf %87, %88 : vector<4x16xf32>
    %90 = arith.truncf %89 : vector<4x16xf32> to vector<4x16xbf16>
    %c0_46 = arith.constant 0 : index
    %c5 = arith.constant 5 : index
    %c0_47 = arith.constant 0 : index
    %c0_48 = arith.constant 0 : index
    %91 = vector.load %arg5[%c0_46, %c5, %c0_47, %c0_48] : memref<1x8x4x16xbf16, #tpu.memory_space<vmem>>, vector<1x1x4x16xbf16>
    %92 = vector.shape_cast %91 : vector<1x1x4x16xbf16> to vector<4x16xbf16>
    %93 = vector.shape_cast %90 : vector<4x16xbf16> to vector<1x1x4x16xbf16>
    tpu.vector_store %arg5[%c0_46, %c5, %c0_47, %c0_48], %93 {strides = array<i32>} : memref<1x8x4x16xbf16, #tpu.memory_space<vmem>>, vector<1x1x4x16xbf16>,
    %94 = vector.extract_strided_slice %38 {offsets = [24, 0], sizes = [4, 16], strides = [1, 1]} : vector<32x16xf32> to vector<4x16xf32>
    %95 = vector.broadcast %39 : vector<1x16xf32> to vector<4x16xf32>
    %96 = arith.addf %94, %95 : vector<4x16xf32>
    %cst_49 = arith.constant 0.000000e+00 : f32
    %97 = vector.broadcast %cst_49 : f32 to vector<4x16xf32>
    %98 = arith.maximumf %96, %97 : vector<4x16xf32>
    %99 = arith.truncf %98 : vector<4x16xf32> to vector<4x16xbf16>
    %c0_50 = arith.constant 0 : index
    %c6 = arith.constant 6 : index
    %c0_51 = arith.constant 0 : index
    %c0_52 = arith.constant 0 : index
    %100 = vector.load %arg5[%c0_50, %c6, %c0_51, %c0_52] : memref<1x8x4x16xbf16, #tpu.memory_space<vmem>>, vector<1x1x4x16xbf16>
    %101 = vector.shape_cast %100 : vector<1x1x4x16xbf16> to vector<4x16xbf16>
    %102 = vector.shape_cast %99 : vector<4x16xbf16> to vector<1x1x4x16xbf16>
    tpu.vector_store %arg5[%c0_50, %c6, %c0_51, %c0_52], %102 {strides = array<i32>} : memref<1x8x4x16xbf16, #tpu.memory_space<vmem>>, vector<1x1x4x16xbf16>,
    %103 = vector.extract_strided_slice %38 {offsets = [28, 0], sizes = [4, 16], strides = [1, 1]} : vector<32x16xf32> to vector<4x16xf32>
    %104 = vector.broadcast %39 : vector<1x16xf32> to vector<4x16xf32>
    %105 = arith.addf %103, %104 : vector<4x16xf32>
    %cst_53 = arith.constant 0.000000e+00 : f32
    %106 = vector.broadcast %cst_53 : f32 to vector<4x16xf32>
    %107 = arith.maximumf %105, %106 : vector<4x16xf32>
    %108 = arith.truncf %107 : vector<4x16xf32> to vector<4x16xbf16>
    %c0_54 = arith.constant 0 : index
    %c7 = arith.constant 7 : index
    %c0_55 = arith.constant 0 : index
    %c0_56 = arith.constant 0 : index
    %109 = vector.load %arg5[%c0_54, %c7, %c0_55, %c0_56] : memref<1x8x4x16xbf16, #tpu.memory_space<vmem>>, vector<1x1x4x16xbf16>
    %110 = vector.shape_cast %109 : vector<1x1x4x16xbf16> to vector<4x16xbf16>
    %111 = vector.shape_cast %108 : vector<4x16xbf16> to vector<1x1x4x16xbf16>
    tpu.vector_store %arg5[%c0_54, %c7, %c0_55, %c0_56], %111 {strides = array<i32>} : memref<1x8x4x16xbf16, #tpu.memory_space<vmem>>, vector<1x1x4x16xbf16>,
    return
  }
  func.func @transform_0(%arg0: i32, %arg1: i32) -> (i32, i32, i32, i32) {
    %c0_i32 = arith.constant 0 : i32
    %c0_i32_0 = arith.constant 0 : i32
    %c0_i32_1 = arith.constant 0 : i32
    %c0_i32_2 = arith.constant 0 : i32
    return %arg0, %c0_i32, %c0_i32_0, %c0_i32_1 : i32, i32, i32, i32
  }
  func.func @transform_1(%arg0: i32, %arg1: i32) -> (i32, i32, i32, i32) {
    %c0_i32 = arith.constant 0 : i32
    %c0_i32_0 = arith.constant 0 : i32
    %c0_i32_1 = arith.constant 0 : i32
    %c0_i32_2 = arith.constant 0 : i32
    %c0_i32_3 = arith.constant 0 : i32
    return %c0_i32, %c0_i32_0, %c0_i32_1, %c0_i32_2 : i32, i32, i32, i32
  }
  func.func @transform_2(%arg0: i32, %arg1: i32) -> (i32, i32) {
    %c0_i32 = arith.constant 0 : i32
    %c0_i32_0 = arith.constant 0 : i32
    %c0_i32_1 = arith.constant 0 : i32
    return %c0_i32, %c0_i32_0 : i32, i32
  }
  func.func @transform_3(%arg0: i32, %arg1: i32) -> (i32, i32, i32, i32) {
    %c0_i32 = arith.constant 0 : i32
    %c0_i32_0 = arith.constant 0 : i32
    %c0_i32_1 = arith.constant 0 : i32
    return %arg0, %arg1, %c0_i32, %c0_i32_0 : i32, i32, i32, i32
  }
}

module attributes {stable_mosaic.version = 11 : i64} {
  func.func @_conv_kernel(%arg0: i32, %arg1: i32, %arg2: memref<1x10x6x16xbf16, #tpu.memory_space<vmem>>, %arg3: memref<3x1x48x16xbf16, #tpu.memory_space<vmem>>, %arg4: memref<1x16xf32, #tpu.memory_space<vmem>>, %arg5: memref<1x4x4x16xbf16, #tpu.memory_space<vmem>>) attributes {dimension_semantics = [#tpu.dimension_semantics<parallel>, #tpu.dimension_semantics<parallel>], iteration_bounds = array<i64: 2, 1>, scalar_prefetch = 0 : i64, scratch_operands = 0 : i64, tpu.core_type = #tpu.core_type<tc>, window_params = [{transform_indices = @transform_0, window_bounds = array<i64: 1, 10, 6, 16>}, {pipeline_mode = #tpu.pipeline_mode<synchronous>, transform_indices = @transform_1, window_bounds = array<i64: 3, 1, 48, 16>}, {pipeline_mode = #tpu.pipeline_mode<synchronous>, transform_indices = @transform_2, window_bounds = array<i64: 1, 16>}, {transform_indices = @transform_3, window_bounds = array<i64: 1, 4, 4, 16>}]} {
    %c8_i32 = arith.constant 8 : i32
    %0 = arith.muli %arg1, %c8_i32 : i32
    %c0_i32 = arith.constant 0 : i32
    %1 = arith.addi %0, %c0_i32 : i32
    %c0 = arith.constant 0 : index
    %2 = arith.index_cast %1 : i32 to index
    %c0_0 = arith.constant 0 : index
    %c0_1 = arith.constant 0 : index
    %3 = vector.load %arg2[%c0, %2, %c0_0, %c0_1] : memref<1x10x6x16xbf16, #tpu.memory_space<vmem>>, vector<1x8x6x16xbf16>
    %4 = vector.shape_cast %3 : vector<1x8x6x16xbf16> to vector<8x6x16xbf16>
    %5 = vector.extract_strided_slice %4 {offsets = [0, 0, 0], sizes = [8, 4, 16], strides = [1, 1, 1]} : vector<8x6x16xbf16> to vector<8x4x16xbf16>
    %6 = vector.extract_strided_slice %4 {offsets = [0, 1, 0], sizes = [8, 4, 16], strides = [1, 1, 1]} : vector<8x6x16xbf16> to vector<8x4x16xbf16>
    %7 = vector.extract_strided_slice %4 {offsets = [0, 2, 0], sizes = [8, 4, 16], strides = [1, 1, 1]} : vector<8x6x16xbf16> to vector<8x4x16xbf16>
    %8 = tpu.concatenate %5, %6, %7 in 2 : vector<8x4x16xbf16>, vector<8x4x16xbf16>, vector<8x4x16xbf16> -> vector<8x4x48xbf16>
    %9 = vector.shape_cast %8 : vector<8x4x48xbf16> to vector<32x48xbf16>
    %c0_2 = arith.constant 0 : index
    %c0_3 = arith.constant 0 : index
    %c0_4 = arith.constant 0 : index
    %c0_5 = arith.constant 0 : index
    %10 = vector.load %arg3[%c0_2, %c0_3, %c0_4, %c0_5] : memref<3x1x48x16xbf16, #tpu.memory_space<vmem>>, vector<1x1x48x16xbf16>
    %11 = vector.shape_cast %10 : vector<1x1x48x16xbf16> to vector<48x16xbf16>
    %cst = arith.constant dense<0.000000e+00> : vector<32x16xf32>
    %12 = tpu.matmul %9, %11, %cst {dimension_numbers = #tpu.dot_dimension_numbers<[1], [0], [0], [1], [0, 0, 1, 1], [], []>} : vector<32x48xbf16>, vector<48x16xbf16>, vector<32x16xf32> -> vector<32x16xf32>
    %c1_i32 = arith.constant 1 : i32
    %13 = arith.addi %0, %c1_i32 : i32
    %c0_6 = arith.constant 0 : index
    %14 = arith.index_cast %13 : i32 to index
    %c0_7 = arith.constant 0 : index
    %c0_8 = arith.constant 0 : index
    %15 = vector.load %arg2[%c0_6, %14, %c0_7, %c0_8] : memref<1x10x6x16xbf16, #tpu.memory_space<vmem>>, vector<1x8x6x16xbf16>
    %16 = vector.shape_cast %15 : vector<1x8x6x16xbf16> to vector<8x6x16xbf16>
    %17 = vector.extract_strided_slice %16 {offsets = [0, 0, 0], sizes = [8, 4, 16], strides = [1, 1, 1]} : vector<8x6x16xbf16> to vector<8x4x16xbf16>
    %18 = vector.extract_strided_slice %16 {offsets = [0, 1, 0], sizes = [8, 4, 16], strides = [1, 1, 1]} : vector<8x6x16xbf16> to vector<8x4x16xbf16>
    %19 = vector.extract_strided_slice %16 {offsets = [0, 2, 0], sizes = [8, 4, 16], strides = [1, 1, 1]} : vector<8x6x16xbf16> to vector<8x4x16xbf16>
    %20 = tpu.concatenate %17, %18, %19 in 2 : vector<8x4x16xbf16>, vector<8x4x16xbf16>, vector<8x4x16xbf16> -> vector<8x4x48xbf16>
    %21 = vector.shape_cast %20 : vector<8x4x48xbf16> to vector<32x48xbf16>
    %c1 = arith.constant 1 : index
    %c0_9 = arith.constant 0 : index
    %c0_10 = arith.constant 0 : index
    %c0_11 = arith.constant 0 : index
    %22 = vector.load %arg3[%c1, %c0_9, %c0_10, %c0_11] : memref<3x1x48x16xbf16, #tpu.memory_space<vmem>>, vector<1x1x48x16xbf16>
    %23 = vector.shape_cast %22 : vector<1x1x48x16xbf16> to vector<48x16xbf16>
    %cst_12 = arith.constant dense<0.000000e+00> : vector<32x16xf32>
    %24 = tpu.matmul %21, %23, %cst_12 {dimension_numbers = #tpu.dot_dimension_numbers<[1], [0], [0], [1], [0, 0, 1, 1], [], []>} : vector<32x48xbf16>, vector<48x16xbf16>, vector<32x16xf32> -> vector<32x16xf32>
    %25 = arith.addf %12, %24 : vector<32x16xf32>
    %c2_i32 = arith.constant 2 : i32
    %26 = arith.addi %0, %c2_i32 : i32
    %c0_13 = arith.constant 0 : index
    %27 = arith.index_cast %26 : i32 to index
    %c0_14 = arith.constant 0 : index
    %c0_15 = arith.constant 0 : index
    %28 = vector.load %arg2[%c0_13, %27, %c0_14, %c0_15] : memref<1x10x6x16xbf16, #tpu.memory_space<vmem>>, vector<1x8x6x16xbf16>
    %29 = vector.shape_cast %28 : vector<1x8x6x16xbf16> to vector<8x6x16xbf16>
    %30 = vector.extract_strided_slice %29 {offsets = [0, 0, 0], sizes = [8, 4, 16], strides = [1, 1, 1]} : vector<8x6x16xbf16> to vector<8x4x16xbf16>
    %31 = vector.extract_strided_slice %29 {offsets = [0, 1, 0], sizes = [8, 4, 16], strides = [1, 1, 1]} : vector<8x6x16xbf16> to vector<8x4x16xbf16>
    %32 = vector.extract_strided_slice %29 {offsets = [0, 2, 0], sizes = [8, 4, 16], strides = [1, 1, 1]} : vector<8x6x16xbf16> to vector<8x4x16xbf16>
    %33 = tpu.concatenate %30, %31, %32 in 2 : vector<8x4x16xbf16>, vector<8x4x16xbf16>, vector<8x4x16xbf16> -> vector<8x4x48xbf16>
    %34 = vector.shape_cast %33 : vector<8x4x48xbf16> to vector<32x48xbf16>
    %c2 = arith.constant 2 : index
    %c0_16 = arith.constant 0 : index
    %c0_17 = arith.constant 0 : index
    %c0_18 = arith.constant 0 : index
    %35 = vector.load %arg3[%c2, %c0_16, %c0_17, %c0_18] : memref<3x1x48x16xbf16, #tpu.memory_space<vmem>>, vector<1x1x48x16xbf16>
    %36 = vector.shape_cast %35 : vector<1x1x48x16xbf16> to vector<48x16xbf16>
    %cst_19 = arith.constant dense<0.000000e+00> : vector<32x16xf32>
    %37 = tpu.matmul %34, %36, %cst_19 {dimension_numbers = #tpu.dot_dimension_numbers<[1], [0], [0], [1], [0, 0, 1, 1], [], []>} : vector<32x48xbf16>, vector<48x16xbf16>, vector<32x16xf32> -> vector<32x16xf32>
    %38 = arith.addf %25, %37 : vector<32x16xf32>
    %c0_20 = arith.constant 0 : index
    %c0_21 = arith.constant 0 : index
    %39 = vector.load %arg4[%c0_20, %c0_21] : memref<1x16xf32, #tpu.memory_space<vmem>>, vector<1x16xf32>
    %40 = vector.extract_strided_slice %38 {offsets = [0, 0], sizes = [4, 16], strides = [1, 1]} : vector<32x16xf32> to vector<4x16xf32>
    %41 = vector.extract_strided_slice %38 {offsets = [4, 0], sizes = [4, 16], strides = [1, 1]} : vector<32x16xf32> to vector<4x16xf32>
    %42 = arith.maximumf %40, %41 : vector<4x16xf32>
    %43 = vector.broadcast %39 : vector<1x16xf32> to vector<4x16xf32>
    %44 = arith.addf %42, %43 : vector<4x16xf32>
    %cst_22 = arith.constant 0.000000e+00 : f32
    %45 = vector.broadcast %cst_22 : f32 to vector<4x16xf32>
    %46 = arith.maximumf %44, %45 : vector<4x16xf32>
    %47 = arith.truncf %46 : vector<4x16xf32> to vector<4x16xbf16>
    %c0_23 = arith.constant 0 : index
    %c0_24 = arith.constant 0 : index
    %c0_25 = arith.constant 0 : index
    %c0_26 = arith.constant 0 : index
    %48 = vector.load %arg5[%c0_23, %c0_24, %c0_25, %c0_26] : memref<1x4x4x16xbf16, #tpu.memory_space<vmem>>, vector<1x1x4x16xbf16>
    %49 = vector.shape_cast %48 : vector<1x1x4x16xbf16> to vector<4x16xbf16>
    %50 = vector.shape_cast %47 : vector<4x16xbf16> to vector<1x1x4x16xbf16>
    tpu.vector_store %arg5[%c0_23, %c0_24, %c0_25, %c0_26], %50 {strides = array<i32>} : memref<1x4x4x16xbf16, #tpu.memory_space<vmem>>, vector<1x1x4x16xbf16>,
    %51 = vector.extract_strided_slice %38 {offsets = [8, 0], sizes = [4, 16], strides = [1, 1]} : vector<32x16xf32> to vector<4x16xf32>
    %52 = vector.extract_strided_slice %38 {offsets = [12, 0], sizes = [4, 16], strides = [1, 1]} : vector<32x16xf32> to vector<4x16xf32>
    %53 = arith.maximumf %51, %52 : vector<4x16xf32>
    %54 = vector.broadcast %39 : vector<1x16xf32> to vector<4x16xf32>
    %55 = arith.addf %53, %54 : vector<4x16xf32>
    %cst_27 = arith.constant 0.000000e+00 : f32
    %56 = vector.broadcast %cst_27 : f32 to vector<4x16xf32>
    %57 = arith.maximumf %55, %56 : vector<4x16xf32>
    %58 = arith.truncf %57 : vector<4x16xf32> to vector<4x16xbf16>
    %c0_28 = arith.constant 0 : index
    %c1_29 = arith.constant 1 : index
    %c0_30 = arith.constant 0 : index
    %c0_31 = arith.constant 0 : index
    %59 = vector.load %arg5[%c0_28, %c1_29, %c0_30, %c0_31] : memref<1x4x4x16xbf16, #tpu.memory_space<vmem>>, vector<1x1x4x16xbf16>
    %60 = vector.shape_cast %59 : vector<1x1x4x16xbf16> to vector<4x16xbf16>
    %61 = vector.shape_cast %58 : vector<4x16xbf16> to vector<1x1x4x16xbf16>
    tpu.vector_store %arg5[%c0_28, %c1_29, %c0_30, %c0_31], %61 {strides = array<i32>} : memref<1x4x4x16xbf16, #tpu.memory_space<vmem>>, vector<1x1x4x16xbf16>,
    %62 = vector.extract_strided_slice %38 {offsets = [16, 0], sizes = [4, 16], strides = [1, 1]} : vector<32x16xf32> to vector<4x16xf32>
    %63 = vector.extract_strided_slice %38 {offsets = [20, 0], sizes = [4, 16], strides = [1, 1]} : vector<32x16xf32> to vector<4x16xf32>
    %64 = arith.maximumf %62, %63 : vector<4x16xf32>
    %65 = vector.broadcast %39 : vector<1x16xf32> to vector<4x16xf32>
    %66 = arith.addf %64, %65 : vector<4x16xf32>
    %cst_32 = arith.constant 0.000000e+00 : f32
    %67 = vector.broadcast %cst_32 : f32 to vector<4x16xf32>
    %68 = arith.maximumf %66, %67 : vector<4x16xf32>
    %69 = arith.truncf %68 : vector<4x16xf32> to vector<4x16xbf16>
    %c0_33 = arith.constant 0 : index
    %c2_34 = arith.constant 2 : index
    %c0_35 = arith.constant 0 : index
    %c0_36 = arith.constant 0 : index
    %70 = vector.load %arg5[%c0_33, %c2_34, %c0_35, %c0_36] : memref<1x4x4x16xbf16, #tpu.memory_space<vmem>>, vector<1x1x4x16xbf16>
    %71 = vector.shape_cast %70 : vector<1x1x4x16xbf16> to vector<4x16xbf16>
    %72 = vector.shape_cast %69 : vector<4x16xbf16> to vector<1x1x4x16xbf16>
    tpu.vector_store %arg5[%c0_33, %c2_34, %c0_35, %c0_36], %72 {strides = array<i32>} : memref<1x4x4x16xbf16, #tpu.memory_space<vmem>>, vector<1x1x4x16xbf16>,
    %73 = vector.extract_strided_slice %38 {offsets = [24, 0], sizes = [4, 16], strides = [1, 1]} : vector<32x16xf32> to vector<4x16xf32>
    %74 = vector.extract_strided_slice %38 {offsets = [28, 0], sizes = [4, 16], strides = [1, 1]} : vector<32x16xf32> to vector<4x16xf32>
    %75 = arith.maximumf %73, %74 : vector<4x16xf32>
    %76 = vector.broadcast %39 : vector<1x16xf32> to vector<4x16xf32>
    %77 = arith.addf %75, %76 : vector<4x16xf32>
    %cst_37 = arith.constant 0.000000e+00 : f32
    %78 = vector.broadcast %cst_37 : f32 to vector<4x16xf32>
    %79 = arith.maximumf %77, %78 : vector<4x16xf32>
    %80 = arith.truncf %79 : vector<4x16xf32> to vector<4x16xbf16>
    %c0_38 = arith.constant 0 : index
    %c3 = arith.constant 3 : index
    %c0_39 = arith.constant 0 : index
    %c0_40 = arith.constant 0 : index
    %81 = vector.load %arg5[%c0_38, %c3, %c0_39, %c0_40] : memref<1x4x4x16xbf16, #tpu.memory_space<vmem>>, vector<1x1x4x16xbf16>
    %82 = vector.shape_cast %81 : vector<1x1x4x16xbf16> to vector<4x16xbf16>
    %83 = vector.shape_cast %80 : vector<4x16xbf16> to vector<1x1x4x16xbf16>
    tpu.vector_store %arg5[%c0_38, %c3, %c0_39, %c0_40], %83 {strides = array<i32>} : memref<1x4x4x16xbf16, #tpu.memory_space<vmem>>, vector<1x1x4x16xbf16>,
    return
  }
  func.func @transform_0(%arg0: i32, %arg1: i32) -> (i32, i32, i32, i32) {
    %c0_i32 = arith.constant 0 : i32
    %c0_i32_0 = arith.constant 0 : i32
    %c0_i32_1 = arith.constant 0 : i32
    %c0_i32_2 = arith.constant 0 : i32
    return %arg0, %c0_i32, %c0_i32_0, %c0_i32_1 : i32, i32, i32, i32
  }
  func.func @transform_1(%arg0: i32, %arg1: i32) -> (i32, i32, i32, i32) {
    %c0_i32 = arith.constant 0 : i32
    %c0_i32_0 = arith.constant 0 : i32
    %c0_i32_1 = arith.constant 0 : i32
    %c0_i32_2 = arith.constant 0 : i32
    %c0_i32_3 = arith.constant 0 : i32
    return %c0_i32, %c0_i32_0, %c0_i32_1, %c0_i32_2 : i32, i32, i32, i32
  }
  func.func @transform_2(%arg0: i32, %arg1: i32) -> (i32, i32) {
    %c0_i32 = arith.constant 0 : i32
    %c0_i32_0 = arith.constant 0 : i32
    %c0_i32_1 = arith.constant 0 : i32
    return %c0_i32, %c0_i32_0 : i32, i32
  }
  func.func @transform_3(%arg0: i32, %arg1: i32) -> (i32, i32, i32, i32) {
    %c0_i32 = arith.constant 0 : i32
    %c0_i32_0 = arith.constant 0 : i32
    %c0_i32_1 = arith.constant 0 : i32
    return %arg0, %arg1, %c0_i32, %c0_i32_0 : i32, i32, i32, i32
  }
}

module attributes {stable_mosaic.version = 11 : i64} {
  func.func @_conv_kernel(%arg0: i32, %arg1: i32, %arg2: memref<1x6x6x16xbf16, #tpu.memory_space<vmem>>, %arg3: memref<3x1x48x32xbf16, #tpu.memory_space<vmem>>, %arg4: memref<1x4x4x32xbf16, #tpu.memory_space<vmem>>, %arg5: memref<1x1x2x32xf32, #tpu.memory_space<vmem>>) attributes {dimension_semantics = [#tpu.dimension_semantics<parallel>, #tpu.dimension_semantics<parallel>], iteration_bounds = array<i64: 2, 1>, scalar_prefetch = 0 : i64, scratch_operands = 0 : i64, tpu.core_type = #tpu.core_type<tc>, window_params = [{transform_indices = @transform_0, window_bounds = array<i64: 1, 6, 6, 16>}, {pipeline_mode = #tpu.pipeline_mode<synchronous>, transform_indices = @transform_1, window_bounds = array<i64: 3, 1, 48, 32>}, {transform_indices = @transform_2, window_bounds = array<i64: 1, 4, 4, 32>}, {transform_indices = @transform_3, window_bounds = array<i64: 1, 1, 2, 32>}]} {
    %c4_i32 = arith.constant 4 : i32
    %0 = arith.muli %arg1, %c4_i32 : i32
    %c0_i32 = arith.constant 0 : i32
    %1 = arith.addi %0, %c0_i32 : i32
    %c0 = arith.constant 0 : index
    %2 = arith.index_cast %1 : i32 to index
    %c0_0 = arith.constant 0 : index
    %c0_1 = arith.constant 0 : index
    %3 = vector.load %arg2[%c0, %2, %c0_0, %c0_1] : memref<1x6x6x16xbf16, #tpu.memory_space<vmem>>, vector<1x4x6x16xbf16>
    %4 = vector.shape_cast %3 : vector<1x4x6x16xbf16> to vector<4x6x16xbf16>
    %5 = vector.extract_strided_slice %4 {offsets = [0, 0, 0], sizes = [4, 4, 16], strides = [1, 1, 1]} : vector<4x6x16xbf16> to vector<4x4x16xbf16>
    %6 = vector.extract_strided_slice %4 {offsets = [0, 1, 0], sizes = [4, 4, 16], strides = [1, 1, 1]} : vector<4x6x16xbf16> to vector<4x4x16xbf16>
    %7 = vector.extract_strided_slice %4 {offsets = [0, 2, 0], sizes = [4, 4, 16], strides = [1, 1, 1]} : vector<4x6x16xbf16> to vector<4x4x16xbf16>
    %8 = tpu.concatenate %5, %6, %7 in 2 : vector<4x4x16xbf16>, vector<4x4x16xbf16>, vector<4x4x16xbf16> -> vector<4x4x48xbf16>
    %9 = vector.shape_cast %8 : vector<4x4x48xbf16> to vector<16x48xbf16>
    %c0_2 = arith.constant 0 : index
    %c0_3 = arith.constant 0 : index
    %c0_4 = arith.constant 0 : index
    %c0_5 = arith.constant 0 : index
    %10 = vector.load %arg3[%c0_2, %c0_3, %c0_4, %c0_5] : memref<3x1x48x32xbf16, #tpu.memory_space<vmem>>, vector<1x1x48x32xbf16>
    %11 = vector.shape_cast %10 : vector<1x1x48x32xbf16> to vector<48x32xbf16>
    %cst = arith.constant dense<0.000000e+00> : vector<16x32xf32>
    %12 = tpu.matmul %9, %11, %cst {dimension_numbers = #tpu.dot_dimension_numbers<[1], [0], [0], [1], [0, 0, 1, 1], [], []>} : vector<16x48xbf16>, vector<48x32xbf16>, vector<16x32xf32> -> vector<16x32xf32>
    %c1_i32 = arith.constant 1 : i32
    %13 = arith.addi %0, %c1_i32 : i32
    %c0_6 = arith.constant 0 : index
    %14 = arith.index_cast %13 : i32 to index
    %c0_7 = arith.constant 0 : index
    %c0_8 = arith.constant 0 : index
    %15 = vector.load %arg2[%c0_6, %14, %c0_7, %c0_8] : memref<1x6x6x16xbf16, #tpu.memory_space<vmem>>, vector<1x4x6x16xbf16>
    %16 = vector.shape_cast %15 : vector<1x4x6x16xbf16> to vector<4x6x16xbf16>
    %17 = vector.extract_strided_slice %16 {offsets = [0, 0, 0], sizes = [4, 4, 16], strides = [1, 1, 1]} : vector<4x6x16xbf16> to vector<4x4x16xbf16>
    %18 = vector.extract_strided_slice %16 {offsets = [0, 1, 0], sizes = [4, 4, 16], strides = [1, 1, 1]} : vector<4x6x16xbf16> to vector<4x4x16xbf16>
    %19 = vector.extract_strided_slice %16 {offsets = [0, 2, 0], sizes = [4, 4, 16], strides = [1, 1, 1]} : vector<4x6x16xbf16> to vector<4x4x16xbf16>
    %20 = tpu.concatenate %17, %18, %19 in 2 : vector<4x4x16xbf16>, vector<4x4x16xbf16>, vector<4x4x16xbf16> -> vector<4x4x48xbf16>
    %21 = vector.shape_cast %20 : vector<4x4x48xbf16> to vector<16x48xbf16>
    %c1 = arith.constant 1 : index
    %c0_9 = arith.constant 0 : index
    %c0_10 = arith.constant 0 : index
    %c0_11 = arith.constant 0 : index
    %22 = vector.load %arg3[%c1, %c0_9, %c0_10, %c0_11] : memref<3x1x48x32xbf16, #tpu.memory_space<vmem>>, vector<1x1x48x32xbf16>
    %23 = vector.shape_cast %22 : vector<1x1x48x32xbf16> to vector<48x32xbf16>
    %cst_12 = arith.constant dense<0.000000e+00> : vector<16x32xf32>
    %24 = tpu.matmul %21, %23, %cst_12 {dimension_numbers = #tpu.dot_dimension_numbers<[1], [0], [0], [1], [0, 0, 1, 1], [], []>} : vector<16x48xbf16>, vector<48x32xbf16>, vector<16x32xf32> -> vector<16x32xf32>
    %25 = arith.addf %12, %24 : vector<16x32xf32>
    %c2_i32 = arith.constant 2 : i32
    %26 = arith.addi %0, %c2_i32 : i32
    %c0_13 = arith.constant 0 : index
    %27 = arith.index_cast %26 : i32 to index
    %c0_14 = arith.constant 0 : index
    %c0_15 = arith.constant 0 : index
    %28 = vector.load %arg2[%c0_13, %27, %c0_14, %c0_15] : memref<1x6x6x16xbf16, #tpu.memory_space<vmem>>, vector<1x4x6x16xbf16>
    %29 = vector.shape_cast %28 : vector<1x4x6x16xbf16> to vector<4x6x16xbf16>
    %30 = vector.extract_strided_slice %29 {offsets = [0, 0, 0], sizes = [4, 4, 16], strides = [1, 1, 1]} : vector<4x6x16xbf16> to vector<4x4x16xbf16>
    %31 = vector.extract_strided_slice %29 {offsets = [0, 1, 0], sizes = [4, 4, 16], strides = [1, 1, 1]} : vector<4x6x16xbf16> to vector<4x4x16xbf16>
    %32 = vector.extract_strided_slice %29 {offsets = [0, 2, 0], sizes = [4, 4, 16], strides = [1, 1, 1]} : vector<4x6x16xbf16> to vector<4x4x16xbf16>
    %33 = tpu.concatenate %30, %31, %32 in 2 : vector<4x4x16xbf16>, vector<4x4x16xbf16>, vector<4x4x16xbf16> -> vector<4x4x48xbf16>
    %34 = vector.shape_cast %33 : vector<4x4x48xbf16> to vector<16x48xbf16>
    %c2 = arith.constant 2 : index
    %c0_16 = arith.constant 0 : index
    %c0_17 = arith.constant 0 : index
    %c0_18 = arith.constant 0 : index
    %35 = vector.load %arg3[%c2, %c0_16, %c0_17, %c0_18] : memref<3x1x48x32xbf16, #tpu.memory_space<vmem>>, vector<1x1x48x32xbf16>
    %36 = vector.shape_cast %35 : vector<1x1x48x32xbf16> to vector<48x32xbf16>
    %cst_19 = arith.constant dense<0.000000e+00> : vector<16x32xf32>
    %37 = tpu.matmul %34, %36, %cst_19 {dimension_numbers = #tpu.dot_dimension_numbers<[1], [0], [0], [1], [0, 0, 1, 1], [], []>} : vector<16x48xbf16>, vector<48x32xbf16>, vector<16x32xf32> -> vector<16x32xf32>
    %38 = arith.addf %25, %37 : vector<16x32xf32>
    %39 = vector.extract_strided_slice %38 {offsets = [0, 0], sizes = [4, 32], strides = [1, 1]} : vector<16x32xf32> to vector<4x32xf32>
    %40 = arith.truncf %39 : vector<4x32xf32> to vector<4x32xbf16>
    %c0_20 = arith.constant 0 : index
    %c0_21 = arith.constant 0 : index
    %c0_22 = arith.constant 0 : index
    %c0_23 = arith.constant 0 : index
    %41 = vector.load %arg4[%c0_20, %c0_21, %c0_22, %c0_23] : memref<1x4x4x32xbf16, #tpu.memory_space<vmem>>, vector<1x1x4x32xbf16>
    %42 = vector.shape_cast %41 : vector<1x1x4x32xbf16> to vector<4x32xbf16>
    %43 = vector.shape_cast %40 : vector<4x32xbf16> to vector<1x1x4x32xbf16>
    tpu.vector_store %arg4[%c0_20, %c0_21, %c0_22, %c0_23], %43 {strides = array<i32>} : memref<1x4x4x32xbf16, #tpu.memory_space<vmem>>, vector<1x1x4x32xbf16>,
    %44 = vector.extract_strided_slice %38 {offsets = [4, 0], sizes = [4, 32], strides = [1, 1]} : vector<16x32xf32> to vector<4x32xf32>
    %45 = arith.truncf %44 : vector<4x32xf32> to vector<4x32xbf16>
    %c0_24 = arith.constant 0 : index
    %c1_25 = arith.constant 1 : index
    %c0_26 = arith.constant 0 : index
    %c0_27 = arith.constant 0 : index
    %46 = vector.load %arg4[%c0_24, %c1_25, %c0_26, %c0_27] : memref<1x4x4x32xbf16, #tpu.memory_space<vmem>>, vector<1x1x4x32xbf16>
    %47 = vector.shape_cast %46 : vector<1x1x4x32xbf16> to vector<4x32xbf16>
    %48 = vector.shape_cast %45 : vector<4x32xbf16> to vector<1x1x4x32xbf16>
    tpu.vector_store %arg4[%c0_24, %c1_25, %c0_26, %c0_27], %48 {strides = array<i32>} : memref<1x4x4x32xbf16, #tpu.memory_space<vmem>>, vector<1x1x4x32xbf16>,
    %49 = vector.extract_strided_slice %38 {offsets = [8, 0], sizes = [4, 32], strides = [1, 1]} : vector<16x32xf32> to vector<4x32xf32>
    %50 = arith.truncf %49 : vector<4x32xf32> to vector<4x32xbf16>
    %c0_28 = arith.constant 0 : index
    %c2_29 = arith.constant 2 : index
    %c0_30 = arith.constant 0 : index
    %c0_31 = arith.constant 0 : index
    %51 = vector.load %arg4[%c0_28, %c2_29, %c0_30, %c0_31] : memref<1x4x4x32xbf16, #tpu.memory_space<vmem>>, vector<1x1x4x32xbf16>
    %52 = vector.shape_cast %51 : vector<1x1x4x32xbf16> to vector<4x32xbf16>
    %53 = vector.shape_cast %50 : vector<4x32xbf16> to vector<1x1x4x32xbf16>
    tpu.vector_store %arg4[%c0_28, %c2_29, %c0_30, %c0_31], %53 {strides = array<i32>} : memref<1x4x4x32xbf16, #tpu.memory_space<vmem>>, vector<1x1x4x32xbf16>,
    %54 = vector.extract_strided_slice %38 {offsets = [12, 0], sizes = [4, 32], strides = [1, 1]} : vector<16x32xf32> to vector<4x32xf32>
    %55 = arith.truncf %54 : vector<4x32xf32> to vector<4x32xbf16>
    %c0_32 = arith.constant 0 : index
    %c3 = arith.constant 3 : index
    %c0_33 = arith.constant 0 : index
    %c0_34 = arith.constant 0 : index
    %56 = vector.load %arg4[%c0_32, %c3, %c0_33, %c0_34] : memref<1x4x4x32xbf16, #tpu.memory_space<vmem>>, vector<1x1x4x32xbf16>
    %57 = vector.shape_cast %56 : vector<1x1x4x32xbf16> to vector<4x32xbf16>
    %58 = vector.shape_cast %55 : vector<4x32xbf16> to vector<1x1x4x32xbf16>
    tpu.vector_store %arg4[%c0_32, %c3, %c0_33, %c0_34], %58 {strides = array<i32>} : memref<1x4x4x32xbf16, #tpu.memory_space<vmem>>, vector<1x1x4x32xbf16>,
    %cst_35 = arith.constant dense<0.000000e+00> : vector<32xf32>
    %59 = vector.multi_reduction <add>, %38, %cst_35 [0] : vector<16x32xf32> to vector<32xf32>
    %60 = vector.shape_cast %59 : vector<32xf32> to vector<1x32xf32>
    %c0_36 = arith.constant 0 : index
    %c0_37 = arith.constant 0 : index
    %c0_38 = arith.constant 0 : index
    %c0_39 = arith.constant 0 : index
    %61 = vector.load %arg5[%c0_36, %c0_37, %c0_38, %c0_39] : memref<1x1x2x32xf32, #tpu.memory_space<vmem>>, vector<1x1x1x32xf32>
    %62 = vector.shape_cast %61 : vector<1x1x1x32xf32> to vector<1x32xf32>
    %63 = vector.shape_cast %60 : vector<1x32xf32> to vector<1x1x1x32xf32>
    tpu.vector_store %arg5[%c0_36, %c0_37, %c0_38, %c0_39], %63 {strides = array<i32>} : memref<1x1x2x32xf32, #tpu.memory_space<vmem>>, vector<1x1x1x32xf32>,
    %64 = arith.mulf %38, %38 : vector<16x32xf32>
    %cst_40 = arith.constant dense<0.000000e+00> : vector<32xf32>
    %65 = vector.multi_reduction <add>, %64, %cst_40 [0] : vector<16x32xf32> to vector<32xf32>
    %66 = vector.shape_cast %65 : vector<32xf32> to vector<1x32xf32>
    %c0_41 = arith.constant 0 : index
    %c0_42 = arith.constant 0 : index
    %c1_43 = arith.constant 1 : index
    %c0_44 = arith.constant 0 : index
    %67 = vector.load %arg5[%c0_41, %c0_42, %c1_43, %c0_44] : memref<1x1x2x32xf32, #tpu.memory_space<vmem>>, vector<1x1x1x32xf32>
    %68 = vector.shape_cast %67 : vector<1x1x1x32xf32> to vector<1x32xf32>
    %69 = vector.shape_cast %66 : vector<1x32xf32> to vector<1x1x1x32xf32>
    tpu.vector_store %arg5[%c0_41, %c0_42, %c1_43, %c0_44], %69 {strides = array<i32>} : memref<1x1x2x32xf32, #tpu.memory_space<vmem>>, vector<1x1x1x32xf32>,
    return
  }
  func.func @transform_0(%arg0: i32, %arg1: i32) -> (i32, i32, i32, i32) {
    %c0_i32 = arith.constant 0 : i32
    %c0_i32_0 = arith.constant 0 : i32
    %c0_i32_1 = arith.constant 0 : i32
    %c0_i32_2 = arith.constant 0 : i32
    return %arg0, %c0_i32, %c0_i32_0, %c0_i32_1 : i32, i32, i32, i32
  }
  func.func @transform_1(%arg0: i32, %arg1: i32) -> (i32, i32, i32, i32) {
    %c0_i32 = arith.constant 0 : i32
    %c0_i32_0 = arith.constant 0 : i32
    %c0_i32_1 = arith.constant 0 : i32
    %c0_i32_2 = arith.constant 0 : i32
    %c0_i32_3 = arith.constant 0 : i32
    return %c0_i32, %c0_i32_0, %c0_i32_1, %c0_i32_2 : i32, i32, i32, i32
  }
  func.func @transform_2(%arg0: i32, %arg1: i32) -> (i32, i32, i32, i32) {
    %c0_i32 = arith.constant 0 : i32
    %c0_i32_0 = arith.constant 0 : i32
    %c0_i32_1 = arith.constant 0 : i32
    return %arg0, %arg1, %c0_i32, %c0_i32_0 : i32, i32, i32, i32
  }
  func.func @transform_3(%arg0: i32, %arg1: i32) -> (i32, i32, i32, i32) {
    %c0_i32 = arith.constant 0 : i32
    %c0_i32_0 = arith.constant 0 : i32
    %c0_i32_1 = arith.constant 0 : i32
    return %arg0, %arg1, %c0_i32, %c0_i32_0 : i32, i32, i32, i32
  }
}

module attributes {stable_mosaic.version = 11 : i64} {
  func.func @_bn_apply_kernel(%arg0: i32, %arg1: i32, %arg2: memref<1x4x4x32xbf16, #tpu.memory_space<vmem>>, %arg3: memref<1x32xf32, #tpu.memory_space<vmem>>, %arg4: memref<1x32xf32, #tpu.memory_space<vmem>>, %arg5: memref<1x4x4x32xbf16, #tpu.memory_space<vmem>>) attributes {dimension_semantics = [#tpu.dimension_semantics<parallel>, #tpu.dimension_semantics<parallel>], iteration_bounds = array<i64: 2, 1>, scalar_prefetch = 0 : i64, scratch_operands = 0 : i64, tpu.core_type = #tpu.core_type<tc>, window_params = [{transform_indices = @transform_0, window_bounds = array<i64: 1, 4, 4, 32>}, {pipeline_mode = #tpu.pipeline_mode<synchronous>, transform_indices = @transform_1, window_bounds = array<i64: 1, 32>}, {pipeline_mode = #tpu.pipeline_mode<synchronous>, transform_indices = @transform_2, window_bounds = array<i64: 1, 32>}, {transform_indices = @transform_3, window_bounds = array<i64: 1, 4, 4, 32>}]} {
    %c0 = arith.constant 0 : index
    %c0_0 = arith.constant 0 : index
    %0 = vector.load %arg3[%c0, %c0_0] : memref<1x32xf32, #tpu.memory_space<vmem>>, vector<1x32xf32>
    %c0_1 = arith.constant 0 : index
    %c0_2 = arith.constant 0 : index
    %1 = vector.load %arg4[%c0_1, %c0_2] : memref<1x32xf32, #tpu.memory_space<vmem>>, vector<1x32xf32>
    %c0_3 = arith.constant 0 : index
    %c0_4 = arith.constant 0 : index
    %c0_5 = arith.constant 0 : index
    %c0_6 = arith.constant 0 : index
    %2 = vector.load %arg2[%c0_3, %c0_4, %c0_5, %c0_6] : memref<1x4x4x32xbf16, #tpu.memory_space<vmem>>, vector<1x1x4x32xbf16>
    %3 = vector.shape_cast %2 : vector<1x1x4x32xbf16> to vector<4x32xbf16>
    %4 = arith.extf %3 : vector<4x32xbf16> to vector<4x32xf32>
    %5 = vector.broadcast %0 : vector<1x32xf32> to vector<4x32xf32>
    %6 = arith.mulf %4, %5 : vector<4x32xf32>
    %7 = vector.broadcast %1 : vector<1x32xf32> to vector<4x32xf32>
    %8 = arith.addf %6, %7 : vector<4x32xf32>
    %cst = arith.constant 0.000000e+00 : f32
    %9 = vector.broadcast %cst : f32 to vector<4x32xf32>
    %10 = arith.maximumf %8, %9 : vector<4x32xf32>
    %11 = arith.truncf %10 : vector<4x32xf32> to vector<4x32xbf16>
    %c0_7 = arith.constant 0 : index
    %c0_8 = arith.constant 0 : index
    %c0_9 = arith.constant 0 : index
    %c0_10 = arith.constant 0 : index
    %12 = vector.load %arg5[%c0_7, %c0_8, %c0_9, %c0_10] : memref<1x4x4x32xbf16, #tpu.memory_space<vmem>>, vector<1x1x4x32xbf16>
    %13 = vector.shape_cast %12 : vector<1x1x4x32xbf16> to vector<4x32xbf16>
    %14 = vector.shape_cast %11 : vector<4x32xbf16> to vector<1x1x4x32xbf16>
    tpu.vector_store %arg5[%c0_7, %c0_8, %c0_9, %c0_10], %14 {strides = array<i32>} : memref<1x4x4x32xbf16, #tpu.memory_space<vmem>>, vector<1x1x4x32xbf16>,
    %c0_11 = arith.constant 0 : index
    %c1 = arith.constant 1 : index
    %c0_12 = arith.constant 0 : index
    %c0_13 = arith.constant 0 : index
    %15 = vector.load %arg2[%c0_11, %c1, %c0_12, %c0_13] : memref<1x4x4x32xbf16, #tpu.memory_space<vmem>>, vector<1x1x4x32xbf16>
    %16 = vector.shape_cast %15 : vector<1x1x4x32xbf16> to vector<4x32xbf16>
    %17 = arith.extf %16 : vector<4x32xbf16> to vector<4x32xf32>
    %18 = vector.broadcast %0 : vector<1x32xf32> to vector<4x32xf32>
    %19 = arith.mulf %17, %18 : vector<4x32xf32>
    %20 = vector.broadcast %1 : vector<1x32xf32> to vector<4x32xf32>
    %21 = arith.addf %19, %20 : vector<4x32xf32>
    %cst_14 = arith.constant 0.000000e+00 : f32
    %22 = vector.broadcast %cst_14 : f32 to vector<4x32xf32>
    %23 = arith.maximumf %21, %22 : vector<4x32xf32>
    %24 = arith.truncf %23 : vector<4x32xf32> to vector<4x32xbf16>
    %c0_15 = arith.constant 0 : index
    %c1_16 = arith.constant 1 : index
    %c0_17 = arith.constant 0 : index
    %c0_18 = arith.constant 0 : index
    %25 = vector.load %arg5[%c0_15, %c1_16, %c0_17, %c0_18] : memref<1x4x4x32xbf16, #tpu.memory_space<vmem>>, vector<1x1x4x32xbf16>
    %26 = vector.shape_cast %25 : vector<1x1x4x32xbf16> to vector<4x32xbf16>
    %27 = vector.shape_cast %24 : vector<4x32xbf16> to vector<1x1x4x32xbf16>
    tpu.vector_store %arg5[%c0_15, %c1_16, %c0_17, %c0_18], %27 {strides = array<i32>} : memref<1x4x4x32xbf16, #tpu.memory_space<vmem>>, vector<1x1x4x32xbf16>,
    %c0_19 = arith.constant 0 : index
    %c2 = arith.constant 2 : index
    %c0_20 = arith.constant 0 : index
    %c0_21 = arith.constant 0 : index
    %28 = vector.load %arg2[%c0_19, %c2, %c0_20, %c0_21] : memref<1x4x4x32xbf16, #tpu.memory_space<vmem>>, vector<1x1x4x32xbf16>
    %29 = vector.shape_cast %28 : vector<1x1x4x32xbf16> to vector<4x32xbf16>
    %30 = arith.extf %29 : vector<4x32xbf16> to vector<4x32xf32>
    %31 = vector.broadcast %0 : vector<1x32xf32> to vector<4x32xf32>
    %32 = arith.mulf %30, %31 : vector<4x32xf32>
    %33 = vector.broadcast %1 : vector<1x32xf32> to vector<4x32xf32>
    %34 = arith.addf %32, %33 : vector<4x32xf32>
    %cst_22 = arith.constant 0.000000e+00 : f32
    %35 = vector.broadcast %cst_22 : f32 to vector<4x32xf32>
    %36 = arith.maximumf %34, %35 : vector<4x32xf32>
    %37 = arith.truncf %36 : vector<4x32xf32> to vector<4x32xbf16>
    %c0_23 = arith.constant 0 : index
    %c2_24 = arith.constant 2 : index
    %c0_25 = arith.constant 0 : index
    %c0_26 = arith.constant 0 : index
    %38 = vector.load %arg5[%c0_23, %c2_24, %c0_25, %c0_26] : memref<1x4x4x32xbf16, #tpu.memory_space<vmem>>, vector<1x1x4x32xbf16>
    %39 = vector.shape_cast %38 : vector<1x1x4x32xbf16> to vector<4x32xbf16>
    %40 = vector.shape_cast %37 : vector<4x32xbf16> to vector<1x1x4x32xbf16>
    tpu.vector_store %arg5[%c0_23, %c2_24, %c0_25, %c0_26], %40 {strides = array<i32>} : memref<1x4x4x32xbf16, #tpu.memory_space<vmem>>, vector<1x1x4x32xbf16>,
    %c0_27 = arith.constant 0 : index
    %c3 = arith.constant 3 : index
    %c0_28 = arith.constant 0 : index
    %c0_29 = arith.constant 0 : index
    %41 = vector.load %arg2[%c0_27, %c3, %c0_28, %c0_29] : memref<1x4x4x32xbf16, #tpu.memory_space<vmem>>, vector<1x1x4x32xbf16>
    %42 = vector.shape_cast %41 : vector<1x1x4x32xbf16> to vector<4x32xbf16>
    %43 = arith.extf %42 : vector<4x32xbf16> to vector<4x32xf32>
    %44 = vector.broadcast %0 : vector<1x32xf32> to vector<4x32xf32>
    %45 = arith.mulf %43, %44 : vector<4x32xf32>
    %46 = vector.broadcast %1 : vector<1x32xf32> to vector<4x32xf32>
    %47 = arith.addf %45, %46 : vector<4x32xf32>
    %cst_30 = arith.constant 0.000000e+00 : f32
    %48 = vector.broadcast %cst_30 : f32 to vector<4x32xf32>
    %49 = arith.maximumf %47, %48 : vector<4x32xf32>
    %50 = arith.truncf %49 : vector<4x32xf32> to vector<4x32xbf16>
    %c0_31 = arith.constant 0 : index
    %c3_32 = arith.constant 3 : index
    %c0_33 = arith.constant 0 : index
    %c0_34 = arith.constant 0 : index
    %51 = vector.load %arg5[%c0_31, %c3_32, %c0_33, %c0_34] : memref<1x4x4x32xbf16, #tpu.memory_space<vmem>>, vector<1x1x4x32xbf16>
    %52 = vector.shape_cast %51 : vector<1x1x4x32xbf16> to vector<4x32xbf16>
    %53 = vector.shape_cast %50 : vector<4x32xbf16> to vector<1x1x4x32xbf16>
    tpu.vector_store %arg5[%c0_31, %c3_32, %c0_33, %c0_34], %53 {strides = array<i32>} : memref<1x4x4x32xbf16, #tpu.memory_space<vmem>>, vector<1x1x4x32xbf16>,
    return
  }
  func.func @transform_0(%arg0: i32, %arg1: i32) -> (i32, i32, i32, i32) {
    %c0_i32 = arith.constant 0 : i32
    %c0_i32_0 = arith.constant 0 : i32
    %c0_i32_1 = arith.constant 0 : i32
    return %arg0, %arg1, %c0_i32, %c0_i32_0 : i32, i32, i32, i32
  }
  func.func @transform_1(%arg0: i32, %arg1: i32) -> (i32, i32) {
    %c0_i32 = arith.constant 0 : i32
    %c0_i32_0 = arith.constant 0 : i32
    %c0_i32_1 = arith.constant 0 : i32
    return %c0_i32, %c0_i32_0 : i32, i32
  }
  func.func @transform_2(%arg0: i32, %arg1: i32) -> (i32, i32) {
    %c0_i32 = arith.constant 0 : i32
    %c0_i32_0 = arith.constant 0 : i32
    %c0_i32_1 = arith.constant 0 : i32
    return %c0_i32, %c0_i32_0 : i32, i32
  }
  func.func @transform_3(%arg0: i32, %arg1: i32) -> (i32, i32, i32, i32) {
    %c0_i32 = arith.constant 0 : i32
    %c0_i32_0 = arith.constant 0 : i32
    %c0_i32_1 = arith.constant 0 : i32
    return %arg0, %arg1, %c0_i32, %c0_i32_0 : i32, i32, i32, i32
  }
}

module attributes {stable_mosaic.version = 11 : i64} {
  func.func @_bn_apply_kernel(%arg0: i32, %arg1: i32, %arg2: memref<1x4x4x32xbf16, #tpu.memory_space<vmem>>, %arg3: memref<1x32xf32, #tpu.memory_space<vmem>>, %arg4: memref<1x32xf32, #tpu.memory_space<vmem>>, %arg5: memref<1x2x4x32xbf16, #tpu.memory_space<vmem>>) attributes {dimension_semantics = [#tpu.dimension_semantics<parallel>, #tpu.dimension_semantics<parallel>], iteration_bounds = array<i64: 2, 1>, scalar_prefetch = 0 : i64, scratch_operands = 0 : i64, tpu.core_type = #tpu.core_type<tc>, window_params = [{transform_indices = @transform_0, window_bounds = array<i64: 1, 4, 4, 32>}, {pipeline_mode = #tpu.pipeline_mode<synchronous>, transform_indices = @transform_1, window_bounds = array<i64: 1, 32>}, {pipeline_mode = #tpu.pipeline_mode<synchronous>, transform_indices = @transform_2, window_bounds = array<i64: 1, 32>}, {transform_indices = @transform_3, window_bounds = array<i64: 1, 2, 4, 32>}]} {
    %c0 = arith.constant 0 : index
    %c0_0 = arith.constant 0 : index
    %0 = vector.load %arg3[%c0, %c0_0] : memref<1x32xf32, #tpu.memory_space<vmem>>, vector<1x32xf32>
    %c0_1 = arith.constant 0 : index
    %c0_2 = arith.constant 0 : index
    %1 = vector.load %arg4[%c0_1, %c0_2] : memref<1x32xf32, #tpu.memory_space<vmem>>, vector<1x32xf32>
    %c0_3 = arith.constant 0 : index
    %c0_4 = arith.constant 0 : index
    %c0_5 = arith.constant 0 : index
    %c0_6 = arith.constant 0 : index
    %2 = vector.load %arg2[%c0_3, %c0_4, %c0_5, %c0_6] : memref<1x4x4x32xbf16, #tpu.memory_space<vmem>>, vector<1x1x4x32xbf16>
    %3 = vector.shape_cast %2 : vector<1x1x4x32xbf16> to vector<4x32xbf16>
    %4 = arith.extf %3 : vector<4x32xbf16> to vector<4x32xf32>
    %5 = vector.broadcast %0 : vector<1x32xf32> to vector<4x32xf32>
    %6 = arith.mulf %4, %5 : vector<4x32xf32>
    %7 = vector.broadcast %1 : vector<1x32xf32> to vector<4x32xf32>
    %8 = arith.addf %6, %7 : vector<4x32xf32>
    %cst = arith.constant 0.000000e+00 : f32
    %9 = vector.broadcast %cst : f32 to vector<4x32xf32>
    %10 = arith.maximumf %8, %9 : vector<4x32xf32>
    %c0_7 = arith.constant 0 : index
    %c1 = arith.constant 1 : index
    %c0_8 = arith.constant 0 : index
    %c0_9 = arith.constant 0 : index
    %11 = vector.load %arg2[%c0_7, %c1, %c0_8, %c0_9] : memref<1x4x4x32xbf16, #tpu.memory_space<vmem>>, vector<1x1x4x32xbf16>
    %12 = vector.shape_cast %11 : vector<1x1x4x32xbf16> to vector<4x32xbf16>
    %13 = arith.extf %12 : vector<4x32xbf16> to vector<4x32xf32>
    %14 = vector.broadcast %0 : vector<1x32xf32> to vector<4x32xf32>
    %15 = arith.mulf %13, %14 : vector<4x32xf32>
    %16 = vector.broadcast %1 : vector<1x32xf32> to vector<4x32xf32>
    %17 = arith.addf %15, %16 : vector<4x32xf32>
    %cst_10 = arith.constant 0.000000e+00 : f32
    %18 = vector.broadcast %cst_10 : f32 to vector<4x32xf32>
    %19 = arith.maximumf %17, %18 : vector<4x32xf32>
    %20 = arith.maximumf %10, %19 : vector<4x32xf32>
    %21 = arith.truncf %20 : vector<4x32xf32> to vector<4x32xbf16>
    %c0_11 = arith.constant 0 : index
    %c0_12 = arith.constant 0 : index
    %c0_13 = arith.constant 0 : index
    %c0_14 = arith.constant 0 : index
    %22 = vector.load %arg5[%c0_11, %c0_12, %c0_13, %c0_14] : memref<1x2x4x32xbf16, #tpu.memory_space<vmem>>, vector<1x1x4x32xbf16>
    %23 = vector.shape_cast %22 : vector<1x1x4x32xbf16> to vector<4x32xbf16>
    %24 = vector.shape_cast %21 : vector<4x32xbf16> to vector<1x1x4x32xbf16>
    tpu.vector_store %arg5[%c0_11, %c0_12, %c0_13, %c0_14], %24 {strides = array<i32>} : memref<1x2x4x32xbf16, #tpu.memory_space<vmem>>, vector<1x1x4x32xbf16>,
    %c0_15 = arith.constant 0 : index
    %c2 = arith.constant 2 : index
    %c0_16 = arith.constant 0 : index
    %c0_17 = arith.constant 0 : index
    %25 = vector.load %arg2[%c0_15, %c2, %c0_16, %c0_17] : memref<1x4x4x32xbf16, #tpu.memory_space<vmem>>, vector<1x1x4x32xbf16>
    %26 = vector.shape_cast %25 : vector<1x1x4x32xbf16> to vector<4x32xbf16>
    %27 = arith.extf %26 : vector<4x32xbf16> to vector<4x32xf32>
    %28 = vector.broadcast %0 : vector<1x32xf32> to vector<4x32xf32>
    %29 = arith.mulf %27, %28 : vector<4x32xf32>
    %30 = vector.broadcast %1 : vector<1x32xf32> to vector<4x32xf32>
    %31 = arith.addf %29, %30 : vector<4x32xf32>
    %cst_18 = arith.constant 0.000000e+00 : f32
    %32 = vector.broadcast %cst_18 : f32 to vector<4x32xf32>
    %33 = arith.maximumf %31, %32 : vector<4x32xf32>
    %c0_19 = arith.constant 0 : index
    %c3 = arith.constant 3 : index
    %c0_20 = arith.constant 0 : index
    %c0_21 = arith.constant 0 : index
    %34 = vector.load %arg2[%c0_19, %c3, %c0_20, %c0_21] : memref<1x4x4x32xbf16, #tpu.memory_space<vmem>>, vector<1x1x4x32xbf16>
    %35 = vector.shape_cast %34 : vector<1x1x4x32xbf16> to vector<4x32xbf16>
    %36 = arith.extf %35 : vector<4x32xbf16> to vector<4x32xf32>
    %37 = vector.broadcast %0 : vector<1x32xf32> to vector<4x32xf32>
    %38 = arith.mulf %36, %37 : vector<4x32xf32>
    %39 = vector.broadcast %1 : vector<1x32xf32> to vector<4x32xf32>
    %40 = arith.addf %38, %39 : vector<4x32xf32>
    %cst_22 = arith.constant 0.000000e+00 : f32
    %41 = vector.broadcast %cst_22 : f32 to vector<4x32xf32>
    %42 = arith.maximumf %40, %41 : vector<4x32xf32>
    %43 = arith.maximumf %33, %42 : vector<4x32xf32>
    %44 = arith.truncf %43 : vector<4x32xf32> to vector<4x32xbf16>
    %c0_23 = arith.constant 0 : index
    %c1_24 = arith.constant 1 : index
    %c0_25 = arith.constant 0 : index
    %c0_26 = arith.constant 0 : index
    %45 = vector.load %arg5[%c0_23, %c1_24, %c0_25, %c0_26] : memref<1x2x4x32xbf16, #tpu.memory_space<vmem>>, vector<1x1x4x32xbf16>
    %46 = vector.shape_cast %45 : vector<1x1x4x32xbf16> to vector<4x32xbf16>
    %47 = vector.shape_cast %44 : vector<4x32xbf16> to vector<1x1x4x32xbf16>
    tpu.vector_store %arg5[%c0_23, %c1_24, %c0_25, %c0_26], %47 {strides = array<i32>} : memref<1x2x4x32xbf16, #tpu.memory_space<vmem>>, vector<1x1x4x32xbf16>,
    return
  }
  func.func @transform_0(%arg0: i32, %arg1: i32) -> (i32, i32, i32, i32) {
    %c0_i32 = arith.constant 0 : i32
    %c0_i32_0 = arith.constant 0 : i32
    %c0_i32_1 = arith.constant 0 : i32
    return %arg0, %arg1, %c0_i32, %c0_i32_0 : i32, i32, i32, i32
  }
  func.func @transform_1(%arg0: i32, %arg1: i32) -> (i32, i32) {
    %c0_i32 = arith.constant 0 : i32
    %c0_i32_0 = arith.constant 0 : i32
    %c0_i32_1 = arith.constant 0 : i32
    return %c0_i32, %c0_i32_0 : i32, i32
  }
  func.func @transform_2(%arg0: i32, %arg1: i32) -> (i32, i32) {
    %c0_i32 = arith.constant 0 : i32
    %c0_i32_0 = arith.constant 0 : i32
    %c0_i32_1 = arith.constant 0 : i32
    return %c0_i32, %c0_i32_0 : i32, i32
  }
  func.func @transform_3(%arg0: i32, %arg1: i32) -> (i32, i32, i32, i32) {
    %c0_i32 = arith.constant 0 : i32
    %c0_i32_0 = arith.constant 0 : i32
    %c0_i32_1 = arith.constant 0 : i32
    return %arg0, %arg1, %c0_i32, %c0_i32_0 : i32, i32, i32, i32
  }
}

module attributes {stable_mosaic.version = 11 : i64} {
  func.func @_conv_kernel(%arg0: i32, %arg1: i32, %arg2: memref<1x6x6x32xbf16, #tpu.memory_space<vmem>>, %arg3: memref<3x1x96x32xbf16, #tpu.memory_space<vmem>>, %arg4: memref<1x4x4x32xbf16, #tpu.memory_space<vmem>>, %arg5: memref<1x1x2x32xf32, #tpu.memory_space<vmem>>) attributes {dimension_semantics = [#tpu.dimension_semantics<parallel>, #tpu.dimension_semantics<parallel>], iteration_bounds = array<i64: 2, 1>, scalar_prefetch = 0 : i64, scratch_operands = 0 : i64, tpu.core_type = #tpu.core_type<tc>, window_params = [{transform_indices = @transform_0, window_bounds = array<i64: 1, 6, 6, 32>}, {pipeline_mode = #tpu.pipeline_mode<synchronous>, transform_indices = @transform_1, window_bounds = array<i64: 3, 1, 96, 32>}, {transform_indices = @transform_2, window_bounds = array<i64: 1, 4, 4, 32>}, {transform_indices = @transform_3, window_bounds = array<i64: 1, 1, 2, 32>}]} {
    %c4_i32 = arith.constant 4 : i32
    %0 = arith.muli %arg1, %c4_i32 : i32
    %c0_i32 = arith.constant 0 : i32
    %1 = arith.addi %0, %c0_i32 : i32
    %c0 = arith.constant 0 : index
    %2 = arith.index_cast %1 : i32 to index
    %c0_0 = arith.constant 0 : index
    %c0_1 = arith.constant 0 : index
    %3 = vector.load %arg2[%c0, %2, %c0_0, %c0_1] : memref<1x6x6x32xbf16, #tpu.memory_space<vmem>>, vector<1x4x6x32xbf16>
    %4 = vector.shape_cast %3 : vector<1x4x6x32xbf16> to vector<4x6x32xbf16>
    %5 = vector.extract_strided_slice %4 {offsets = [0, 0, 0], sizes = [4, 4, 32], strides = [1, 1, 1]} : vector<4x6x32xbf16> to vector<4x4x32xbf16>
    %6 = vector.extract_strided_slice %4 {offsets = [0, 1, 0], sizes = [4, 4, 32], strides = [1, 1, 1]} : vector<4x6x32xbf16> to vector<4x4x32xbf16>
    %7 = vector.extract_strided_slice %4 {offsets = [0, 2, 0], sizes = [4, 4, 32], strides = [1, 1, 1]} : vector<4x6x32xbf16> to vector<4x4x32xbf16>
    %8 = tpu.concatenate %5, %6, %7 in 2 : vector<4x4x32xbf16>, vector<4x4x32xbf16>, vector<4x4x32xbf16> -> vector<4x4x96xbf16>
    %9 = vector.shape_cast %8 : vector<4x4x96xbf16> to vector<16x96xbf16>
    %c0_2 = arith.constant 0 : index
    %c0_3 = arith.constant 0 : index
    %c0_4 = arith.constant 0 : index
    %c0_5 = arith.constant 0 : index
    %10 = vector.load %arg3[%c0_2, %c0_3, %c0_4, %c0_5] : memref<3x1x96x32xbf16, #tpu.memory_space<vmem>>, vector<1x1x96x32xbf16>
    %11 = vector.shape_cast %10 : vector<1x1x96x32xbf16> to vector<96x32xbf16>
    %cst = arith.constant dense<0.000000e+00> : vector<16x32xf32>
    %12 = tpu.matmul %9, %11, %cst {dimension_numbers = #tpu.dot_dimension_numbers<[1], [0], [0], [1], [0, 0, 1, 1], [], []>} : vector<16x96xbf16>, vector<96x32xbf16>, vector<16x32xf32> -> vector<16x32xf32>
    %c1_i32 = arith.constant 1 : i32
    %13 = arith.addi %0, %c1_i32 : i32
    %c0_6 = arith.constant 0 : index
    %14 = arith.index_cast %13 : i32 to index
    %c0_7 = arith.constant 0 : index
    %c0_8 = arith.constant 0 : index
    %15 = vector.load %arg2[%c0_6, %14, %c0_7, %c0_8] : memref<1x6x6x32xbf16, #tpu.memory_space<vmem>>, vector<1x4x6x32xbf16>
    %16 = vector.shape_cast %15 : vector<1x4x6x32xbf16> to vector<4x6x32xbf16>
    %17 = vector.extract_strided_slice %16 {offsets = [0, 0, 0], sizes = [4, 4, 32], strides = [1, 1, 1]} : vector<4x6x32xbf16> to vector<4x4x32xbf16>
    %18 = vector.extract_strided_slice %16 {offsets = [0, 1, 0], sizes = [4, 4, 32], strides = [1, 1, 1]} : vector<4x6x32xbf16> to vector<4x4x32xbf16>
    %19 = vector.extract_strided_slice %16 {offsets = [0, 2, 0], sizes = [4, 4, 32], strides = [1, 1, 1]} : vector<4x6x32xbf16> to vector<4x4x32xbf16>
    %20 = tpu.concatenate %17, %18, %19 in 2 : vector<4x4x32xbf16>, vector<4x4x32xbf16>, vector<4x4x32xbf16> -> vector<4x4x96xbf16>
    %21 = vector.shape_cast %20 : vector<4x4x96xbf16> to vector<16x96xbf16>
    %c1 = arith.constant 1 : index
    %c0_9 = arith.constant 0 : index
    %c0_10 = arith.constant 0 : index
    %c0_11 = arith.constant 0 : index
    %22 = vector.load %arg3[%c1, %c0_9, %c0_10, %c0_11] : memref<3x1x96x32xbf16, #tpu.memory_space<vmem>>, vector<1x1x96x32xbf16>
    %23 = vector.shape_cast %22 : vector<1x1x96x32xbf16> to vector<96x32xbf16>
    %cst_12 = arith.constant dense<0.000000e+00> : vector<16x32xf32>
    %24 = tpu.matmul %21, %23, %cst_12 {dimension_numbers = #tpu.dot_dimension_numbers<[1], [0], [0], [1], [0, 0, 1, 1], [], []>} : vector<16x96xbf16>, vector<96x32xbf16>, vector<16x32xf32> -> vector<16x32xf32>
    %25 = arith.addf %12, %24 : vector<16x32xf32>
    %c2_i32 = arith.constant 2 : i32
    %26 = arith.addi %0, %c2_i32 : i32
    %c0_13 = arith.constant 0 : index
    %27 = arith.index_cast %26 : i32 to index
    %c0_14 = arith.constant 0 : index
    %c0_15 = arith.constant 0 : index
    %28 = vector.load %arg2[%c0_13, %27, %c0_14, %c0_15] : memref<1x6x6x32xbf16, #tpu.memory_space<vmem>>, vector<1x4x6x32xbf16>
    %29 = vector.shape_cast %28 : vector<1x4x6x32xbf16> to vector<4x6x32xbf16>
    %30 = vector.extract_strided_slice %29 {offsets = [0, 0, 0], sizes = [4, 4, 32], strides = [1, 1, 1]} : vector<4x6x32xbf16> to vector<4x4x32xbf16>
    %31 = vector.extract_strided_slice %29 {offsets = [0, 1, 0], sizes = [4, 4, 32], strides = [1, 1, 1]} : vector<4x6x32xbf16> to vector<4x4x32xbf16>
    %32 = vector.extract_strided_slice %29 {offsets = [0, 2, 0], sizes = [4, 4, 32], strides = [1, 1, 1]} : vector<4x6x32xbf16> to vector<4x4x32xbf16>
    %33 = tpu.concatenate %30, %31, %32 in 2 : vector<4x4x32xbf16>, vector<4x4x32xbf16>, vector<4x4x32xbf16> -> vector<4x4x96xbf16>
    %34 = vector.shape_cast %33 : vector<4x4x96xbf16> to vector<16x96xbf16>
    %c2 = arith.constant 2 : index
    %c0_16 = arith.constant 0 : index
    %c0_17 = arith.constant 0 : index
    %c0_18 = arith.constant 0 : index
    %35 = vector.load %arg3[%c2, %c0_16, %c0_17, %c0_18] : memref<3x1x96x32xbf16, #tpu.memory_space<vmem>>, vector<1x1x96x32xbf16>
    %36 = vector.shape_cast %35 : vector<1x1x96x32xbf16> to vector<96x32xbf16>
    %cst_19 = arith.constant dense<0.000000e+00> : vector<16x32xf32>
    %37 = tpu.matmul %34, %36, %cst_19 {dimension_numbers = #tpu.dot_dimension_numbers<[1], [0], [0], [1], [0, 0, 1, 1], [], []>} : vector<16x96xbf16>, vector<96x32xbf16>, vector<16x32xf32> -> vector<16x32xf32>
    %38 = arith.addf %25, %37 : vector<16x32xf32>
    %39 = vector.extract_strided_slice %38 {offsets = [0, 0], sizes = [4, 32], strides = [1, 1]} : vector<16x32xf32> to vector<4x32xf32>
    %40 = arith.truncf %39 : vector<4x32xf32> to vector<4x32xbf16>
    %c0_20 = arith.constant 0 : index
    %c0_21 = arith.constant 0 : index
    %c0_22 = arith.constant 0 : index
    %c0_23 = arith.constant 0 : index
    %41 = vector.load %arg4[%c0_20, %c0_21, %c0_22, %c0_23] : memref<1x4x4x32xbf16, #tpu.memory_space<vmem>>, vector<1x1x4x32xbf16>
    %42 = vector.shape_cast %41 : vector<1x1x4x32xbf16> to vector<4x32xbf16>
    %43 = vector.shape_cast %40 : vector<4x32xbf16> to vector<1x1x4x32xbf16>
    tpu.vector_store %arg4[%c0_20, %c0_21, %c0_22, %c0_23], %43 {strides = array<i32>} : memref<1x4x4x32xbf16, #tpu.memory_space<vmem>>, vector<1x1x4x32xbf16>,
    %44 = vector.extract_strided_slice %38 {offsets = [4, 0], sizes = [4, 32], strides = [1, 1]} : vector<16x32xf32> to vector<4x32xf32>
    %45 = arith.truncf %44 : vector<4x32xf32> to vector<4x32xbf16>
    %c0_24 = arith.constant 0 : index
    %c1_25 = arith.constant 1 : index
    %c0_26 = arith.constant 0 : index
    %c0_27 = arith.constant 0 : index
    %46 = vector.load %arg4[%c0_24, %c1_25, %c0_26, %c0_27] : memref<1x4x4x32xbf16, #tpu.memory_space<vmem>>, vector<1x1x4x32xbf16>
    %47 = vector.shape_cast %46 : vector<1x1x4x32xbf16> to vector<4x32xbf16>
    %48 = vector.shape_cast %45 : vector<4x32xbf16> to vector<1x1x4x32xbf16>
    tpu.vector_store %arg4[%c0_24, %c1_25, %c0_26, %c0_27], %48 {strides = array<i32>} : memref<1x4x4x32xbf16, #tpu.memory_space<vmem>>, vector<1x1x4x32xbf16>,
    %49 = vector.extract_strided_slice %38 {offsets = [8, 0], sizes = [4, 32], strides = [1, 1]} : vector<16x32xf32> to vector<4x32xf32>
    %50 = arith.truncf %49 : vector<4x32xf32> to vector<4x32xbf16>
    %c0_28 = arith.constant 0 : index
    %c2_29 = arith.constant 2 : index
    %c0_30 = arith.constant 0 : index
    %c0_31 = arith.constant 0 : index
    %51 = vector.load %arg4[%c0_28, %c2_29, %c0_30, %c0_31] : memref<1x4x4x32xbf16, #tpu.memory_space<vmem>>, vector<1x1x4x32xbf16>
    %52 = vector.shape_cast %51 : vector<1x1x4x32xbf16> to vector<4x32xbf16>
    %53 = vector.shape_cast %50 : vector<4x32xbf16> to vector<1x1x4x32xbf16>
    tpu.vector_store %arg4[%c0_28, %c2_29, %c0_30, %c0_31], %53 {strides = array<i32>} : memref<1x4x4x32xbf16, #tpu.memory_space<vmem>>, vector<1x1x4x32xbf16>,
    %54 = vector.extract_strided_slice %38 {offsets = [12, 0], sizes = [4, 32], strides = [1, 1]} : vector<16x32xf32> to vector<4x32xf32>
    %55 = arith.truncf %54 : vector<4x32xf32> to vector<4x32xbf16>
    %c0_32 = arith.constant 0 : index
    %c3 = arith.constant 3 : index
    %c0_33 = arith.constant 0 : index
    %c0_34 = arith.constant 0 : index
    %56 = vector.load %arg4[%c0_32, %c3, %c0_33, %c0_34] : memref<1x4x4x32xbf16, #tpu.memory_space<vmem>>, vector<1x1x4x32xbf16>
    %57 = vector.shape_cast %56 : vector<1x1x4x32xbf16> to vector<4x32xbf16>
    %58 = vector.shape_cast %55 : vector<4x32xbf16> to vector<1x1x4x32xbf16>
    tpu.vector_store %arg4[%c0_32, %c3, %c0_33, %c0_34], %58 {strides = array<i32>} : memref<1x4x4x32xbf16, #tpu.memory_space<vmem>>, vector<1x1x4x32xbf16>,
    %cst_35 = arith.constant dense<0.000000e+00> : vector<32xf32>
    %59 = vector.multi_reduction <add>, %38, %cst_35 [0] : vector<16x32xf32> to vector<32xf32>
    %60 = vector.shape_cast %59 : vector<32xf32> to vector<1x32xf32>
    %c0_36 = arith.constant 0 : index
    %c0_37 = arith.constant 0 : index
    %c0_38 = arith.constant 0 : index
    %c0_39 = arith.constant 0 : index
    %61 = vector.load %arg5[%c0_36, %c0_37, %c0_38, %c0_39] : memref<1x1x2x32xf32, #tpu.memory_space<vmem>>, vector<1x1x1x32xf32>
    %62 = vector.shape_cast %61 : vector<1x1x1x32xf32> to vector<1x32xf32>
    %63 = vector.shape_cast %60 : vector<1x32xf32> to vector<1x1x1x32xf32>
    tpu.vector_store %arg5[%c0_36, %c0_37, %c0_38, %c0_39], %63 {strides = array<i32>} : memref<1x1x2x32xf32, #tpu.memory_space<vmem>>, vector<1x1x1x32xf32>,
    %64 = arith.mulf %38, %38 : vector<16x32xf32>
    %cst_40 = arith.constant dense<0.000000e+00> : vector<32xf32>
    %65 = vector.multi_reduction <add>, %64, %cst_40 [0] : vector<16x32xf32> to vector<32xf32>
    %66 = vector.shape_cast %65 : vector<32xf32> to vector<1x32xf32>
    %c0_41 = arith.constant 0 : index
    %c0_42 = arith.constant 0 : index
    %c1_43 = arith.constant 1 : index
    %c0_44 = arith.constant 0 : index
    %67 = vector.load %arg5[%c0_41, %c0_42, %c1_43, %c0_44] : memref<1x1x2x32xf32, #tpu.memory_space<vmem>>, vector<1x1x1x32xf32>
    %68 = vector.shape_cast %67 : vector<1x1x1x32xf32> to vector<1x32xf32>
    %69 = vector.shape_cast %66 : vector<1x32xf32> to vector<1x1x1x32xf32>
    tpu.vector_store %arg5[%c0_41, %c0_42, %c1_43, %c0_44], %69 {strides = array<i32>} : memref<1x1x2x32xf32, #tpu.memory_space<vmem>>, vector<1x1x1x32xf32>,
    return
  }
  func.func @transform_0(%arg0: i32, %arg1: i32) -> (i32, i32, i32, i32) {
    %c0_i32 = arith.constant 0 : i32
    %c0_i32_0 = arith.constant 0 : i32
    %c0_i32_1 = arith.constant 0 : i32
    %c0_i32_2 = arith.constant 0 : i32
    return %arg0, %c0_i32, %c0_i32_0, %c0_i32_1 : i32, i32, i32, i32
  }
  func.func @transform_1(%arg0: i32, %arg1: i32) -> (i32, i32, i32, i32) {
    %c0_i32 = arith.constant 0 : i32
    %c0_i32_0 = arith.constant 0 : i32
    %c0_i32_1 = arith.constant 0 : i32
    %c0_i32_2 = arith.constant 0 : i32
    %c0_i32_3 = arith.constant 0 : i32
    return %c0_i32, %c0_i32_0, %c0_i32_1, %c0_i32_2 : i32, i32, i32, i32
  }
  func.func @transform_2(%arg0: i32, %arg1: i32) -> (i32, i32, i32, i32) {
    %c0_i32 = arith.constant 0 : i32
    %c0_i32_0 = arith.constant 0 : i32
    %c0_i32_1 = arith.constant 0 : i32
    return %arg0, %arg1, %c0_i32, %c0_i32_0 : i32, i32, i32, i32
  }
  func.func @transform_3(%arg0: i32, %arg1: i32) -> (i32, i32, i32, i32) {
    %c0_i32 = arith.constant 0 : i32
    %c0_i32_0 = arith.constant 0 : i32
    %c0_i32_1 = arith.constant 0 : i32
    return %arg0, %arg1, %c0_i32, %c0_i32_0 : i32, i32, i32, i32
  }
}

module attributes {stable_mosaic.version = 11 : i64} {
  func.func @_conv_kernel(%arg0: i32, %arg1: i32, %arg2: memref<1x2x4x32xbf16, #tpu.memory_space<vmem>>, %arg3: memref<2x1x64x32xbf16, #tpu.memory_space<vmem>>, %arg4: memref<1x32xf32, #tpu.memory_space<vmem>>, %arg5: memref<1x1x3x32xf32, #tpu.memory_space<vmem>>) attributes {dimension_semantics = [#tpu.dimension_semantics<parallel>, #tpu.dimension_semantics<parallel>], iteration_bounds = array<i64: 2, 1>, scalar_prefetch = 0 : i64, scratch_operands = 0 : i64, tpu.core_type = #tpu.core_type<tc>, window_params = [{transform_indices = @transform_0, window_bounds = array<i64: 1, 2, 4, 32>}, {pipeline_mode = #tpu.pipeline_mode<synchronous>, transform_indices = @transform_1, window_bounds = array<i64: 2, 1, 64, 32>}, {pipeline_mode = #tpu.pipeline_mode<synchronous>, transform_indices = @transform_2, window_bounds = array<i64: 1, 32>}, {transform_indices = @transform_3, window_bounds = array<i64: 1, 1, 3, 32>}]} {
    %c1_i32 = arith.constant 1 : i32
    %0 = arith.muli %arg1, %c1_i32 : i32
    %c0_i32 = arith.constant 0 : i32
    %1 = arith.addi %0, %c0_i32 : i32
    %c0 = arith.constant 0 : index
    %2 = arith.index_cast %1 : i32 to index
    %c0_0 = arith.constant 0 : index
    %c0_1 = arith.constant 0 : index
    %3 = vector.load %arg2[%c0, %2, %c0_0, %c0_1] : memref<1x2x4x32xbf16, #tpu.memory_space<vmem>>, vector<1x1x4x32xbf16>
    %4 = vector.shape_cast %3 : vector<1x1x4x32xbf16> to vector<1x4x32xbf16>
    %5 = vector.extract_strided_slice %4 {offsets = [0, 0, 0], sizes = [1, 3, 32], strides = [1, 1, 1]} : vector<1x4x32xbf16> to vector<1x3x32xbf16>
    %6 = vector.extract_strided_slice %4 {offsets = [0, 1, 0], sizes = [1, 3, 32], strides = [1, 1, 1]} : vector<1x4x32xbf16> to vector<1x3x32xbf16>
    %7 = tpu.concatenate %5, %6 in 2 : vector<1x3x32xbf16>, vector<1x3x32xbf16> -> vector<1x3x64xbf16>
    %8 = vector.shape_cast %7 : vector<1x3x64xbf16> to vector<3x64xbf16>
    %c0_2 = arith.constant 0 : index
    %c0_3 = arith.constant 0 : index
    %c0_4 = arith.constant 0 : index
    %c0_5 = arith.constant 0 : index
    %9 = vector.load %arg3[%c0_2, %c0_3, %c0_4, %c0_5] : memref<2x1x64x32xbf16, #tpu.memory_space<vmem>>, vector<1x1x64x32xbf16>
    %10 = vector.shape_cast %9 : vector<1x1x64x32xbf16> to vector<64x32xbf16>
    %cst = arith.constant dense<0.000000e+00> : vector<3x32xf32>
    %11 = tpu.matmul %8, %10, %cst {dimension_numbers = #tpu.dot_dimension_numbers<[1], [0], [0], [1], [0, 0, 1, 1], [], []>} : vector<3x64xbf16>, vector<64x32xbf16>, vector<3x32xf32> -> vector<3x32xf32>
    %c1_i32_6 = arith.constant 1 : i32
    %12 = arith.addi %0, %c1_i32_6 : i32
    %c0_7 = arith.constant 0 : index
    %13 = arith.index_cast %12 : i32 to index
    %c0_8 = arith.constant 0 : index
    %c0_9 = arith.constant 0 : index
    %14 = vector.load %arg2[%c0_7, %13, %c0_8, %c0_9] : memref<1x2x4x32xbf16, #tpu.memory_space<vmem>>, vector<1x1x4x32xbf16>
    %15 = vector.shape_cast %14 : vector<1x1x4x32xbf16> to vector<1x4x32xbf16>
    %16 = vector.extract_strided_slice %15 {offsets = [0, 0, 0], sizes = [1, 3, 32], strides = [1, 1, 1]} : vector<1x4x32xbf16> to vector<1x3x32xbf16>
    %17 = vector.extract_strided_slice %15 {offsets = [0, 1, 0], sizes = [1, 3, 32], strides = [1, 1, 1]} : vector<1x4x32xbf16> to vector<1x3x32xbf16>
    %18 = tpu.concatenate %16, %17 in 2 : vector<1x3x32xbf16>, vector<1x3x32xbf16> -> vector<1x3x64xbf16>
    %19 = vector.shape_cast %18 : vector<1x3x64xbf16> to vector<3x64xbf16>
    %c1 = arith.constant 1 : index
    %c0_10 = arith.constant 0 : index
    %c0_11 = arith.constant 0 : index
    %c0_12 = arith.constant 0 : index
    %20 = vector.load %arg3[%c1, %c0_10, %c0_11, %c0_12] : memref<2x1x64x32xbf16, #tpu.memory_space<vmem>>, vector<1x1x64x32xbf16>
    %21 = vector.shape_cast %20 : vector<1x1x64x32xbf16> to vector<64x32xbf16>
    %cst_13 = arith.constant dense<0.000000e+00> : vector<3x32xf32>
    %22 = tpu.matmul %19, %21, %cst_13 {dimension_numbers = #tpu.dot_dimension_numbers<[1], [0], [0], [1], [0, 0, 1, 1], [], []>} : vector<3x64xbf16>, vector<64x32xbf16>, vector<3x32xf32> -> vector<3x32xf32>
    %23 = arith.addf %11, %22 : vector<3x32xf32>
    %c0_14 = arith.constant 0 : index
    %c0_15 = arith.constant 0 : index
    %24 = vector.load %arg4[%c0_14, %c0_15] : memref<1x32xf32, #tpu.memory_space<vmem>>, vector<1x32xf32>
    %25 = vector.broadcast %24 : vector<1x32xf32> to vector<3x32xf32>
    %26 = arith.addf %23, %25 : vector<3x32xf32>
    %cst_16 = arith.constant 0.000000e+00 : f32
    %27 = vector.broadcast %cst_16 : f32 to vector<3x32xf32>
    %28 = arith.maximumf %26, %27 : vector<3x32xf32>
    %c0_17 = arith.constant 0 : index
    %c0_18 = arith.constant 0 : index
    %c0_19 = arith.constant 0 : index
    %c0_20 = arith.constant 0 : index
    %29 = vector.load %arg5[%c0_17, %c0_18, %c0_19, %c0_20] : memref<1x1x3x32xf32, #tpu.memory_space<vmem>>, vector<1x1x3x32xf32>
    %30 = vector.shape_cast %29 : vector<1x1x3x32xf32> to vector<3x32xf32>
    %31 = vector.shape_cast %28 : vector<3x32xf32> to vector<1x1x3x32xf32>
    tpu.vector_store %arg5[%c0_17, %c0_18, %c0_19, %c0_20], %31 {strides = array<i32>} : memref<1x1x3x32xf32, #tpu.memory_space<vmem>>, vector<1x1x3x32xf32>,
    return
  }
  func.func @transform_0(%arg0: i32, %arg1: i32) -> (i32, i32, i32, i32) {
    %c0_i32 = arith.constant 0 : i32
    %c0_i32_0 = arith.constant 0 : i32
    %c0_i32_1 = arith.constant 0 : i32
    %c0_i32_2 = arith.constant 0 : i32
    return %arg0, %c0_i32, %c0_i32_0, %c0_i32_1 : i32, i32, i32, i32
  }
  func.func @transform_1(%arg0: i32, %arg1: i32) -> (i32, i32, i32, i32) {
    %c0_i32 = arith.constant 0 : i32
    %c0_i32_0 = arith.constant 0 : i32
    %c0_i32_1 = arith.constant 0 : i32
    %c0_i32_2 = arith.constant 0 : i32
    %c0_i32_3 = arith.constant 0 : i32
    return %c0_i32, %c0_i32_0, %c0_i32_1, %c0_i32_2 : i32, i32, i32, i32
  }
  func.func @transform_2(%arg0: i32, %arg1: i32) -> (i32, i32) {
    %c0_i32 = arith.constant 0 : i32
    %c0_i32_0 = arith.constant 0 : i32
    %c0_i32_1 = arith.constant 0 : i32
    return %c0_i32, %c0_i32_0 : i32, i32
  }
  func.func @transform_3(%arg0: i32, %arg1: i32) -> (i32, i32, i32, i32) {
    %c0_i32 = arith.constant 0 : i32
    %c0_i32_0 = arith.constant 0 : i32
    %c0_i32_1 = arith.constant 0 : i32
    return %arg0, %arg1, %c0_i32, %c0_i32_0 : i32, i32, i32, i32
  }
}

</mosaic_0001>

<bundles_post_ra>
// kernel: vgg_feature_extractor.12
= control target key start
LH: loop header
LB: loop body
LE: loop exit
PB: predicated region body
PF: predicated region fallthrough
CT: control target
= control target key end

     0   :  { %s1457_s12 = smov 0   ;;  %s1459_s13 = smov 0   ;;  %s1890_s0 = inlined_call_operand.vmem [shape: bf16[2,10,6,16], index: 0, kind: input, shape index: {}]   ;;  %s1891_s1 = inlined_call_operand.vmem [shape: bf16[3,1,48,16], index: 1, kind: input, shape index: {}]   ;;  %s1892_s2 = inlined_call_operand.vmem [shape: f32[1,16], index: 2, kind: input, shape index: {}]   ;;  %s1893_s3 = inlined_call_operand.vmem [shape: bf16[2,4,4,16], index: 3, kind: output, shape index: {}]  }
   0x1   :  { %s1461_s14 = smov 0  }
   0x2 LB: > { %s25_s15 = sadd.s32 1, %s1428_s13  ;;  %p1218_p0 = scmp.ge.s32.totalorder %s1432_s14, 1  ;;  %s1432_s14 = sphi %s1461_s14, %s13_s14   ;;  %s1428_s13 = sphi %s1459_s13, %s1895_s13   ;;  %s1424_s12 = sphi %s1457_s12, %s1894_s12  }
   0x3   : > { %p27_p1 = scmp.ge.s32.totalorder %s25_s15, 2  ;;  %p151_p2 = scmp.lt.s32.totalorder %s1432_s14, 3 }
   0x5   : > { %s1897_s15 = smov (%p27_p1, %s25_s15), 0  ;;  %p152_p3 = pnand %p1218_p0, %p151_p2 }
   0x6   : > { %p179_p4 = scmp.lt.s32.totalorder (!%p152_p3), %s1424_s12, 1  ;;  %s1434_s20 = smov (!%p152_p3), 32   ;;  %v1401_v48 = vld [vmem:[%s1891_s1] sm:$0xff] (!%p152_p3)   ;;  %v1402_v52 = vld [vmem:[%s1891_s1 + $0x8] sm:$0xff] (!%p152_p3)   ;;  %v1403_v59 = vld [vmem:[%s1891_s1 + $0x10] sm:$0xff] (!%p152_p3)   ;;  %vm326_vm0 = vcmask (!%p152_p3), 130048  }
   0x7   : > { %155 = sbr.rel (%p152_p3) target bundleno = 466 (0x1d2), region = 32  ;;  %s1435_s21 = smov (!%p152_p3), 16   ;;  %1321 = vmatprep.subr.bf16.mxu0 (!%p152_p3), %v1401_v48  ;;  %vm351_vm1 = vcmask (!%p152_p3), 261120   ;;  %vm612_vm2 = vcmask (!%p152_p3), 392192   ;;  %vm1094_vm3 = vcmask (!%p152_p3), 123904  }
   0x8   : > { %1322 = vmatpush3.bf16.msra.mxu0 (!%p152_p3), %v1401_v48 }
   0x9   : > { %1323 = vmatprep.subr.bf16.mxu0 (!%p152_p3), %v1402_v52 }
   0xc   : > { %1324 = vmatpush3.bf16.msra.mxu0 (!%p152_p3), %v1402_v52 }
   0xd   : > { %1325 = vmatprep.subr.bf16.mxu0 (!%p152_p3), %v1403_v59 }
   0xe   : > { %s1899_s12 = smov (!%p179_p4, %s1424_s12), 1 }
   0xf   : > { %s1349_s16 = smul.u32 40, %s1899_s12 }
  0x10   : > { %1326 = vmatpush3.bf16.msra.mxu0 %v1403_v59 }
  0x11   : > { %s1481_s19 = scalar_lea.vmem %s1890_s0, %s1349_s16 }
  0x12   : > { %v1484_v0 = vld [vmem:[%s1481_s19 + $0x4] sm:$0x7]  ;;  %v1487_v1 = vld [vmem:[%s1481_s19] sm:$0x7]  ;;  %v1490_v2 = vld [vmem:[%s1481_s19 + $0x8] sm:$0x7] }
  0x13   : > { %v1223_v3 = vcombine.low %v1484_v0, %v1484_v0  ;;  %v1222_v4 = vcombine.low %v1487_v1, %v1487_v1  ;;  %v1498_v5 = vcombine.low %v1490_v2, %v1490_v2  ;;  %v1501_v6 = vld [vmem:[%s1481_s19 + $0xc] sm:$0x7]  ;;  %v1504_v7 = vld [vmem:[%s1481_s19 + $0x14] sm:$0x7]  ;;  %v1507_v8 = vld [vmem:[%s1481_s19 + $0x10] sm:$0x7] }
  0x14   : > { %v1511_v9 = vcombine.low %v1501_v6, %v1501_v6  ;;  %v1515_v10 = vcombine.low %v1504_v7, %v1504_v7  ;;  %v1519_v11 = vcombine.low %v1507_v8, %v1507_v8  ;;  %v1525_v19 = vld [vmem:[%s1481_s19 + $0x1c] sm:$0x7]  ;;  %v1531_v23 = vld [vmem:[%s1481_s19 + $0x18] sm:$0x7]  ;;  %v1559_v51 = vld [vmem:[%s1481_s19 + $0x8] sm:$0x7] }
  0x15   : > { %v303_v12 = vrot.slane %v1223_v3, 1  ;;  %v302_v13 = vrot.slane %v1222_v4, 1  ;;  %v245_v14 = vshrl.u32 %v1498_v5, 16  ;;  %v247_v15 = vshll.u32 %v1498_v5, 16  ;;  %v1565_v53 = vld [vmem:[%s1481_s19 + $0x4] sm:$0x7] }
  0x16   : > { %v231_v16 = vshrl.u32 %v1222_v4, 16  ;;  %v233_v17 = vshll.u32 %v1222_v4, 16  ;;  %v254_v18 = vshll.u32 %v1511_v9, 16  ;;  %v252_v21 = vshrl.u32 %v1511_v9, 16  ;;  %v1580_v58 = vld [vmem:[%s1481_s19 + $0x10] sm:$0x7] }
  0x17   : > { %312 = vrot.lane.b32.xlu1 %v303_v12, %s1434_s20  ;;  %310 = vrot.lane.b32.xlu0 %v302_v13, %s1434_s20  ;;  %v249_v20 = vrot.slane %v247_v15, 1  ;;  %v240_v22 = vshll.u32 %v1223_v3, 16  ;;  %v238_v26 = vshrl.u32 %v1223_v3, 16  ;;  %v268_v27 = vshll.u32 %v1515_v10, 16  ;;  %v1586_v60 = vld [vmem:[%s1481_s19 + $0xc] sm:$0x7] }
  0x18   : > { %v235_v24 = vrot.slane %v233_v17, 1  ;;  %v256_v25 = vrot.slane %v254_v18, 1  ;;  %v261_v30 = vshll.u32 %v1519_v11, 16  ;;  %v1537_v31 = vcombine.low %v1525_v19, %v1525_v19  ;;  %v1596_v3 = vld [vmem:[%s1481_s19 + $0xc] sm:$0x7] }
  0x19   : > { %v250_v28 = vor.u32 %v249_v20, %v245_v14  ;;  %v242_v29 = vrot.slane %v240_v22, 1  ;;  %v1541_v33 = vcombine.low %v1531_v23, %v1531_v23  ;;  %v266_v35 = vshrl.u32 %v1515_v10, 16  ;;  %v1625_v22 = vld [vmem:[%s1481_s19 + $0x14] sm:$0x7]  ;;  %v1668_v48 = vld [vmem:[%s1481_s19 + $0x1c] sm:$0x7] }
  0x1a   : > { %v236_v32 = vor.u32 %v235_v24, %v231_v16  ;;  %v257_v34 = vor.u32 %v256_v25, %v252_v21  ;;  %v270_v36 = vrot.slane %v268_v27, 1  ;;  %v282_v37 = vshll.u32 %v1537_v31, 16  ;;  %v1628_v24 = vld [vmem:[%s1481_s19 + $0x10] sm:$0x7] }
  0x1b   : > { %290 = vrot.lane.b32.xlu1 %v250_v28, %s1435_s21  ;;  %v243_v38 = vor.u32 %v242_v29, %v238_v26  ;;  %v259_v39 = vshrl.u32 %v1519_v11, 16  ;;  %v263_v40 = vrot.slane %v261_v30, 1  ;;  %v275_v41 = vshll.u32 %v1541_v33, 16 }
  0x1c   : > { %286 = vrot.lane.b32.xlu0 %v236_v32, %s1435_s21  ;;  %v271_v42 = vor.u32 %v270_v36, %v266_v35  ;;  %v280_v43 = vshrl.u32 %v1537_v31, 16  ;;  %v284_v44 = vrot.slane %v282_v37, 1  ;;  %v273_v45 = vshrl.u32 %v1541_v33, 16  ;;  %v1645_v35 = vld [vmem:[%s1481_s19 + $0x18] sm:$0x7] }
  0x1d   : > { %v264_v46 = vor.u32 %v263_v40, %v259_v39  ;;  %v277_v47 = vrot.slane %v275_v41, 1  ;;  %v305_v54 = vrot.slane %v1511_v9, 1  ;;  %v1571_v55 = vcombine.low %v1559_v51, %v1559_v51  ;;  %v1648_v36 = vld [vmem:[%s1481_s19 + $0x14] sm:$0x7] }
  0x1e   : > { %v285_v49 = vor.u32 %v284_v44, %v280_v43  ;;  %v304_v56 = vrot.slane %v1498_v5, 1  ;;  %v1577_v57 = vcombine.low %v1565_v53, %v1565_v53  ;;  %v307_v61 = vrot.slane %v1515_v10, 1  ;;  %v1606_v10 = vld [vmem:[%s1481_s19 + $0x8] sm:$0x7] }
  0x1f   : > { %292 = vrot.lane.b32.xlu1 %v257_v34, %s1435_s21  ;;  %v278_v50 = vor.u32 %v277_v47, %v273_v45  ;;  %v419_v62 = vshll.u32 %v1571_v55, 16  ;;  %v1593_v63 = vcombine.low %v1580_v58, %v1580_v58  ;;  %v306_v4 = vrot.slane %v1519_v11, 1  ;;  %v1665_v47 = vld [vmem:[%s1481_s19 + $0x20] sm:$0x7] }
  0x20   : > { %288 = vrot.lane.b32.xlu0 %v243_v38, %s1435_s21  ;;  %v412_v5 = vshll.u32 %v1577_v57, 16  ;;  %v1603_v9 = vcombine.low %v1586_v60, %v1586_v60  ;;  %v309_v12 = vrot.slane %v1537_v31, 1  ;;  %v1611_v13 = vcombine.low %v1596_v3, %v1596_v3 }
  0x21   : > { %v417_v11 = vshrl.u32 %v1571_v55, 16  ;;  %v421_v14 = vrot.slane %v419_v62, 1  ;;  %v433_v15 = vshll.u32 %v1593_v63, 16  ;;  %v1618_v16 = vcombine.low %v1606_v10, %v1606_v10 }
  0x22   : > { %v308_v17 = vrot.slane %v1541_v33, 1  ;;  %v410_v18 = vshrl.u32 %v1577_v57, 16  ;;  %v414_v20 = vrot.slane %v412_v5, 1  ;;  %v426_v21 = vshll.u32 %v1603_v9, 16 }
  0x23   : > { %296 = vrot.lane.b32.xlu1 %v271_v42, %s1435_s21  ;;  %v431_v25 = vshrl.u32 %v1593_v63, 16  ;;  %v828_v26 = vshll.u32 %v1611_v13, 16  ;;  %v422_v27 = vor.u32 %v421_v14, %v417_v11  ;;  %v435_v28 = vrot.slane %v433_v15, 1 }
  0x24   : > { %294 = vrot.lane.b32.xlu0 %v264_v46, %s1435_s21  ;;  %v821_v29 = vshll.u32 %v1618_v16, 16  ;;  %v1636_v30 = vcombine.low %v1625_v22, %v1625_v22  ;;  %v415_v31 = vor.u32 %v414_v20, %v410_v18  ;;  %v424_v32 = vshrl.u32 %v1603_v9, 16 }
  0x25   : > { %v428_v33 = vrot.slane %v426_v21, 1  ;;  %v1642_v34 = vcombine.low %v1628_v24, %v1628_v24  ;;  %v826_v37 = vshrl.u32 %v1611_v13, 16  ;;  %v830_v38 = vrot.slane %v828_v26, 1 }
  0x26   : > { %v819_v39 = vshrl.u32 %v1618_v16, 16  ;;  %v436_v40 = vor.u32 %v435_v28, %v431_v25  ;;  %v823_v41 = vrot.slane %v821_v29, 1  ;;  %v842_v42 = vshll.u32 %v1636_v30, 16 }
  0x27   : > { %300 = vrot.lane.b32.xlu1 %v285_v49, %s1435_s21  ;;  %v1656_v43 = vcombine.low %v1645_v35, %v1645_v35  ;;  %v429_v44 = vor.u32 %v428_v33, %v424_v32  ;;  %v835_v45 = vshll.u32 %v1642_v34, 16  ;;  %v1662_v46 = vcombine.low %v1648_v36, %v1648_v36  ;;  %v1695_v32 = vld [vmem:[%s1481_s19 + $0x1c] sm:$0x7]  ;;  %v1698_v33 = vld [vmem:[%s1481_s19 + $0x18] sm:$0x7] }
  0x28   : > { %298 = vrot.lane.b32.xlu0 %v278_v50, %s1435_s21  ;;  %v831_v49 = vor.u32 %v830_v38, %v826_v37  ;;  %v840_v50 = vshrl.u32 %v1636_v30, 16  ;;  %v824_v52 = vor.u32 %v823_v41, %v819_v39  ;;  %v1675_v59 = vcombine.low %v1665_v47, %v1665_v47  ;;  %v1711_v41 = vld [vmem:[%s1481_s19 + $0x24] sm:$0x7] }
  0x29   : > { %v837_v62 = vrot.slane %v835_v45, 1  ;;  %v1682_v5 = vcombine.low %v1668_v48, %v1668_v48  ;;  %v445_v11 = vshrl.u32 %v1656_v43, 16  ;;  %v438_v18 = vshrl.u32 %v1662_v46, 16 }
  0x2a   : > { %v461_v15 = vshll.u32 %v1675_v59, 16  ;;  %v459_v26 = vshrl.u32 %v1675_v59, 16  ;;  %v1703_v38 = vcombine.low %v1695_v32, %v1695_v32 }
  0x2b   : > { %316 = vrot.lane.b32.xlu1 %v305_v54, %s1434_s20  ;;  %v844_v54 = vrot.slane %v842_v42, 1  ;;  %v454_v21 = vshll.u32 %v1682_v5, 16  ;;  %v452_v29 = vshrl.u32 %v1682_v5, 16  ;;  %v1714_v42 = vld [vmem:[%s1481_s19 + $0x20] sm:$0x7]  ;;  %s1295_s19 = sshll.u32 %s1899_s12, 3 }
  0x2c   : > { %314 = vrot.lane.b32.xlu0 %v304_v56, %s1434_s20  ;;  %v447_v56 = vshll.u32 %v1656_v43, 16  ;;  %v856_v45 = vshll.u32 %v1703_v38, 16  ;;  %s192_s22 = scalar_lea.vmem %s1893_s3, %s1295_s19 }
  0x2e   : > { %v449_v14 = vrot.slane %v447_v56, 1  ;;  %v484_v56 = vrot.slane %v1593_v63, 1 }
  0x2f   : > { %320 = vrot.lane.b32.xlu1 %v307_v61, %s1434_s20  ;;  %v833_v61 = vshrl.u32 %v1642_v34, 16 }
  0x30   : > { %318 = vrot.lane.b32.xlu0 %v306_v4, %s1434_s20  ;;  %v440_v4 = vshll.u32 %v1662_v46, 16  ;;  %v450_v25 = vor.u32 %v449_v14, %v445_v11 }
  0x32   : > { %v442_v20 = vrot.slane %v440_v4, 1  ;;  %v483_v4 = vrot.slane %v1603_v9, 1 }
  0x33   : > { %324 = vrot.lane.b32.xlu1 %v309_v12, %s1434_s20  ;;  %v845_v12 = vor.u32 %v844_v54, %v840_v50  ;;  %v481_v50 = vrot.slane %v1577_v57, 1  ;;  %v1276_v54 = vcombine.low %v1714_v42, %v1714_v42 }
  0x34   : > { %322 = vrot.lane.b32.xlu0 %v308_v17, %s1434_s20  ;;  %v838_v17 = vor.u32 %v837_v62, %v833_v61  ;;  %v443_v28 = vor.u32 %v442_v20, %v438_v18  ;;  %v858_v61 = vrot.slane %v856_v45, 1 }
  0x35   : > { %v863_v11 = vshll.u32 %v1276_v54, 16  ;;  %v861_v18 = vshrl.u32 %v1276_v54, 16 }
  0x37   : > { %467 = vrot.lane.b32.xlu1 %v422_v27, %s1435_s21  ;;  %v463_v27 = vrot.slane %v461_v15, 1  ;;  %v865_v20 = vrot.slane %v863_v11, 1 }
  0x38   : > { %465 = vrot.lane.b32.xlu0 %v415_v31, %s1435_s21  ;;  %v456_v31 = vrot.slane %v454_v21, 1 }
  0x39   : > { %v464_v37 = vor.u32 %v463_v27, %v459_v26  ;;  %v866_v9 = vor.u32 %v865_v20, %v861_v18  ;;  %v891_v26 = vrot.slane %v1611_v13, 1  ;;  %v890_v27 = vrot.slane %v1618_v16, 1  ;;  %v1753_v13 = vld [vmem:[%s1891_s1 + $0x30] sm:$0xff]   ;;  %v1407_v16 = vld [vmem:[%s1891_s1 + $0x28] sm:$0xff]  }
  0x3a   : > { %v457_v39 = vor.u32 %v456_v31, %v452_v29  ;;  %v893_v29 = vrot.slane %v1636_v30, 1  ;;  %v892_v31 = vrot.slane %v1642_v34, 1  ;;  %1331 = vmatprep.subr.bf16.mxu0 %v1753_v13  ;;  %v486_v30 = vrot.slane %v1656_v43, 1 }
  0x3b   : > { %471 = vrot.lane.b32.xlu1 %v436_v40, %s1435_s21  ;;  %v1708_v40 = vcombine.low %v1698_v33, %v1698_v33  ;;  %v485_v34 = vrot.slane %v1662_v46, 1  ;;  %v896_v46 = vrot.slane %v1276_v54, 1 }
  0x3c   : > { %469 = vrot.lane.b32.xlu0 %v429_v44, %s1435_s21  ;;  %v482_v44 = vrot.slane %v1571_v55, 1  ;;  %v854_v55 = vshrl.u32 %v1703_v38, 16 }
  0x3d   : > { %v894_v43 = vrot.slane %v1708_v40, 1 }
  0x3e   : > { %v859_v14 = vor.u32 %v858_v61, %v854_v55 }
  0x3f   : > { %876 = vrot.lane.b32.xlu1 %v831_v49, %s1435_s21  ;;  %v1277_v49 = vcombine.low %v1711_v41, %v1711_v41 }
  0x40   : > { %874 = vrot.lane.b32.xlu0 %v824_v52, %s1435_s21  ;;  %v849_v52 = vshll.u32 %v1708_v40, 16 }
  0x41   : > { %v870_v62 = vshll.u32 %v1277_v49, 16  ;;  %v868_v15 = vshrl.u32 %v1277_v49, 16  ;;  %v897_v45 = vrot.slane %v1277_v49, 1 }
  0x42   : > { %v851_v57 = vrot.slane %v849_v52, 1 }
  0x43   : > { %880 = vrot.lane.b32.xlu1 %v845_v12, %s1435_s21  ;;  %v847_v12 = vshrl.u32 %v1708_v40, 16 }
  0x44   : > { %878 = vrot.lane.b32.xlu0 %v838_v17, %s1435_s21  ;;  %v872_v17 = vrot.slane %v870_v62, 1  ;;  %v1436_v62 = vmov 1983009808  }
  0x45   : > { %v852_v63 = vor.u32 %v851_v57, %v847_v12  ;;  %v563_v40 = vunpack.c.l.s4 %v1436_v62 }
  0x46   : > { %v873_v21 = vor.u32 %v872_v17, %v868_v15 }
  0x47   : > { %475 = vrot.lane.b32.xlu1 %v450_v25, %s1435_s21  ;;  %v1404_v25 = vld [vmem:[%s1891_s1 + $0x18] sm:$0xff]   ;;  %v564_v11 = vunpack.c.0.s8 %v563_v40 }
  0x48   : > { %473 = vrot.lane.b32.xlu0 %v443_v28, %s1435_s21  ;;  %1311 = vmatprep.subr.bf16.mxu1 %v1404_v25  ;;  %v1405_v28 = vld [vmem:[%s1891_s1 + $0x20] sm:$0xff]  }
  0x49   : > { %1312 = vmatpush3.bf16.msra.mxu1 %v1404_v25 }
  0x4a   : > { %1313 = vmatprep.subr.bf16.mxu1 %v1405_v28 }
  0x4b   : > { %479 = vrot.lane.b32.xlu1 %v464_v37, %s1435_s21  ;;  %v488_v37 = vrot.slane %v1675_v59, 1 }
  0x4c   : > { %477 = vrot.lane.b32.xlu0 %v457_v39, %s1435_s21  ;;  %v487_v39 = vrot.slane %v1682_v5, 1 }
  0x4d   : > { %1314 = vmatpush3.bf16.msra.mxu1 %v1405_v28 }
  0x4e   : > { %1315 = vmatprep.subr.bf16.mxu1 %v1407_v16 }
  0x4f   : > { %491 = vrot.lane.b32.xlu1 %v482_v44, %s1434_s20  ;;  %v895_v44 = vrot.slane %v1703_v38, 1 }
  0x50   : > { %489 = vrot.lane.b32.xlu0 %v481_v50, %s1434_s20 }
  0x51   : > { %1316 = vmatpush3.bf16.msra.mxu1 %v1407_v16 }
  0x53   : > { %495 = vrot.lane.b32.xlu1 %v484_v56, %s1434_s20 }
  0x54   : > { %493 = vrot.lane.b32.xlu0 %v483_v4, %s1434_s20  ;;  %v565_v4 = vlaneseq }
  0x57   : > { %884 = vrot.lane.b32.xlu1 %v859_v14, %s1435_s21  ;;  %v566_v14 = vshrl.u32 %v565_v4, 7 }
  0x58   : > { %882 = vrot.lane.b32.xlu0 %v852_v63, %s1435_s21 }
  0x59   : > { %v1786_v25 = vsub.s32 %v564_v11, %v566_v14 }
  0x5b   : > { %888 = vrot.lane.b32.xlu1 %v873_v21, %s1435_s21 }
  0x5c   : > { %886 = vrot.lane.b32.xlu0 %v866_v9, %s1435_s21 }
  0x5f   : > { %900 = vrot.lane.b32.xlu1 %v891_v26, %s1434_s20 }
  0x60   : > { %898 = vrot.lane.b32.xlu0 %v890_v27, %s1434_s20 }
  0x63   : > { %904 = vrot.lane.b32.xlu1 %v893_v29, %s1434_s20 }
  0x64   : > { %902 = vrot.lane.b32.xlu0 %v892_v31, %s1434_s20 }
  0x67   : > { %499 = vrot.lane.b32.xlu1 %v486_v30, %s1434_s20 }
  0x68   : > { %497 = vrot.lane.b32.xlu0 %v485_v34, %s1434_s20 }
  0x6b   : > { %503 = vrot.lane.b32.xlu1 %v488_v37, %s1434_s20 }
  0x6c   : > { %501 = vrot.lane.b32.xlu0 %v487_v39, %s1434_s20 }
  0x6f   : > { %908 = vrot.lane.b32.xlu1 %v895_v44, %s1434_s20 }
  0x70   : > { %906 = vrot.lane.b32.xlu0 %v894_v43, %s1434_s20 }
  0x73   : > { %912 = vrot.lane.b32.xlu1 %v897_v45, %s1434_s20 }
  0x74   : > { %910 = vrot.lane.b32.xlu0 %v896_v46, %s1434_s20 }
  0x89   : > { %v313_v59 = vpop.permute.xlu1 %312  ;;  %v311_v5 = vpop.permute.xlu0 %310 }
  0x8d   : > { %v291_v50 = vpop.permute.xlu1 %290 }
  0x8e   : > { %v287_v52 = vpop.permute.xlu0 %286  ;;  %v335_v20 = vsel %vm326_vm0, %v1490_v2, %v291_v50 }
  0x8f   : > { %v329_v12 = vsel %vm326_vm0, %v1487_v1, %v287_v52 }
  0x90   : > { %v353_v17 = vsel %vm351_vm1, %v329_v12, %v311_v5 }
  0x91   : > { %v293_v56 = vpop.permute.xlu1 %292 }
  0x92   : > { %v289_v38 = vpop.permute.xlu0 %288  ;;  %v338_v63 = vsel %vm326_vm0, %v1501_v6, %v293_v56 }
  0x93   : > { %v332_v49 = vsel %vm326_vm0, %v1484_v0, %v289_v38 }
  0x94   : > { %v355_v15 = vsel %vm351_vm1, %v332_v49, %v313_v59 }
  0x95   : > { %v297_v55 = vpop.permute.xlu1 %296  ;;  %v676_v0 = vcombine.low %v353_v17, %v355_v15 }
  0x96   : > { %v295_v61 = vpop.permute.xlu0 %294  ;;  %v344_v28 = vsel %vm326_vm0, %v1504_v7, %v297_v55  ;;  %v1409_v55 = vld [vmem:[%s1891_s1 + $0x40] sm:$0xff]  }
  0x97   : > { %v341_v6 = vsel %vm326_vm0, %v1507_v8, %v295_v61  ;;  %v684_v31 = vrot.slane %v676_v0, %v1786_v25 }
  0x99   : > { %v301_v54 = vpop.permute.xlu1 %300 }
  0x9a   : > { %v299_v57 = vpop.permute.xlu0 %298  ;;  %v350_v37 = vsel %vm326_vm0, %v1525_v19, %v301_v54 }
  0x9b   : > { %v347_v7 = vsel %vm326_vm0, %v1531_v23, %v299_v57  ;;  %v1408_v23 = vld [vmem:[%s1891_s1 + $0x38] sm:$0xff]  }
  0x9d   : > { %v317_v18 = vpop.permute.xlu1 %316 }
  0x9e   : > { %v359_v21 = vsel %vm351_vm1, %v338_v63, %v317_v18  ;;  %v315_v9 = vpop.permute.xlu0 %314 }
  0x9f   : > { %v357_v1 = vsel %vm351_vm1, %v335_v20, %v315_v9 }
  0xa0   : > { %v677_v26 = vcombine.low %v357_v1, %v359_v21 }
  0xa1   : > { %v321_v27 = vpop.permute.xlu1 %320 }
  0xa2   : > { %v319_v29 = vpop.permute.xlu0 %318  ;;  %v691_v2 = vrot.slane %v677_v26, %v1786_v25  ;;  %v363_v16 = vsel %vm351_vm1, %v344_v28, %v321_v27 }
  0xa3   : > { %v361_v30 = vsel %vm351_vm1, %v341_v6, %v319_v29 }
  0xa4   : > { %v692_v34 = vcombine.low %v684_v31, %v691_v2  ;;  %v693_v44 = vcombine.low %v361_v30, %v363_v16 }
  0xa5   : > { %v325_v39 = vpop.permute.xlu1 %324 }
  0xa6   : > { %v367_v8 = vsel %vm351_vm1, %v350_v37, %v325_v39  ;;  %1327 = vmatprep.mubr.msk.bf16.mxu0 %vm612_vm2, %v692_v34  ;;  %v323_v43 = vpop.permute.xlu0 %322  ;;  %v701_v5 = vrot.slane %v693_v44, %v1786_v25 }
  0xa7   : > { %v365_v45 = vsel %vm351_vm1, %v347_v7, %v323_v43 }
  0xa8   : > { %v694_v46 = vcombine.low %v365_v45, %v367_v8 }
  0xa9   : > { %v468_v59 = vpop.permute.xlu1 %467 }
  0xaa   : > { %v708_v50 = vrot.slane %v694_v46, %v1786_v25  ;;  %v466_v52 = vpop.permute.xlu0 %465 }
  0xab   : > { %v507_v14 = vsel %vm326_vm0, %v1565_v53, %v466_v52 }
  0xac   : > { %v709_v19 = vcombine.low %v701_v5, %v708_v50 }
  0xad   : > { %v472_v56 = vpop.permute.xlu1 %471 }
  0xae   : > { %1328 = vmatmul.mubr.msk.bf16.vlgmr.msra.gmra.mrb[0].mxu0 %vm612_vm2, %v709_v19  ;;  %v470_v38 = vpop.permute.xlu0 %469  ;;  %v516_v18 = vsel %vm326_vm0, %v1580_v58, %v472_v56 }
  0xaf   : > { %1332 = vmatpush3.bf16.msra.mxu0 %v1753_v13  ;;  %v510_v13 = vsel %vm326_vm0, %v1559_v51, %v468_v59  ;;  %v513_v0 = vsel %vm326_vm0, %v1586_v60, %v470_v38 }
  0xb0   : > { %1333 = vmatprep.subr.bf16.mxu0 %v1408_v23 }
  0xb1   : > { %v877_v61 = vpop.permute.xlu1 %876 }
  0xb2   : > { %v875_v62 = vpop.permute.xlu0 %874  ;;  %v919_v60 = vsel %vm326_vm0, %v1596_v3, %v877_v61 }
  0xb3   : > { %1334 = vmatpush3.bf16.msra.mxu0 %v1408_v23  ;;  %v916_v16 = vsel %vm326_vm0, %v1606_v10, %v875_v62 }
  0xb4   : > { %1335 = vmatprep.subr.bf16.mxu0 %v1409_v55 }
  0xb5   : > { %v881_v40 = vpop.permute.xlu1 %880 }
  0xb6   : > { %v879_v4 = vpop.permute.xlu0 %878  ;;  %v925_v39 = vsel %vm326_vm0, %v1625_v22, %v881_v40 }
  0xb7   : > { %1336 = vmatpush3.bf16.msra.mxu0 %v1409_v55  ;;  %v922_v44 = vsel %vm326_vm0, %v1628_v24, %v879_v4 }
  0xb9   : > { %v476_v49 = vpop.permute.xlu1 %475 }
  0xba   : > { %v474_v54 = vpop.permute.xlu0 %473  ;;  %v522_v59 = vsel %vm326_vm0, %v1645_v35, %v476_v49 }
  0xbb   : > { %v519_v5 = vsel %vm326_vm0, %v1648_v36, %v474_v54 }
  0xbd   : > { %v480_v12 = vpop.permute.xlu1 %479 }
  0xbe   : > { %v478_v57 = vpop.permute.xlu0 %477  ;;  %v528_v56 = vsel %vm326_vm0, %v1665_v47, %v480_v12 }
  0xbf   : > { %v525_v35 = vsel %vm326_vm0, %v1668_v48, %v478_v57 }
  0xc1   : > { %v492_v11 = vpop.permute.xlu1 %491 }
  0xc2   : > { %v490_v15 = vpop.permute.xlu0 %489  ;;  %v532_v17 = vsel %vm351_vm1, %v510_v13, %v492_v11 }
  0xc3   : > { %v530_v63 = vsel %vm351_vm1, %v507_v14, %v490_v15 }
  0xc4   : > { %v560_v21 = vcombine.low %v530_v63, %v532_v17 }
  0xc5   : > { %v496_v20 = vpop.permute.xlu1 %495 }
  0xc6   : > { %v536_v9 = vsel %vm351_vm1, %v516_v18, %v496_v20  ;;  %v494_v1 = vpop.permute.xlu0 %493  ;;  %v568_v28 = vrot.slane %v560_v21, %v1786_v25 }
  0xc7   : > { %v534_v51 = vsel %vm351_vm1, %v513_v0, %v494_v1 }
  0xc8   : > { %v561_v26 = vcombine.low %v534_v51, %v536_v9 }
  0xc9   : > { %v885_v53 = vpop.permute.xlu1 %884 }
  0xca   : > { %v883_v27 = vpop.permute.xlu0 %882  ;;  %v575_v6 = vrot.slane %v561_v26, %v1786_v25  ;;  %v931_v49 = vsel %vm326_vm0, %v1695_v32, %v885_v53 }
  0xcb   : > { %v928_v47 = vsel %vm326_vm0, %v1698_v33, %v883_v27 }
  0xcc   : > { %v576_v29 = vcombine.low %v568_v28, %v575_v6 }
  0xcd   : > { %v889_v31 = vpop.permute.xlu1 %888 }
  0xce   : > { %1317 = vmatprep.mubr.msk.bf16.mxu1 %vm612_vm2, %v576_v29  ;;  %v887_v58 = vpop.permute.xlu0 %886  ;;  %v937_v14 = vsel %vm326_vm0, %v1711_v41, %v889_v31 }
  0xcf   : > { %v934_v32 = vsel %vm326_vm0, %v1714_v42, %v887_v58 }
  0xd1   : > { %v901_v2 = vpop.permute.xlu1 %900 }
  0xd2   : > { %v899_v30 = vpop.permute.xlu0 %898  ;;  %v941_v34 = vsel %vm351_vm1, %v919_v60, %v901_v2 }
  0xd3   : > { %v939_v37 = vsel %vm351_vm1, %v916_v16, %v899_v30 }
  0xd4   : > { %v969_v8 = vcombine.low %v939_v37, %v941_v34 }
  0xd5   : > { %v905_v7 = vpop.permute.xlu1 %904 }
  0xd6   : > { %v945_v43 = vsel %vm351_vm1, %v925_v39, %v905_v7  ;;  %v903_v45 = vpop.permute.xlu0 %902  ;;  %v977_v22 = vrot.slane %v969_v8, %v1786_v25 }
  0xd7   : > { %v943_v3 = vsel %vm351_vm1, %v922_v44, %v903_v45 }
  0xd8   : > { %v970_v46 = vcombine.low %v943_v3, %v945_v43 }
  0xd9   : > { %v500_v10 = vpop.permute.xlu1 %499 }
  0xda   : > { %v984_v50 = vrot.slane %v970_v46, %v1786_v25  ;;  %v498_v52 = vpop.permute.xlu0 %497  ;;  %v540_v24 = vsel %vm351_vm1, %v522_v59, %v500_v10 }
  0xdb   : > { %v538_v19 = vsel %vm351_vm1, %v519_v5, %v498_v52 }
  0xdc   : > { %v985_v23 = vcombine.low %v977_v22, %v984_v50  ;;  %v577_v55 = vcombine.low %v538_v19, %v540_v24 }
  0xdd   : > { %v504_v38 = vpop.permute.xlu1 %503 }
  0xde   : > { %v544_v36 = vsel %vm351_vm1, %v528_v56, %v504_v38  ;;  %1337 = vmatprep.mubr.msk.bf16.mxu0 %vm612_vm2, %v985_v23  ;;  %v502_v61 = vpop.permute.xlu0 %501  ;;  %v585_v54 = vrot.slane %v577_v55, %v1786_v25 }
  0xdf   : > { %v542_v62 = vsel %vm351_vm1, %v525_v35, %v502_v61 }
  0xe0   : > { %v578_v40 = vcombine.low %v542_v62, %v544_v36 }
  0xe1   : > { %v909_v4 = vpop.permute.xlu1 %908 }
  0xe2   : > { %v592_v48 = vrot.slane %v578_v40, %v1786_v25  ;;  %v907_v12 = vpop.permute.xlu0 %906  ;;  %v949_v57 = vsel %vm351_vm1, %v931_v49, %v909_v4 }
  0xe3   : > { %v947_v11 = vsel %vm351_vm1, %v928_v47, %v907_v12 }
  0xe4   : > { %v593_v13 = vcombine.low %v585_v54, %v592_v48  ;;  %v986_v17 = vcombine.low %v947_v11, %v949_v57 }
  0xe5   : > { %v913_v15 = vpop.permute.xlu1 %912 }
  0xe6   : > { %v953_v33 = vsel %vm351_vm1, %v937_v14, %v913_v15  ;;  %1318 = vmatmul.mubr.msk.bf16.vlgmr.msra.gmra.mrb[0].mxu1 %vm612_vm2, %v593_v13  ;;  %v911_v63 = vpop.permute.xlu0 %910  ;;  %v994_v0 = vrot.slane %v986_v17, %v1786_v25 }
  0xe7   : > { %v951_v18 = vsel %vm351_vm1, %v934_v32, %v911_v63 }
  0xe8   : > { %v987_v20 = vcombine.low %v951_v18, %v953_v33 }
  0xea   : > { %v1001_v21 = vrot.slane %v987_v20, %v1786_v25  ;;  %v1289_v25 = vld [vmem:[%s1892_s2] ss:$0 sm:$0xff] }
  0xec   : > { %v1002_v9 = vcombine.low %v994_v0, %v1001_v21 }
  0xee   : > { %1338 = vmatmul.mubr.msk.bf16.vlgmr.msra.gmra.mrb[0].mxu0 %vm612_vm2, %v1002_v9 }
 0x1b9   : > { %v1319_v41 = vpop.f32.mrb[0].mxu1 }
 0x1ba   : > { %v653_v1 = vpop.f32.mrb[1].mxu1 }
 0x1bb   : > { %v1320_v51 = vpop.f32.mrb[2].mxu1 }
 0x1bc   : > { %v656_v42 = vpop.f32.mrb[3].mxu1 }
 0x1c1   : > { %v1339_v26 = vpop.f32.mrb[0].mxu0 }
 0x1c2   : > { %v1341_v53 = vadd.f32 %v1339_v26, %v1319_v41  ;;  %v1061_v27 = vpop.f32.mrb[1].mxu0 }
 0x1c3   : > { %v1342_v28 = vadd.f32 %v1061_v27, %v653_v1  ;;  %v1340_v6 = vpop.f32.mrb[2].mxu0 }
 0x1c4   : > { %v1106_v29 = vrot.slane %v1341_v53, 4  ;;  %v1343_v31 = vadd.f32 %v1340_v6, %v1320_v51  ;;  %v1064_v58 = vpop.f32.mrb[3].mxu0 }
 0x1c5   : > { %v1082_v2 = vrot.slane %v1342_v28, 4  ;;  %v1344_v60 = vadd.f32 %v1064_v58, %v656_v42 }
 0x1c6   : > { %v1108_v16 = vmax.f32 %v1341_v53, %v1106_v29  ;;  %v1115_v30 = vrot.slane %v1343_v31, 4 }
 0x1c7   : > { %v1084_v34 = vmax.f32 %v1342_v28, %v1082_v2  ;;  %v1097_v37 = vrot.slane %v1344_v60, 4 }
 0x1c8   : > { %v1109_v39 = vadd.f32 %v1289_v25, %v1108_v16  ;;  %v1117_v7 = vmax.f32 %v1343_v31, %v1115_v30 }
 0x1c9   : > { %v1091_v44 = vadd.f32 %v1289_v25, %v1084_v34  ;;  %v1099_v8 = vmax.f32 %v1344_v60, %v1097_v37 }
 0x1ca   : > { %v1110_v43 = vmax.f32 %v1109_v39, 0.0  ;;  %v1118_v45 = vadd.f32 %v1289_v25, %v1117_v7 }
 0x1cb   : > { %v1092_v3 = vmax.f32 %v1091_v44, 0.0  ;;  %v1100_v46 = vadd.f32 %v1289_v25, %v1099_v8 }
 0x1cc   : > { %v1111_v10 = vpack.c.bf16 %v1110_v43, %v1110_v43  ;;  %v1119_v59 = vmax.f32 %v1118_v45, 0.0 }
 0x1cd   : > { %v1093_v5 = vpack.c.bf16 %v1092_v3, %v1092_v3  ;;  %v1101_v22 = vmax.f32 %v1100_v46, 0.0 }
 0x1ce   : > { %1291 = vst.msk [vmem:[%s192_s22 + $0x4] sm:$0x3] %vm1094_vm3, %v1111_v10  ;;  %v1120_v50 = vpack.c.bf16 %v1119_v59, %v1119_v59 }
 0x1cf   : > { %1095 = vst.msk [vmem:[%s192_s22] sm:$0x3] %vm1094_vm3, %v1093_v5  ;;  %v1102_v52 = vpack.c.bf16 %v1101_v22, %v1101_v22 }
 0x1d0   : > { %1292 = vst.msk [vmem:[%s192_s22 + $0x6] sm:$0x3] %vm1094_vm3, %v1120_v50 }
 0x1d1   : > { %1290 = vst.msk [vmem:[%s192_s22 + $0x2] sm:$0x3] %vm1094_vm3, %v1102_v52 }
 0x1d2 PF: > { %s13_s14 = sadd.s32 1, %s1432_s14   ;;  %s1894_s12 = smov %s1428_s13 }
 0x1d3   : > { %p10_p5 = scmp.ge.s32.totalorder %s13_s14, 4   ;;  %s1895_s13 = smov %s1897_s15 }
 0x1d5   :  { %12 = sbr.rel (!%p10_p5) target bundleno = 2 (0x2), region = 70 }

// kernel: vgg_feature_extractor.11
= control target key start
LH: loop header
LB: loop body
LE: loop exit
PB: predicated region body
PF: predicated region fallthrough
CT: control target
= control target key end

     0   :  { %s1449_s12 = smov 0   ;;  %s1451_s13 = smov 0   ;;  %s1891_s0 = inlined_call_operand.vmem [shape: bf16[2,10,6,8], index: 0, kind: input, shape index: {}]   ;;  %s1892_s1 = inlined_call_operand.vmem [shape: bf16[3,1,24,16], index: 1, kind: input, shape index: {}]   ;;  %s1893_s2 = inlined_call_operand.vmem [shape: f32[1,16], index: 2, kind: input, shape index: {}]   ;;  %s1894_s3 = inlined_call_operand.vmem [shape: bf16[2,8,4,16], index: 3, kind: output, shape index: {}]  }
   0x1   :  { %s1453_s14 = smov 0  }
   0x2 LB: > { %s25_s15 = sadd.s32 1, %s1420_s13  ;;  %p1224_p0 = scmp.ge.s32.totalorder %s1424_s14, 1  ;;  %s1424_s14 = sphi %s1453_s14, %s13_s14   ;;  %s1420_s13 = sphi %s1451_s13, %s1896_s13   ;;  %s1416_s12 = sphi %s1449_s12, %s1895_s12  }
   0x3   : > { %p27_p1 = scmp.ge.s32.totalorder %s25_s15, 2  ;;  %p151_p2 = scmp.lt.s32.totalorder %s1424_s14, 3 }
   0x5   : > { %s1898_s15 = smov (%p27_p1, %s25_s15), 0  ;;  %p152_p3 = pnand %p1224_p0, %p151_p2 }
   0x6   : > { %p179_p4 = scmp.lt.s32.totalorder (!%p152_p3), %s1416_s12, 1  ;;  %s1426_s20 = smov (!%p152_p3), 16   ;;  %v1396_v51 = vld [vmem:[%s1892_s1] sm:$0xff] (!%p152_p3)   ;;  %vm604_vm0 = vcmask (!%p152_p3), 1043456   ;;  %vm326_vm1 = vcmask (!%p152_p3), 64512   ;;  %vm351_vm2 = vcmask (!%p152_p3), 130048  }
   0x7   : > { %155 = sbr.rel (%p152_p3) target bundleno = 466 (0x1d2), region = 32  ;;  %s1427_s21 = smov (!%p152_p3), 8   ;;  %1317 = vmatprep.subr.bf16.mxu0 (!%p152_p3), %v1396_v51  ;;  %vm597_vm3 = vcmask (!%p152_p3), 195584   ;;  %vm1064_vm4 = vcmask (!%p152_p3), 123904  }
   0x8   : > { %1318 = vmatpush3.bf16.msra.mxu0 (!%p152_p3), %v1396_v51 }
   0xe   : > { %s1900_s12 = smov (!%p179_p4, %s1416_s12), 1 }
   0xf   : > { %s1344_s16 = smul.u32 40, %s1900_s12  ;;  %s1296_s9 = sshll.u32 %s1900_s12, 4 }
  0x11   : > { %s1473_s19 = scalar_lea.vmem %s1891_s0, %s1344_s16  ;;  %s192_s16 = scalar_lea.vmem %s1894_s3, %s1296_s9 }
  0x12   : > { %v1476_v0 = vld [vmem:[%s1473_s19 + $0x4] sm:$0x7]  ;;  %v1479_v1 = vld [vmem:[%s1473_s19] sm:$0x7]  ;;  %v1482_v2 = vld [vmem:[%s1473_s19 + $0x8] sm:$0x7] }
  0x13   : > { %v1229_v3 = vcombine.low %v1476_v0, %v1476_v0  ;;  %v1228_v4 = vcombine.low %v1479_v1, %v1479_v1  ;;  %v1490_v5 = vcombine.low %v1482_v2, %v1482_v2  ;;  %v1493_v6 = vld [vmem:[%s1473_s19 + $0xc] sm:$0x7]  ;;  %v1496_v7 = vld [vmem:[%s1473_s19 + $0x14] sm:$0x7]  ;;  %v1499_v8 = vld [vmem:[%s1473_s19 + $0x10] sm:$0x7] }
  0x14   : > { %v1503_v9 = vcombine.low %v1493_v6, %v1493_v6  ;;  %v1507_v10 = vcombine.low %v1496_v7, %v1496_v7  ;;  %v1511_v11 = vcombine.low %v1499_v8, %v1499_v8  ;;  %v1517_v19 = vld [vmem:[%s1473_s19 + $0x1c] sm:$0x7]  ;;  %v1523_v23 = vld [vmem:[%s1473_s19 + $0x18] sm:$0x7]  ;;  %v1548_v50 = vld [vmem:[%s1473_s19 + $0x8] sm:$0x7] }
  0x15   : > { %v303_v12 = vrot.slane %v1229_v3, 1  ;;  %v302_v13 = vrot.slane %v1228_v4, 1  ;;  %v245_v14 = vshrl.u32 %v1490_v5, 16  ;;  %v247_v15 = vshll.u32 %v1490_v5, 16  ;;  %v1554_v52 = vld [vmem:[%s1473_s19 + $0x4] sm:$0x7] }
  0x16   : > { %v231_v16 = vshrl.u32 %v1228_v4, 16  ;;  %v233_v17 = vshll.u32 %v1228_v4, 16  ;;  %v254_v18 = vshll.u32 %v1503_v9, 16  ;;  %v252_v21 = vshrl.u32 %v1503_v9, 16  ;;  %v1569_v57 = vld [vmem:[%s1473_s19 + $0x10] sm:$0x7] }
  0x17   : > { %312 = vrot.lane.b32.xlu1 %v303_v12, %s1426_s20  ;;  %310 = vrot.lane.b32.xlu0 %v302_v13, %s1426_s20  ;;  %v249_v20 = vrot.slane %v247_v15, 1  ;;  %v240_v22 = vshll.u32 %v1229_v3, 16  ;;  %v238_v26 = vshrl.u32 %v1229_v3, 16  ;;  %v268_v27 = vshll.u32 %v1507_v10, 16  ;;  %v1572_v58 = vld [vmem:[%s1473_s19 + $0xc] sm:$0x7] }
  0x18   : > { %v235_v24 = vrot.slane %v233_v17, 1  ;;  %v256_v25 = vrot.slane %v254_v18, 1  ;;  %v261_v30 = vshll.u32 %v1511_v11, 16  ;;  %v1529_v31 = vcombine.low %v1517_v19, %v1517_v19  ;;  %v1582_v62 = vld [vmem:[%s1473_s19 + $0xc] sm:$0x7] }
  0x19   : > { %v250_v28 = vor.u32 %v249_v20, %v245_v14  ;;  %v242_v29 = vrot.slane %v240_v22, 1  ;;  %v1533_v33 = vcombine.low %v1523_v23, %v1523_v23  ;;  %v266_v35 = vshrl.u32 %v1507_v10, 16  ;;  %v1611_v20 = vld [vmem:[%s1473_s19 + $0x14] sm:$0x7] }
  0x1a   : > { %v236_v32 = vor.u32 %v235_v24, %v231_v16  ;;  %v257_v34 = vor.u32 %v256_v25, %v252_v21  ;;  %v270_v36 = vrot.slane %v268_v27, 1  ;;  %v282_v37 = vshll.u32 %v1529_v31, 16  ;;  %v1614_v21 = vld [vmem:[%s1473_s19 + $0x10] sm:$0x7] }
  0x1b   : > { %290 = vrot.lane.b32.xlu1 %v250_v28, %s1427_s21  ;;  %v243_v38 = vor.u32 %v242_v29, %v238_v26  ;;  %v259_v39 = vshrl.u32 %v1511_v11, 16  ;;  %v263_v40 = vrot.slane %v261_v30, 1  ;;  %v275_v41 = vshll.u32 %v1533_v33, 16 }
  0x1c   : > { %286 = vrot.lane.b32.xlu0 %v236_v32, %s1427_s21  ;;  %v271_v42 = vor.u32 %v270_v36, %v266_v35  ;;  %v280_v43 = vshrl.u32 %v1529_v31, 16  ;;  %v284_v44 = vrot.slane %v282_v37, 1  ;;  %v273_v46 = vshrl.u32 %v1533_v33, 16  ;;  %v1397_v35 = vld [vmem:[%s1892_s1 + $0x8] ss:$0 sps:$4 sm:$0xff]  }
  0x1d   : > { %v264_v45 = vor.u32 %v263_v40, %v259_v39  ;;  %v277_v47 = vrot.slane %v275_v41, 1  ;;  %v305_v53 = vrot.slane %v1503_v9, 1  ;;  %v1560_v54 = vcombine.low %v1548_v50, %v1548_v50  ;;  %1342 = vmatprep.subr.msk.bf16.mxu0 %vm604_vm0, %v1397_v35 }
  0x1e   : > { %v285_v48 = vor.u32 %v284_v44, %v280_v43  ;;  %v304_v55 = vrot.slane %v1490_v5, 1  ;;  %v1566_v56 = vcombine.low %v1554_v52, %v1554_v52  ;;  %v307_v59 = vrot.slane %v1507_v10, 1  ;;  %v1592_v5 = vld [vmem:[%s1473_s19 + $0x8] sm:$0x7] }
  0x1f   : > { %292 = vrot.lane.b32.xlu1 %v257_v34, %s1427_s21  ;;  %v278_v49 = vor.u32 %v277_v47, %v273_v46  ;;  %v416_v60 = vshll.u32 %v1560_v54, 16  ;;  %v1579_v61 = vcombine.low %v1569_v57, %v1569_v57  ;;  %v306_v63 = vrot.slane %v1511_v11, 1  ;;  %v1634_v34 = vld [vmem:[%s1473_s19 + $0x14] sm:$0x7]  ;;  %v1654_v46 = vld [vmem:[%s1473_s19 + $0x20] sm:$0x7] }
  0x20   : > { %288 = vrot.lane.b32.xlu0 %v243_v38, %s1427_s21  ;;  %v409_v3 = vshll.u32 %v1566_v56, 16  ;;  %v1589_v4 = vcombine.low %v1572_v58, %v1572_v58  ;;  %v309_v9 = vrot.slane %v1529_v31, 1  ;;  %v1597_v10 = vcombine.low %v1582_v62, %v1582_v62  ;;  %v1657_v47 = vld [vmem:[%s1473_s19 + $0x1c] sm:$0x7] }
  0x21   : > { %v414_v11 = vshrl.u32 %v1560_v54, 16  ;;  %v418_v12 = vrot.slane %v416_v60, 1  ;;  %v430_v13 = vshll.u32 %v1579_v61, 16  ;;  %v1604_v14 = vcombine.low %v1592_v5, %v1592_v5 }
  0x22   : > { %v308_v15 = vrot.slane %v1533_v33, 1  ;;  %v407_v16 = vshrl.u32 %v1566_v56, 16  ;;  %v411_v17 = vrot.slane %v409_v3, 1  ;;  %v423_v18 = vshll.u32 %v1589_v4, 16  ;;  %v1631_v33 = vld [vmem:[%s1473_s19 + $0x18] sm:$0x7] }
  0x23   : > { %296 = vrot.lane.b32.xlu1 %v271_v42, %s1427_s21  ;;  %v428_v22 = vshrl.u32 %v1579_v61, 16  ;;  %v811_v24 = vshll.u32 %v1597_v10, 16  ;;  %v419_v25 = vor.u32 %v418_v12, %v414_v11  ;;  %v432_v26 = vrot.slane %v430_v13, 1 }
  0x24   : > { %294 = vrot.lane.b32.xlu0 %v264_v45, %s1427_s21  ;;  %v804_v27 = vshll.u32 %v1604_v14, 16  ;;  %v1622_v28 = vcombine.low %v1611_v20, %v1611_v20  ;;  %v412_v29 = vor.u32 %v411_v17, %v407_v16  ;;  %v421_v30 = vshrl.u32 %v1589_v4, 16 }
  0x25   : > { %v425_v31 = vrot.slane %v423_v18, 1  ;;  %v1628_v32 = vcombine.low %v1614_v21, %v1614_v21  ;;  %v809_v36 = vshrl.u32 %v1597_v10, 16  ;;  %v813_v37 = vrot.slane %v811_v24, 1 }
  0x26   : > { %v802_v38 = vshrl.u32 %v1604_v14, 16  ;;  %v433_v39 = vor.u32 %v432_v26, %v428_v22  ;;  %v806_v40 = vrot.slane %v804_v27, 1  ;;  %v825_v41 = vshll.u32 %v1622_v28, 16 }
  0x27   : > { %300 = vrot.lane.b32.xlu1 %v285_v48, %s1427_s21  ;;  %v1645_v42 = vcombine.low %v1631_v33, %v1631_v33  ;;  %v426_v43 = vor.u32 %v425_v31, %v421_v30  ;;  %v818_v44 = vshll.u32 %v1628_v32, 16  ;;  %v1651_v45 = vcombine.low %v1634_v34, %v1634_v34 }
  0x28   : > { %298 = vrot.lane.b32.xlu0 %v278_v49, %s1427_s21  ;;  %v715_v48 = vsel %vm604_vm0, %v1397_v35, 0  ;;  %v814_v49 = vor.u32 %v813_v37, %v809_v36  ;;  %v823_v51 = vshrl.u32 %v1622_v28, 16  ;;  %v1666_v60 = vcombine.low %v1654_v46, %v1654_v46  ;;  %v1686_v35 = vld [vmem:[%s1473_s19 + $0x1c] sm:$0x7]  ;;  %v1689_v36 = vld [vmem:[%s1473_s19 + $0x18] sm:$0x7] }
  0x29   : > { %1320 = vmatpush3.bf16.msra.mxu0 %v715_v48  ;;  %v820_v3 = vrot.slane %v818_v44, 1  ;;  %v1673_v11 = vcombine.low %v1657_v47, %v1657_v47  ;;  %v442_v13 = vshrl.u32 %v1645_v42, 16  ;;  %v435_v18 = vshrl.u32 %v1651_v45, 16 }
  0x2a   : > { %v458_v16 = vshll.u32 %v1666_v60, 16  ;;  %v456_v26 = vshrl.u32 %v1666_v60, 16  ;;  %v479_v44 = vrot.slane %v1560_v54, 1 }
  0x2b   : > { %316 = vrot.lane.b32.xlu1 %v305_v53, %s1426_s20  ;;  %v807_v53 = vor.u32 %v806_v40, %v802_v38  ;;  %v451_v24 = vshll.u32 %v1673_v11, 16  ;;  %v449_v30 = vshrl.u32 %v1673_v11, 16  ;;  %v1694_v38 = vcombine.low %v1686_v35, %v1686_v35 }
  0x2c   : > { %314 = vrot.lane.b32.xlu0 %v304_v55, %s1426_s20  ;;  %v827_v55 = vrot.slane %v825_v41, 1  ;;  %v460_v27 = vrot.slane %v458_v16, 1  ;;  %v1699_v40 = vcombine.low %v1689_v36, %v1689_v36  ;;  %v1702_v41 = vld [vmem:[%s1473_s19 + $0x24] sm:$0x7] }
  0x2d   : > { %v453_v31 = vrot.slane %v451_v24, 1  ;;  %v839_v48 = vshll.u32 %v1694_v38, 16  ;;  %v837_v54 = vshrl.u32 %v1694_v38, 16 }
  0x2e   : > { %v828_v12 = vor.u32 %v827_v55, %v823_v51  ;;  %v461_v37 = vor.u32 %v460_v27, %v456_v26  ;;  %v478_v51 = vrot.slane %v1566_v56, 1  ;;  %v873_v26 = vrot.slane %v1604_v14, 1  ;;  %v1398_v27 = vld [vmem:[%s1892_s1 + $0xc] sm:$0xff]  }
  0x2f   : > { %320 = vrot.lane.b32.xlu1 %v307_v59, %s1426_s20  ;;  %v444_v59 = vshll.u32 %v1645_v42, 16  ;;  %1309 = vmatprep.subr.bf16.mxu1 %v1398_v27 }
  0x30   : > { %318 = vrot.lane.b32.xlu0 %v306_v63, %s1426_s20  ;;  %v816_v63 = vshrl.u32 %v1628_v32, 16  ;;  %1310 = vmatpush3.bf16.msra.mxu1 %v1398_v27 }
  0x32   : > { %v821_v17 = vor.u32 %v820_v3, %v816_v63  ;;  %v841_v63 = vrot.slane %v839_v48, 1 }
  0x33   : > { %324 = vrot.lane.b32.xlu1 %v309_v9, %s1426_s20  ;;  %v437_v9 = vshll.u32 %v1651_v45, 16 }
  0x34   : > { %322 = vrot.lane.b32.xlu0 %v308_v15, %s1426_s20  ;;  %v446_v15 = vrot.slane %v444_v59, 1  ;;  %v481_v59 = vrot.slane %v1579_v61, 1 }
  0x35   : > { %v439_v22 = vrot.slane %v437_v9, 1  ;;  %v480_v9 = vrot.slane %v1589_v4, 1 }
  0x37   : > { %464 = vrot.lane.b32.xlu1 %v419_v25, %s1427_s21  ;;  %v447_v25 = vor.u32 %v446_v15, %v442_v13  ;;  %v842_v15 = vor.u32 %v841_v63, %v837_v54 }
  0x38   : > { %462 = vrot.lane.b32.xlu0 %v412_v29, %s1427_s21  ;;  %v440_v29 = vor.u32 %v439_v22, %v435_v18 }
  0x3b   : > { %468 = vrot.lane.b32.xlu1 %v433_v39, %s1427_s21  ;;  %v454_v39 = vor.u32 %v453_v31, %v449_v30  ;;  %v875_v30 = vrot.slane %v1628_v32, 1  ;;  %v483_v31 = vrot.slane %v1645_v42, 1  ;;  %v1750_v32 = vld [vmem:[%s1892_s1 + $0x18] sm:$0xff]   ;;  %v484_v42 = vrot.slane %v1673_v11, 1 }
  0x3c   : > { %466 = vrot.lane.b32.xlu0 %v426_v43, %s1427_s21  ;;  %v1705_v43 = vld [vmem:[%s1473_s19 + $0x20] sm:$0x7]  ;;  %1325 = vmatprep.subr.bf16.mxu0 %v1750_v32 }
  0x3d   : > { %v1277_v55 = vcombine.low %v1705_v43, %v1705_v43 }
  0x3f   : > { %859 = vrot.lane.b32.xlu1 %v814_v49, %s1427_s21  ;;  %v1278_v49 = vcombine.low %v1702_v41, %v1702_v41  ;;  %v846_v13 = vshll.u32 %v1277_v55, 16  ;;  %v844_v18 = vshrl.u32 %v1277_v55, 16  ;;  %v879_v48 = vrot.slane %v1277_v55, 1 }
  0x40   : > { %857 = vrot.lane.b32.xlu0 %v807_v53, %s1427_s21  ;;  %v832_v53 = vshll.u32 %v1699_v40, 16 }
  0x41   : > { %v853_v3 = vshll.u32 %v1278_v49, 16  ;;  %v851_v16 = vshrl.u32 %v1278_v49, 16  ;;  %v848_v22 = vrot.slane %v846_v13, 1 }
  0x42   : > { %v834_v56 = vrot.slane %v832_v53, 1 }
  0x43   : > { %863 = vrot.lane.b32.xlu1 %v828_v12, %s1427_s21  ;;  %v830_v12 = vshrl.u32 %v1699_v40, 16  ;;  %v849_v4 = vor.u32 %v848_v22, %v844_v18 }
  0x44   : > { %861 = vrot.lane.b32.xlu0 %v821_v17, %s1427_s21  ;;  %v855_v17 = vrot.slane %v853_v3, 1  ;;  %v1428_v3 = vmov 1983009808  }
  0x45   : > { %v835_v61 = vor.u32 %v834_v56, %v830_v12 }
  0x46   : > { %v856_v24 = vor.u32 %v855_v17, %v851_v16 }
  0x47   : > { %472 = vrot.lane.b32.xlu1 %v447_v25, %s1427_s21  ;;  %v874_v25 = vrot.slane %v1597_v10, 1  ;;  %v1400_v10 = vld [vmem:[%s1892_s1 + $0x14] ss:$0 sps:$4 sm:$0xff]  }
  0x48   : > { %470 = vrot.lane.b32.xlu0 %v440_v29, %s1427_s21  ;;  %v876_v29 = vrot.slane %v1622_v28, 1  ;;  %1341 = vmatprep.subr.msk.bf16.mxu1 %vm604_vm0, %v1400_v10  ;;  %v606_v14 = vsel %vm604_vm0, %v1400_v10, 0  ;;  %v482_v28 = vrot.slane %v1651_v45, 1  ;;  %v877_v45 = vrot.slane %v1699_v40, 1 }
  0x49   : > { %1312 = vmatpush3.bf16.msra.mxu1 %v606_v14  ;;  %v557_v40 = vunpack.c.l.s4 %v1428_v3 }
  0x4b   : > { %476 = vrot.lane.b32.xlu1 %v461_v37, %s1427_s21  ;;  %v485_v37 = vrot.slane %v1666_v60, 1  ;;  %v558_v13 = vunpack.c.0.s8 %v557_v40 }
  0x4c   : > { %474 = vrot.lane.b32.xlu0 %v454_v39, %s1427_s21  ;;  %v878_v39 = vrot.slane %v1694_v38, 1 }
  0x4f   : > { %488 = vrot.lane.b32.xlu1 %v479_v44, %s1426_s20  ;;  %v880_v44 = vrot.slane %v1278_v49, 1 }
  0x50   : > { %486 = vrot.lane.b32.xlu0 %v478_v51, %s1426_s20 }
  0x53   : > { %492 = vrot.lane.b32.xlu1 %v481_v59, %s1426_s20 }
  0x54   : > { %490 = vrot.lane.b32.xlu0 %v480_v9, %s1426_s20  ;;  %v559_v9 = vlaneseq }
  0x57   : > { %867 = vrot.lane.b32.xlu1 %v842_v15, %s1427_s21  ;;  %v560_v15 = vshrl.u32 %v559_v9, 7 }
  0x58   : > { %865 = vrot.lane.b32.xlu0 %v835_v61, %s1427_s21 }
  0x5b   : > { %871 = vrot.lane.b32.xlu1 %v856_v24, %s1427_s21 }
  0x5c   : > { %869 = vrot.lane.b32.xlu0 %v849_v4, %s1427_s21 }
  0x5f   : > { %883 = vrot.lane.b32.xlu1 %v874_v25, %s1426_s20  ;;  %v1776_v25 = vsub.s32 %v558_v13, %v560_v15 }
  0x60   : > { %881 = vrot.lane.b32.xlu0 %v873_v26, %s1426_s20 }
  0x63   : > { %887 = vrot.lane.b32.xlu1 %v876_v29, %s1426_s20 }
  0x64   : > { %885 = vrot.lane.b32.xlu0 %v875_v30, %s1426_s20 }
  0x67   : > { %496 = vrot.lane.b32.xlu1 %v483_v31, %s1426_s20 }
  0x68   : > { %494 = vrot.lane.b32.xlu0 %v482_v28, %s1426_s20 }
  0x6b   : > { %500 = vrot.lane.b32.xlu1 %v485_v37, %s1426_s20 }
  0x6c   : > { %498 = vrot.lane.b32.xlu0 %v484_v42, %s1426_s20 }
  0x6f   : > { %891 = vrot.lane.b32.xlu1 %v878_v39, %s1426_s20 }
  0x70   : > { %889 = vrot.lane.b32.xlu0 %v877_v45, %s1426_s20 }
  0x73   : > { %895 = vrot.lane.b32.xlu1 %v880_v44, %s1426_s20 }
  0x74   : > { %893 = vrot.lane.b32.xlu0 %v879_v48, %s1426_s20 }
  0x89   : > { %v313_v60 = vpop.permute.xlu1 %312  ;;  %v311_v11 = vpop.permute.xlu0 %310 }
  0x8d   : > { %v291_v51 = vpop.permute.xlu1 %290 }
  0x8e   : > { %v287_v53 = vpop.permute.xlu0 %286  ;;  %v335_v22 = vsel %vm326_vm1, %v1482_v2, %v291_v51 }
  0x8f   : > { %v329_v12 = vsel %vm326_vm1, %v1479_v1, %v287_v53 }
  0x90   : > { %v353_v17 = vsel %vm351_vm2, %v329_v12, %v311_v11 }
  0x91   : > { %v293_v59 = vpop.permute.xlu1 %292 }
  0x92   : > { %v289_v38 = vpop.permute.xlu0 %288  ;;  %v338_v61 = vsel %vm326_vm1, %v1493_v6, %v293_v59 }
  0x93   : > { %v332_v49 = vsel %vm326_vm1, %v1476_v0, %v289_v38 }
  0x94   : > { %v355_v16 = vsel %vm351_vm2, %v332_v49, %v313_v60 }
  0x95   : > { %v297_v54 = vpop.permute.xlu1 %296  ;;  %v665_v0 = vcombine.low %v353_v17, %v355_v16 }
  0x96   : > { %v295_v63 = vpop.permute.xlu0 %294  ;;  %v344_v29 = vsel %vm326_vm1, %v1496_v7, %v297_v54 }
  0x97   : > { %v341_v6 = vsel %vm326_vm1, %v1499_v8, %v295_v63  ;;  %v673_v10 = vrot.slane %v665_v0, %v1776_v25 }
  0x99   : > { %v301_v55 = vpop.permute.xlu1 %300 }
  0x9a   : > { %v299_v56 = vpop.permute.xlu0 %298  ;;  %v350_v37 = vsel %vm326_vm1, %v1517_v19, %v301_v55 }
  0x9b   : > { %v347_v7 = vsel %vm326_vm1, %v1523_v23, %v299_v56  ;;  %v1401_v23 = vld [vmem:[%s1892_s1 + $0x20] ss:$0 sps:$4 sm:$0xff]  }
  0x9c   : > { %v999_v54 = vsel %vm604_vm0, %v1401_v23, 0 }
  0x9d   : > { %v317_v18 = vpop.permute.xlu1 %316 }
  0x9e   : > { %v359_v24 = vsel %vm351_vm2, %v338_v61, %v317_v18  ;;  %v315_v4 = vpop.permute.xlu0 %314 }
  0x9f   : > { %v357_v1 = vsel %vm351_vm2, %v335_v22, %v315_v4 }
  0xa0   : > { %v666_v26 = vcombine.low %v357_v1, %v359_v24 }
  0xa1   : > { %v321_v27 = vpop.permute.xlu1 %320 }
  0xa2   : > { %v319_v30 = vpop.permute.xlu0 %318  ;;  %v680_v2 = vrot.slane %v666_v26, %v1776_v25  ;;  %v363_v14 = vsel %vm351_vm2, %v344_v29, %v321_v27 }
  0xa3   : > { %v361_v31 = vsel %vm351_vm2, %v341_v6, %v319_v30 }
  0xa4   : > { %v681_v28 = vcombine.low %v673_v10, %v680_v2  ;;  %v682_v39 = vcombine.low %v361_v31, %v363_v14 }
  0xa5   : > { %v325_v42 = vpop.permute.xlu1 %324 }
  0xa6   : > { %v367_v8 = vsel %vm351_vm2, %v350_v37, %v325_v42  ;;  %1321 = vmatprep.mubr.msk.bf16.mxu0 %vm597_vm3, %v681_v28  ;;  %v323_v45 = vpop.permute.xlu0 %322  ;;  %v690_v11 = vrot.slane %v682_v39, %v1776_v25 }
  0xa7   : > { %v365_v44 = vsel %vm351_vm2, %v347_v7, %v323_v45 }
  0xa8   : > { %v683_v48 = vcombine.low %v365_v44, %v367_v8 }
  0xa9   : > { %v465_v60 = vpop.permute.xlu1 %464 }
  0xaa   : > { %v697_v51 = vrot.slane %v683_v48, %v1776_v25  ;;  %v463_v53 = vpop.permute.xlu0 %462  ;;  %v507_v15 = vsel %vm326_vm1, %v1548_v50, %v465_v60 }
  0xac   : > { %v698_v19 = vcombine.low %v690_v11, %v697_v51 }
  0xad   : > { %v469_v59 = vpop.permute.xlu1 %468 }
  0xae   : > { %1322 = vmatmul.mubr.msk.bf16.vlgmr.msra.gmra.mrb[0].mxu0 %vm597_vm3, %v698_v19  ;;  %v467_v38 = vpop.permute.xlu0 %466  ;;  %v513_v18 = vsel %vm326_vm1, %v1569_v57, %v469_v59 }
  0xaf   : > { %1326 = vmatpush3.bf16.msra.mxu0 %v1750_v32  ;;  %v504_v32 = vsel %vm326_vm1, %v1554_v52, %v463_v53  ;;  %v510_v0 = vsel %vm326_vm1, %v1572_v58, %v467_v38 }
  0xb0   : > { %1343 = vmatprep.subr.msk.bf16.mxu0 %vm604_vm0, %v1401_v23 }
  0xb1   : > { %v860_v63 = vpop.permute.xlu1 %859 }
  0xb2   : > { %v858_v3 = vpop.permute.xlu0 %857  ;;  %v902_v58 = vsel %vm326_vm1, %v1582_v62, %v860_v63 }
  0xb3   : > { %1328 = vmatpush3.bf16.msra.mxu0 %v999_v54  ;;  %v899_v14 = vsel %vm326_vm1, %v1592_v5, %v858_v3 }
  0xb5   : > { %v864_v40 = vpop.permute.xlu1 %863 }
  0xb6   : > { %v862_v9 = vpop.permute.xlu0 %861  ;;  %v908_v42 = vsel %vm326_vm1, %v1611_v20, %v864_v40 }
  0xb7   : > { %v905_v39 = vsel %vm326_vm1, %v1614_v21, %v862_v9 }
  0xb9   : > { %v473_v49 = vpop.permute.xlu1 %472 }
  0xba   : > { %v471_v55 = vpop.permute.xlu0 %470  ;;  %v519_v60 = vsel %vm326_vm1, %v1631_v33, %v473_v49 }
  0xbb   : > { %v516_v11 = vsel %vm326_vm1, %v1634_v34, %v471_v55 }
  0xbd   : > { %v477_v12 = vpop.permute.xlu1 %476 }
  0xbe   : > { %v475_v56 = vpop.permute.xlu0 %474  ;;  %v525_v59 = vsel %vm326_vm1, %v1654_v46, %v477_v12 }
  0xbf   : > { %v522_v33 = vsel %vm326_vm1, %v1657_v47, %v475_v56 }
  0xc1   : > { %v489_v13 = vpop.permute.xlu1 %488 }
  0xc2   : > { %v487_v16 = vpop.permute.xlu0 %486  ;;  %v529_v17 = vsel %vm351_vm2, %v507_v15, %v489_v13 }
  0xc3   : > { %v527_v61 = vsel %vm351_vm2, %v504_v32, %v487_v16 }
  0xc4   : > { %v554_v24 = vcombine.low %v527_v61, %v529_v17 }
  0xc5   : > { %v493_v22 = vpop.permute.xlu1 %492 }
  0xc6   : > { %v533_v4 = vsel %vm351_vm2, %v513_v18, %v493_v22  ;;  %v491_v1 = vpop.permute.xlu0 %490  ;;  %v562_v29 = vrot.slane %v554_v24, %v1776_v25 }
  0xc7   : > { %v531_v50 = vsel %vm351_vm2, %v510_v0, %v491_v1 }
  0xc8   : > { %v555_v26 = vcombine.low %v531_v50, %v533_v4 }
  0xc9   : > { %v868_v52 = vpop.permute.xlu1 %867 }
  0xca   : > { %v866_v27 = vpop.permute.xlu0 %865  ;;  %v569_v6 = vrot.slane %v555_v26, %v1776_v25  ;;  %v914_v49 = vsel %vm326_vm1, %v1686_v35, %v868_v52  ;;  %v1286_v52 = vld [vmem:[%s1893_s2] ss:$0 sm:$0xff] }
  0xcb   : > { %v911_v46 = vsel %vm326_vm1, %v1689_v36, %v866_v27 }
  0xcc   : > { %v570_v30 = vcombine.low %v562_v29, %v569_v6 }
  0xcd   : > { %v872_v10 = vpop.permute.xlu1 %871 }
  0xce   : > { %1313 = vmatprep.mubr.msk.bf16.mxu1 %vm597_vm3, %v570_v30  ;;  %v870_v57 = vpop.permute.xlu0 %869  ;;  %v920_v32 = vsel %vm326_vm1, %v1702_v41, %v872_v10 }
  0xcf   : > { %v917_v35 = vsel %vm326_vm1, %v1705_v43, %v870_v57 }
  0xd1   : > { %v884_v2 = vpop.permute.xlu1 %883 }
  0xd2   : > { %v882_v31 = vpop.permute.xlu0 %881  ;;  %v924_v28 = vsel %vm351_vm2, %v902_v58, %v884_v2 }
  0xd3   : > { %v922_v37 = vsel %vm351_vm2, %v899_v14, %v882_v31 }
  0xd4   : > { %v949_v8 = vcombine.low %v922_v37, %v924_v28 }
  0xd5   : > { %v888_v7 = vpop.permute.xlu1 %887 }
  0xd6   : > { %v928_v45 = vsel %vm351_vm2, %v908_v42, %v888_v7  ;;  %v886_v44 = vpop.permute.xlu0 %885  ;;  %v957_v20 = vrot.slane %v949_v8, %v1776_v25 }
  0xd7   : > { %v926_v62 = vsel %vm351_vm2, %v905_v39, %v886_v44 }
  0xd8   : > { %v950_v48 = vcombine.low %v926_v62, %v928_v45 }
  0xd9   : > { %v497_v5 = vpop.permute.xlu1 %496 }
  0xda   : > { %v964_v51 = vrot.slane %v950_v48, %v1776_v25  ;;  %v495_v53 = vpop.permute.xlu0 %494  ;;  %v537_v21 = vsel %vm351_vm2, %v519_v60, %v497_v5 }
  0xdb   : > { %v535_v19 = vsel %vm351_vm2, %v516_v11, %v495_v53 }
  0xdc   : > { %v965_v23 = vcombine.low %v957_v20, %v964_v51  ;;  %v571_v54 = vcombine.low %v535_v19, %v537_v21 }
  0xdd   : > { %v501_v38 = vpop.permute.xlu1 %500 }
  0xde   : > { %v541_v34 = vsel %vm351_vm2, %v525_v59, %v501_v38  ;;  %1329 = vmatprep.mubr.msk.bf16.mxu0 %vm597_vm3, %v965_v23  ;;  %v499_v63 = vpop.permute.xlu0 %498  ;;  %v579_v55 = vrot.slane %v571_v54, %v1776_v25 }
  0xdf   : > { %v539_v3 = vsel %vm351_vm2, %v522_v33, %v499_v63 }
  0xe0   : > { %v572_v40 = vcombine.low %v539_v3, %v541_v34 }
  0xe1   : > { %v892_v9 = vpop.permute.xlu1 %891 }
  0xe2   : > { %v586_v47 = vrot.slane %v572_v40, %v1776_v25  ;;  %v890_v12 = vpop.permute.xlu0 %889  ;;  %v932_v56 = vsel %vm351_vm2, %v914_v49, %v892_v9 }
  0xe3   : > { %v930_v13 = vsel %vm351_vm2, %v911_v46, %v890_v12 }
  0xe4   : > { %v587_v15 = vcombine.low %v579_v55, %v586_v47  ;;  %v966_v17 = vcombine.low %v930_v13, %v932_v56 }
  0xe5   : > { %v896_v16 = vpop.permute.xlu1 %895 }
  0xe6   : > { %v936_v36 = vsel %vm351_vm2, %v920_v32, %v896_v16  ;;  %1314 = vmatmul.mubr.msk.bf16.vlgmr.msra.gmra.mrb[0].mxu1 %vm597_vm3, %v587_v15  ;;  %v894_v61 = vpop.permute.xlu0 %893  ;;  %v974_v0 = vrot.slane %v966_v17, %v1776_v25 }
  0xe7   : > { %v934_v18 = vsel %vm351_vm2, %v917_v35, %v894_v61 }
  0xe8   : > { %v967_v22 = vcombine.low %v934_v18, %v936_v36 }
  0xea   : > { %v981_v24 = vrot.slane %v967_v22, %v1776_v25 }
  0xec   : > { %v982_v4 = vcombine.low %v974_v0, %v981_v24 }
  0xee   : > { %1330 = vmatmul.mubr.msk.bf16.vlgmr.msra.gmra.mrb[0].mxu0 %vm597_vm3, %v982_v4 }
 0x1b9   : > { %v1315_v41 = vpop.f32.mrb[0].mxu1 }
 0x1ba   : > { %v642_v1 = vpop.f32.mrb[1].mxu1 }
 0x1bb   : > { %v1316_v43 = vpop.f32.mrb[2].mxu1 }
 0x1bc   : > { %v645_v50 = vpop.f32.mrb[3].mxu1 }
 0x1c1   : > { %v1331_v26 = vpop.f32.mrb[0].mxu0 }
 0x1c2   : > { %v1333_v27 = vadd.f32 %v1331_v26, %v1315_v41  ;;  %v1035_v29 = vpop.f32.mrb[1].mxu0 }
 0x1c3   : > { %v1334_v6 = vadd.f32 %v1035_v29, %v642_v1  ;;  %v1332_v30 = vpop.f32.mrb[2].mxu0 }
 0x1c4   : > { %v1095_v10 = vadd.f32 %v1333_v27, %v1286_v52  ;;  %v1335_v57 = vadd.f32 %v1332_v30, %v1316_v43  ;;  %v1038_v2 = vpop.f32.mrb[3].mxu0 }
 0x1c5   : > { %v1061_v58 = vadd.f32 %v1334_v6, %v1286_v52  ;;  %v1336_v14 = vadd.f32 %v1038_v2, %v645_v50 }
 0x1c6   : > { %v1096_v31 = vmax.f32 %v1095_v10, 0.0  ;;  %v1112_v28 = vadd.f32 %v1335_v57, %v1286_v52 }
 0x1c7   : > { %v1062_v37 = vmax.f32 %v1061_v58, 0.0  ;;  %v1078_v42 = vadd.f32 %v1336_v14, %v1286_v52 }
 0x1c8   : > { %v1097_v7 = vpack.c.bf16 %v1096_v31, %v1096_v31  ;;  %v1113_v39 = vmax.f32 %v1112_v28, 0.0 }
 0x1c9   : > { %v1063_v8 = vpack.c.bf16 %v1062_v37, %v1062_v37  ;;  %v1079_v45 = vmax.f32 %v1078_v42, 0.0 }
 0x1ca   : > { %1290 = vst.msk [vmem:[%s192_s16 + $0x8] sm:$0x3] %vm1064_vm4, %v1097_v7  ;;  %v1107_v44 = vrot.slane %v1097_v7, %v1776_v25  ;;  %v1114_v62 = vpack.c.bf16 %v1113_v39, %v1113_v39 }
 0x1cb   : > { %1065 = vst.msk [vmem:[%s192_s16] sm:$0x3] %vm1064_vm4, %v1063_v8  ;;  %v1073_v48 = vrot.slane %v1063_v8, %v1776_v25  ;;  %v1080_v5 = vpack.c.bf16 %v1079_v45, %v1079_v45 }
 0x1cc   : > { %v1108_v60 = vcombine.high %v1107_v44, %v1107_v44  ;;  %1292 = vst.msk [vmem:[%s192_s16 + $0xc] sm:$0x3] %vm1064_vm4, %v1114_v62  ;;  %v1124_v11 = vrot.slane %v1114_v62, %v1776_v25 }
 0x1cd   : > { %v1074_v20 = vcombine.high %v1073_v48, %v1073_v48  ;;  %1288 = vst.msk [vmem:[%s192_s16 + $0x4] sm:$0x3] %vm1064_vm4, %v1080_v5  ;;  %v1090_v51 = vrot.slane %v1080_v5, %v1776_v25 }
 0x1ce   : > { %1291 = vst.msk [vmem:[%s192_s16 + $0xa] sm:$0x3] %vm1064_vm4, %v1108_v60  ;;  %v1125_v53 = vcombine.high %v1124_v11, %v1124_v11 }
 0x1cf   : > { %1287 = vst.msk [vmem:[%s192_s16 + $0x2] sm:$0x3] %vm1064_vm4, %v1074_v20  ;;  %v1091_v21 = vcombine.high %v1090_v51, %v1090_v51 }
 0x1d0   : > { %1293 = vst.msk [vmem:[%s192_s16 + $0xe] sm:$0x3] %vm1064_vm4, %v1125_v53 }
 0x1d1   : > { %1289 = vst.msk [vmem:[%s192_s16 + $0x6] sm:$0x3] %vm1064_vm4, %v1091_v21 }
 0x1d2 PF: > { %s13_s14 = sadd.s32 1, %s1424_s14   ;;  %s1895_s12 = smov %s1420_s13 }
 0x1d3   : > { %p10_p5 = scmp.ge.s32.totalorder %s13_s14, 4   ;;  %s1896_s13 = smov %s1898_s15 }
 0x1d5   :  { %12 = sbr.rel (!%p10_p5) target bundleno = 2 (0x2), region = 74 }

// kernel: vgg_feature_extractor.10
= control target key start
LH: loop header
LB: loop body
LE: loop exit
PB: predicated region body
PF: predicated region fallthrough
CT: control target
= control target key end

     0   :  { %s2287_s12 = smov 0   ;;  %s2289_s13 = smov 0   ;;  %s2815_s0 = inlined_call_operand.vmem [shape: bf16[2,18,5,8], index: 0, kind: input, shape index: {}]   ;;  %s2816_s1 = inlined_call_operand.vmem [shape: bf16[3,2,16,8], index: 1, kind: input, shape index: {}]   ;;  %s2817_s2 = inlined_call_operand.vmem [shape: f32[1,8], index: 2, kind: input, shape index: {}]   ;;  %s2818_s3 = inlined_call_operand.vmem [shape: bf16[2,8,4,8], index: 3, kind: output, shape index: {}]  }
   0x1   :  { %s2291_s14 = smov 0  }
   0x2 LB: > { %s25_s15 = sadd.s32 1, %s2259_s13  ;;  %p1903_p0 = scmp.ge.s32.totalorder %s2263_s14, 1  ;;  %s2263_s14 = sphi %s2291_s14, %s13_s14   ;;  %s2259_s13 = sphi %s2289_s13, %s2850_s13   ;;  %s2255_s12 = sphi %s2287_s12, %s2849_s12  }
   0x3   : > { %p27_p1 = scmp.ge.s32.totalorder %s25_s15, 2  ;;  %p151_p2 = scmp.lt.s32.totalorder %s2263_s14, 3 }
   0x5   : > { %s2852_s15 = smov (%p27_p1, %s25_s15), 0  ;;  %p152_p3 = pnand %p1903_p0, %p151_p2 }
   0x7   : > { %155 = sbr.rel (%p152_p3) target bundleno = 471 (0x1d7), region = 32 }
   0xe   : > { %p179_p4 = scmp.lt.s32.totalorder %s2255_s12, 1  ;;  %s2265_s20 = smov 8   ;;  %v2235_v48 = vld [vmem:[%s2816_s1 + $0x10] sm:$0xff]   ;;  %v2236_v53 = vld [vmem:[%s2816_s1 + $0x18] sm:$0xff]   ;;  %vm406_vm0 = vcmask 64512   ;;  %vm812_vm1 = vcmask 130048  }
   0xf   : > { %2068 = vmatprep.subr.bf16.mxu0 %v2235_v48  ;;  %2088 = vmatprep.subr.bf16.mxu1 %v2236_v53  ;;  %vm1743_vm2 = vcmask 58368  }
  0x10   : > { %s2854_s12 = smov (!%p179_p4, %s2255_s12), 1  ;;  %2069 = vmatpush3.bf16.msra.mxu0 %v2235_v48  ;;  %2089 = vmatpush3.bf16.msra.mxu1 %v2236_v53 }
  0x11   : > { %s2160_s16 = smul.u32 72, %s2854_s12  ;;  %s2037_s8 = sshll.u32 %s2854_s12, 4 }
  0x12   : > { %s2788_s11 = scalar_lea.vmem %s2818_s3, %s2037_s8 }
  0x13   : > { %s2311_s19 = scalar_lea.vmem %s2815_s0, %s2160_s16 }
  0x14   : > { %v2314_v0 = vld [vmem:[%s2311_s19 + $0xc] sm:$0x7]  ;;  %v2317_v1 = vld [vmem:[%s2311_s19 + $0x4] sm:$0x7]  ;;  %v2320_v2 = vld [vmem:[%s2311_s19 + $0x10] sm:$0x7] }
  0x15   : > { %v1943_v3 = vcombine.low %v2314_v0, %v2314_v0  ;;  %v1941_v4 = vcombine.low %v2317_v1, %v2317_v1  ;;  %v1944_v5 = vcombine.low %v2320_v2, %v2320_v2  ;;  %v2329_v6 = vld [vmem:[%s2311_s19 + $0x8] sm:$0x7]  ;;  %v2332_v7 = vld [vmem:[%s2311_s19 + $0x18] sm:$0x7]  ;;  %v2335_v8 = vld [vmem:[%s2311_s19 + $0x14] sm:$0x7] }
  0x16   : > { %v1942_v9 = vcombine.low %v2329_v6, %v2329_v6  ;;  %v1946_v10 = vcombine.low %v2332_v7, %v2332_v7  ;;  %v1945_v11 = vcombine.low %v2335_v8, %v2335_v8  ;;  %v2344_v19 = vld [vmem:[%s2311_s19 + $0x20] sm:$0x7]  ;;  %v2347_v24 = vld [vmem:[%s2311_s19 + $0x1c] sm:$0x7]  ;;  %v2350_v29 = vld [vmem:[%s2311_s19 + $0x28] sm:$0x7] }
  0x17   : > { %v542_v12 = vshrl.u32 %v1943_v3, 16  ;;  %v544_v13 = vshll.u32 %v1943_v3, 16  ;;  %v528_v14 = vshrl.u32 %v1941_v4, 16  ;;  %v530_v15 = vshll.u32 %v1941_v4, 16  ;;  %v2355_v34 = vld [vmem:[%s2311_s19 + $0x24] sm:$0x7] }
  0x18   : > { %v549_v16 = vshrl.u32 %v1944_v5, 16  ;;  %v551_v17 = vshll.u32 %v1944_v5, 16  ;;  %v537_v18 = vshll.u32 %v1942_v9, 16  ;;  %v535_v22 = vshrl.u32 %v1942_v9, 16  ;;  %v2360_v38 = vld [vmem:[%s2311_s19 + $0x30] sm:$0x7] }
  0x19   : > { %v546_v20 = vrot.slane %v544_v13, 1  ;;  %v532_v21 = vrot.slane %v530_v15, 1  ;;  %v565_v23 = vshll.u32 %v1946_v10, 16  ;;  %v563_v27 = vshrl.u32 %v1946_v10, 16  ;;  %v2369_v45 = vld [vmem:[%s2311_s19 + $0x2c] sm:$0x7] }
  0x1a   : > { %v553_v25 = vrot.slane %v551_v17, 1  ;;  %v539_v26 = vrot.slane %v537_v18, 1  ;;  %v558_v28 = vshll.u32 %v1945_v11, 16  ;;  %v1948_v33 = vcombine.low %v2344_v19, %v2344_v19  ;;  %v2384_v58 = vld [vmem:[%s2311_s19 + $0x38] sm:$0x7] }
  0x1b   : > { %v547_v30 = vor.u32 %v546_v20, %v542_v12  ;;  %v533_v31 = vor.u32 %v532_v21, %v528_v14  ;;  %v567_v32 = vrot.slane %v565_v23, 1  ;;  %v556_v35 = vshrl.u32 %v1945_v11, 16  ;;  %v2387_v59 = vld [vmem:[%s2311_s19 + $0x34] sm:$0x7]  ;;  %v2396_v12 = vld [vmem:[%s2311_s19 + $0x40] sm:$0x7] }
  0x1c   : > { %v560_v36 = vrot.slane %v558_v28, 1  ;;  %v1947_v37 = vcombine.low %v2347_v24, %v2347_v24  ;;  %v554_v39 = vor.u32 %v553_v25, %v549_v16  ;;  %v540_v40 = vor.u32 %v539_v26, %v535_v22  ;;  %v2399_v13 = vld [vmem:[%s2311_s19 + $0x3c] sm:$0x7]  ;;  %v2408_v26 = vld [vmem:[%s2311_s19 + $0x4] sm:$0x7] }
  0x1d   : > { %643 = vrot.lane.b32.xlu1 %v547_v30, %s2265_s20  ;;  %639 = vrot.lane.b32.xlu0 %v533_v31, %s2265_s20  ;;  %v579_v41 = vshll.u32 %v1948_v33, 16  ;;  %v1950_v42 = vcombine.low %v2350_v29, %v2350_v29  ;;  %v1949_v44 = vcombine.low %v2355_v34, %v2355_v34  ;;  %v568_v46 = vor.u32 %v567_v32, %v563_v27  ;;  %v2411_v27 = vld [vmem:[%s2311_s19] sm:$0x7] }
  0x1e   : > { %v572_v43 = vshll.u32 %v1947_v37, 16  ;;  %v1952_v47 = vcombine.low %v2360_v38, %v2360_v38  ;;  %v561_v49 = vor.u32 %v560_v36, %v556_v35  ;;  %v577_v50 = vshrl.u32 %v1948_v33, 16  ;;  %v2416_v36 = vld [vmem:[%s2311_s19 + $0xc] sm:$0x7] }
  0x1f   : > { %v581_v51 = vrot.slane %v579_v41, 1  ;;  %v593_v52 = vshll.u32 %v1950_v42, 16  ;;  %v570_v54 = vshrl.u32 %v1947_v37, 16  ;;  %v586_v56 = vshll.u32 %v1949_v44, 16 }
  0x20   : > { %v574_v55 = vrot.slane %v572_v43, 1  ;;  %v1951_v57 = vcombine.low %v2369_v45, %v2369_v45  ;;  %v591_v60 = vshrl.u32 %v1950_v42, 16  ;;  %v607_v61 = vshll.u32 %v1952_v47, 16  ;;  %v2423_v42 = vld [vmem:[%s2311_s19 + $0x8] sm:$0x7] }
  0x21   : > { %645 = vrot.lane.b32.xlu1 %v554_v39, %s2265_s20  ;;  %641 = vrot.lane.b32.xlu0 %v540_v40, %s2265_s20  ;;  %v582_v62 = vor.u32 %v581_v51, %v577_v50  ;;  %v595_v63 = vrot.slane %v593_v52, 1  ;;  %v584_v3 = vshrl.u32 %v1949_v44, 16  ;;  %v1954_v4 = vcombine.low %v2384_v58, %v2384_v58 }
  0x22   : > { %v575_v5 = vor.u32 %v574_v55, %v570_v54  ;;  %v588_v9 = vrot.slane %v586_v56, 1  ;;  %v600_v10 = vshll.u32 %v1951_v57, 16  ;;  %v1953_v11 = vcombine.low %v2387_v59, %v2387_v59  ;;  %v2432_v54 = vld [vmem:[%s2311_s19 + $0x14] sm:$0x7]  ;;  %v2435_v55 = vld [vmem:[%s2311_s19 + $0x10] sm:$0x7] }
  0x23   : > { %v605_v14 = vshrl.u32 %v1952_v47, 16  ;;  %v609_v15 = vrot.slane %v607_v61, 1  ;;  %v596_v16 = vor.u32 %v595_v63, %v591_v60  ;;  %v598_v17 = vshrl.u32 %v1951_v57, 16 }
  0x24   : > { %v621_v18 = vshll.u32 %v1954_v4, 16  ;;  %v1956_v20 = vcombine.low %v2396_v12, %v2396_v12  ;;  %v589_v21 = vor.u32 %v588_v9, %v584_v3  ;;  %v602_v22 = vrot.slane %v600_v10, 1  ;;  %v2444_v10 = vld [vmem:[%s2311_s19 + $0x1c] sm:$0x7] }
  0x25   : > { %649 = vrot.lane.b32.xlu1 %v568_v46, %s2265_s20  ;;  %647 = vrot.lane.b32.xlu0 %v561_v49, %s2265_s20  ;;  %v614_v23 = vshll.u32 %v1953_v11, 16  ;;  %v1955_v25 = vcombine.low %v2399_v13, %v2399_v13  ;;  %v610_v28 = vor.u32 %v609_v15, %v605_v14  ;;  %v619_v30 = vshrl.u32 %v1954_v4, 16 }
  0x26   : > { %v623_v31 = vrot.slane %v621_v18, 1  ;;  %v612_v32 = vshrl.u32 %v1953_v11, 16  ;;  %v635_v33 = vshll.u32 %v1956_v20, 16  ;;  %v1908_v35 = vcombine.low %v2408_v26, %v2408_v26  ;;  %v2447_v11 = vld [vmem:[%s2311_s19 + $0x18] sm:$0x7] }
  0x27   : > { %v603_v37 = vor.u32 %v602_v22, %v598_v17  ;;  %v616_v39 = vrot.slane %v614_v23, 1  ;;  %v628_v40 = vshll.u32 %v1955_v25, 16  ;;  %v1907_v41 = vcombine.low %v2411_v27, %v2411_v27 }
  0x28   : > { %v633_v43 = vshrl.u32 %v1956_v20, 16  ;;  %v1910_v44 = vcombine.low %v2416_v36, %v2416_v36  ;;  %v624_v46 = vor.u32 %v623_v31, %v619_v30  ;;  %v637_v47 = vrot.slane %v635_v33, 1  ;;  %v2459_v30 = vld [vmem:[%s2311_s19 + $0x20] sm:$0x7] }
  0x29   : > { %653 = vrot.lane.b32.xlu1 %v582_v62, %s2265_s20  ;;  %651 = vrot.lane.b32.xlu0 %v575_v5, %s2265_s20  ;;  %v626_v48 = vshrl.u32 %v1955_v25, 16  ;;  %v272_v49 = vshll.u32 %v1908_v35, 16  ;;  %v617_v50 = vor.u32 %v616_v39, %v612_v32  ;;  %v630_v51 = vrot.slane %v628_v40, 1  ;;  %v2464_v40 = vld [vmem:[%s2311_s19 + $0x2c] sm:$0x7] }
  0x2a   : > { %v265_v52 = vshll.u32 %v1907_v41, 16  ;;  %v1909_v53 = vcombine.low %v2423_v42, %v2423_v42  ;;  %v270_v56 = vshrl.u32 %v1908_v35, 16  ;;  %v286_v57 = vshll.u32 %v1910_v44, 16 }
  0x2b   : > { %v638_v60 = vor.u32 %v637_v47, %v633_v43  ;;  %v274_v61 = vrot.slane %v272_v49, 1  ;;  %v263_v62 = vshrl.u32 %v1907_v41, 16  ;;  %v1912_v63 = vcombine.low %v2432_v54, %v2432_v54  ;;  %v2473_v47 = vld [vmem:[%s2816_s1] sm:$0xff]   ;;  %v2481_v49 = vld [vmem:[%s2311_s19 + $0x28] sm:$0x7] }
  0x2c   : > { %v631_v3 = vor.u32 %v630_v51, %v626_v48  ;;  %v267_v4 = vrot.slane %v265_v52, 1  ;;  %v279_v5 = vshll.u32 %v1909_v53, 16  ;;  %v1911_v9 = vcombine.low %v2435_v55, %v2435_v55  ;;  %v2478_v48 = vld [vmem:[%s2816_s1 + $0x8] sm:$0xff]   ;;  %2078 = vmatprep.subr.bf16.mxu0 %v2473_v47 }
  0x2d   : > { %657 = vrot.lane.b32.xlu1 %v596_v16, %s2265_s20  ;;  %655 = vrot.lane.b32.xlu0 %v589_v21, %s2265_s20  ;;  %v284_v14 = vshrl.u32 %v1910_v44, 16  ;;  %v288_v15 = vrot.slane %v286_v57, 1  ;;  %v275_v16 = vor.u32 %v274_v61, %v270_v56  ;;  %v300_v17 = vshll.u32 %v1912_v63, 16 }
  0x2e   : > { %v1914_v18 = vcombine.low %v2444_v10, %v2444_v10  ;;  %v1913_v20 = vcombine.low %v2447_v11, %v2447_v11  ;;  %v268_v21 = vor.u32 %v267_v4, %v263_v62  ;;  %v277_v22 = vshrl.u32 %v1909_v53, 16  ;;  %2098 = vmatprep.subr.bf16.mxu1 %v2478_v48  ;;  %v2495_v4 = vld [vmem:[%s2311_s19 + $0x30] sm:$0x7] }
  0x2f   : > { %v281_v23 = vrot.slane %v279_v5, 1  ;;  %v293_v25 = vshll.u32 %v1911_v9, 16  ;;  %v289_v31 = vor.u32 %v288_v15, %v284_v14  ;;  %v298_v32 = vshrl.u32 %v1912_v63, 16 }
  0x30   : > { %v302_v33 = vrot.slane %v300_v17, 1  ;;  %v291_v35 = vshrl.u32 %v1911_v9, 16  ;;  %v307_v44 = vshll.u32 %v1913_v20, 16  ;;  %v1918_v51 = vcombine.low %v2464_v40, %v2464_v40 }
  0x31   : > { %661 = vrot.lane.b32.xlu1 %v610_v28, %s2265_s20  ;;  %659 = vrot.lane.b32.xlu0 %v603_v37, %s2265_s20  ;;  %v2456_v28 = vld [vmem:[%s2311_s19 + $0x24] sm:$0x7]  ;;  %v314_v37 = vshll.u32 %v1914_v18, 16  ;;  %v282_v41 = vor.u32 %v281_v23, %v277_v22  ;;  %v295_v43 = vrot.slane %v293_v25, 1  ;;  %v305_v56 = vshrl.u32 %v1913_v20, 16 }
  0x32   : > { %v1916_v39 = vcombine.low %v2456_v28, %v2456_v28  ;;  %v303_v52 = vor.u32 %v302_v33, %v298_v32  ;;  %v309_v61 = vrot.slane %v307_v44, 1  ;;  %v1917_v63 = vcombine.low %v2481_v49, %v2481_v49  ;;  %v2504_v23 = vld [vmem:[%s2311_s19 + $0x3c] sm:$0x7]  ;;  %v2507_v25 = vld [vmem:[%s2311_s19 + $0x38] sm:$0x7] }
  0x33   : > { %v316_v53 = vrot.slane %v314_v37, 1  ;;  %v342_v9 = vshll.u32 %v1918_v51, 16  ;;  %v1919_v22 = vcombine.low %v2495_v4, %v2495_v4 }
  0x34   : > { %v328_v57 = vshll.u32 %v1916_v39, 16  ;;  %v326_v5 = vshrl.u32 %v1916_v39, 16  ;;  %v1922_v39 = vcombine.low %v2504_v23, %v2504_v23 }
  0x35   : > { %665 = vrot.lane.b32.xlu1 %v624_v46, %s2265_s20  ;;  %663 = vrot.lane.b32.xlu0 %v617_v50, %s2265_s20  ;;  %v1915_v46 = vcombine.low %v2459_v30, %v2459_v30  ;;  %v312_v50 = vshrl.u32 %v1914_v18, 16  ;;  %v310_v18 = vor.u32 %v309_v61, %v305_v56  ;;  %v344_v32 = vrot.slane %v342_v9, 1 }
  0x36   : > { %v330_v15 = vrot.slane %v328_v57, 1 }
  0x37   : > { %v321_v62 = vshll.u32 %v1915_v46, 16  ;;  %v317_v14 = vor.u32 %v316_v53, %v312_v50  ;;  %v1921_v50 = vcombine.low %v2507_v25, %v2507_v25 }
  0x38   : > { %v331_v33 = vor.u32 %v330_v15, %v326_v5  ;;  %v2531_v15 = vld [vmem:[%s2311_s19 + $0x10] sm:$0x7] }
  0x39   : > { %669 = vrot.lane.b32.xlu1 %v638_v60, %s2265_s20  ;;  %667 = vrot.lane.b32.xlu0 %v631_v3, %s2265_s20  ;;  %v296_v60 = vor.u32 %v295_v43, %v291_v35  ;;  %v2492_v3 = vld [vmem:[%s2311_s19 + $0x34] sm:$0x7]  ;;  %v323_v20 = vrot.slane %v321_v62, 1  ;;  %v333_v35 = vshrl.u32 %v1917_v63, 16  ;;  %v363_v9 = vshll.u32 %v1921_v50, 16  ;;  %2829 = vst [vmem:[#allocation2_spill] sm:$0xff] %v2531_v15 }
  0x3a   : > { %v1920_v17 = vcombine.low %v2492_v3, %v2492_v3 }
  0x3c   : > { %v356_v37 = vshll.u32 %v1920_v17, 16 }
  0x3d   : > { %376 = vrot.lane.b32.xlu1 %v275_v16, %s2265_s20  ;;  %374 = vrot.lane.b32.xlu0 %v268_v21, %s2265_s20  ;;  %v319_v16 = vshrl.u32 %v1915_v46, 16  ;;  %v335_v21 = vshll.u32 %v1917_v63, 16  ;;  %v349_v46 = vshll.u32 %v1919_v22, 16  ;;  %v347_v63 = vshrl.u32 %v1919_v22, 16 }
  0x3e   : > { %v358_v57 = vrot.slane %v356_v37, 1  ;;  %v2540_v37 = vld [vmem:[%s2311_s19 + $0x1c] sm:$0x7] }
  0x3f   : > { %v324_v43 = vor.u32 %v323_v20, %v319_v16  ;;  %v337_v44 = vrot.slane %v335_v21, 1  ;;  %v351_v5 = vrot.slane %v349_v46, 1  ;;  %v368_v16 = vshrl.u32 %v1922_v39, 16  ;;  %2830 = vst [vmem:[#allocation3_spill] sm:$0xff] %v2540_v37 }
  0x41   : > { %380 = vrot.lane.b32.xlu1 %v289_v31, %s2265_s20  ;;  %378 = vrot.lane.b32.xlu0 %v282_v41, %s2265_s20  ;;  %v340_v31 = vshrl.u32 %v1918_v51, 16  ;;  %v2512_v41 = vld [vmem:[%s2311_s19 + $0xc] sm:$0x7]  ;;  %v2519_v51 = vld [vmem:[%s2311_s19 + $0x8] sm:$0x7]  ;;  %v338_v62 = vor.u32 %v337_v44, %v333_v35  ;;  %v352_v22 = vor.u32 %v351_v5, %v347_v63  ;;  %v1999_v35 = vcombine.low %v2531_v15, %v2531_v15 }
  0x42   : > { %v1998_v53 = vcombine.low %v2512_v41, %v2512_v41  ;;  %v1997_v61 = vcombine.low %v2519_v51, %v2519_v51 }
  0x43   : > { %v345_v56 = vor.u32 %v344_v32, %v340_v31  ;;  %v361_v32 = vshrl.u32 %v1921_v50, 16 }
  0x44   : > { %v1272_v21 = vshll.u32 %v1997_v61, 16  ;;  %v1270_v46 = vshrl.u32 %v1997_v61, 16  ;;  %v2555_v61 = vld [vmem:[%s2311_s19 + $0x20] sm:$0x7] }
  0x45   : > { %384 = vrot.lane.b32.xlu1 %v303_v52, %s2265_s20  ;;  %382 = vrot.lane.b32.xlu0 %v296_v60, %s2265_s20  ;;  %v354_v52 = vshrl.u32 %v1920_v17, 16  ;;  %v370_v60 = vshll.u32 %v1922_v39, 16  ;;  %v1279_v17 = vshll.u32 %v1998_v53, 16  ;;  %v2543_v39 = vld [vmem:[%s2311_s19 + $0x18] sm:$0x7]  ;;  %2833 = vst [vmem:[#allocation6_spill] sm:$0xff] %v2555_v61 }
  0x46   : > { %2831 = vst [vmem:[#allocation4_spill] sm:$0xff] %v2543_v39  ;;  %v2001_v63 = vcombine.low %v2543_v39, %v2543_v39 }
  0x47   : > { %v372_v20 = vrot.slane %v370_v60, 1  ;;  %v1281_v44 = vrot.slane %v1279_v17, 1 }
  0x49   : > { %388 = vrot.lane.b32.xlu1 %v317_v14, %s2265_s20  ;;  %386 = vrot.lane.b32.xlu0 %v310_v18, %s2265_s20  ;;  %v2528_v14 = vld [vmem:[%s2311_s19 + $0x14] sm:$0x7]  ;;  %v359_v18 = vor.u32 %v358_v57, %v354_v52  ;;  %v1274_v52 = vrot.slane %v1272_v21, 1  ;;  %v373_v50 = vor.u32 %v372_v20, %v368_v16  ;;  %v1300_v20 = vshll.u32 %v2001_v63, 16 }
  0x4a   : > { %v2000_v31 = vcombine.low %v2528_v14, %v2528_v14 }
  0x4b   : > { %v1275_v17 = vor.u32 %v1274_v52, %v1270_v46  ;;  %v1298_v46 = vshrl.u32 %v2001_v63, 16 }
  0x4c   : > { %v1293_v57 = vshll.u32 %v2000_v31, 16 }
  0x4d   : > { %392 = vrot.lane.b32.xlu1 %v331_v33, %s2265_s20  ;;  %390 = vrot.lane.b32.xlu0 %v324_v43, %s2265_s20  ;;  %v365_v33 = vrot.slane %v363_v9, 1  ;;  %v1277_v43 = vshrl.u32 %v1998_v53, 16  ;;  %v2552_v53 = vld [vmem:[%s2311_s19 + $0x24] sm:$0x7]  ;;  %v1291_v9 = vshrl.u32 %v2000_v31, 16  ;;  %v2003_v31 = vcombine.low %v2555_v61, %v2555_v61 }
  0x4e   : > { %2832 = vst [vmem:[#allocation5_spill] sm:$0xff] %v2552_v53  ;;  %v1295_v21 = vrot.slane %v1293_v57, 1  ;;  %v2579_v61 = vld [vmem:[%s2311_s19 + $0x30] sm:$0x7] }
  0x4f   : > { %v366_v60 = vor.u32 %v365_v33, %v361_v32  ;;  %v1282_v5 = vor.u32 %v1281_v44, %v1277_v43  ;;  %v2567_v32 = vld [vmem:[%s2311_s19 + $0x28] sm:$0x7]  ;;  %2837 = vst [vmem:[#allocation10_spill] sm:$0xff] %v2579_v61 }
  0x50   : > { %2835 = vst [vmem:[#allocation8_spill] sm:$0xff] %v2567_v32  ;;  %v1296_v43 = vor.u32 %v1295_v21, %v1291_v9  ;;  %v2005_v52 = vcombine.low %v2567_v32, %v2567_v32  ;;  %v1312_v21 = vshrl.u32 %v2003_v31, 16 }
  0x51   : > { %396 = vrot.lane.b32.xlu1 %v345_v56, %s2265_s20  ;;  %394 = vrot.lane.b32.xlu0 %v338_v62, %s2265_s20  ;;  %v2002_v56 = vcombine.low %v2540_v37, %v2540_v37  ;;  %v1286_v62 = vshll.u32 %v1999_v35, 16  ;;  %v1284_v37 = vshrl.u32 %v1999_v35, 16 }
  0x52   : > { %v1326_v32 = vshrl.u32 %v2005_v52, 16 }
  0x53   : > { %v1307_v15 = vshll.u32 %v2002_v56, 16  ;;  %v1288_v16 = vrot.slane %v1286_v62, 1  ;;  %v1305_v33 = vshrl.u32 %v2002_v56, 16  ;;  %v1314_v62 = vshll.u32 %v2003_v31, 16  ;;  %v2576_v56 = vld [vmem:[%s2311_s19 + $0x34] sm:$0x7] }
  0x54   : > { %2836 = vst [vmem:[#allocation9_spill] sm:$0xff] %v2576_v56 }
  0x55   : > { %400 = vrot.lane.b32.xlu1 %v359_v18, %s2265_s20  ;;  %398 = vrot.lane.b32.xlu0 %v352_v22, %s2265_s20  ;;  %v2558_v18 = vld [vmem:[%s2311_s19 + $0x2c] sm:$0x7]  ;;  %v2004_v22 = vcombine.low %v2552_v53, %v2552_v53  ;;  %v1309_v44 = vrot.slane %v1307_v15, 1  ;;  %v1289_v57 = vor.u32 %v1288_v16, %v1284_v37  ;;  %v1316_v16 = vrot.slane %v1314_v62, 1  ;;  %v2600_v62 = vld [vmem:[%s2311_s19 + $0x44] sm:$0x7] }
  0x56   : > { %2834 = vst [vmem:[#allocation7_spill] sm:$0xff] %v2558_v18  ;;  %v2006_v35 = vcombine.low %v2558_v18, %v2558_v18  ;;  %v1328_v18 = vshll.u32 %v2005_v52, 16 }
  0x57   : > { %v1319_v9 = vshrl.u32 %v2004_v22, 16  ;;  %v1310_v63 = vor.u32 %v1309_v44, %v1305_v33  ;;  %v2591_v33 = vld [vmem:[%s2311_s19 + $0x38] sm:$0x7] }
  0x58   : > { %v1335_v15 = vshll.u32 %v2006_v35, 16  ;;  %v1333_v31 = vshrl.u32 %v2006_v35, 16  ;;  %v2603_v35 = vld [vmem:[%s2311_s19 + $0x40] sm:$0x7] }
  0x59   : > { %404 = vrot.lane.b32.xlu1 %v373_v50, %s2265_s20  ;;  %402 = vrot.lane.b32.xlu0 %v366_v60, %s2265_s20  ;;  %v1302_v50 = vrot.slane %v1300_v20, 1  ;;  %v1321_v60 = vshll.u32 %v2004_v22, 16  ;;  %v2007_v20 = vcombine.low %v2579_v61, %v2579_v61  ;;  %v2588_v22 = vld [vmem:[%s2311_s19 + $0x3c] sm:$0x7] }
  0x5a   : > { %2838 = vst [vmem:[#allocation11_spill] sm:$0xff] %v2588_v22  ;;  %v1337_v44 = vrot.slane %v1335_v15, 1 }
  0x5b   : > { %v1303_v37 = vor.u32 %v1302_v50, %v1298_v46  ;;  %v1342_v50 = vshll.u32 %v2007_v20, 16  ;;  %v1340_v39 = vshrl.u32 %v2007_v20, 16 }
  0x5c   : > { %v1338_v52 = vor.u32 %v1337_v44, %v1333_v31 }
  0x5d   : > { %1383 = vrot.lane.b32.xlu1 %v1282_v5, %s2265_s20  ;;  %1381 = vrot.lane.b32.xlu0 %v1275_v17, %s2265_s20  ;;  %v2008_v5 = vcombine.low %v2576_v56, %v2576_v56  ;;  %v1323_v17 = vrot.slane %v1321_v60, 1  ;;  %v1330_v56 = vrot.slane %v1328_v18, 1  ;;  %v2009_v60 = vcombine.low %v2591_v33, %v2591_v33 }
  0x5f   : > { %v1349_v53 = vshll.u32 %v2008_v5, 16  ;;  %v1324_v46 = vor.u32 %v1323_v17, %v1319_v9  ;;  %v1347_v18 = vshrl.u32 %v2008_v5, 16  ;;  %v1331_v15 = vor.u32 %v1330_v56, %v1326_v32 }
  0x60   : > { %v1344_v9 = vrot.slane %v1342_v50, 1  ;;  %v1354_v5 = vshrl.u32 %v2009_v60, 16 }
  0x61   : > { %1387 = vrot.lane.b32.xlu1 %v1296_v43, %s2265_s20  ;;  %1385 = vrot.lane.b32.xlu0 %v1289_v57, %s2265_s20  ;;  %v2010_v43 = vcombine.low %v2588_v22, %v2588_v22  ;;  %v1317_v57 = vor.u32 %v1316_v16, %v1312_v21  ;;  %v1351_v61 = vrot.slane %v1349_v53, 1  ;;  %v2012_v21 = vcombine.low %v2600_v62, %v2600_v62 }
  0x62   : > { %v1345_v53 = vor.u32 %v1344_v9, %v1340_v39  ;;  %v2266_v39 = vmov 1983009808  }
  0x63   : > { %v1363_v22 = vshll.u32 %v2010_v43, 16  ;;  %v1352_v17 = vor.u32 %v1351_v61, %v1347_v18  ;;  %v1361_v16 = vshrl.u32 %v2010_v43, 16  ;;  %v1377_v56 = vshll.u32 %v2012_v21, 16 }
  0x64   : > { %v743_v18 = vlaneseq }
  0x65   : > { %1391 = vrot.lane.b32.xlu1 %v1310_v63, %s2265_s20  ;;  %1389 = vrot.lane.b32.xlu0 %v1303_v37, %s2265_s20  ;;  %v1356_v63 = vshll.u32 %v2009_v60, 16  ;;  %v2011_v37 = vcombine.low %v2603_v35, %v2603_v35  ;;  %v1365_v31 = vrot.slane %v1363_v22, 1  ;;  %v1379_v50 = vrot.slane %v1377_v56, 1 }
  0x67   : > { %v1358_v32 = vrot.slane %v1356_v63, 1  ;;  %v1370_v20 = vshll.u32 %v2011_v37, 16  ;;  %v1366_v44 = vor.u32 %v1365_v31, %v1361_v16  ;;  %v1368_v61 = vshrl.u32 %v2011_v37, 16 }
  0x69   : > { %1395 = vrot.lane.b32.xlu1 %v1324_v46, %s2265_s20  ;;  %1393 = vrot.lane.b32.xlu0 %v1317_v57, %s2265_s20  ;;  %v1375_v46 = vshrl.u32 %v2012_v21, 16  ;;  %v1359_v57 = vor.u32 %v1358_v32, %v1354_v5  ;;  %v1372_v43 = vrot.slane %v1370_v20, 1  ;;  %v744_v21 = vshrl.u32 %v743_v18, 7 }
  0x6b   : > { %v1380_v22 = vor.u32 %v1379_v50, %v1375_v46  ;;  %v1373_v60 = vor.u32 %v1372_v43, %v1368_v61 }
  0x6d   : > { %1399 = vrot.lane.b32.xlu1 %v1338_v52, %s2265_s20  ;;  %1397 = vrot.lane.b32.xlu0 %v1331_v15, %s2265_s20  ;;  %v741_v52 = vunpack.c.l.s4 %v2266_v39 }
  0x6f   : > { %v742_v63 = vunpack.c.0.s8 %v741_v52 }
  0x71   : > { %1403 = vrot.lane.b32.xlu1 %v1352_v17, %s2265_s20  ;;  %1401 = vrot.lane.b32.xlu0 %v1345_v53, %s2265_s20  ;;  %v2619_v16 = vsub.s32 %v742_v63, %v744_v21 }
  0x75   : > { %1407 = vrot.lane.b32.xlu1 %v1366_v44, %s2265_s20  ;;  %1405 = vrot.lane.b32.xlu0 %v1359_v57, %s2265_s20 }
  0x79   : > { %1411 = vrot.lane.b32.xlu1 %v1380_v22, %s2265_s20  ;;  %1409 = vrot.lane.b32.xlu0 %v1373_v60, %s2265_s20 }
  0x8f   : > { %v644_v15 = vpop.permute.xlu1 %643  ;;  %v640_v9 = vpop.permute.xlu0 %639 }
  0x90   : > { %v679_v31 = vsel %vm406_vm0, %v2314_v0, %v644_v15  ;;  %v673_v5 = vsel %vm406_vm0, %v2317_v1, %v640_v9 }
  0x93   : > { %v646_v37 = vpop.permute.xlu1 %645  ;;  %v642_v17 = vpop.permute.xlu0 %641 }
  0x94   : > { %v682_v53 = vsel %vm406_vm0, %v2320_v2, %v646_v37  ;;  %v676_v32 = vsel %vm406_vm0, %v2329_v6, %v642_v17 }
  0x95   : > { %v739_v56 = vcombine.low %v679_v31, %v682_v53  ;;  %v738_v20 = vcombine.low %v673_v5, %v676_v32 }
  0x97   : > { %v650_v44 = vpop.permute.xlu1 %649  ;;  %v648_v46 = vpop.permute.xlu0 %647  ;;  %v746_v57 = vrot.slane %v738_v20, %v2619_v16  ;;  %v753_v50 = vrot.slane %v739_v56, %v2619_v16 }
  0x98   : > { %v688_v0 = vsel %vm406_vm0, %v2332_v7, %v650_v44  ;;  %v685_v1 = vsel %vm406_vm0, %v2335_v8, %v648_v46 }
  0x99   : > { %v754_v61 = vcombine.low %v746_v57, %v753_v50  ;;  %v755_v2 = vcombine.low %v685_v1, %v688_v0 }
  0x9b   : > { %v654_v43 = vpop.permute.xlu1 %653  ;;  %2070 = vmatprep.mubr.msk.bf16.mxu0 %vm812_vm1, %v754_v61  ;;  %2090 = vmatprep.mubr.msk.bf16.mxu1 %vm812_vm1, %v754_v61  ;;  %v652_v6 = vpop.permute.xlu0 %651  ;;  %v763_v7 = vrot.slane %v755_v2, %v2619_v16 }
  0x9c   : > { %v694_v22 = vsel %vm406_vm0, %v2344_v19, %v654_v43  ;;  %v691_v60 = vsel %vm406_vm0, %v2347_v24, %v652_v6  ;;  %v2650_v19 = vld [vmem:[%s2816_s1 + $0x20] sm:$0xff]   ;;  %v2655_v24 = vld [vmem:[%s2816_s1 + $0x28] sm:$0xff]  }
  0x9d   : > { %v756_v39 = vcombine.low %v691_v60, %v694_v22 }
  0x9f   : > { %v770_v8 = vrot.slane %v756_v39, %v2619_v16  ;;  %v658_v52 = vpop.permute.xlu1 %657  ;;  %v656_v18 = vpop.permute.xlu0 %655 }
  0xa0   : > { %v700_v15 = vsel %vm406_vm0, %v2350_v29, %v658_v52  ;;  %v697_v9 = vsel %vm406_vm0, %v2355_v34, %v656_v18 }
  0xa1   : > { %v771_v63 = vcombine.low %v763_v7, %v770_v8  ;;  %v772_v21 = vcombine.low %v697_v9, %v700_v15 }
  0xa3   : > { %v662_v37 = vpop.permute.xlu1 %661  ;;  %2071 = vmatmul.mubr.msk.bf16.vlgmr.msra.gmra.mrb[0].mxu0 %vm812_vm1, %v771_v63  ;;  %2091 = vmatmul.mubr.msk.bf16.vlgmr.msra.gmra.mrb[0].mxu1 %vm812_vm1, %v771_v63  ;;  %v660_v29 = vpop.permute.xlu0 %659  ;;  %v780_v5 = vrot.slane %v772_v21, %v2619_v16 }
  0xa4   : > { %v706_v34 = vsel %vm406_vm0, %v2360_v38, %v662_v37  ;;  %v703_v17 = vsel %vm406_vm0, %v2369_v45, %v660_v29  ;;  %2079 = vmatpush3.bf16.msra.mxu0 %v2473_v47  ;;  %2099 = vmatpush3.bf16.msra.mxu1 %v2478_v48 }
  0xa5   : > { %v773_v31 = vcombine.low %v703_v17, %v706_v34  ;;  %2108 = vmatprep.subr.bf16.mxu0 %v2650_v19  ;;  %2118 = vmatprep.subr.bf16.mxu1 %v2655_v24 }
  0xa7   : > { %v787_v53 = vrot.slane %v773_v31, %v2619_v16  ;;  %v666_v32 = vpop.permute.xlu1 %665  ;;  %v664_v56 = vpop.permute.xlu0 %663 }
  0xa8   : > { %v712_v38 = vsel %vm406_vm0, %v2384_v58, %v666_v32  ;;  %v709_v45 = vsel %vm406_vm0, %v2387_v59, %v664_v56 }
  0xa9   : > { %v788_v47 = vcombine.low %v780_v5, %v787_v53  ;;  %v789_v20 = vcombine.low %v709_v45, %v712_v38 }
  0xab   : > { %v670_v48 = vpop.permute.xlu1 %669  ;;  %2074 = vmatprep.mubr.msk.bf16.mxu0 %vm812_vm1, %v788_v47  ;;  %2094 = vmatprep.mubr.msk.bf16.mxu1 %vm812_vm1, %v788_v47  ;;  %v668_v44 = vpop.permute.xlu0 %667  ;;  %v797_v58 = vrot.slane %v789_v20, %v2619_v16 }
  0xac   : > { %v718_v46 = vsel %vm406_vm0, %v2396_v12, %v670_v48  ;;  %v715_v57 = vsel %vm406_vm0, %v2399_v13, %v668_v44 }
  0xad   : > { %v790_v50 = vcombine.low %v715_v57, %v718_v46 }
  0xaf   : > { %v804_v0 = vrot.slane %v790_v50, %v2619_v16  ;;  %v377_v59 = vpop.permute.xlu1 %376  ;;  %v375_v1 = vpop.permute.xlu0 %374 }
  0xb0   : > { %v412_v61 = vsel %vm406_vm0, %v2408_v26, %v377_v59  ;;  %v409_v2 = vsel %vm406_vm0, %v2411_v27, %v375_v1 }
  0xb1   : > { %v805_v43 = vcombine.low %v797_v58, %v804_v0  ;;  %v906_v6 = vcombine.low %v409_v2, %v412_v61 }
  0xb3   : > { %2075 = vmatmul.mubr.msk.bf16.gmra.mrb[4].mxu0 %vm812_vm1, %v805_v43  ;;  %2095 = vmatmul.mubr.msk.bf16.gmra.mrb[4].mxu1 %vm812_vm1, %v805_v43  ;;  %v381_v12 = vpop.permute.xlu1 %380  ;;  %v379_v13 = vpop.permute.xlu0 %378  ;;  %v914_v26 = vrot.slane %v906_v6, %v2619_v16  ;;  %v2839_v43 = vld [vmem:[#allocation2_spill] sm:$0xff] }
  0xb4   : > { %v418_v22 = vsel %vm406_vm0, %v2416_v36, %v381_v12  ;;  %v415_v60 = vsel %vm406_vm0, %v2423_v42, %v379_v13 }
  0xb5   : > { %v907_v39 = vcombine.low %v415_v60, %v418_v22  ;;  %v2840_v60 = vld [vmem:[#allocation3_spill] sm:$0xff] }
  0xb7   : > { %v921_v7 = vrot.slane %v907_v39, %v2619_v16  ;;  %v385_v27 = vpop.permute.xlu1 %384  ;;  %v383_v8 = vpop.permute.xlu0 %382 }
  0xb8   : > { %v424_v52 = vsel %vm406_vm0, %v2432_v54, %v385_v27  ;;  %v421_v18 = vsel %vm406_vm0, %v2435_v55, %v383_v8 }
  0xb9   : > { %v922_v15 = vcombine.low %v914_v26, %v921_v7  ;;  %v923_v9 = vcombine.low %v421_v18, %v424_v52  ;;  %v2841_v26 = vld [vmem:[#allocation4_spill] sm:$0xff]  ;;  %v2842_v18 = vld [vmem:[#allocation5_spill] sm:$0xff] }
  0xbb   : > { %v389_v63 = vpop.permute.xlu1 %388  ;;  %2080 = vmatprep.mubr.msk.bf16.mxu0 %vm812_vm1, %v922_v15  ;;  %2100 = vmatprep.mubr.msk.bf16.mxu1 %vm812_vm1, %v922_v15  ;;  %v387_v36 = vpop.permute.xlu0 %386  ;;  %v931_v54 = vrot.slane %v923_v9, %v2619_v16  ;;  %v2843_v9 = vld [vmem:[#allocation6_spill] sm:$0xff] }
  0xbc   : > { %v430_v42 = vsel %vm406_vm0, %v2444_v10, %v389_v63  ;;  %v427_v21 = vsel %vm406_vm0, %v2447_v11, %v387_v36 }
  0xbd   : > { %v924_v37 = vcombine.low %v427_v21, %v430_v42 }
  0xbf   : > { %v938_v29 = vrot.slane %v924_v37, %v2619_v16  ;;  %v393_v55 = vpop.permute.xlu1 %392  ;;  %v391_v34 = vpop.permute.xlu0 %390 }
  0xc0   : > { %v436_v17 = vsel %vm406_vm0, %v2456_v28, %v393_v55  ;;  %v433_v31 = vsel %vm406_vm0, %v2459_v30, %v391_v34  ;;  %v2845_v34 = vld [vmem:[#allocation8_spill] sm:$0xff] }
  0xc1   : > { %v939_v5 = vcombine.low %v931_v54, %v938_v29  ;;  %v940_v53 = vcombine.low %v433_v31, %v436_v17  ;;  %v2844_v29 = vld [vmem:[#allocation7_spill] sm:$0xff] }
  0xc3   : > { %v397_v32 = vpop.permute.xlu1 %396  ;;  %2081 = vmatmul.mubr.msk.bf16.vlgmr.msra.gmra.mrb[0].mxu0 %vm812_vm1, %v939_v5  ;;  %2101 = vmatmul.mubr.msk.bf16.vlgmr.msra.gmra.mrb[0].mxu1 %vm812_vm1, %v939_v5  ;;  %v395_v10 = vpop.permute.xlu0 %394  ;;  %v948_v30 = vrot.slane %v940_v53, %v2619_v16 }
  0xc4   : > { %v442_v11 = vsel %vm406_vm0, %v2464_v40, %v397_v32  ;;  %v439_v56 = vsel %vm406_vm0, %v2481_v49, %v395_v10  ;;  %2109 = vmatpush3.bf16.msra.mxu0 %v2650_v19  ;;  %2119 = vmatpush3.bf16.msra.mxu1 %v2655_v24  ;;  %v2846_v10 = vld [vmem:[#allocation9_spill] sm:$0xff] }
  0xc5   : > { %v941_v28 = vcombine.low %v439_v56, %v442_v11  ;;  %v2847_v56 = vld [vmem:[#allocation10_spill] sm:$0xff] }
  0xc7   : > { %v955_v38 = vrot.slane %v941_v28, %v2619_v16  ;;  %v401_v45 = vpop.permute.xlu1 %400  ;;  %v399_v47 = vpop.permute.xlu0 %398 }
  0xc8   : > { %v448_v20 = vsel %vm406_vm0, %v2492_v3, %v401_v45  ;;  %v445_v40 = vsel %vm406_vm0, %v2495_v4, %v399_v47 }
  0xc9   : > { %v956_v48 = vcombine.low %v948_v30, %v955_v38  ;;  %v957_v44 = vcombine.low %v445_v40, %v448_v20  ;;  %v2848_v40 = vld [vmem:[#allocation11_spill] sm:$0xff] }
  0xcb   : > { %v405_v49 = vpop.permute.xlu1 %404  ;;  %2084 = vmatprep.mubr.msk.bf16.mxu0 %vm812_vm1, %v956_v48  ;;  %2104 = vmatprep.mubr.msk.bf16.mxu1 %vm812_vm1, %v956_v48  ;;  %v403_v19 = vpop.permute.xlu0 %402  ;;  %v965_v3 = vrot.slane %v957_v44, %v2619_v16 }
  0xcc   : > { %v454_v24 = vsel %vm406_vm0, %v2504_v23, %v405_v49  ;;  %v451_v46 = vsel %vm406_vm0, %v2507_v25, %v403_v19 }
  0xcd   : > { %v958_v57 = vcombine.low %v451_v46, %v454_v24 }
  0xcf   : > { %v972_v50 = vrot.slane %v958_v57, %v2619_v16  ;;  %v1384_v4 = vpop.permute.xlu1 %1383  ;;  %v1382_v58 = vpop.permute.xlu0 %1381 }
  0xd0   : > { %v1418_v0 = vsel %vm406_vm0, %v2512_v41, %v1384_v4  ;;  %v1415_v59 = vsel %vm406_vm0, %v2519_v51, %v1382_v58 }
  0xd1   : > { %v973_v1 = vcombine.low %v965_v3, %v972_v50  ;;  %v1480_v61 = vcombine.low %v1415_v59, %v1418_v0 }
  0xd3   : > { %v1388_v2 = vpop.permute.xlu1 %1387  ;;  %2085 = vmatmul.mubr.msk.bf16.gmra.mrb[4].mxu0 %vm812_vm1, %v973_v1  ;;  %2105 = vmatmul.mubr.msk.bf16.gmra.mrb[4].mxu1 %vm812_vm1, %v973_v1  ;;  %v1386_v23 = vpop.permute.xlu0 %1385  ;;  %v1488_v41 = vrot.slane %v1480_v61, %v2619_v16 }
  0xd4   : > { %v1424_v25 = vsel %vm406_vm0, %v2528_v14, %v1388_v2  ;;  %v1421_v6 = vsel %vm406_vm0, %v2839_v43, %v1386_v23 }
  0xd5   : > { %v1481_v12 = vcombine.low %v1421_v6, %v1424_v25 }
  0xd7   : > { %v1495_v13 = vrot.slane %v1481_v12, %v2619_v16  ;;  %v1392_v51 = vpop.permute.xlu1 %1391  ;;  %v1390_v22 = vpop.permute.xlu0 %1389 }
  0xd8   : > { %v1430_v39 = vsel %vm406_vm0, %v2840_v60, %v1392_v51  ;;  %v1427_v7 = vsel %vm406_vm0, %v2841_v26, %v1390_v22 }
  0xd9   : > { %v1496_v27 = vcombine.low %v1488_v41, %v1495_v13  ;;  %v1497_v8 = vcombine.low %v1427_v7, %v1430_v39 }
  0xdb   : > { %v1396_v52 = vpop.permute.xlu1 %1395  ;;  %2110 = vmatprep.mubr.msk.bf16.mxu0 %vm812_vm1, %v1496_v27  ;;  %2120 = vmatprep.mubr.msk.bf16.mxu1 %vm812_vm1, %v1496_v27  ;;  %v1394_v14 = vpop.permute.xlu0 %1393  ;;  %v1505_v42 = vrot.slane %v1497_v8, %v2619_v16 }
  0xdc   : > { %v1436_v15 = vsel %vm406_vm0, %v2842_v18, %v1396_v52  ;;  %v1433_v63 = vsel %vm406_vm0, %v2843_v9, %v1394_v14 }
  0xdd   : > { %v1498_v36 = vcombine.low %v1433_v63, %v1436_v15 }
  0xdf   : > { %v1512_v21 = vrot.slane %v1498_v36, %v2619_v16  ;;  %v1400_v37 = vpop.permute.xlu1 %1399  ;;  %v1398_v54 = vpop.permute.xlu0 %1397 }
  0xe0   : > { %v1442_v55 = vsel %vm406_vm0, %v2844_v29, %v1400_v37  ;;  %v1439_v17 = vsel %vm406_vm0, %v2845_v34, %v1398_v54 }
  0xe1   : > { %v1513_v31 = vcombine.low %v1505_v42, %v1512_v21  ;;  %v1514_v5 = vcombine.low %v1439_v17, %v1442_v55 }
  0xe3   : > { %v1404_v53 = vpop.permute.xlu1 %1403  ;;  %2111 = vmatmul.mubr.msk.bf16.vlgmr.msra.gmra.mrb[0].mxu0 %vm812_vm1, %v1513_v31  ;;  %2121 = vmatmul.mubr.msk.bf16.vlgmr.msra.gmra.mrb[0].mxu1 %vm812_vm1, %v1513_v31  ;;  %v1402_v32 = vpop.permute.xlu0 %1401  ;;  %v1522_v38 = vrot.slane %v1514_v5, %v2619_v16 }
  0xe4   : > { %v1448_v11 = vsel %vm406_vm0, %v2846_v10, %v1404_v53  ;;  %v1445_v28 = vsel %vm406_vm0, %v2847_v56, %v1402_v32 }
  0xe5   : > { %v1515_v30 = vcombine.low %v1445_v28, %v1448_v11 }
  0xe7   : > { %v1529_v45 = vrot.slane %v1515_v30, %v2619_v16  ;;  %v1408_v47 = vpop.permute.xlu1 %1407  ;;  %v1406_v20 = vpop.permute.xlu0 %1405 }
  0xe8   : > { %v1454_v48 = vsel %vm406_vm0, %v2848_v40, %v1408_v47  ;;  %v1451_v44 = vsel %vm406_vm0, %v2591_v33, %v1406_v20 }
  0xe9   : > { %v1530_v49 = vcombine.low %v1522_v38, %v1529_v45  ;;  %v1531_v19 = vcombine.low %v1451_v44, %v1454_v48 }
  0xeb   : > { %v1412_v24 = vpop.permute.xlu1 %1411  ;;  %2114 = vmatprep.mubr.msk.bf16.mxu0 %vm812_vm1, %v1530_v49  ;;  %2124 = vmatprep.mubr.msk.bf16.mxu1 %vm812_vm1, %v1530_v49  ;;  %v1410_v46 = vpop.permute.xlu0 %1409  ;;  %v1539_v4 = vrot.slane %v1531_v19, %v2619_v16 }
  0xec   : > { %v1460_v57 = vsel %vm406_vm0, %v2600_v62, %v1412_v24  ;;  %v1457_v3 = vsel %vm406_vm0, %v2603_v35, %v1410_v46 }
  0xed   : > { %v1532_v50 = vcombine.low %v1457_v3, %v1460_v57 }
  0xef   : > { %v1546_v58 = vrot.slane %v1532_v50, %v2619_v16  ;;  %v2027_v16 = vld [vmem:[%s2817_s2] ss:$0 sm:$0xff] }
  0xf1   : > { %v1547_v33 = vcombine.low %v1539_v4, %v1546_v58 }
  0xf3   : > { %2115 = vmatmul.mubr.msk.bf16.gmra.mrb[4].mxu0 %vm812_vm1, %v1547_v33  ;;  %2125 = vmatmul.mubr.msk.bf16.gmra.mrb[4].mxu1 %vm812_vm1, %v1547_v33 }
 0x1b6   : > { %v2112_v0 = vpop.f32.mrb[0].mxu0  ;;  %v2122_v59 = vpop.f32.mrb[0].mxu1 }
 0x1b7   : > { %v1723_v1 = vmax.f32 %v2112_v0, %v2122_v59  ;;  %v1600_v61 = vpop.f32.mrb[1].mxu0  ;;  %v1682_v2 = vpop.f32.mrb[1].mxu1 }
 0x1b8   : > { %v1721_v62 = vmax.f32 %v1600_v61, %v1682_v2  ;;  %v2113_v23 = vpop.f32.mrb[2].mxu0  ;;  %v2123_v25 = vpop.f32.mrb[2].mxu1 }
 0x1b9   : > { %v1755_v35 = vrot.slane %v1723_v1, 4  ;;  %v1724_v43 = vmax.f32 %v2113_v23, %v2123_v25  ;;  %v1603_v6 = vpop.f32.mrb[3].mxu0  ;;  %v1685_v12 = vpop.f32.mrb[3].mxu1 }
 0x1ba   : > { %v1731_v41 = vrot.slane %v1721_v62, 4  ;;  %v1722_v13 = vmax.f32 %v1603_v6, %v1685_v12 }
 0x1bb   : > { %v1757_v51 = vmax.f32 %v1723_v1, %v1755_v35  ;;  %v1764_v22 = vrot.slane %v1724_v43, 4 }
 0x1bc   : > { %v1733_v60 = vmax.f32 %v1721_v62, %v1731_v41  ;;  %v1746_v39 = vrot.slane %v1722_v13, 4 }
 0x1bd   : > { %v1758_v26 = vadd.f32 %v2027_v16, %v1757_v51  ;;  %v1766_v7 = vmax.f32 %v1724_v43, %v1764_v22 }
 0x1be   : > { %v1740_v27 = vadd.f32 %v2027_v16, %v1733_v60  ;;  %v1748_v8 = vmax.f32 %v1722_v13, %v1746_v39 }
 0x1bf   : > { %v1759_v52 = vmax.f32 %v1758_v26, 0.0  ;;  %v1767_v14 = vadd.f32 %v2027_v16, %v1766_v7 }
 0x1c0   : > { %v1741_v18 = vmax.f32 %v1740_v27, 0.0  ;;  %v1749_v15 = vadd.f32 %v2027_v16, %v1748_v8 }
 0x1c1   : > { %v1760_v9 = vpack.c.bf16 %v1759_v52, %v1759_v52  ;;  %v1768_v63 = vmax.f32 %v1767_v14, 0.0 }
 0x1c2   : > { %v1742_v36 = vpack.c.bf16 %v1741_v18, %v1741_v18  ;;  %v1750_v42 = vmax.f32 %v1749_v15, 0.0 }
 0x1c3   : > { %2029 = vst.msk [vmem:[%s2788_s11 + $0x4] sm:$0x3] %vm1743_vm2, %v1760_v9  ;;  %v1769_v21 = vpack.c.bf16 %v1768_v63, %v1768_v63 }
 0x1c4   : > { %1744 = vst.msk [vmem:[%s2788_s11] sm:$0x3] %vm1743_vm2, %v1742_v36  ;;  %v1751_v37 = vpack.c.bf16 %v1750_v42, %v1750_v42 }
 0x1c5   : > { %2030 = vst.msk [vmem:[%s2788_s11 + $0x6] sm:$0x3] %vm1743_vm2, %v1769_v21 }
 0x1c6   : > { %2028 = vst.msk [vmem:[%s2788_s11 + $0x2] sm:$0x3] %vm1743_vm2, %v1751_v37  ;;  %v2116_v54 = vpop.f32.mrb[4].mxu0  ;;  %v2126_v29 = vpop.f32.mrb[4].mxu1 }
 0x1c7   : > { %v1727_v55 = vmax.f32 %v2116_v54, %v2126_v29  ;;  %v1616_v34 = vpop.f32.mrb[5].mxu0  ;;  %v1698_v17 = vpop.f32.mrb[5].mxu1 }
 0x1c8   : > { %v1725_v31 = vmax.f32 %v1616_v34, %v1698_v17  ;;  %v2117_v5 = vpop.f32.mrb[6].mxu0  ;;  %v2127_v53 = vpop.f32.mrb[6].mxu1 }
 0x1c9   : > { %v1791_v32 = vrot.slane %v1727_v55, 4  ;;  %v1728_v10 = vmax.f32 %v2117_v5, %v2127_v53  ;;  %v1619_v11 = vpop.f32.mrb[7].mxu0  ;;  %v1701_v56 = vpop.f32.mrb[7].mxu1 }
 0x1ca   : > { %v1773_v28 = vrot.slane %v1725_v31, 4  ;;  %v1726_v30 = vmax.f32 %v1619_v11, %v1701_v56 }
 0x1cb   : > { %v1793_v38 = vmax.f32 %v1727_v55, %v1791_v32  ;;  %v1800_v45 = vrot.slane %v1728_v10, 4 }
 0x1cc   : > { %v1775_v47 = vmax.f32 %v1725_v31, %v1773_v28  ;;  %v1782_v20 = vrot.slane %v1726_v30, 4 }
 0x1cd   : > { %v1794_v40 = vadd.f32 %v2027_v16, %v1793_v38  ;;  %v1802_v48 = vmax.f32 %v1728_v10, %v1800_v45 }
 0x1ce   : > { %v1776_v44 = vadd.f32 %v2027_v16, %v1775_v47  ;;  %v1784_v49 = vmax.f32 %v1726_v30, %v1782_v20 }
 0x1cf   : > { %v1795_v19 = vmax.f32 %v1794_v40, 0.0  ;;  %v1803_v24 = vadd.f32 %v2027_v16, %v1802_v48 }
 0x1d0   : > { %v1777_v46 = vmax.f32 %v1776_v44, 0.0  ;;  %v1785_v57 = vadd.f32 %v2027_v16, %v1784_v49 }
 0x1d1   : > { %v1796_v3 = vpack.c.bf16 %v1795_v19, %v1795_v19  ;;  %v1804_v50 = vmax.f32 %v1803_v24, 0.0 }
 0x1d2   : > { %v1778_v4 = vpack.c.bf16 %v1777_v46, %v1777_v46  ;;  %v1786_v58 = vmax.f32 %v1785_v57, 0.0 }
 0x1d3   : > { %2033 = vst.msk [vmem:[%s2788_s11 + $0xc] sm:$0x3] %vm1743_vm2, %v1796_v3  ;;  %v1805_v33 = vpack.c.bf16 %v1804_v50, %v1804_v50 }
 0x1d4   : > { %2031 = vst.msk [vmem:[%s2788_s11 + $0x8] sm:$0x3] %vm1743_vm2, %v1778_v4  ;;  %v1787_v0 = vpack.c.bf16 %v1786_v58, %v1786_v58 }
 0x1d5   : > { %2034 = vst.msk [vmem:[%s2788_s11 + $0xe] sm:$0x3] %vm1743_vm2, %v1805_v33 }
 0x1d6   : > { %2032 = vst.msk [vmem:[%s2788_s11 + $0xa] sm:$0x3] %vm1743_vm2, %v1787_v0 }
 0x1d7 PF: > { %s13_s14 = sadd.s32 1, %s2263_s14   ;;  %s2849_s12 = smov %s2259_s13 }
 0x1d8   : > { %p10_p5 = scmp.ge.s32.totalorder %s13_s14, 4   ;;  %s2850_s13 = smov %s2852_s15 }
 0x1da   :  { %12 = sbr.rel (!%p10_p5) target bundleno = 2 (0x2), region = 77 }

// kernel: vgg_feature_extractor.9
= control target key start
LH: loop header
LB: loop body
LE: loop exit
PB: predicated region body
PF: predicated region fallthrough
CT: control target
= control target key end

     0   :  { %s4812_s12 = smov 0   ;;  %s4814_s13 = smov 0   ;;  %s5720_s0 = inlined_call_operand.vmem [shape: bf16[2,34,9,8], index: 0, kind: input, shape index: {}]   ;;  %s5721_s1 = inlined_call_operand.vmem [shape: bf16[3,2,16,4], index: 1, kind: input, shape index: {}]   ;;  %s5722_s2 = inlined_call_operand.vmem [shape: f32[1,4], index: 2, kind: input, shape index: {}]   ;;  %s5723_s3 = inlined_call_operand.vmem [shape: bf16[2,16,8,4], index: 3, kind: output, shape index: {}]  }
   0x1   :  { %s4816_s14 = smov 0  }
   0x2 LB: > { %s25_s15 = sadd.s32 1, %s4785_s13  ;;  %p3730_p0 = scmp.ge.s32.totalorder %s4789_s14, 1  ;;  %s4789_s14 = sphi %s4816_s14, %s13_s14   ;;  %s4785_s13 = sphi %s4814_s13, %s5725_s13   ;;  %s4781_s12 = sphi %s4812_s12, %s5724_s12  }
   0x3   : > { %p27_p1 = scmp.ge.s32.totalorder %s25_s15, 2  ;;  %p151_p2 = scmp.lt.s32.totalorder %s4789_s14, 3 }
   0x5   : > { %s5727_s15 = smov (%p27_p1, %s25_s15), 0  ;;  %p152_p3 = pnand %p3730_p0, %p151_p2 }
   0x6   : > { %p179_p4 = scmp.lt.s32.totalorder (!%p152_p3), %s4781_s12, 1  ;;  %v4657_v0 = vld [vmem:[%s5721_s1 + $0x10] sm:$0xff] (!%p152_p3)   ;;  %v4658_v1 = vld [vmem:[%s5721_s1 + $0x18] sm:$0xff] (!%p152_p3)   ;;  %v4661_v29 = vld [vmem:[%s5721_s1] sm:$0xff] (!%p152_p3)   ;;  %s4791_s28 = smov (!%p152_p3), 8   ;;  %vm711_vm0 = vcmask (!%p152_p3), 64512  }
   0x7   : > { %155 = sbr.rel (%p152_p3) target bundleno = 561 (0x231), region = 32  ;;  %4239 = vmatprep.subr.bf16.mxu0 (!%p152_p3), %v4657_v0  ;;  %4307 = vmatprep.subr.bf16.mxu1 (!%p152_p3), %v4658_v1  ;;  %v4662_v39 = vld [vmem:[%s5721_s1 + $0x8] sm:$0xff] (!%p152_p3)   ;;  %vm1514_vm1 = vcmask (!%p152_p3), 130048   ;;  %vm3543_vm2 = vcmask (!%p152_p3), 27648  }
   0x8   : > { %4240 = vmatpush3.bf16.msra.mxu0 (!%p152_p3), %v4657_v0  ;;  %4308 = vmatpush3.bf16.msra.mxu1 (!%p152_p3), %v4658_v1 }
   0x9   : > { %4273 = vmatprep.subr.bf16.mxu0 (!%p152_p3), %v4661_v29  ;;  %4341 = vmatprep.subr.bf16.mxu1 (!%p152_p3), %v4662_v39 }
   0xe   : > { %s5729_s12 = smov (!%p179_p4, %s4781_s12), 1 }
   0xf   : > { %s4571_s16 = smul.u32 272, %s5729_s12 }
  0x11   : > { %s4842_s23 = scalar_lea.vmem %s5720_s0, %s4571_s16  ;;  %s4136_s16 = sshll.u32 %s5729_s12, 6 }
  0x12   : > { %v3772_v2 = vld [vmem:[%s4842_s23 + $0x18] sm:$0xf]  ;;  %v3773_v3 = vld [vmem:[%s4842_s23 + $0x1c] sm:$0x1]  ;;  %v3768_v4 = vld [vmem:[%s4842_s23 + $0x8] sm:$0xf]  ;;  %s5663_s19 = scalar_lea.vmem %s5723_s3, %s4136_s16 }
  0x13   : > { %v3834_v5 = vcombine.low %v3772_v2, %v3773_v3  ;;  %v3769_v6 = vld [vmem:[%s4842_s23 + $0xc] sm:$0x1]  ;;  %v3774_v7 = vld [vmem:[%s4842_s23 + $0x20] sm:$0xf]  ;;  %v3775_v8 = vld [vmem:[%s4842_s23 + $0x24] sm:$0x1] }
  0x14   : > { %v3832_v9 = vcombine.low %v3768_v4, %v3769_v6  ;;  %v3835_v10 = vcombine.low %v3774_v7, %v3775_v8  ;;  %v3770_v11 = vld [vmem:[%s4842_s23 + $0x10] sm:$0xf]  ;;  %v3771_v12 = vld [vmem:[%s4842_s23 + $0x14] sm:$0x1]  ;;  %v3776_v18 = vld [vmem:[%s4842_s23 + $0x28] sm:$0xf] }
  0x15   : > { %v3778_v13 = vld [vmem:[%s4842_s23 + $0x30] sm:$0xf]  ;;  %v1056_v14 = vshrl.u32 %v3834_v5, 16  ;;  %v1058_v15 = vshll.u32 %v3834_v5, 16  ;;  %v3833_v16 = vcombine.low %v3770_v11, %v3771_v12  ;;  %v3779_v17 = vld [vmem:[%s4842_s23 + $0x34] sm:$0x1] }
  0x16   : > { %v1042_v19 = vshrl.u32 %v3832_v9, 16  ;;  %v1044_v20 = vshll.u32 %v3832_v9, 16  ;;  %v1063_v21 = vshrl.u32 %v3835_v10, 16  ;;  %v1065_v22 = vshll.u32 %v3835_v10, 16  ;;  %v3777_v23 = vld [vmem:[%s4842_s23 + $0x2c] sm:$0x1] }
  0x17   : > { %v1060_v24 = vrot.slane %v1058_v15, 1  ;;  %v1049_v25 = vshrl.u32 %v3833_v16, 16  ;;  %v1051_v26 = vshll.u32 %v3833_v16, 16  ;;  %v3837_v27 = vcombine.low %v3778_v13, %v3779_v17  ;;  %v3782_v28 = vld [vmem:[%s4842_s23 + $0x40] sm:$0xf] }
  0x18   : > { %v1046_v30 = vrot.slane %v1044_v20, 1  ;;  %v1067_v31 = vrot.slane %v1065_v22, 1  ;;  %v3836_v32 = vcombine.low %v3776_v18, %v3777_v23  ;;  %v3783_v33 = vld [vmem:[%s4842_s23 + $0x44] sm:$0x1]  ;;  %v3780_v34 = vld [vmem:[%s4842_s23 + $0x38] sm:$0xf] }
  0x19   : > { %v1061_v35 = vor.u32 %v1060_v24, %v1056_v14  ;;  %v1053_v36 = vrot.slane %v1051_v26, 1  ;;  %v1079_v37 = vshll.u32 %v3837_v27, 16  ;;  %v3781_v38 = vld [vmem:[%s4842_s23 + $0x3c] sm:$0x1]  ;;  %v1077_v42 = vshrl.u32 %v3837_v27, 16 }
  0x1a   : > { %v1047_v40 = vor.u32 %v1046_v30, %v1042_v19  ;;  %v1068_v41 = vor.u32 %v1067_v31, %v1063_v21  ;;  %v1072_v43 = vshll.u32 %v3836_v32, 16  ;;  %v3786_v44 = vld [vmem:[%s4842_s23 + $0x50] sm:$0xf]  ;;  %v3787_v45 = vld [vmem:[%s4842_s23 + $0x54] sm:$0x1]  ;;  %v1070_v47 = vshrl.u32 %v3836_v32, 16 }
  0x1b   : > { %1269 = vrot.lane.b32.xlu1 %v1061_v35, %s4791_s28  ;;  %v1081_v46 = vrot.slane %v1079_v37, 1  ;;  %v3839_v48 = vcombine.low %v3782_v28, %v3783_v33  ;;  %v3838_v49 = vcombine.low %v3780_v34, %v3781_v38  ;;  %v3784_v50 = vld [vmem:[%s4842_s23 + $0x48] sm:$0xf]  ;;  %v3785_v51 = vld [vmem:[%s4842_s23 + $0x4c] sm:$0x1]  ;;  %v1054_v52 = vor.u32 %v1053_v36, %v1049_v25 }
  0x1c   : > { %1265 = vrot.lane.b32.xlu0 %v1047_v40, %s4791_s28  ;;  %v1074_v53 = vrot.slane %v1072_v43, 1  ;;  %v3841_v54 = vcombine.low %v3786_v44, %v3787_v45  ;;  %v3840_v55 = vcombine.low %v3784_v50, %v3785_v51  ;;  %v3790_v56 = vld [vmem:[%s4842_s23 + $0x60] sm:$0xf]  ;;  %v3791_v57 = vld [vmem:[%s4842_s23 + $0x64] sm:$0x1] }
  0x1d   : > { %v1093_v58 = vshll.u32 %v3839_v48, 16  ;;  %v3788_v59 = vld [vmem:[%s4842_s23 + $0x58] sm:$0xf]  ;;  %v1082_v60 = vor.u32 %v1081_v46, %v1077_v42  ;;  %v1091_v61 = vshrl.u32 %v3839_v48, 16  ;;  %v1086_v62 = vshll.u32 %v3838_v49, 16 }
  0x1e   : > { %v3789_v63 = vld [vmem:[%s4842_s23 + $0x5c] sm:$0x1]  ;;  %v1084_v1 = vshrl.u32 %v3838_v49, 16  ;;  %v1107_v2 = vshll.u32 %v3841_v54, 16  ;;  %v3843_v3 = vcombine.low %v3790_v56, %v3791_v57  ;;  %v1075_v4 = vor.u32 %v1074_v53, %v1070_v47  ;;  %v3794_v8 = vld [vmem:[%s4842_s23 + $0x70] sm:$0xf] }
  0x1f   : > { %1271 = vrot.lane.b32.xlu1 %v1068_v41, %s4791_s28  ;;  %v1095_v0 = vrot.slane %v1093_v58, 1  ;;  %v1088_v5 = vrot.slane %v1086_v62, 1  ;;  %v1100_v6 = vshll.u32 %v3840_v55, 16  ;;  %v3842_v7 = vcombine.low %v3788_v59, %v3789_v63  ;;  %v3795_v9 = vld [vmem:[%s4842_s23 + $0x74] sm:$0x1] }
  0x20   : > { %1267 = vrot.lane.b32.xlu0 %v1054_v52, %s4791_s28  ;;  %v3792_v10 = vld [vmem:[%s4842_s23 + $0x68] sm:$0xf]  ;;  %v3793_v11 = vld [vmem:[%s4842_s23 + $0x6c] sm:$0x1]  ;;  %v1105_v12 = vshrl.u32 %v3841_v54, 16  ;;  %v1121_v13 = vshll.u32 %v3843_v3, 16  ;;  %v3845_v17 = vcombine.low %v3794_v8, %v3795_v9 }
  0x21   : > { %v1096_v14 = vor.u32 %v1095_v0, %v1091_v61  ;;  %v1109_v15 = vrot.slane %v1107_v2, 1  ;;  %v1098_v16 = vshrl.u32 %v3840_v55, 16  ;;  %v1089_v18 = vor.u32 %v1088_v5, %v1084_v1  ;;  %v3798_v22 = vld [vmem:[%s4842_s23 + $0x80] sm:$0xf]  ;;  %v3799_v23 = vld [vmem:[%s4842_s23 + $0x84] sm:$0x1] }
  0x22   : > { %v1102_v19 = vrot.slane %v1100_v6, 1  ;;  %v1114_v20 = vshll.u32 %v3842_v7, 16  ;;  %v3844_v21 = vcombine.low %v3792_v10, %v3793_v11  ;;  %v3796_v24 = vld [vmem:[%s4842_s23 + $0x78] sm:$0xf]  ;;  %v3797_v25 = vld [vmem:[%s4842_s23 + $0x7c] sm:$0x1]  ;;  %v3847_v31 = vcombine.low %v3798_v22, %v3799_v23 }
  0x23   : > { %1275 = vrot.lane.b32.xlu1 %v1082_v60, %s4791_s28  ;;  %v1119_v26 = vshrl.u32 %v3843_v3, 16  ;;  %v1123_v27 = vrot.slane %v1121_v13, 1  ;;  %v1110_v28 = vor.u32 %v1109_v15, %v1105_v12  ;;  %v1112_v29 = vshrl.u32 %v3842_v7, 16  ;;  %v3802_v32 = vld [vmem:[%s4842_s23 + $0x90] sm:$0xf] }
  0x24   : > { %1273 = vrot.lane.b32.xlu0 %v1075_v4, %s4791_s28  ;;  %v1135_v30 = vshll.u32 %v3845_v17, 16  ;;  %v3803_v33 = vld [vmem:[%s4842_s23 + $0x94] sm:$0x1]  ;;  %v1103_v34 = vor.u32 %v1102_v19, %v1098_v16  ;;  %v1116_v35 = vrot.slane %v1114_v20, 1  ;;  %v1128_v36 = vshll.u32 %v3844_v21, 16 }
  0x25   : > { %v3846_v37 = vcombine.low %v3796_v24, %v3797_v25  ;;  %v3800_v38 = vld [vmem:[%s4842_s23 + $0x88] sm:$0xf]  ;;  %v3801_v39 = vld [vmem:[%s4842_s23 + $0x8c] sm:$0x1]  ;;  %v1124_v40 = vor.u32 %v1123_v27, %v1119_v26  ;;  %v3849_v41 = vcombine.low %v3802_v32, %v3803_v33  ;;  %v1133_v42 = vshrl.u32 %v3845_v17, 16 }
  0x26   : > { %v1137_v43 = vrot.slane %v1135_v30, 1  ;;  %v1126_v44 = vshrl.u32 %v3844_v21, 16  ;;  %v1149_v45 = vshll.u32 %v3847_v31, 16  ;;  %v1117_v46 = vor.u32 %v1116_v35, %v1112_v29  ;;  %v3806_v50 = vld [vmem:[%s4842_s23 + $0xa0] sm:$0xf] }
  0x27   : > { %1279 = vrot.lane.b32.xlu1 %v1096_v14, %s4791_s28  ;;  %v1130_v47 = vrot.slane %v1128_v36, 1  ;;  %v1142_v48 = vshll.u32 %v3846_v37, 16  ;;  %v3848_v49 = vcombine.low %v3800_v38, %v3801_v39  ;;  %v3807_v51 = vld [vmem:[%s4842_s23 + $0xa4] sm:$0x1]  ;;  %v3804_v52 = vld [vmem:[%s4842_s23 + $0x98] sm:$0xf] }
  0x28   : > { %1277 = vrot.lane.b32.xlu0 %v1089_v18, %s4791_s28  ;;  %v3805_v53 = vld [vmem:[%s4842_s23 + $0x9c] sm:$0x1]  ;;  %v1147_v54 = vshrl.u32 %v3847_v31, 16  ;;  %v1163_v55 = vshll.u32 %v3849_v41, 16  ;;  %v1138_v56 = vor.u32 %v1137_v43, %v1133_v42  ;;  %v1151_v57 = vrot.slane %v1149_v45, 1 }
  0x29   : > { %v1140_v58 = vshrl.u32 %v3846_v37, 16  ;;  %v3851_v59 = vcombine.low %v3806_v50, %v3807_v51  ;;  %v1131_v60 = vor.u32 %v1130_v47, %v1126_v44  ;;  %v1144_v61 = vrot.slane %v1142_v48, 1  ;;  %v3810_v0 = vld [vmem:[%s4842_s23 + $0xb0] sm:$0xf]  ;;  %v3811_v1 = vld [vmem:[%s4842_s23 + $0xb4] sm:$0x1] }
  0x2a   : > { %v1156_v62 = vshll.u32 %v3848_v49, 16  ;;  %v3850_v63 = vcombine.low %v3804_v52, %v3805_v53  ;;  %v3808_v2 = vld [vmem:[%s4842_s23 + $0xa8] sm:$0xf]  ;;  %v3809_v3 = vld [vmem:[%s4842_s23 + $0xac] sm:$0x1]  ;;  %v1161_v4 = vshrl.u32 %v3849_v41, 16  ;;  %v1152_v6 = vor.u32 %v1151_v57, %v1147_v54 }
  0x2b   : > { %1283 = vrot.lane.b32.xlu1 %v1110_v28, %s4791_s28  ;;  %v1165_v5 = vrot.slane %v1163_v55, 1  ;;  %v1154_v7 = vshrl.u32 %v3848_v49, 16  ;;  %v1177_v8 = vshll.u32 %v3851_v59, 16  ;;  %v3853_v9 = vcombine.low %v3810_v0, %v3811_v1  ;;  %v3814_v10 = vld [vmem:[%s4842_s23 + $0xc0] sm:$0xf] }
  0x2c   : > { %1281 = vrot.lane.b32.xlu0 %v1103_v34, %s4791_s28  ;;  %v3815_v11 = vld [vmem:[%s4842_s23 + $0xc4] sm:$0x1]  ;;  %v1145_v12 = vor.u32 %v1144_v61, %v1140_v58  ;;  %v1158_v13 = vrot.slane %v1156_v62, 1  ;;  %v1170_v14 = vshll.u32 %v3850_v63, 16  ;;  %v3852_v15 = vcombine.low %v3808_v2, %v3809_v3  ;;  %v3812_v16 = vld [vmem:[%s4842_s23 + $0xb8] sm:$0xf] }
  0x2d   : > { %v3813_v17 = vld [vmem:[%s4842_s23 + $0xbc] sm:$0x1]  ;;  %v1166_v18 = vor.u32 %v1165_v5, %v1161_v4  ;;  %v3855_v19 = vcombine.low %v3814_v10, %v3815_v11  ;;  %v1175_v20 = vshrl.u32 %v3851_v59, 16  ;;  %v1179_v21 = vrot.slane %v1177_v8, 1  ;;  %v3818_v28 = vld [vmem:[%s4842_s23 + $0xd0] sm:$0xf] }
  0x2e   : > { %v1168_v22 = vshrl.u32 %v3850_v63, 16  ;;  %v1191_v23 = vshll.u32 %v3853_v9, 16  ;;  %v1159_v24 = vor.u32 %v1158_v13, %v1154_v7  ;;  %v1172_v25 = vrot.slane %v1170_v14, 1  ;;  %v3819_v29 = vld [vmem:[%s4842_s23 + $0xd4] sm:$0x1] }
  0x2f   : > { %1287 = vrot.lane.b32.xlu1 %v1124_v40, %s4791_s28  ;;  %v1184_v26 = vshll.u32 %v3852_v15, 16  ;;  %v3854_v27 = vcombine.low %v3812_v16, %v3813_v17  ;;  %v3816_v30 = vld [vmem:[%s4842_s23 + $0xc8] sm:$0xf]  ;;  %v3817_v31 = vld [vmem:[%s4842_s23 + $0xcc] sm:$0x1]  ;;  %v1189_v32 = vshrl.u32 %v3853_v9, 16  ;;  %v1180_v34 = vor.u32 %v1179_v21, %v1175_v20 }
  0x30   : > { %1285 = vrot.lane.b32.xlu0 %v1117_v46, %s4791_s28  ;;  %v1205_v33 = vshll.u32 %v3855_v19, 16  ;;  %v1193_v35 = vrot.slane %v1191_v23, 1  ;;  %v1182_v36 = vshrl.u32 %v3852_v15, 16  ;;  %v3857_v37 = vcombine.low %v3818_v28, %v3819_v29  ;;  %v3822_v42 = vld [vmem:[%s4842_s23 + $0xe0] sm:$0xf] }
  0x31   : > { %v1173_v38 = vor.u32 %v1172_v25, %v1168_v22  ;;  %v1186_v39 = vrot.slane %v1184_v26, 1  ;;  %v1198_v40 = vshll.u32 %v3854_v27, 16  ;;  %v3856_v41 = vcombine.low %v3816_v30, %v3817_v31  ;;  %v3823_v43 = vld [vmem:[%s4842_s23 + $0xe4] sm:$0x1]  ;;  %v3820_v44 = vld [vmem:[%s4842_s23 + $0xd8] sm:$0xf] }
  0x32   : > { %v3821_v45 = vld [vmem:[%s4842_s23 + $0xdc] sm:$0x1]  ;;  %v1203_v46 = vshrl.u32 %v3855_v19, 16  ;;  %v1207_v47 = vrot.slane %v1205_v33, 1  ;;  %v1194_v48 = vor.u32 %v1193_v35, %v1189_v32  ;;  %v1196_v49 = vshrl.u32 %v3854_v27, 16 }
  0x33   : > { %1291 = vrot.lane.b32.xlu1 %v1138_v56, %s4791_s28  ;;  %v1219_v50 = vshll.u32 %v3857_v37, 16  ;;  %v3859_v51 = vcombine.low %v3822_v42, %v3823_v43  ;;  %v3826_v52 = vld [vmem:[%s4842_s23 + $0xf0] sm:$0xf]  ;;  %v3827_v53 = vld [vmem:[%s4842_s23 + $0xf4] sm:$0x1]  ;;  %v1187_v54 = vor.u32 %v1186_v39, %v1182_v36  ;;  %v1200_v55 = vrot.slane %v1198_v40, 1 }
  0x34   : > { %1289 = vrot.lane.b32.xlu0 %v1131_v60, %s4791_s28  ;;  %v1212_v56 = vshll.u32 %v3856_v41, 16  ;;  %v3858_v57 = vcombine.low %v3820_v44, %v3821_v45  ;;  %v3824_v58 = vld [vmem:[%s4842_s23 + $0xe8] sm:$0xf]  ;;  %v3825_v59 = vld [vmem:[%s4842_s23 + $0xec] sm:$0x1]  ;;  %v1208_v60 = vor.u32 %v1207_v47, %v1203_v46  ;;  %v3861_v61 = vcombine.low %v3826_v52, %v3827_v53 }
  0x35   : > { %v1217_v62 = vshrl.u32 %v3857_v37, 16  ;;  %v1221_v63 = vrot.slane %v1219_v50, 1  ;;  %v1210_v0 = vshrl.u32 %v3856_v41, 16  ;;  %v1233_v1 = vshll.u32 %v3859_v51, 16  ;;  %v3831_v7 = vld [vmem:[%s4842_s23 + $0x104] sm:$0x1] }
  0x36   : > { %v1201_v2 = vor.u32 %v1200_v55, %v1196_v49  ;;  %v1214_v3 = vrot.slane %v1212_v56, 1  ;;  %v1226_v4 = vshll.u32 %v3858_v57, 16  ;;  %v3860_v5 = vcombine.low %v3824_v58, %v3825_v59  ;;  %v3828_v8 = vld [vmem:[%s4842_s23 + $0xf8] sm:$0xf]  ;;  %v3829_v9 = vld [vmem:[%s4842_s23 + $0xfc] sm:$0x1] }
  0x37   : > { %1295 = vrot.lane.b32.xlu1 %v1152_v6, %s4791_s28  ;;  %v3830_v6 = vld [vmem:[%s4842_s23 + $0x100] sm:$0xf]  ;;  %v1231_v10 = vshrl.u32 %v3859_v51, 16  ;;  %v1247_v11 = vshll.u32 %v3861_v61, 16  ;;  %v1235_v13 = vrot.slane %v1233_v1, 1  ;;  %v1224_v14 = vshrl.u32 %v3858_v57, 16 }
  0x38   : > { %1293 = vrot.lane.b32.xlu0 %v1145_v12, %s4791_s28  ;;  %v1222_v12 = vor.u32 %v1221_v63, %v1217_v62  ;;  %v3863_v15 = vcombine.low %v3830_v6, %v3831_v7  ;;  %v1215_v16 = vor.u32 %v1214_v3, %v1210_v0  ;;  %v1228_v17 = vrot.slane %v1226_v4, 1  ;;  %v201_v20 = vld [vmem:[%s4842_s23 + $0x8] sm:$0xf]  ;;  %v202_v21 = vld [vmem:[%s4842_s23 + $0xc] sm:$0x1] }
  0x39   : > { %v3862_v19 = vcombine.low %v3828_v8, %v3829_v9  ;;  %v199_v22 = vld [vmem:[%s4842_s23] sm:$0xf]  ;;  %v200_v23 = vld [vmem:[%s4842_s23 + $0x4] sm:$0x1]  ;;  %v1249_v25 = vrot.slane %v1247_v11, 1  ;;  %v1236_v26 = vor.u32 %v1235_v13, %v1231_v10  ;;  %v1238_v27 = vshrl.u32 %v3860_v5, 16 }
  0x3a   : > { %v1261_v28 = vshll.u32 %v3863_v15, 16  ;;  %v3735_v29 = vcombine.low %v201_v20, %v202_v21  ;;  %v205_v30 = vld [vmem:[%s4842_s23 + $0x18] sm:$0xf]  ;;  %v206_v31 = vld [vmem:[%s4842_s23 + $0x1c] sm:$0x1]  ;;  %v1229_v32 = vor.u32 %v1228_v17, %v1224_v14  ;;  %v3734_v35 = vcombine.low %v199_v22, %v200_v23 }
  0x3b   : > { %1299 = vrot.lane.b32.xlu1 %v1166_v18, %s4791_s28  ;;  %v1240_v18 = vshll.u32 %v3860_v5, 16  ;;  %v203_v36 = vld [vmem:[%s4842_s23 + $0x10] sm:$0xf]  ;;  %v204_v37 = vld [vmem:[%s4842_s23 + $0x14] sm:$0x1]  ;;  %v3737_v39 = vcombine.low %v205_v30, %v206_v31  ;;  %v1259_v40 = vshrl.u32 %v3863_v15, 16 }
  0x3c   : > { %1297 = vrot.lane.b32.xlu0 %v1159_v24, %s4791_s28  ;;  %v1245_v24 = vshrl.u32 %v3861_v61, 16  ;;  %v1263_v41 = vrot.slane %v1261_v28, 1  ;;  %v1252_v42 = vshrl.u32 %v3862_v19, 16  ;;  %v433_v43 = vshll.u32 %v3735_v29, 16  ;;  %v210_v49 = vld [vmem:[%s4842_s23 + $0x2c] sm:$0x1] }
  0x3d   : > { %v1242_v33 = vrot.slane %v1240_v18, 1  ;;  %v426_v46 = vshll.u32 %v3734_v35, 16  ;;  %v3736_v47 = vcombine.low %v203_v36, %v204_v37  ;;  %v207_v50 = vld [vmem:[%s4842_s23 + $0x20] sm:$0xf]  ;;  %v208_v51 = vld [vmem:[%s4842_s23 + $0x24] sm:$0x1] }
  0x3e   : > { %v431_v52 = vshrl.u32 %v3735_v29, 16  ;;  %v447_v53 = vshll.u32 %v3737_v39, 16  ;;  %v435_v55 = vrot.slane %v433_v43, 1  ;;  %v424_v56 = vshrl.u32 %v3734_v35, 16  ;;  %v213_v62 = vld [vmem:[%s4842_s23 + $0x38] sm:$0xf] }
  0x3f   : > { %1303 = vrot.lane.b32.xlu1 %v1180_v34, %s4791_s28  ;;  %v1254_v34 = vshll.u32 %v3862_v19, 16  ;;  %v1243_v44 = vor.u32 %v1242_v33, %v1238_v27  ;;  %v428_v59 = vrot.slane %v426_v46, 1  ;;  %v3738_v61 = vcombine.low %v207_v50, %v208_v51  ;;  %v214_v63 = vld [vmem:[%s4842_s23 + $0x3c] sm:$0x1]  ;;  %v211_v0 = vld [vmem:[%s4842_s23 + $0x30] sm:$0xf] }
  0x40   : > { %1301 = vrot.lane.b32.xlu0 %v1173_v38, %s4791_s28  ;;  %v1250_v38 = vor.u32 %v1249_v25, %v1245_v24  ;;  %v212_v1 = vld [vmem:[%s4842_s23 + $0x34] sm:$0x1]  ;;  %v449_v3 = vrot.slane %v447_v53, 1  ;;  %v436_v4 = vor.u32 %v435_v55, %v431_v52  ;;  %v438_v5 = vshrl.u32 %v3736_v47, 16  ;;  %v217_v8 = vld [vmem:[%s4842_s23 + $0x48] sm:$0xf] }
  0x41   : > { %v1256_v45 = vrot.slane %v1254_v34, 1  ;;  %v3741_v7 = vcombine.low %v213_v62, %v214_v63  ;;  %v218_v9 = vld [vmem:[%s4842_s23 + $0x4c] sm:$0x1]  ;;  %v429_v10 = vor.u32 %v428_v59, %v424_v56  ;;  %v3740_v13 = vcombine.low %v211_v0, %v212_v1  ;;  %v215_v14 = vld [vmem:[%s4842_s23 + $0x40] sm:$0xf] }
  0x42   : > { %v216_v15 = vld [vmem:[%s4842_s23 + $0x44] sm:$0x1]  ;;  %v3743_v17 = vcombine.low %v217_v8, %v218_v9  ;;  %v452_v20 = vshrl.u32 %v3738_v61, 16  ;;  %v222_v27 = vld [vmem:[%s4842_s23 + $0x5c] sm:$0x1] }
  0x43   : > { %1307 = vrot.lane.b32.xlu1 %v1194_v48, %s4791_s28  ;;  %v209_v48 = vld [vmem:[%s4842_s23 + $0x28] sm:$0xf]  ;;  %v1257_v58 = vor.u32 %v1256_v45, %v1252_v42  ;;  %v475_v21 = vshll.u32 %v3741_v7, 16  ;;  %v468_v24 = vshll.u32 %v3740_v13, 16  ;;  %v3742_v25 = vcombine.low %v215_v14, %v216_v15  ;;  %v219_v28 = vld [vmem:[%s4842_s23 + $0x50] sm:$0xf] }
  0x44   : > { %1305 = vrot.lane.b32.xlu0 %v1187_v54, %s4791_s28  ;;  %v1264_v54 = vor.u32 %v1263_v41, %v1259_v40  ;;  %v3739_v57 = vcombine.low %v209_v48, %v210_v49  ;;  %v220_v29 = vld [vmem:[%s4842_s23 + $0x54] sm:$0x1]  ;;  %v473_v30 = vshrl.u32 %v3741_v7, 16  ;;  %v489_v31 = vshll.u32 %v3743_v17, 16  ;;  %v225_v40 = vld [vmem:[%s4842_s23 + $0x68] sm:$0xf] }
  0x45   : > { %v477_v33 = vrot.slane %v475_v21, 1  ;;  %v466_v34 = vshrl.u32 %v3740_v13, 16  ;;  %v470_v37 = vrot.slane %v468_v24, 1  ;;  %v226_v41 = vld [vmem:[%s4842_s23 + $0x6c] sm:$0x1] }
  0x46   : > { %v461_v6 = vshll.u32 %v3739_v57, 16  ;;  %v459_v18 = vshrl.u32 %v3739_v57, 16  ;;  %v223_v42 = vld [vmem:[%s4842_s23 + $0x60] sm:$0xf]  ;;  %v224_v43 = vld [vmem:[%s4842_s23 + $0x64] sm:$0x1]  ;;  %v3747_v49 = vcombine.low %v225_v40, %v226_v41 }
  0x47   : > { %1311 = vrot.lane.b32.xlu1 %v1208_v60, %s4791_s28  ;;  %v440_v60 = vshll.u32 %v3736_v47, 16  ;;  %v491_v45 = vrot.slane %v489_v31, 1  ;;  %v478_v46 = vor.u32 %v477_v33, %v473_v30  ;;  %v480_v47 = vshrl.u32 %v3742_v25, 16  ;;  %v229_v50 = vld [vmem:[%s4842_s23 + $0x78] sm:$0xf] }
  0x48   : > { %1309 = vrot.lane.b32.xlu0 %v1201_v2, %s4791_s28  ;;  %v445_v2 = vshrl.u32 %v3737_v39, 16  ;;  %v463_v19 = vrot.slane %v461_v6, 1  ;;  %v3744_v39 = vcombine.low %v219_v28, %v220_v29  ;;  %v230_v51 = vld [vmem:[%s4842_s23 + $0x7c] sm:$0x1]  ;;  %v471_v52 = vor.u32 %v470_v37, %v466_v34  ;;  %v227_v56 = vld [vmem:[%s4842_s23 + $0x70] sm:$0xf] }
  0x49   : > { %v442_v11 = vrot.slane %v440_v60, 1  ;;  %v3746_v55 = vcombine.low %v223_v42, %v224_v43  ;;  %v228_v57 = vld [vmem:[%s4842_s23 + $0x74] sm:$0x1]  ;;  %v3749_v59 = vcombine.low %v229_v50, %v230_v51  ;;  %v517_v63 = vshll.u32 %v3747_v49, 16  ;;  %v231_v6 = vld [vmem:[%s4842_s23 + $0x80] sm:$0xf] }
  0x4a   : > { %v494_v62 = vshrl.u32 %v3744_v39, 16  ;;  %v232_v7 = vld [vmem:[%s4842_s23 + $0x84] sm:$0x1]  ;;  %v515_v8 = vshrl.u32 %v3747_v49, 16  ;;  %v236_v21 = vld [vmem:[%s4842_s23 + $0x94] sm:$0x1] }
  0x4b   : > { %1315 = vrot.lane.b32.xlu1 %v1222_v12, %s4791_s28  ;;  %v454_v12 = vshll.u32 %v3738_v61, 16  ;;  %v443_v22 = vor.u32 %v442_v11, %v438_v5  ;;  %v234_v5 = vld [vmem:[%s4842_s23 + $0x8c] sm:$0x1]  ;;  %v531_v9 = vshll.u32 %v3749_v59, 16  ;;  %v519_v11 = vrot.slane %v517_v63, 1 }
  0x4c   : > { %1313 = vrot.lane.b32.xlu0 %v1215_v16, %s4791_s28  ;;  %v450_v16 = vor.u32 %v449_v3, %v445_v2  ;;  %v510_v2 = vshll.u32 %v3746_v55, 16  ;;  %v3748_v3 = vcombine.low %v227_v56, %v228_v57  ;;  %v241_v28 = vld [vmem:[%s4842_s23 + $0xa8] sm:$0xf]  ;;  %v242_v29 = vld [vmem:[%s4842_s23 + $0xac] sm:$0x1] }
  0x4d   : > { %v456_v23 = vrot.slane %v454_v12, 1  ;;  %v508_v12 = vshrl.u32 %v3746_v55, 16  ;;  %v520_v24 = vor.u32 %v519_v11, %v515_v8  ;;  %v239_v34 = vld [vmem:[%s4842_s23 + $0xa0] sm:$0xf]  ;;  %v3755_v37 = vcombine.low %v241_v28, %v242_v29  ;;  %v244_v49 = vld [vmem:[%s4842_s23 + $0xb4] sm:$0x1] }
  0x4e   : > { %v512_v15 = vrot.slane %v510_v2, 1  ;;  %v248_v63 = vld [vmem:[%s4842_s23 + $0xc4] sm:$0x1]  ;;  %v254_v11 = vld [vmem:[%s4842_s23 + $0xdc] sm:$0x1] }
  0x4f   : > { %1319 = vrot.lane.b32.xlu1 %v1236_v26, %s4791_s28  ;;  %v221_v26 = vld [vmem:[%s4842_s23 + $0x58] sm:$0xf]  ;;  %v457_v36 = vor.u32 %v456_v23, %v452_v20  ;;  %v235_v20 = vld [vmem:[%s4842_s23 + $0x90] sm:$0xf]  ;;  %v533_v23 = vrot.slane %v531_v9, 1  ;;  %v573_v51 = vshll.u32 %v3755_v37, 16 }
  0x50   : > { %1317 = vrot.lane.b32.xlu0 %v1229_v32, %s4791_s28  ;;  %v464_v32 = vor.u32 %v463_v19, %v459_v18  ;;  %v3745_v35 = vcombine.low %v221_v26, %v222_v27  ;;  %v237_v18 = vld [vmem:[%s4842_s23 + $0x98] sm:$0xf]  ;;  %v238_v19 = vld [vmem:[%s4842_s23 + $0x9c] sm:$0x1]  ;;  %v513_v30 = vor.u32 %v512_v15, %v508_v12  ;;  %v3752_v33 = vcombine.low %v235_v20, %v236_v21  ;;  %v251_v12 = vld [vmem:[%s4842_s23 + $0xd0] sm:$0xf] }
  0x51   : > { %v3753_v27 = vcombine.low %v237_v18, %v238_v19 }
  0x52   : > { %v503_v48 = vshll.u32 %v3745_v35, 16  ;;  %v501_v60 = vshrl.u32 %v3745_v35, 16  ;;  %v240_v35 = vld [vmem:[%s4842_s23 + $0xa4] sm:$0x1] }
  0x53   : > { %1323 = vrot.lane.b32.xlu1 %v1250_v38, %s4791_s28  ;;  %v482_v38 = vshll.u32 %v3742_v25, 16  ;;  %v522_v25 = vshrl.u32 %v3748_v3, 16  ;;  %v559_v41 = vshll.u32 %v3753_v27, 16  ;;  %v557_v50 = vshrl.u32 %v3753_v27, 16  ;;  %v256_v27 = vld [vmem:[%s4842_s23 + $0xe4] sm:$0x1] }
  0x54   : > { %1321 = vrot.lane.b32.xlu0 %v1243_v44, %s4791_s28  ;;  %v487_v44 = vshrl.u32 %v3743_v17, 16  ;;  %v505_v61 = vrot.slane %v503_v48, 1  ;;  %v3750_v17 = vcombine.low %v231_v6, %v232_v7  ;;  %v243_v48 = vld [vmem:[%s4842_s23 + $0xb0] sm:$0xf] }
  0x55   : > { %v484_v53 = vrot.slane %v482_v38, 1 }
  0x56   : > { %v536_v40 = vshrl.u32 %v3750_v17, 16 }
  0x57   : > { %1327 = vrot.lane.b32.xlu1 %v1264_v54, %s4791_s28  ;;  %v496_v54 = vshll.u32 %v3744_v39, 16  ;;  %v485_v0 = vor.u32 %v484_v53, %v480_v47  ;;  %v246_v47 = vld [vmem:[%s4842_s23 + $0xbc] sm:$0x1]  ;;  %v561_v53 = vrot.slane %v559_v41, 1 }
  0x58   : > { %1325 = vrot.lane.b32.xlu0 %v1257_v58, %s4791_s28  ;;  %v492_v58 = vor.u32 %v491_v45, %v487_v44  ;;  %v552_v44 = vshll.u32 %v3752_v33, 16  ;;  %v3754_v45 = vcombine.low %v239_v34, %v240_v35 }
  0x59   : > { %v498_v1 = vrot.slane %v496_v54, 1  ;;  %v550_v54 = vshrl.u32 %v3752_v33, 16  ;;  %v562_v2 = vor.u32 %v561_v53, %v557_v50 }
  0x5a   : > { %v554_v57 = vrot.slane %v552_v44, 1 }
  0x5b   : > { %649 = vrot.lane.b32.xlu1 %v436_v4, %s4791_s28  ;;  %v233_v4 = vld [vmem:[%s4842_s23 + $0x88] sm:$0xf]  ;;  %v499_v14 = vor.u32 %v498_v1, %v494_v62  ;;  %v247_v62 = vld [vmem:[%s4842_s23 + $0xc0] sm:$0xf]  ;;  %v575_v1 = vrot.slane %v573_v51, 1 }
  0x5c   : > { %647 = vrot.lane.b32.xlu0 %v429_v10, %s4791_s28  ;;  %v506_v10 = vor.u32 %v505_v61, %v501_v60  ;;  %v3751_v13 = vcombine.low %v233_v4, %v234_v5  ;;  %v249_v60 = vld [vmem:[%s4842_s23 + $0xc8] sm:$0xf]  ;;  %v250_v61 = vld [vmem:[%s4842_s23 + $0xcc] sm:$0x1]  ;;  %v555_v6 = vor.u32 %v554_v57, %v550_v54  ;;  %v3758_v9 = vcombine.low %v247_v62, %v248_v63 }
  0x5d   : > { %v3759_v5 = vcombine.low %v249_v60, %v250_v61 }
  0x5e   : > { %v545_v26 = vshll.u32 %v3751_v13, 16  ;;  %v543_v38 = vshrl.u32 %v3751_v13, 16  ;;  %v252_v13 = vld [vmem:[%s4842_s23 + $0xd4] sm:$0x1]  ;;  %v592_v29 = vshrl.u32 %v3758_v9, 16 }
  0x5f   : > { %653 = vrot.lane.b32.xlu1 %v450_v16, %s4791_s28  ;;  %v524_v16 = vshll.u32 %v3748_v3, 16  ;;  %v564_v3 = vshrl.u32 %v3754_v45, 16  ;;  %v601_v18 = vshll.u32 %v3759_v5, 16  ;;  %v599_v28 = vshrl.u32 %v3759_v5, 16 }
  0x60   : > { %651 = vrot.lane.b32.xlu0 %v443_v22, %s4791_s28  ;;  %v529_v22 = vshrl.u32 %v3749_v59, 16  ;;  %v547_v39 = vrot.slane %v545_v26, 1  ;;  %v3756_v59 = vcombine.low %v243_v48, %v244_v49  ;;  %v255_v26 = vld [vmem:[%s4842_s23 + $0xe0] sm:$0xf]  ;;  %v3971_v48 = vld [vmem:[%s4842_s23 + $0x1c] sm:$0x1] }
  0x61   : > { %v526_v31 = vrot.slane %v524_v16, 1 }
  0x62   : > { %v580_v8 = vshll.u32 %v3756_v59, 16 }
  0x63   : > { %657 = vrot.lane.b32.xlu1 %v464_v32, %s4791_s28  ;;  %v538_v32 = vshll.u32 %v3750_v17, 16  ;;  %v527_v42 = vor.u32 %v526_v31, %v522_v25  ;;  %v578_v17 = vshrl.u32 %v3756_v59, 16  ;;  %v258_v25 = vld [vmem:[%s4842_s23 + $0xec] sm:$0x1]  ;;  %v603_v31 = vrot.slane %v601_v18, 1 }
  0x64   : > { %655 = vrot.lane.b32.xlu0 %v457_v36, %s4791_s28  ;;  %v534_v36 = vor.u32 %v533_v23, %v529_v22  ;;  %v582_v21 = vrot.slane %v580_v8, 1  ;;  %v594_v22 = vshll.u32 %v3758_v9, 16  ;;  %v3760_v23 = vcombine.low %v251_v12, %v252_v13  ;;  %v3973_v8 = vld [vmem:[%s4842_s23 + $0x24] sm:$0x1] }
  0x65   : > { %v540_v43 = vrot.slane %v538_v32, 1  ;;  %v604_v44 = vor.u32 %v603_v31, %v599_v28  ;;  %v5076_v28 = vld [vmem:[%s4842_s23 + $0x30] sm:$0xf] }
  0x66   : > { %v583_v34 = vor.u32 %v582_v21, %v578_v17  ;;  %v596_v35 = vrot.slane %v594_v22, 1  ;;  %v606_v41 = vshrl.u32 %v3760_v23, 16  ;;  %v4699_v21 = vld [vmem:[%s4842_s23 + $0x18] sm:$0xf] }
  0x67   : > { %661 = vrot.lane.b32.xlu1 %v478_v46, %s4791_s28  ;;  %v245_v46 = vld [vmem:[%s4842_s23 + $0xb8] sm:$0xf]  ;;  %v541_v56 = vor.u32 %v540_v43, %v536_v40  ;;  %v260_v43 = vld [vmem:[%s4842_s23 + $0xf4] sm:$0x1] }
  0x68   : > { %659 = vrot.lane.b32.xlu0 %v471_v52, %s4791_s28  ;;  %v548_v52 = vor.u32 %v547_v39, %v543_v38  ;;  %v3757_v55 = vcombine.low %v245_v46, %v246_v47  ;;  %v261_v38 = vld [vmem:[%s4842_s23 + $0xf8] sm:$0xf]  ;;  %v262_v39 = vld [vmem:[%s4842_s23 + $0xfc] sm:$0x1]  ;;  %v597_v49 = vor.u32 %v596_v35, %v592_v29  ;;  %v3977_v29 = vld [vmem:[%s4842_s23 + $0x34] sm:$0x1] }
  0x69   : > { %v3970_v47 = vld [vmem:[%s4842_s23 + $0x18] sm:$0xf] }
  0x6a   : > { %v587_v4 = vshll.u32 %v3757_v55, 16  ;;  %v585_v15 = vshrl.u32 %v3757_v55, 16  ;;  %v5038_v54 = vcombine.low %v3970_v47, %v3971_v48  ;;  %v3968_v55 = vld [vmem:[%s4842_s23 + $0x10] sm:$0xf] }
  0x6b   : > { %665 = vrot.lane.b32.xlu1 %v492_v58, %s4791_s28  ;;  %v566_v58 = vshll.u32 %v3754_v45, 16  ;;  %v4703_v47 = vld [vmem:[%s4842_s23 + $0x30] sm:$0xf] }
  0x6c   : > { %663 = vrot.lane.b32.xlu0 %v485_v0, %s4791_s28  ;;  %v571_v0 = vshrl.u32 %v3755_v37, 16  ;;  %v589_v16 = vrot.slane %v587_v4, 1  ;;  %v3762_v37 = vcombine.low %v255_v26, %v256_v27  ;;  %v3975_v4 = vld [vmem:[%s4842_s23 + $0x2c] sm:$0x1]  ;;  %v2592_v26 = vshrl.u32 %v5038_v54, 16 }
  0x6d   : > { %v568_v7 = vrot.slane %v566_v58, 1 }
  0x6e   : > { %v622_v51 = vshll.u32 %v3762_v37, 16  ;;  %v620_v61 = vshrl.u32 %v3762_v37, 16 }
  0x6f   : > { %669 = vrot.lane.b32.xlu1 %v506_v10, %s4791_s28  ;;  %v253_v10 = vld [vmem:[%s4842_s23 + $0xd8] sm:$0xf]  ;;  %v569_v20 = vor.u32 %v568_v7, %v564_v3  ;;  %v5048_v3 = vld [vmem:[%s4842_s23 + $0x28] sm:$0xf]  ;;  %v5053_v7 = vld [vmem:[%s4842_s23 + $0x20] sm:$0xf] }
  0x70   : > { %667 = vrot.lane.b32.xlu0 %v499_v14, %s4791_s28  ;;  %v576_v14 = vor.u32 %v575_v1, %v571_v0  ;;  %v3761_v19 = vcombine.low %v253_v10, %v254_v11  ;;  %v624_v62 = vrot.slane %v622_v51, 1  ;;  %v5059_v13 = vcombine.low %v5048_v3, %v3975_v4  ;;  %v3981_v51 = vld [vmem:[%s4842_s23 + $0x44] sm:$0x1] }
  0x72   : > { %v615_v32 = vshll.u32 %v3761_v19, 16  ;;  %v613_v40 = vshrl.u32 %v3761_v19, 16  ;;  %v625_v10 = vor.u32 %v624_v62, %v620_v61  ;;  %v2606_v62 = vshrl.u32 %v5059_v13, 16 }
  0x73   : > { %673 = vrot.lane.b32.xlu1 %v520_v24, %s4791_s28  ;;  %v257_v24 = vld [vmem:[%s4842_s23 + $0xe8] sm:$0xf] }
  0x74   : > { %671 = vrot.lane.b32.xlu0 %v513_v30, %s4791_s28  ;;  %v590_v30 = vor.u32 %v589_v16, %v585_v15  ;;  %v3763_v33 = vcombine.low %v257_v24, %v258_v25  ;;  %v617_v45 = vrot.slane %v615_v32, 1  ;;  %v3979_v15 = vld [vmem:[%s4842_s23 + $0x3c] sm:$0x1] }
  0x76   : > { %v629_v46 = vshll.u32 %v3763_v33, 16  ;;  %v618_v57 = vor.u32 %v617_v45, %v613_v40  ;;  %v627_v58 = vshrl.u32 %v3763_v33, 16  ;;  %v4702_v33 = vld [vmem:[%s4842_s23 + $0x10] sm:$0xf]  ;;  %v5091_v40 = vld [vmem:[%s4842_s23 + $0x48] sm:$0xf] }
  0x77   : > { %677 = vrot.lane.b32.xlu1 %v534_v36, %s4791_s28  ;;  %v608_v36 = vshll.u32 %v3760_v23, 16  ;;  %v4700_v23 = vld [vmem:[%s4842_s23 + $0x20] sm:$0xf] }
  0x78   : > { %675 = vrot.lane.b32.xlu0 %v527_v42, %s4791_s28  ;;  %v259_v42 = vld [vmem:[%s4842_s23 + $0xf0] sm:$0xf]  ;;  %v631_v59 = vrot.slane %v629_v46, 1  ;;  %v5096_v46 = vcombine.low %v5076_v28, %v3977_v29 }
  0x79   : > { %v610_v50 = vrot.slane %v608_v36, 1  ;;  %v5036_v53 = vcombine.low %v259_v42, %v260_v43 }
  0x7a   : > { %v632_v9 = vor.u32 %v631_v59, %v627_v58  ;;  %v5122_v58 = vld [vmem:[%s5721_s1 + $0x28] sm:$0xff]   ;;  %v4705_v59 = vld [vmem:[%s5721_s1] sm:$0xff]  }
  0x7b   : > { %681 = vrot.lane.b32.xlu1 %v548_v52, %s4791_s28  ;;  %v3765_v52 = vcombine.low %v261_v38, %v262_v39  ;;  %v611_v60 = vor.u32 %v610_v50, %v606_v41  ;;  %v636_v1 = vshll.u32 %v5036_v53, 16  ;;  %v634_v17 = vshrl.u32 %v5036_v53, 16  ;;  %v3983_v41 = vld [vmem:[%s4842_s23 + $0x4c] sm:$0x1]  ;;  %v5103_v50 = vld [vmem:[%s4842_s23 + $0x40] sm:$0xf] }
  0x7c   : > { %679 = vrot.lane.b32.xlu0 %v541_v56, %s4791_s28  ;;  %v3969_v56 = vld [vmem:[%s4842_s23 + $0x14] sm:$0x1]  ;;  %v2608_v39 = vshll.u32 %v5059_v13, 16  ;;  %v5147_v13 = vld [vmem:[%s4842_s23 + $0x50] sm:$0xf] }
  0x7d   : > { %v643_v63 = vshll.u32 %v3765_v52, 16  ;;  %v641_v11 = vshrl.u32 %v3765_v52, 16  ;;  %v638_v18 = vrot.slane %v636_v1, 1  ;;  %v4704_v52 = vld [vmem:[%s4842_s23 + $0x28] sm:$0xf] }
  0x7f   : > { %685 = vrot.lane.b32.xlu1 %v562_v2, %s4791_s28  ;;  %v5045_v2 = vcombine.low %v3968_v55, %v3969_v56  ;;  %v645_v12 = vrot.slane %v643_v63, 1  ;;  %v639_v43 = vor.u32 %v638_v18, %v634_v17  ;;  %v5112_v56 = vcombine.low %v5091_v40, %v3983_v41 }
  0x80   : > { %683 = vrot.lane.b32.xlu0 %v555_v6, %s4791_s28  ;;  %v2594_v6 = vshll.u32 %v5038_v54, 16  ;;  %v2610_v63 = vrot.slane %v2608_v39, 1 }
  0x81   : > { %v2587_v19 = vshll.u32 %v5045_v2, 16  ;;  %v646_v37 = vor.u32 %v645_v12, %v641_v11  ;;  %v2585_v38 = vshrl.u32 %v5045_v2, 16 }
  0x82   : > { %v2596_v27 = vrot.slane %v2594_v6, 1  ;;  %v5136_v6 = vcombine.low %v5103_v50, %v3981_v51 }
  0x83   : > { %689 = vrot.lane.b32.xlu1 %v576_v14, %s4791_s28  ;;  %v5062_v14 = vld [vmem:[%s4842_s23 + $0x38] sm:$0xf] }
  0x84   : > { %687 = vrot.lane.b32.xlu0 %v569_v20, %s4791_s28  ;;  %v5068_v20 = vcombine.low %v5053_v7, %v3973_v8  ;;  %v5085_v35 = vcombine.low %v5062_v14, %v3979_v15  ;;  %v2597_v54 = vor.u32 %v2596_v27, %v2592_v26  ;;  %v5139_v8 = vld [vmem:[%s4842_s23 + $0x58] sm:$0xf]  ;;  %v3985_v15 = vld [vmem:[%s4842_s23 + $0x54] sm:$0x1]  ;;  %v2629_v29 = vshll.u32 %v5136_v6, 16 }
  0x86   : > { %v2601_v45 = vshll.u32 %v5068_v20, 16  ;;  %v2622_v55 = vshll.u32 %v5085_v35, 16  ;;  %v2620_v18 = vshrl.u32 %v5085_v35, 16 }
  0x87   : > { %693 = vrot.lane.b32.xlu1 %v590_v30, %s4791_s28  ;;  %v4701_v30 = vld [vmem:[%s4842_s23 + $0x8] sm:$0xf] }
  0x88   : > { %691 = vrot.lane.b32.xlu0 %v583_v34, %s4791_s28  ;;  %v2603_v4 = vrot.slane %v2601_v45, 1  ;;  %v2627_v45 = vshrl.u32 %v5136_v6, 16 }
  0x8b   : > { %697 = vrot.lane.b32.xlu1 %v604_v44, %s4791_s28  ;;  %v2589_v44 = vrot.slane %v2587_v19, 1  ;;  %v2624_v19 = vrot.slane %v2622_v55, 1 }
  0x8c   : > { %695 = vrot.lane.b32.xlu0 %v597_v49, %s4791_s28 }
  0x8d   : > { %v1270_v0 = vpop.permute.xlu1 %1269  ;;  %v2590_v2 = vor.u32 %v2589_v44, %v2585_v38  ;;  %v4710_v38 = vld [vmem:[%s4842_s23 + $0x48] sm:$0xf]  ;;  %v2625_v41 = vor.u32 %v2624_v19, %v2620_v18  ;;  %v3999_v19 = vld [vmem:[%s4842_s23 + $0x8c] sm:$0x1] }
  0x8e   : > { %v1266_v5 = vpop.permute.xlu0 %1265  ;;  %v1337_v22 = vsel %vm711_vm0, %v4699_v21, %v1270_v0  ;;  %v2599_v0 = vshrl.u32 %v5068_v20, 16  ;;  %v2636_v20 = vshll.u32 %v5112_v56, 16  ;;  %v5219_v18 = vld [vmem:[%s4842_s23 + $0x88] sm:$0xf] }
  0x8f   : > { %701 = vrot.lane.b32.xlu1 %v618_v57, %s4791_s28  ;;  %v1331_v31 = vsel %vm711_vm0, %v4701_v30, %v1266_v5  ;;  %v5117_v57 = vld [vmem:[%s5721_s1 + $0x20] sm:$0xff]   ;;  %v2615_v5 = vshll.u32 %v5096_v46, 16  ;;  %v5164_v30 = vcombine.low %v5147_v13, %v3985_v15 }
  0x90   : > { %699 = vrot.lane.b32.xlu0 %v611_v60, %s4791_s28  ;;  %v4706_v60 = vld [vmem:[%s5721_s1 + $0x8] sm:$0xff]   ;;  %v2604_v26 = vor.u32 %v2603_v4, %v2599_v0 }
  0x91   : > { %v1272_v16 = vpop.permute.xlu1 %1271  ;;  %v2617_v27 = vrot.slane %v2615_v5, 1 }
  0x92   : > { %v1340_v24 = vsel %vm711_vm0, %v4700_v23, %v1272_v16  ;;  %v1268_v25 = vpop.permute.xlu0 %1267  ;;  %v4708_v16 = vld [vmem:[%s4842_s23 + $0x38] sm:$0xf]  ;;  %v2613_v23 = vshrl.u32 %v5096_v46, 16 }
  0x93   : > { %v3867_v32 = vcombine.low %v1337_v22, %v1340_v24  ;;  %v1334_v34 = vsel %vm711_vm0, %v4702_v33, %v1268_v25  ;;  %705 = vrot.lane.b32.xlu1 %v632_v9, %s4791_s28  ;;  %v3987_v9 = vld [vmem:[%s4842_s23 + $0x5c] sm:$0x1]  ;;  %v2611_v22 = vor.u32 %v2610_v63, %v2606_v62  ;;  %v4709_v33 = vld [vmem:[%s4842_s23 + $0x50] sm:$0xf]  ;;  %v3993_v62 = vld [vmem:[%s4842_s23 + $0x74] sm:$0x1] }
  0x94   : > { %703 = vrot.lane.b32.xlu0 %v625_v10, %s4791_s28  ;;  %v3866_v36 = vcombine.low %v1331_v31, %v1334_v34  ;;  %v4707_v10 = vld [vmem:[%s4842_s23 + $0x40] sm:$0xf]  ;;  %v5158_v24 = vcombine.low %v5139_v8, %v3987_v9  ;;  %v5167_v31 = vld [vmem:[%s4842_s23 + $0x68] sm:$0xf]  ;;  %v4712_v63 = vld [vmem:[%s4842_s23 + $0x58] sm:$0xf] }
  0x95   : > { %v1276_v42 = vpop.permute.xlu1 %1275  ;;  %v2641_v9 = vshrl.u32 %v5164_v30, 16 }
  0x96   : > { %4241 = vmatprep.mubr.msk.bf16.mxu0 %vm1514_vm1, %v3866_v36  ;;  %4309 = vmatprep.mubr.msk.bf16.mxu1 %vm1514_vm1, %v3866_v36  ;;  %v1346_v48 = vsel %vm711_vm0, %v4703_v47, %v1276_v42  ;;  %v1274_v49 = vpop.permute.xlu0 %1273  ;;  %v5173_v36 = vld [vmem:[%s4842_s23 + $0x60] sm:$0xf]  ;;  %v2634_v42 = vshrl.u32 %v5112_v56, 16  ;;  %v2650_v46 = vshll.u32 %v5158_v24, 16 }
  0x97   : > { %4242 = vmatmul.mubr.msk.bf16.vlgmr.msra.gmra.mrb[0].mxu0 %vm1514_vm1, %v3867_v32  ;;  %4310 = vmatmul.mubr.msk.bf16.vlgmr.msra.gmra.mrb[0].mxu1 %vm1514_vm1, %v3867_v32  ;;  %v1343_v53 = vsel %vm711_vm0, %v4704_v52, %v1274_v49  ;;  %v3991_v32 = vld [vmem:[%s4842_s23 + $0x6c] sm:$0x1]  ;;  %v3995_v49 = vld [vmem:[%s4842_s23 + $0x7c] sm:$0x1]  ;;  %v2618_v52 = vor.u32 %v2617_v27, %v2613_v23  ;;  %v4711_v56 = vld [vmem:[%s4842_s23 + $0x60] sm:$0xf] }
  0x98   : > { %4274 = vmatpush3.bf16.msra.mxu0 %v4705_v59  ;;  %4342 = vmatpush3.bf16.msra.mxu1 %v4706_v60  ;;  %v3868_v61 = vcombine.low %v1343_v53, %v1346_v48  ;;  %v5184_v47 = vcombine.low %v5167_v31, %v3991_v32  ;;  %v5187_v48 = vld [vmem:[%s4842_s23 + $0x78] sm:$0xf]  ;;  %v2631_v53 = vrot.slane %v2629_v29, 1  ;;  %v2652_v6 = vrot.slane %v2650_v46, 1  ;;  %v5225_v23 = vld [vmem:[%s4842_s23 + $0x80] sm:$0xf] }
  0x99   : > { %709 = vrot.lane.b32.xlu1 %v646_v37, %s4791_s28  ;;  %707 = vrot.lane.b32.xlu0 %v639_v43, %s4791_s28  ;;  %v1280_v1 = vpop.permute.xlu1 %1279  ;;  %v3989_v37 = vld [vmem:[%s4842_s23 + $0x64] sm:$0x1]  ;;  %v2638_v43 = vrot.slane %v2636_v20, 1  ;;  %v5208_v4 = vcombine.low %v5187_v48, %v3995_v49  ;;  %v4713_v20 = vld [vmem:[%s4842_s23 + $0x70] sm:$0xf] }
  0x9a   : > { %v1352_v11 = vsel %vm711_vm0, %v4707_v10, %v1280_v1  ;;  %4245 = vmatprep.mubr.msk.bf16.mxu0 %vm1514_vm1, %v3868_v61  ;;  %4313 = vmatprep.mubr.msk.bf16.mxu1 %vm1514_vm1, %v3868_v61  ;;  %v1278_v12 = vpop.permute.xlu0 %1277  ;;  %v5194_v55 = vcombine.low %v5173_v36, %v3989_v37  ;;  %v5201_v61 = vld [vmem:[%s4842_s23 + $0x70] sm:$0xf]  ;;  %v2664_v10 = vshll.u32 %v5184_v47, 16  ;;  %v2662_v27 = vshrl.u32 %v5184_v47, 16  ;;  %v5239_v37 = vld [vmem:[%s4842_s23 + $0x98] sm:$0xf] }
  0x9b   : > { %v1349_v17 = vsel %vm711_vm0, %v4708_v16, %v1278_v12  ;;  %4375 = vmatprep.subr.bf16.mxu0 %v5117_v57  ;;  %4409 = vmatprep.subr.bf16.mxu1 %v5122_v58  ;;  %v2639_v1 = vor.u32 %v2638_v43, %v2634_v42  ;;  %v2632_v12 = vor.u32 %v2631_v53, %v2627_v45  ;;  %v4715_v45 = vld [vmem:[%s4842_s23 + $0x80] sm:$0xf]  ;;  %v5253_v49 = vld [vmem:[%s4842_s23 + $0x90] sm:$0xf] }
  0x9c   : > { %v3869_v21 = vcombine.low %v1349_v17, %v1352_v11  ;;  %v2657_v16 = vshll.u32 %v5194_v55, 16  ;;  %v5216_v17 = vcombine.low %v5201_v61, %v3993_v62  ;;  %v2655_v29 = vshrl.u32 %v5194_v55, 16 }
  0x9d   : > { %2810 = vrot.lane.b32.xlu1 %v2597_v54, %s4791_s28  ;;  %2808 = vrot.lane.b32.xlu0 %v2590_v2, %s4791_s28  ;;  %v1284_v25 = vpop.permute.xlu1 %1283  ;;  %v2643_v54 = vshll.u32 %v5164_v30, 16  ;;  %v2648_v2 = vshrl.u32 %v5158_v24, 16  ;;  %v3997_v24 = vld [vmem:[%s4842_s23 + $0x84] sm:$0x1]  ;;  %v2678_v30 = vshll.u32 %v5208_v4, 16 }
  0x9e   : > { %v1358_v34 = vsel %vm711_vm0, %v4709_v33, %v1284_v25  ;;  %v1282_v35 = vpop.permute.xlu0 %1281  ;;  %v4714_v25 = vld [vmem:[%s4842_s23 + $0x68] sm:$0xf]  ;;  %v2659_v42 = vrot.slane %v2657_v16, 1  ;;  %v2671_v43 = vshll.u32 %v5216_v17, 16  ;;  %v2669_v62 = vshrl.u32 %v5216_v17, 16 }
  0x9f   : > { %4246 = vmatmul.mubr.msk.bf16.gmra.mrb[4].mxu0 %vm1514_vm1, %v3869_v21  ;;  %4314 = vmatmul.mubr.msk.bf16.gmra.mrb[4].mxu1 %vm1514_vm1, %v3869_v21  ;;  %v1355_v39 = vsel %vm711_vm0, %v4710_v38, %v1282_v35  ;;  %v2645_v15 = vrot.slane %v2643_v54, 1  ;;  %v2653_v33 = vor.u32 %v2652_v6, %v2648_v2  ;;  %v5236_v35 = vcombine.low %v5219_v18, %v3999_v19  ;;  %v4003_v38 = vld [vmem:[%s4842_s23 + $0x9c] sm:$0x1]  ;;  %v5271_v6 = vld [vmem:[%s4842_s23 + $0xa8] sm:$0xf] }
  0xa0   : > { %v3870_v44 = vcombine.low %v1355_v39, %v1358_v34  ;;  %v2666_v34 = vrot.slane %v2664_v10, 1  ;;  %v2676_v54 = vshrl.u32 %v5208_v4, 16  ;;  %v2680_v55 = vrot.slane %v2678_v30, 1  ;;  %v4717_v10 = vld [vmem:[%s4842_s23 + $0x90] sm:$0xf] }
  0xa1   : > { %2814 = vrot.lane.b32.xlu1 %v2611_v22, %s4791_s28  ;;  %2812 = vrot.lane.b32.xlu0 %v2604_v26, %s4791_s28  ;;  %v1288_v51 = vpop.permute.xlu1 %1287  ;;  %v2673_v2 = vrot.slane %v2671_v43, 1  ;;  %v4005_v16 = vld [vmem:[%s4842_s23 + $0xa4] sm:$0x1]  ;;  %v4718_v17 = vld [vmem:[%s4842_s23 + $0x88] sm:$0xf] }
  0xa2   : > { %v1364_v59 = vsel %vm711_vm0, %v4711_v56, %v1288_v51  ;;  %4249 = vmatprep.mubr.msk.bf16.mxu0 %vm1514_vm1, %v3870_v44  ;;  %4317 = vmatprep.mubr.msk.bf16.mxu1 %vm1514_vm1, %v3870_v44  ;;  %v1286_v60 = vpop.permute.xlu0 %1285  ;;  %v5246_v44 = vcombine.low %v5225_v23, %v3997_v24  ;;  %v4001_v51 = vld [vmem:[%s4842_s23 + $0x94] sm:$0x1]  ;;  %v5260_v56 = vcombine.low %v5239_v37, %v4003_v38  ;;  %v4011_v38 = vld [vmem:[%s4842_s23 + $0xbc] sm:$0x1]  ;;  %v5305_v43 = vld [vmem:[%s4842_s23 + $0xb0] sm:$0xf] }
  0xa3   : > { %v1361_v0 = vsel %vm711_vm0, %v4712_v63, %v1286_v60  ;;  %v2667_v60 = vor.u32 %v2666_v34, %v2662_v27  ;;  %v2692_v63 = vshll.u32 %v5236_v35, 16  ;;  %v2674_v30 = vor.u32 %v2673_v2, %v2669_v62  ;;  %v4015_v2 = vld [vmem:[%s4842_s23 + $0xcc] sm:$0x1] }
  0xa4   : > { %v3871_v5 = vcombine.low %v1361_v0, %v1364_v59  ;;  %v2685_v4 = vshll.u32 %v5246_v44, 16 }
  0xa5   : > { %2818 = vrot.lane.b32.xlu1 %v2625_v41, %s4791_s28  ;;  %2816 = vrot.lane.b32.xlu0 %v2618_v52, %s4791_s28  ;;  %v1292_v11 = vpop.permute.xlu1 %1291  ;;  %v2646_v41 = vor.u32 %v2645_v15, %v2641_v9  ;;  %v4716_v52 = vld [vmem:[%s4842_s23 + $0x78] sm:$0xf]  ;;  %v4007_v9 = vld [vmem:[%s4842_s23 + $0xac] sm:$0x1] }
  0xa6   : > { %v1370_v21 = vsel %vm711_vm0, %v4713_v20, %v1292_v11  ;;  %v1290_v22 = vpop.permute.xlu0 %1289  ;;  %v5277_v15 = vld [vmem:[%s4842_s23 + $0xa0] sm:$0xf]  ;;  %v2681_v20 = vor.u32 %v2680_v55, %v2676_v54  ;;  %v5288_v27 = vcombine.low %v5271_v6, %v4007_v9 }
  0xa7   : > { %4250 = vmatmul.mubr.msk.bf16.gmra.mrb[8].mxu0 %vm1514_vm1, %v3871_v5  ;;  %4318 = vmatmul.mubr.msk.bf16.gmra.mrb[8].mxu1 %vm1514_vm1, %v3871_v5  ;;  %v1367_v26 = vsel %vm711_vm0, %v4714_v25, %v1290_v22  ;;  %v5268_v5 = vcombine.low %v5253_v49, %v4001_v51  ;;  %v2706_v22 = vshll.u32 %v5260_v56, 16  ;;  %v2694_v25 = vrot.slane %v2692_v63, 1 }
  0xa8   : > { %v3872_v32 = vcombine.low %v1367_v26, %v1370_v21  ;;  %v2690_v21 = vshrl.u32 %v5236_v35, 16  ;;  %v2683_v26 = vshrl.u32 %v5246_v44, 16  ;;  %v5294_v34 = vcombine.low %v5277_v15, %v4005_v16  ;;  %v5297_v35 = vld [vmem:[%s4842_s23 + $0xb8] sm:$0xf]  ;;  %v4009_v44 = vld [vmem:[%s4842_s23 + $0xb4] sm:$0x1] }
  0xa9   : > { %2822 = vrot.lane.b32.xlu1 %v2639_v1, %s4791_s28  ;;  %2820 = vrot.lane.b32.xlu0 %v2632_v12, %s4791_s28  ;;  %v1296_v39 = vpop.permute.xlu1 %1295  ;;  %v2660_v1 = vor.u32 %v2659_v42, %v2655_v29  ;;  %v2708_v51 = vrot.slane %v2706_v22, 1  ;;  %v2720_v55 = vshll.u32 %v5288_v27, 16 }
  0xaa   : > { %v1376_v46 = vsel %vm711_vm0, %v4715_v45, %v1296_v39  ;;  %4253 = vmatprep.mubr.msk.bf16.mxu0 %vm1514_vm1, %v3872_v32  ;;  %4321 = vmatprep.mubr.msk.bf16.mxu1 %vm1514_vm1, %v3872_v32  ;;  %v1294_v47 = vpop.permute.xlu0 %1293  ;;  %v2687_v32 = vrot.slane %v2685_v4, 1  ;;  %v4719_v39 = vld [vmem:[%s4842_s23 + $0xa0] sm:$0xf]  ;;  %v4720_v45 = vld [vmem:[%s4842_s23 + $0x98] sm:$0xf]  ;;  %v2695_v54 = vor.u32 %v2694_v25, %v2690_v21  ;;  %v2713_v63 = vshll.u32 %v5294_v34, 16 }
  0xab   : > { %v1373_v53 = vsel %vm711_vm0, %v4716_v52, %v1294_v47  ;;  %v2704_v47 = vshrl.u32 %v5260_v56, 16  ;;  %v2697_v52 = vshrl.u32 %v5268_v5, 16  ;;  %v4721_v4 = vld [vmem:[%s4842_s23 + $0xb0] sm:$0xf]  ;;  %v2722_v22 = vrot.slane %v2720_v55, 1 }
  0xac   : > { %v3873_v59 = vcombine.low %v1373_v53, %v1376_v46  ;;  %v2688_v56 = vor.u32 %v2687_v32, %v2683_v26  ;;  %v5343_v26 = vld [vmem:[%s4842_s23 + $0xd8] sm:$0xf]  ;;  %v2715_v32 = vrot.slane %v2713_v63, 1 }
  0xad   : > { %2826 = vrot.lane.b32.xlu1 %v2653_v33, %s4791_s28  ;;  %2824 = vrot.lane.b32.xlu0 %v2646_v41, %s4791_s28  ;;  %v1300_v0 = vpop.permute.xlu1 %1299  ;;  %v2699_v33 = vshll.u32 %v5268_v5, 16 }
  0xae   : > { %v1382_v11 = vsel %vm711_vm0, %v4717_v10, %v1300_v0  ;;  %v1298_v12 = vpop.permute.xlu0 %1297  ;;  %v5320_v0 = vcombine.low %v5305_v43, %v4009_v44  ;;  %v5329_v10 = vld [vmem:[%s4842_s23 + $0xc0] sm:$0xf] }
  0xaf   : > { %4254 = vmatmul.mubr.msk.bf16.gmra.mrb[12].mxu0 %vm1514_vm1, %v3873_v59  ;;  %4322 = vmatmul.mubr.msk.bf16.gmra.mrb[12].mxu1 %vm1514_vm1, %v3873_v59  ;;  %v1379_v19 = vsel %vm711_vm0, %v4718_v17, %v1298_v12  ;;  %v5314_v59 = vcombine.low %v5297_v35, %v4011_v38  ;;  %v2701_v62 = vrot.slane %v2699_v33, 1  ;;  %v4722_v12 = vld [vmem:[%s4842_s23 + $0xa8] sm:$0xf]  ;;  %v2709_v17 = vor.u32 %v2708_v51, %v2704_v47  ;;  %v5353_v38 = vld [vmem:[%s4842_s23 + $0xd0] sm:$0xf] }
  0xb0   : > { %v3874_v24 = vcombine.low %v1379_v19, %v1382_v11  ;;  %v4013_v11 = vld [vmem:[%s4842_s23 + $0xc4] sm:$0x1]  ;;  %v2718_v19 = vshrl.u32 %v5288_v27, 16  ;;  %v2727_v33 = vshll.u32 %v5320_v0, 16  ;;  %v2725_v51 = vshrl.u32 %v5320_v0, 16 }
  0xb1   : > { %2830 = vrot.lane.b32.xlu1 %v2667_v60, %s4791_s28  ;;  %2828 = vrot.lane.b32.xlu0 %v2660_v1, %s4791_s28  ;;  %v1304_v29 = vpop.permute.xlu1 %1303  ;;  %v5323_v1 = vld [vmem:[%s4842_s23 + $0xc8] sm:$0xf]  ;;  %v2732_v47 = vshrl.u32 %v5314_v59, 16 }
  0xb2   : > { %v1388_v41 = vsel %vm711_vm0, %v4719_v39, %v1304_v29  ;;  %4257 = vmatprep.mubr.msk.bf16.mxu0 %vm1514_vm1, %v3874_v24  ;;  %4325 = vmatprep.mubr.msk.bf16.mxu1 %vm1514_vm1, %v3874_v24  ;;  %v1302_v42 = vpop.permute.xlu0 %1301  ;;  %v2734_v24 = vshll.u32 %v5314_v59, 16  ;;  %v5340_v25 = vcombine.low %v5323_v1, %v4015_v2  ;;  %v4019_v29 = vld [vmem:[%s4842_s23 + $0xdc] sm:$0x1]  ;;  %v4017_v39 = vld [vmem:[%s4842_s23 + $0xd4] sm:$0x1]  ;;  %v2729_v63 = vrot.slane %v2727_v33, 1 }
  0xb3   : > { %v1385_v46 = vsel %vm711_vm0, %v4720_v45, %v1302_v42  ;;  %v4724_v45 = vld [vmem:[%s4842_s23 + $0xb8] sm:$0xf]  ;;  %v5375_v2 = vld [vmem:[%s4842_s23 + $0xe8] sm:$0xf] }
  0xb4   : > { %v3875_v53 = vcombine.low %v1385_v46, %v1388_v41  ;;  %v4723_v41 = vld [vmem:[%s4842_s23 + $0xc0] sm:$0xf]  ;;  %v2748_v55 = vshll.u32 %v5340_v25, 16  ;;  %v2730_v33 = vor.u32 %v2729_v63, %v2725_v51 }
  0xb5   : > { %2834 = vrot.lane.b32.xlu1 %v2681_v20, %s4791_s28  ;;  %2832 = vrot.lane.b32.xlu0 %v2674_v30, %s4791_s28  ;;  %v1308_v60 = vpop.permute.xlu1 %1307  ;;  %v2711_v20 = vshrl.u32 %v5294_v34, 16  ;;  %v2702_v30 = vor.u32 %v2701_v62, %v2697_v52  ;;  %v5350_v34 = vcombine.low %v5329_v10, %v4013_v11  ;;  %v5365_v52 = vcombine.low %v5343_v26, %v4019_v29 }
  0xb6   : > { %v1394_v5 = vsel %vm711_vm0, %v4721_v4, %v1308_v60  ;;  %v1306_v9 = vpop.permute.xlu0 %1305  ;;  %v5369_v60 = vcombine.low %v5353_v38, %v4017_v39  ;;  %v4023_v4 = vld [vmem:[%s4842_s23 + $0xec] sm:$0x1]  ;;  %v2750_v29 = vrot.slane %v2748_v55, 1  ;;  %v4025_v55 = vld [vmem:[%s4842_s23 + $0xf4] sm:$0x1] }
  0xb7   : > { %4258 = vmatmul.mubr.msk.bf16.gmra.mrb[16].mxu0 %vm1514_vm1, %v3875_v53  ;;  %4326 = vmatmul.mubr.msk.bf16.gmra.mrb[16].mxu1 %vm1514_vm1, %v3875_v53  ;;  %v1391_v16 = vsel %vm711_vm0, %v4722_v12, %v1306_v9  ;;  %v2716_v62 = vor.u32 %v2715_v32, %v2711_v20  ;;  %v2741_v0 = vshll.u32 %v5350_v34, 16  ;;  %v5381_v12 = vld [vmem:[%s4842_s23 + $0xe0] sm:$0xf]  ;;  %v2746_v20 = vshrl.u32 %v5340_v25, 16 }
  0xb8   : > { %v3876_v21 = vcombine.low %v1391_v16, %v1394_v5  ;;  %v4725_v5 = vld [vmem:[%s4842_s23 + $0xd0] sm:$0xf]  ;;  %v4021_v16 = vld [vmem:[%s4842_s23 + $0xe4] sm:$0x1] }
  0xb9   : > { %2838 = vrot.lane.b32.xlu1 %v2695_v54, %s4791_s28  ;;  %2836 = vrot.lane.b32.xlu0 %v2688_v56, %s4791_s28  ;;  %v1312_v27 = vpop.permute.xlu1 %1311  ;;  %v2736_v54 = vrot.slane %v2734_v24, 1  ;;  %v2723_v56 = vor.u32 %v2722_v22, %v2718_v19  ;;  %v2762_v22 = vshll.u32 %v5365_v52, 16  ;;  %v5398_v39 = vcombine.low %v5381_v12, %v4021_v16  ;;  %v5423_v16 = vld [vmem:[%s4842_s23 + $0x108] sm:$0xf] }
  0xba   : > { %v1400_v42 = vsel %vm711_vm0, %v4723_v41, %v1312_v27  ;;  %4261 = vmatprep.mubr.msk.bf16.mxu0 %vm1514_vm1, %v3876_v21  ;;  %4329 = vmatprep.mubr.msk.bf16.mxu1 %vm1514_vm1, %v3876_v21  ;;  %v1310_v44 = vpop.permute.xlu0 %1309  ;;  %v2739_v21 = vshrl.u32 %v5350_v34, 16  ;;  %v2755_v27 = vshll.u32 %v5369_v60, 16  ;;  %v2743_v34 = vrot.slane %v2741_v0, 1  ;;  %v5401_v41 = vld [vmem:[%s4842_s23 + $0xf8] sm:$0xf] }
  0xbb   : > { %v1397_v46 = vsel %vm711_vm0, %v4724_v45, %v1310_v44  ;;  %v2737_v32 = vor.u32 %v2736_v54, %v2732_v47  ;;  %v4727_v44 = vld [vmem:[%s4842_s23 + $0xe0] sm:$0xf]  ;;  %v4728_v47 = vld [vmem:[%s4842_s23 + $0xd8] sm:$0xf]  ;;  %v2760_v54 = vshrl.u32 %v5365_v52, 16 }
  0xbc   : > { %v3877_v53 = vcombine.low %v1397_v46, %v1400_v42  ;;  %v4027_v42 = vld [vmem:[%s4842_s23 + $0xfc] sm:$0x1]  ;;  %v2757_v63 = vrot.slane %v2755_v27, 1  ;;  %v2744_v52 = vor.u32 %v2743_v34, %v2739_v21  ;;  %v5429_v27 = vld [vmem:[%s4842_s23 + $0x100] sm:$0xf] }
  0xbd   : > { %2842 = vrot.lane.b32.xlu1 %v2709_v17, %s4791_s28  ;;  %2840 = vrot.lane.b32.xlu0 %v2702_v30, %s4791_s28  ;;  %v1316_v59 = vpop.permute.xlu1 %1315  ;;  %v4726_v17 = vld [vmem:[%s4842_s23 + $0xc8] sm:$0xf]  ;;  %v5393_v30 = vcombine.low %v5375_v2, %v4023_v4  ;;  %v4061_v4 = vcombine.low %v5401_v41, %v4027_v42 }
  0xbe   : > { %v1406_v9 = vsel %vm711_vm0, %v4725_v5, %v1316_v59  ;;  %v1314_v11 = vpop.permute.xlu0 %1313  ;;  %v2764_v59 = vrot.slane %v2762_v22, 1 }
  0xbf   : > { %4262 = vmatmul.mubr.msk.bf16.gmra.mrb[20].mxu0 %vm1514_vm1, %v3877_v53  ;;  %4330 = vmatmul.mubr.msk.bf16.gmra.mrb[20].mxu1 %vm1514_vm1, %v3877_v53  ;;  %v1403_v19 = vsel %vm711_vm0, %v4726_v17, %v1314_v11  ;;  %v5409_v53 = vld [vmem:[%s4842_s23 + $0xf0] sm:$0xf]  ;;  %v2776_v0 = vshll.u32 %v5393_v30, 16  ;;  %v2769_v11 = vshll.u32 %v5398_v39, 16 }
  0xc0   : > { %v3878_v24 = vcombine.low %v1403_v19, %v1406_v9  ;;  %v2751_v9 = vor.u32 %v2750_v29, %v2746_v20  ;;  %v4729_v17 = vld [vmem:[%s4842_s23 + $0xf0] sm:$0xf]  ;;  %v4730_v20 = vld [vmem:[%s4842_s23 + $0xe8] sm:$0xf]  ;;  %v2765_v29 = vor.u32 %v2764_v59, %v2760_v54  ;;  %v4731_v59 = vld [vmem:[%s4842_s23 + $0x100] sm:$0xf] }
  0xc1   : > { %2846 = vrot.lane.b32.xlu1 %v2723_v56, %s4791_s28  ;;  %2844 = vrot.lane.b32.xlu0 %v2716_v62, %s4791_s28  ;;  %v1320_v25 = vpop.permute.xlu1 %1319  ;;  %v2753_v56 = vshrl.u32 %v5369_v60, 16  ;;  %v4060_v60 = vcombine.low %v5409_v53, %v4025_v55  ;;  %v2771_v55 = vrot.slane %v2769_v11, 1 }
  0xc2   : > { %v1412_v45 = vsel %vm711_vm0, %v4727_v44, %v1320_v25  ;;  %4265 = vmatprep.mubr.msk.bf16.mxu0 %vm1514_vm1, %v3878_v24  ;;  %4333 = vmatprep.mubr.msk.bf16.mxu1 %vm1514_vm1, %v3878_v24  ;;  %v1318_v46 = vpop.permute.xlu0 %1317  ;;  %v4031_v24 = vld [vmem:[%s4842_s23 + $0x10c] sm:$0x1]  ;;  %v4029_v25 = vld [vmem:[%s4842_s23 + $0x104] sm:$0x1]  ;;  %v2778_v44 = vrot.slane %v2776_v0, 1 }
  0xc3   : > { %v1409_v51 = vsel %vm711_vm0, %v4728_v47, %v1318_v46  ;;  %v2758_v42 = vor.u32 %v2757_v63, %v2753_v56  ;;  %v2783_v47 = vshll.u32 %v4060_v60, 16  ;;  %v4062_v54 = vcombine.low %v5429_v27, %v4029_v25  ;;  %v4732_v56 = vld [vmem:[%s4842_s23 + $0xf8] sm:$0xf]  ;;  %v4733_v25 = vld [vmem:[%s4842_s23 + $0x8] sm:$0xf] }
  0xc4   : > { %v3879_v62 = vcombine.low %v1409_v51, %v1412_v45  ;;  %v2790_v45 = vshll.u32 %v4061_v4, 16  ;;  %v4063_v51 = vcombine.low %v5423_v16, %v4031_v24  ;;  %v2788_v63 = vshrl.u32 %v4061_v4, 16  ;;  %v4734_v4 = vld [vmem:[%s4842_s23] sm:$0xf] }
  0xc5   : > { %2850 = vrot.lane.b32.xlu1 %v2737_v32, %s4791_s28  ;;  %2848 = vrot.lane.b32.xlu0 %v2730_v33, %s4791_s28  ;;  %v1324_v5 = vpop.permute.xlu1 %1323  ;;  %v2774_v32 = vshrl.u32 %v5393_v30, 16  ;;  %v2767_v33 = vshrl.u32 %v5398_v39, 16  ;;  %v2797_v24 = vshll.u32 %v4062_v54, 16 }
  0xc6   : > { %v1418_v19 = vsel %vm711_vm0, %v4729_v17, %v1324_v5  ;;  %v1322_v22 = vpop.permute.xlu0 %1321 }
  0xc7   : > { %4266 = vmatmul.mubr.msk.bf16.gmra.mrb[24].mxu0 %vm1514_vm1, %v3879_v62  ;;  %4334 = vmatmul.mubr.msk.bf16.gmra.mrb[24].mxu1 %vm1514_vm1, %v3879_v62  ;;  %v1415_v21 = vsel %vm711_vm0, %v4730_v20, %v1322_v22  ;;  %v2779_v5 = vor.u32 %v2778_v44, %v2774_v32  ;;  %v2772_v17 = vor.u32 %v2771_v55, %v2767_v33  ;;  %v2804_v22 = vshll.u32 %v4063_v51, 16  ;;  %v4735_v55 = vld [vmem:[%s4842_s23 + $0x18] sm:$0xf] }
  0xc8   : > { %v3880_v34 = vcombine.low %v1415_v21, %v1418_v19  ;;  %v2785_v19 = vrot.slane %v2783_v47, 1 }
  0xc9   : > { %2854 = vrot.lane.b32.xlu1 %v2751_v9, %s4791_s28  ;;  %2852 = vrot.lane.b32.xlu0 %v2744_v52, %s4791_s28  ;;  %v1328_v46 = vpop.permute.xlu1 %1327  ;;  %v2792_v9 = vrot.slane %v2790_v45, 1  ;;  %v2781_v52 = vshrl.u32 %v4060_v60, 16  ;;  %v2806_v44 = vrot.slane %v2804_v22, 1  ;;  %v2795_v45 = vshrl.u32 %v4062_v54, 16 }
  0xca   : > { %v1424_v30 = vsel %vm711_vm0, %v4731_v59, %v1328_v46  ;;  %4269 = vmatprep.mubr.msk.bf16.mxu0 %vm1514_vm1, %v3880_v34  ;;  %4337 = vmatprep.mubr.msk.bf16.mxu1 %vm1514_vm1, %v3880_v34  ;;  %v1326_v39 = vpop.permute.xlu0 %1325  ;;  %v2802_v34 = vshrl.u32 %v4063_v51, 16  ;;  %v2799_v46 = vrot.slane %v2797_v24, 1  ;;  %v4736_v51 = vld [vmem:[%s4842_s23 + $0x10] sm:$0xf] }
  0xcb   : > { %v1421_v62 = vsel %vm711_vm0, %v4732_v56, %v1326_v39  ;;  %v2793_v32 = vor.u32 %v2792_v9, %v2788_v63  ;;  %v4737_v63 = vld [vmem:[%s4842_s23 + $0x28] sm:$0xf]  ;;  %v4738_v9 = vld [vmem:[%s4842_s23 + $0x20] sm:$0xf] }
  0xcc   : > { %v3881_v0 = vcombine.low %v1421_v62, %v1424_v30  ;;  %v2807_v54 = vor.u32 %v2806_v44, %v2802_v34  ;;  %v2800_v62 = vor.u32 %v2799_v46, %v2795_v45  ;;  %v4744_v46 = vld [vmem:[%s4842_s23 + $0x50] sm:$0xf] }
  0xcd   : > { %2858 = vrot.lane.b32.xlu1 %v2765_v29, %s4791_s28  ;;  %2856 = vrot.lane.b32.xlu0 %v2758_v42, %s4791_s28  ;;  %v650_v11 = vpop.permute.xlu1 %649  ;;  %v2786_v42 = vor.u32 %v2785_v19, %v2781_v52  ;;  %v4739_v19 = vld [vmem:[%s4842_s23 + $0x38] sm:$0xf] }
  0xce   : > { %v717_v20 = vsel %vm711_vm0, %v4733_v25, %v650_v11  ;;  %v648_v21 = vpop.permute.xlu0 %647  ;;  %v4740_v25 = vld [vmem:[%s4842_s23 + $0x30] sm:$0xf] }
  0xcf   : > { %4270 = vmatmul.mubr.msk.bf16.gmra.mrb[28].mxu0 %vm1514_vm1, %v3881_v0  ;;  %4338 = vmatmul.mubr.msk.bf16.gmra.mrb[28].mxu1 %vm1514_vm1, %v3881_v0  ;;  %v714_v60 = vsel %vm711_vm0, %v4734_v4, %v648_v21  ;;  %v4741_v21 = vld [vmem:[%s4842_s23 + $0x48] sm:$0xf] }
  0xd0   : > { %v3899_v29 = vcombine.low %v714_v60, %v717_v20 }
  0xd1   : > { %2862 = vrot.lane.b32.xlu1 %v2779_v5, %s4791_s28  ;;  %2860 = vrot.lane.b32.xlu0 %v2772_v17, %s4791_s28  ;;  %v654_v33 = vpop.permute.xlu1 %653 }
  0xd2   : > { %v723_v47 = vsel %vm711_vm0, %v4735_v55, %v654_v33  ;;  %4275 = vmatprep.mubr.msk.bf16.mxu0 %vm1514_vm1, %v3899_v29  ;;  %4343 = vmatprep.mubr.msk.bf16.mxu1 %vm1514_vm1, %v3899_v29  ;;  %v652_v59 = vpop.permute.xlu0 %651  ;;  %v4742_v29 = vld [vmem:[%s4842_s23 + $0x40] sm:$0xf] }
  0xd3   : > { %v720_v30 = vsel %vm711_vm0, %v4736_v51, %v652_v59  ;;  %v4745_v51 = vld [vmem:[%s4842_s23 + $0x68] sm:$0xf] }
  0xd4   : > { %v3900_v39 = vcombine.low %v720_v30, %v723_v47 }
  0xd5   : > { %2866 = vrot.lane.b32.xlu1 %v2793_v32, %s4791_s28  ;;  %2864 = vrot.lane.b32.xlu0 %v2786_v42, %s4791_s28  ;;  %v658_v56 = vpop.permute.xlu1 %657  ;;  %v4743_v42 = vld [vmem:[%s4842_s23 + $0x58] sm:$0xf] }
  0xd6   : > { %v729_v0 = vsel %vm711_vm0, %v4737_v63, %v658_v56  ;;  %v656_v5 = vpop.permute.xlu0 %655  ;;  %v4746_v56 = vld [vmem:[%s4842_s23 + $0x60] sm:$0xf] }
  0xd7   : > { %4276 = vmatmul.mubr.msk.bf16.vlgmr.msra.gmra.mrb[0].mxu0 %vm1514_vm1, %v3900_v39  ;;  %4344 = vmatmul.mubr.msk.bf16.vlgmr.msra.gmra.mrb[0].mxu1 %vm1514_vm1, %v3900_v39  ;;  %v726_v52 = vsel %vm711_vm0, %v4738_v9, %v656_v5 }
  0xd8   : > { %4376 = vmatpush3.bf16.msra.mxu0 %v5117_v57  ;;  %4410 = vmatpush3.bf16.msra.mxu1 %v5122_v58  ;;  %v3901_v11 = vcombine.low %v726_v52, %v729_v0  ;;  %v4747_v0 = vld [vmem:[%s4842_s23 + $0x78] sm:$0xf]  ;;  %v4748_v52 = vld [vmem:[%s4842_s23 + $0x70] sm:$0xf] }
  0xd9   : > { %2870 = vrot.lane.b32.xlu1 %v2807_v54, %s4791_s28  ;;  %2868 = vrot.lane.b32.xlu0 %v2800_v62, %s4791_s28  ;;  %v662_v17 = vpop.permute.xlu1 %661 }
  0xda   : > { %v735_v22 = vsel %vm711_vm0, %v4739_v19, %v662_v17  ;;  %4279 = vmatprep.mubr.msk.bf16.mxu0 %vm1514_vm1, %v3901_v11  ;;  %4347 = vmatprep.mubr.msk.bf16.mxu1 %vm1514_vm1, %v3901_v11  ;;  %v660_v24 = vpop.permute.xlu0 %659 }
  0xdb   : > { %v732_v57 = vsel %vm711_vm0, %v4740_v25, %v660_v24 }
  0xdc   : > { %v3902_v58 = vcombine.low %v732_v57, %v735_v22  ;;  %v4749_v22 = vld [vmem:[%s4842_s23 + $0x88] sm:$0xf]  ;;  %v4750_v57 = vld [vmem:[%s4842_s23 + $0x80] sm:$0xf] }
  0xdd   : > { %v666_v20 = vpop.permute.xlu1 %665 }
  0xde   : > { %v741_v4 = vsel %vm711_vm0, %v4741_v21, %v666_v20  ;;  %v664_v60 = vpop.permute.xlu0 %663 }
  0xdf   : > { %4280 = vmatmul.mubr.msk.bf16.gmra.mrb[4].mxu0 %vm1514_vm1, %v3902_v58  ;;  %4348 = vmatmul.mubr.msk.bf16.gmra.mrb[4].mxu1 %vm1514_vm1, %v3902_v58  ;;  %v738_v32 = vsel %vm711_vm0, %v4742_v29, %v664_v60 }
  0xe0   : > { %v3903_v34 = vcombine.low %v738_v32, %v741_v4  ;;  %v4751_v4 = vld [vmem:[%s4842_s23 + $0x98] sm:$0xf]  ;;  %v4752_v32 = vld [vmem:[%s4842_s23 + $0x90] sm:$0xf] }
  0xe1   : > { %v670_v33 = vpop.permute.xlu1 %669 }
  0xe2   : > { %v747_v44 = vsel %vm711_vm0, %v4743_v42, %v670_v33  ;;  %4283 = vmatprep.mubr.msk.bf16.mxu0 %vm1514_vm1, %v3903_v34  ;;  %4351 = vmatprep.mubr.msk.bf16.mxu1 %vm1514_vm1, %v3903_v34  ;;  %v668_v45 = vpop.permute.xlu0 %667 }
  0xe3   : > { %v744_v55 = vsel %vm711_vm0, %v4744_v46, %v668_v45 }
  0xe4   : > { %v3904_v47 = vcombine.low %v744_v55, %v747_v44  ;;  %v4753_v44 = vld [vmem:[%s4842_s23 + $0xa8] sm:$0xf]  ;;  %v4754_v55 = vld [vmem:[%s4842_s23 + $0xa0] sm:$0xf] }
  0xe5   : > { %v674_v59 = vpop.permute.xlu1 %673 }
  0xe6   : > { %v753_v30 = vsel %vm711_vm0, %v4745_v51, %v674_v59  ;;  %v672_v39 = vpop.permute.xlu0 %671 }
  0xe7   : > { %4284 = vmatmul.mubr.msk.bf16.gmra.mrb[8].mxu0 %vm1514_vm1, %v3904_v47  ;;  %4352 = vmatmul.mubr.msk.bf16.gmra.mrb[8].mxu1 %vm1514_vm1, %v3904_v47  ;;  %v750_v54 = vsel %vm711_vm0, %v4746_v56, %v672_v39 }
  0xe8   : > { %v3905_v62 = vcombine.low %v750_v54, %v753_v30  ;;  %v4755_v30 = vld [vmem:[%s4842_s23 + $0xb8] sm:$0xf]  ;;  %v4756_v54 = vld [vmem:[%s4842_s23 + $0xb0] sm:$0xf] }
  0xe9   : > { %v678_v63 = vpop.permute.xlu1 %677 }
  0xea   : > { %v759_v5 = vsel %vm711_vm0, %v4747_v0, %v678_v63  ;;  %4287 = vmatprep.mubr.msk.bf16.mxu0 %vm1514_vm1, %v3905_v62  ;;  %4355 = vmatprep.mubr.msk.bf16.mxu1 %vm1514_vm1, %v3905_v62  ;;  %v676_v9 = vpop.permute.xlu0 %675 }
  0xeb   : > { %v756_v11 = vsel %vm711_vm0, %v4748_v52, %v676_v9 }
  0xec   : > { %v3906_v17 = vcombine.low %v756_v11, %v759_v5  ;;  %v4757_v5 = vld [vmem:[%s4842_s23 + $0xc8] sm:$0xf]  ;;  %v4758_v11 = vld [vmem:[%s4842_s23 + $0xc0] sm:$0xf] }
  0xed   : > { %v682_v19 = vpop.permute.xlu1 %681 }
  0xee   : > { %v765_v24 = vsel %vm711_vm0, %v4749_v22, %v682_v19  ;;  %v680_v25 = vpop.permute.xlu0 %679 }
  0xef   : > { %4288 = vmatmul.mubr.msk.bf16.gmra.mrb[12].mxu0 %vm1514_vm1, %v3906_v17  ;;  %4356 = vmatmul.mubr.msk.bf16.gmra.mrb[12].mxu1 %vm1514_vm1, %v3906_v17  ;;  %v762_v58 = vsel %vm711_vm0, %v4750_v57, %v680_v25 }
  0xf0   : > { %v3907_v20 = vcombine.low %v762_v58, %v765_v24  ;;  %v4759_v24 = vld [vmem:[%s4842_s23 + $0xd8] sm:$0xf]  ;;  %v4760_v58 = vld [vmem:[%s4842_s23 + $0xd0] sm:$0xf] }
  0xf1   : > { %v686_v21 = vpop.permute.xlu1 %685 }
  0xf2   : > { %v771_v60 = vsel %vm711_vm0, %v4751_v4, %v686_v21  ;;  %4291 = vmatprep.mubr.msk.bf16.mxu0 %vm1514_vm1, %v3907_v20  ;;  %4359 = vmatprep.mubr.msk.bf16.mxu1 %vm1514_vm1, %v3907_v20  ;;  %v684_v29 = vpop.permute.xlu0 %683 }
  0xf3   : > { %v768_v34 = vsel %vm711_vm0, %v4752_v32, %v684_v29 }
  0xf4   : > { %v3908_v33 = vcombine.low %v768_v34, %v771_v60  ;;  %v4761_v60 = vld [vmem:[%s4842_s23 + $0xe8] sm:$0xf]  ;;  %v4762_v34 = vld [vmem:[%s4842_s23 + $0xe0] sm:$0xf] }
  0xf5   : > { %v690_v42 = vpop.permute.xlu1 %689 }
  0xf6   : > { %v777_v45 = vsel %vm711_vm0, %v4753_v44, %v690_v42  ;;  %v688_v46 = vpop.permute.xlu0 %687 }
  0xf7   : > { %4292 = vmatmul.mubr.msk.bf16.gmra.mrb[16].mxu0 %vm1514_vm1, %v3908_v33  ;;  %4360 = vmatmul.mubr.msk.bf16.gmra.mrb[16].mxu1 %vm1514_vm1, %v3908_v33  ;;  %v774_v47 = vsel %vm711_vm0, %v4754_v55, %v688_v46  ;;  %v4763_v46 = vld [vmem:[%s4842_s23 + $0xf8] sm:$0xf] }
  0xf8   : > { %v3909_v59 = vcombine.low %v774_v47, %v777_v45  ;;  %v4764_v47 = vld [vmem:[%s4842_s23 + $0xf0] sm:$0xf] }
  0xf9   : > { %v694_v51 = vpop.permute.xlu1 %693 }
  0xfa   : > { %v783_v39 = vsel %vm711_vm0, %v4755_v30, %v694_v51  ;;  %4295 = vmatprep.mubr.msk.bf16.mxu0 %vm1514_vm1, %v3909_v59  ;;  %4363 = vmatprep.mubr.msk.bf16.mxu1 %vm1514_vm1, %v3909_v59  ;;  %v692_v56 = vpop.permute.xlu0 %691 }
  0xfb   : > { %v780_v62 = vsel %vm711_vm0, %v4756_v54, %v692_v56  ;;  %v4765_v56 = vld [vmem:[%s4842_s23 + $0x18] sm:$0xf] }
  0xfc   : > { %v3910_v63 = vcombine.low %v780_v62, %v783_v39  ;;  %v4766_v62 = vld [vmem:[%s4842_s23 + $0x10] sm:$0xf] }
  0xfd   : > { %v698_v0 = vpop.permute.xlu1 %697 }
  0xfe   : > { %v789_v9 = vsel %vm711_vm0, %v4757_v5, %v698_v0  ;;  %v696_v52 = vpop.permute.xlu0 %695 }
  0xff   : > { %4296 = vmatmul.mubr.msk.bf16.gmra.mrb[20].mxu0 %vm1514_vm1, %v3910_v63  ;;  %4364 = vmatmul.mubr.msk.bf16.gmra.mrb[20].mxu1 %vm1514_vm1, %v3910_v63  ;;  %v786_v17 = vsel %vm711_vm0, %v4758_v11, %v696_v52 }
 0x100   : > { %v3911_v19 = vcombine.low %v786_v17, %v789_v9 }
 0x101   : > { %v702_v22 = vpop.permute.xlu1 %701 }
 0x102   : > { %v795_v25 = vsel %vm711_vm0, %v4759_v24, %v702_v22  ;;  %4299 = vmatprep.mubr.msk.bf16.mxu0 %vm1514_vm1, %v3911_v19  ;;  %4367 = vmatprep.mubr.msk.bf16.mxu1 %vm1514_vm1, %v3911_v19  ;;  %v700_v57 = vpop.permute.xlu0 %699 }
 0x103   : > { %v792_v20 = vsel %vm711_vm0, %v4760_v58, %v700_v57 }
 0x104   : > { %v3912_v21 = vcombine.low %v792_v20, %v795_v25 }
 0x105   : > { %v706_v4 = vpop.permute.xlu1 %705 }
 0x106   : > { %v801_v29 = vsel %vm711_vm0, %v4761_v60, %v706_v4  ;;  %v704_v32 = vpop.permute.xlu0 %703 }
 0x107   : > { %4300 = vmatmul.mubr.msk.bf16.gmra.mrb[24].mxu0 %vm1514_vm1, %v3912_v21  ;;  %4368 = vmatmul.mubr.msk.bf16.gmra.mrb[24].mxu1 %vm1514_vm1, %v3912_v21  ;;  %v798_v33 = vsel %vm711_vm0, %v4762_v34, %v704_v32 }
 0x108   : > { %v3913_v42 = vcombine.low %v798_v33, %v801_v29 }
 0x10a   : > { %4303 = vmatprep.mubr.msk.bf16.mxu0 %vm1514_vm1, %v3913_v42  ;;  %4371 = vmatprep.mubr.msk.bf16.mxu1 %vm1514_vm1, %v3913_v42 }
 0x10b   : > { %v710_v44 = vpop.permute.xlu1 %709  ;;  %v708_v45 = vpop.permute.xlu0 %707 }
 0x10c   : > { %v807_v55 = vsel %vm711_vm0, %v4763_v46, %v710_v44  ;;  %v804_v59 = vsel %vm711_vm0, %v4764_v47, %v708_v45 }
 0x10d   : > { %v3914_v51 = vcombine.low %v804_v59, %v807_v55 }
 0x10f   : > { %v2811_v30 = vpop.permute.xlu1 %2810  ;;  %4304 = vmatmul.mubr.msk.bf16.gmra.mrb[28].mxu0 %vm1514_vm1, %v3914_v51  ;;  %4372 = vmatmul.mubr.msk.bf16.gmra.mrb[28].mxu1 %vm1514_vm1, %v3914_v51  ;;  %v2809_v39 = vpop.permute.xlu0 %2808 }
 0x110   : > { %v2877_v54 = vsel %vm711_vm0, %v4765_v56, %v2811_v30  ;;  %v2874_v63 = vsel %vm711_vm0, %v4766_v62, %v2809_v39 }
 0x111   : > { %v4066_v0 = vcombine.low %v2874_v63, %v2877_v54 }
 0x113   : > { %v2815_v5 = vpop.permute.xlu1 %2814  ;;  %4377 = vmatprep.mubr.msk.bf16.mxu0 %vm1514_vm1, %v4066_v0  ;;  %4411 = vmatprep.mubr.msk.bf16.mxu1 %vm1514_vm1, %v4066_v0  ;;  %v2813_v9 = vpop.permute.xlu0 %2812 }
 0x114   : > { %v2883_v52 = vsel %vm711_vm0, %v5048_v3, %v2815_v5  ;;  %v2880_v11 = vsel %vm711_vm0, %v5053_v7, %v2813_v9 }
 0x115   : > { %v4067_v17 = vcombine.low %v2880_v11, %v2883_v52 }
 0x117   : > { %v2819_v19 = vpop.permute.xlu1 %2818  ;;  %4378 = vmatmul.mubr.msk.bf16.vlgmr.msra.gmra.mrb[0].mxu0 %vm1514_vm1, %v4067_v17  ;;  %4412 = vmatmul.mubr.msk.bf16.vlgmr.msra.gmra.mrb[0].mxu1 %vm1514_vm1, %v4067_v17  ;;  %v2817_v22 = vpop.permute.xlu0 %2816 }
 0x118   : > { %v2889_v24 = vsel %vm711_vm0, %v5062_v14, %v2819_v19  ;;  %v2886_v25 = vsel %vm711_vm0, %v5076_v28, %v2817_v22 }
 0x119   : > { %v4068_v57 = vcombine.low %v2886_v25, %v2889_v24 }
 0x11b   : > { %v2823_v58 = vpop.permute.xlu1 %2822  ;;  %4381 = vmatprep.mubr.msk.bf16.mxu0 %vm1514_vm1, %v4068_v57  ;;  %4415 = vmatprep.mubr.msk.bf16.mxu1 %vm1514_vm1, %v4068_v57  ;;  %v2821_v3 = vpop.permute.xlu0 %2820 }
 0x11c   : > { %v2895_v7 = vsel %vm711_vm0, %v5091_v40, %v2823_v58  ;;  %v2892_v20 = vsel %vm711_vm0, %v5103_v50, %v2821_v3 }
 0x11d   : > { %v4069_v21 = vcombine.low %v2892_v20, %v2895_v7 }
 0x11f   : > { %v2827_v4 = vpop.permute.xlu1 %2826  ;;  %4382 = vmatmul.mubr.msk.bf16.gmra.mrb[4].mxu0 %vm1514_vm1, %v4069_v21  ;;  %4416 = vmatmul.mubr.msk.bf16.gmra.mrb[4].mxu1 %vm1514_vm1, %v4069_v21  ;;  %v2825_v14 = vpop.permute.xlu0 %2824 }
 0x120   : > { %v2901_v28 = vsel %vm711_vm0, %v5139_v8, %v2827_v4  ;;  %v2898_v60 = vsel %vm711_vm0, %v5147_v13, %v2825_v14 }
 0x121   : > { %v4070_v29 = vcombine.low %v2898_v60, %v2901_v28 }
 0x123   : > { %v2831_v32 = vpop.permute.xlu1 %2830  ;;  %4385 = vmatprep.mubr.msk.bf16.mxu0 %vm1514_vm1, %v4070_v29  ;;  %4419 = vmatprep.mubr.msk.bf16.mxu1 %vm1514_vm1, %v4070_v29  ;;  %v2829_v40 = vpop.permute.xlu0 %2828 }
 0x124   : > { %v2907_v50 = vsel %vm711_vm0, %v5167_v31, %v2831_v32  ;;  %v2904_v34 = vsel %vm711_vm0, %v5173_v36, %v2829_v40 }
 0x125   : > { %v4071_v33 = vcombine.low %v2904_v34, %v2907_v50 }
 0x127   : > { %v2835_v42 = vpop.permute.xlu1 %2834  ;;  %4386 = vmatmul.mubr.msk.bf16.gmra.mrb[8].mxu0 %vm1514_vm1, %v4071_v33  ;;  %4420 = vmatmul.mubr.msk.bf16.gmra.mrb[8].mxu1 %vm1514_vm1, %v4071_v33  ;;  %v2833_v8 = vpop.permute.xlu0 %2832 }
 0x128   : > { %v2913_v13 = vsel %vm711_vm0, %v5187_v48, %v2835_v42  ;;  %v2910_v44 = vsel %vm711_vm0, %v5201_v61, %v2833_v8 }
 0x129   : > { %v4072_v45 = vcombine.low %v2910_v44, %v2913_v13 }
 0x12b   : > { %v2839_v46 = vpop.permute.xlu1 %2838  ;;  %4389 = vmatprep.mubr.msk.bf16.mxu0 %vm1514_vm1, %v4072_v45  ;;  %4423 = vmatprep.mubr.msk.bf16.mxu1 %vm1514_vm1, %v4072_v45  ;;  %v2837_v31 = vpop.permute.xlu0 %2836 }
 0x12c   : > { %v2919_v36 = vsel %vm711_vm0, %v5219_v18, %v2839_v46  ;;  %v2916_v55 = vsel %vm711_vm0, %v5225_v23, %v2837_v31 }
 0x12d   : > { %v4073_v47 = vcombine.low %v2916_v55, %v2919_v36 }
 0x12f   : > { %v2843_v59 = vpop.permute.xlu1 %2842  ;;  %4390 = vmatmul.mubr.msk.bf16.gmra.mrb[12].mxu0 %vm1514_vm1, %v4073_v47  ;;  %4424 = vmatmul.mubr.msk.bf16.gmra.mrb[12].mxu1 %vm1514_vm1, %v4073_v47  ;;  %v2841_v48 = vpop.permute.xlu0 %2840 }
 0x130   : > { %v2925_v61 = vsel %vm711_vm0, %v5239_v37, %v2843_v59  ;;  %v2922_v51 = vsel %vm711_vm0, %v5253_v49, %v2841_v48 }
 0x131   : > { %v4074_v30 = vcombine.low %v2922_v51, %v2925_v61 }
 0x133   : > { %v2847_v39 = vpop.permute.xlu1 %2846  ;;  %4393 = vmatprep.mubr.msk.bf16.mxu0 %vm1514_vm1, %v4074_v30  ;;  %4427 = vmatprep.mubr.msk.bf16.mxu1 %vm1514_vm1, %v4074_v30  ;;  %v2845_v18 = vpop.permute.xlu0 %2844 }
 0x134   : > { %v2931_v23 = vsel %vm711_vm0, %v5271_v6, %v2847_v39  ;;  %v2928_v56 = vsel %vm711_vm0, %v5277_v15, %v2845_v18 }
 0x135   : > { %v4075_v54 = vcombine.low %v2928_v56, %v2931_v23 }
 0x137   : > { %v2851_v62 = vpop.permute.xlu1 %2850  ;;  %4394 = vmatmul.mubr.msk.bf16.gmra.mrb[16].mxu0 %vm1514_vm1, %v4075_v54  ;;  %4428 = vmatmul.mubr.msk.bf16.gmra.mrb[16].mxu1 %vm1514_vm1, %v4075_v54  ;;  %v2849_v37 = vpop.permute.xlu0 %2848 }
 0x138   : > { %v2937_v49 = vsel %vm711_vm0, %v5297_v35, %v2851_v62  ;;  %v2934_v63 = vsel %vm711_vm0, %v5305_v43, %v2849_v37 }
 0x139   : > { %v4076_v0 = vcombine.low %v2934_v63, %v2937_v49 }
 0x13b   : > { %v2855_v5 = vpop.permute.xlu1 %2854  ;;  %4397 = vmatprep.mubr.msk.bf16.mxu0 %vm1514_vm1, %v4076_v0  ;;  %4431 = vmatprep.mubr.msk.bf16.mxu1 %vm1514_vm1, %v4076_v0  ;;  %v2853_v6 = vpop.permute.xlu0 %2852 }
 0x13c   : > { %v2943_v15 = vsel %vm711_vm0, %v5323_v1, %v2855_v5  ;;  %v2940_v9 = vsel %vm711_vm0, %v5329_v10, %v2853_v6 }
 0x13d   : > { %v4077_v52 = vcombine.low %v2940_v9, %v2943_v15 }
 0x13f   : > { %v2859_v11 = vpop.permute.xlu1 %2858  ;;  %4398 = vmatmul.mubr.msk.bf16.gmra.mrb[20].mxu0 %vm1514_vm1, %v4077_v52  ;;  %4432 = vmatmul.mubr.msk.bf16.gmra.mrb[20].mxu1 %vm1514_vm1, %v4077_v52  ;;  %v2857_v35 = vpop.permute.xlu0 %2856 }
 0x140   : > { %v2949_v43 = vsel %vm711_vm0, %v5343_v26, %v2859_v11  ;;  %v2946_v17 = vsel %vm711_vm0, %v5353_v38, %v2857_v35 }
 0x141   : > { %v4078_v19 = vcombine.low %v2946_v17, %v2949_v43 }
 0x143   : > { %v2863_v22 = vpop.permute.xlu1 %2862  ;;  %4401 = vmatprep.mubr.msk.bf16.mxu0 %vm1514_vm1, %v4078_v19  ;;  %4435 = vmatprep.mubr.msk.bf16.mxu1 %vm1514_vm1, %v4078_v19  ;;  %v2861_v1 = vpop.permute.xlu0 %2860 }
 0x144   : > { %v2955_v10 = vsel %vm711_vm0, %v5375_v2, %v2863_v22  ;;  %v2952_v24 = vsel %vm711_vm0, %v5381_v12, %v2861_v1 }
 0x145   : > { %v4079_v25 = vcombine.low %v2952_v24, %v2955_v10 }
 0x147   : > { %v2867_v57 = vpop.permute.xlu1 %2866  ;;  %4402 = vmatmul.mubr.msk.bf16.gmra.mrb[24].mxu0 %vm1514_vm1, %v4079_v25  ;;  %4436 = vmatmul.mubr.msk.bf16.gmra.mrb[24].mxu1 %vm1514_vm1, %v4079_v25  ;;  %v2865_v26 = vpop.permute.xlu0 %2864 }
 0x148   : > { %v2961_v38 = vsel %vm711_vm0, %v5401_v41, %v2867_v57  ;;  %v2958_v58 = vsel %vm711_vm0, %v5409_v53, %v2865_v26 }
 0x149   : > { %v4080_v3 = vcombine.low %v2958_v58, %v2961_v38 }
 0x14b   : > { %v2871_v7 = vpop.permute.xlu1 %2870  ;;  %4405 = vmatprep.mubr.msk.bf16.mxu0 %vm1514_vm1, %v4080_v3  ;;  %4439 = vmatprep.mubr.msk.bf16.mxu1 %vm1514_vm1, %v4080_v3  ;;  %v2869_v2 = vpop.permute.xlu0 %2868 }
 0x14c   : > { %v2967_v12 = vsel %vm711_vm0, %v5423_v16, %v2871_v7  ;;  %v2964_v20 = vsel %vm711_vm0, %v5429_v27, %v2869_v2  ;;  %v5655_v27 = vld [vmem:[%s5722_s2] ss:$0 sm:$0xff] }
 0x14d   : > { %v4081_v21 = vcombine.low %v2964_v20, %v2967_v12 }
 0x14f   : > { %4406 = vmatmul.mubr.msk.bf16.gmra.mrb[28].mxu0 %vm1514_vm1, %v4081_v21  ;;  %4440 = vmatmul.mubr.msk.bf16.gmra.mrb[28].mxu1 %vm1514_vm1, %v4081_v21 }
 0x1ea   : > { %v4379_v41 = vpop.f32.mrb[0].mxu0  ;;  %v4413_v53 = vpop.f32.mrb[0].mxu1 }
 0x1eb   : > { %v3502_v4 = vmax.f32 %v4379_v41, %v4413_v53  ;;  %v3139_v14 = vpop.f32.mrb[1].mxu0  ;;  %v3341_v28 = vpop.f32.mrb[1].mxu1 }
 0x1ec   : > { %v3500_v60 = vmax.f32 %v3139_v14, %v3341_v28  ;;  %v4380_v29 = vpop.f32.mrb[2].mxu0  ;;  %v4414_v32 = vpop.f32.mrb[2].mxu1 }
 0x1ed   : > { %v3503_v40 = vmax.f32 %v4380_v29, %v4414_v32  ;;  %v3142_v50 = vpop.f32.mrb[3].mxu0  ;;  %v3344_v16 = vpop.f32.mrb[3].mxu1 }
 0x1ee   : > { %v3501_v34 = vmax.f32 %v3142_v50, %v3344_v16 }
 0x1ef   : > { %v3545_v33 = vmax.f32 %v3502_v4, %v3503_v40 }
 0x1f0   : > { %v3533_v42 = vmax.f32 %v3500_v60, %v3501_v34 }
 0x1f1   : > { %v3546_v8 = vadd.f32 %v5655_v27, %v3545_v33 }
 0x1f2   : > { %v3540_v13 = vadd.f32 %v5655_v27, %v3533_v42  ;;  %v4383_v44 = vpop.f32.mrb[4].mxu0  ;;  %v4417_v45 = vpop.f32.mrb[4].mxu1 }
 0x1f3   : > { %v3547_v46 = vmax.f32 %v3546_v8, 0.0  ;;  %v3506_v31 = vmax.f32 %v4383_v44, %v4417_v45  ;;  %v3155_v36 = vpop.f32.mrb[5].mxu0  ;;  %v3357_v55 = vpop.f32.mrb[5].mxu1 }
 0x1f4   : > { %v3541_v47 = vmax.f32 %v3540_v13, 0.0  ;;  %v3504_v59 = vmax.f32 %v3155_v36, %v3357_v55  ;;  %v4384_v48 = vpop.f32.mrb[6].mxu0  ;;  %v4418_v61 = vpop.f32.mrb[6].mxu1 }
 0x1f5   : > { %v3548_v51 = vpack.c.bf16 %v3547_v46, %v3547_v46  ;;  %v3507_v30 = vmax.f32 %v4384_v48, %v4418_v61  ;;  %v3158_v39 = vpop.f32.mrb[7].mxu0  ;;  %v3360_v18 = vpop.f32.mrb[7].mxu1 }
 0x1f6   : > { %v3542_v23 = vpack.c.bf16 %v3541_v47, %v3541_v47  ;;  %v3505_v56 = vmax.f32 %v3158_v39, %v3360_v18 }
 0x1f7   : > { %4119 = vst.msk [vmem:[%s5663_s19 + $0x4] sm:$0xf] %vm3543_vm2, %v3548_v51  ;;  %v3557_v54 = vmax.f32 %v3506_v31, %v3507_v30 }
 0x1f8   : > { %3544 = vst.msk [vmem:[%s5663_s19] sm:$0xf] %vm3543_vm2, %v3542_v23  ;;  %v3551_v62 = vmax.f32 %v3504_v59, %v3505_v56 }
 0x1f9   : > { %v3558_v37 = vadd.f32 %v5655_v27, %v3557_v54 }
 0x1fa   : > { %v3552_v49 = vadd.f32 %v5655_v27, %v3551_v62  ;;  %v4387_v63 = vpop.f32.mrb[8].mxu0  ;;  %v4421_v0 = vpop.f32.mrb[8].mxu1 }
 0x1fb   : > { %v3559_v5 = vmax.f32 %v3558_v37, 0.0  ;;  %v3510_v6 = vmax.f32 %v4387_v63, %v4421_v0  ;;  %v3171_v15 = vpop.f32.mrb[9].mxu0  ;;  %v3373_v9 = vpop.f32.mrb[9].mxu1 }
 0x1fc   : > { %v3553_v52 = vmax.f32 %v3552_v49, 0.0  ;;  %v3508_v11 = vmax.f32 %v3171_v15, %v3373_v9  ;;  %v4388_v35 = vpop.f32.mrb[10].mxu0  ;;  %v4422_v43 = vpop.f32.mrb[10].mxu1 }
 0x1fd   : > { %v3560_v17 = vpack.c.bf16 %v3559_v5, %v3559_v5  ;;  %v3511_v19 = vmax.f32 %v4388_v35, %v4422_v43  ;;  %v3174_v22 = vpop.f32.mrb[11].mxu0  ;;  %v3376_v1 = vpop.f32.mrb[11].mxu1 }
 0x1fe   : > { %v3554_v10 = vpack.c.bf16 %v3553_v52, %v3553_v52  ;;  %v3509_v24 = vmax.f32 %v3174_v22, %v3376_v1 }
 0x1ff   : > { %4121 = vst.msk [vmem:[%s5663_s19 + $0xc] sm:$0xf] %vm3543_vm2, %v3560_v17  ;;  %v3569_v25 = vmax.f32 %v3510_v6, %v3511_v19 }
 0x200   : > { %4120 = vst.msk [vmem:[%s5663_s19 + $0x8] sm:$0xf] %vm3543_vm2, %v3554_v10  ;;  %v3563_v57 = vmax.f32 %v3508_v11, %v3509_v24 }
 0x201   : > { %v3570_v26 = vadd.f32 %v5655_v27, %v3569_v25 }
 0x202   : > { %v3564_v38 = vadd.f32 %v5655_v27, %v3563_v57  ;;  %v4391_v58 = vpop.f32.mrb[12].mxu0  ;;  %v4425_v3 = vpop.f32.mrb[12].mxu1 }
 0x203   : > { %v3571_v7 = vmax.f32 %v3570_v26, 0.0  ;;  %v3514_v2 = vmax.f32 %v4391_v58, %v4425_v3  ;;  %v3187_v12 = vpop.f32.mrb[13].mxu0  ;;  %v3389_v20 = vpop.f32.mrb[13].mxu1 }
 0x204   : > { %v3565_v21 = vmax.f32 %v3564_v38, 0.0  ;;  %v3512_v41 = vmax.f32 %v3187_v12, %v3389_v20  ;;  %v4392_v53 = vpop.f32.mrb[14].mxu0  ;;  %v4426_v4 = vpop.f32.mrb[14].mxu1 }
 0x205   : > { %v3572_v14 = vpack.c.bf16 %v3571_v7, %v3571_v7  ;;  %v3515_v28 = vmax.f32 %v4392_v53, %v4426_v4  ;;  %v3190_v60 = vpop.f32.mrb[15].mxu0  ;;  %v3392_v29 = vpop.f32.mrb[15].mxu1 }
 0x206   : > { %v3566_v32 = vpack.c.bf16 %v3565_v21, %v3565_v21  ;;  %v3513_v40 = vmax.f32 %v3190_v60, %v3392_v29 }
 0x207   : > { %4123 = vst.msk [vmem:[%s5663_s19 + $0x14] sm:$0xf] %vm3543_vm2, %v3572_v14  ;;  %v3581_v50 = vmax.f32 %v3514_v2, %v3515_v28 }
 0x208   : > { %4122 = vst.msk [vmem:[%s5663_s19 + $0x10] sm:$0xf] %vm3543_vm2, %v3566_v32  ;;  %v3575_v16 = vmax.f32 %v3512_v41, %v3513_v40 }
 0x209   : > { %v3582_v34 = vadd.f32 %v5655_v27, %v3581_v50 }
 0x20a   : > { %v3576_v33 = vadd.f32 %v5655_v27, %v3575_v16  ;;  %v4395_v42 = vpop.f32.mrb[16].mxu0  ;;  %v4429_v8 = vpop.f32.mrb[16].mxu1 }
 0x20b   : > { %v3583_v13 = vmax.f32 %v3582_v34, 0.0  ;;  %v3518_v44 = vmax.f32 %v4395_v42, %v4429_v8  ;;  %v3203_v45 = vpop.f32.mrb[17].mxu0  ;;  %v3405_v46 = vpop.f32.mrb[17].mxu1 }
 0x20c   : > { %v3577_v31 = vmax.f32 %v3576_v33, 0.0  ;;  %v3516_v36 = vmax.f32 %v3203_v45, %v3405_v46  ;;  %v4396_v55 = vpop.f32.mrb[18].mxu0  ;;  %v4430_v47 = vpop.f32.mrb[18].mxu1 }
 0x20d   : > { %v3584_v59 = vpack.c.bf16 %v3583_v13, %v3583_v13  ;;  %v3519_v48 = vmax.f32 %v4396_v55, %v4430_v47  ;;  %v3206_v61 = vpop.f32.mrb[19].mxu0  ;;  %v3408_v51 = vpop.f32.mrb[19].mxu1 }
 0x20e   : > { %v3578_v30 = vpack.c.bf16 %v3577_v31, %v3577_v31  ;;  %v3517_v39 = vmax.f32 %v3206_v61, %v3408_v51 }
 0x20f   : > { %4125 = vst.msk [vmem:[%s5663_s19 + $0x1c] sm:$0xf] %vm3543_vm2, %v3584_v59  ;;  %v3593_v18 = vmax.f32 %v3518_v44, %v3519_v48 }
 0x210   : > { %4124 = vst.msk [vmem:[%s5663_s19 + $0x18] sm:$0xf] %vm3543_vm2, %v3578_v30  ;;  %v3587_v23 = vmax.f32 %v3516_v36, %v3517_v39 }
 0x211   : > { %v3594_v56 = vadd.f32 %v5655_v27, %v3593_v18 }
 0x212   : > { %v3588_v54 = vadd.f32 %v5655_v27, %v3587_v23  ;;  %v4399_v62 = vpop.f32.mrb[20].mxu0  ;;  %v4433_v37 = vpop.f32.mrb[20].mxu1 }
 0x213   : > { %v3595_v49 = vmax.f32 %v3594_v56, 0.0  ;;  %v3522_v63 = vmax.f32 %v4399_v62, %v4433_v37  ;;  %v3219_v0 = vpop.f32.mrb[21].mxu0  ;;  %v3421_v5 = vpop.f32.mrb[21].mxu1 }
 0x214   : > { %v3589_v6 = vmax.f32 %v3588_v54, 0.0  ;;  %v3520_v15 = vmax.f32 %v3219_v0, %v3421_v5  ;;  %v4400_v9 = vpop.f32.mrb[22].mxu0  ;;  %v4434_v52 = vpop.f32.mrb[22].mxu1 }
 0x215   : > { %v3596_v11 = vpack.c.bf16 %v3595_v49, %v3595_v49  ;;  %v3523_v35 = vmax.f32 %v4400_v9, %v4434_v52  ;;  %v3222_v43 = vpop.f32.mrb[23].mxu0  ;;  %v3424_v17 = vpop.f32.mrb[23].mxu1 }
 0x216   : > { %v3590_v19 = vpack.c.bf16 %v3589_v6, %v3589_v6  ;;  %v3521_v22 = vmax.f32 %v3222_v43, %v3424_v17 }
 0x217   : > { %4127 = vst.msk [vmem:[%s5663_s19 + $0x24] sm:$0xf] %vm3543_vm2, %v3596_v11  ;;  %v3605_v1 = vmax.f32 %v3522_v63, %v3523_v35 }
 0x218   : > { %4126 = vst.msk [vmem:[%s5663_s19 + $0x20] sm:$0xf] %vm3543_vm2, %v3590_v19  ;;  %v3599_v10 = vmax.f32 %v3520_v15, %v3521_v22 }
 0x219   : > { %v3606_v24 = vadd.f32 %v5655_v27, %v3605_v1 }
 0x21a   : > { %v3600_v25 = vadd.f32 %v5655_v27, %v3599_v10  ;;  %v4403_v57 = vpop.f32.mrb[24].mxu0  ;;  %v4437_v26 = vpop.f32.mrb[24].mxu1 }
 0x21b   : > { %v3607_v38 = vmax.f32 %v3606_v24, 0.0  ;;  %v3526_v58 = vmax.f32 %v4403_v57, %v4437_v26  ;;  %v3235_v3 = vpop.f32.mrb[25].mxu0  ;;  %v3437_v7 = vpop.f32.mrb[25].mxu1 }
 0x21c   : > { %v3601_v2 = vmax.f32 %v3600_v25, 0.0  ;;  %v3524_v12 = vmax.f32 %v3235_v3, %v3437_v7  ;;  %v4404_v20 = vpop.f32.mrb[26].mxu0  ;;  %v4438_v21 = vpop.f32.mrb[26].mxu1 }
 0x21d   : > { %v3608_v41 = vpack.c.bf16 %v3607_v38, %v3607_v38  ;;  %v3527_v53 = vmax.f32 %v4404_v20, %v4438_v21  ;;  %v3238_v4 = vpop.f32.mrb[27].mxu0  ;;  %v3440_v14 = vpop.f32.mrb[27].mxu1 }
 0x21e   : > { %v3602_v28 = vpack.c.bf16 %v3601_v2, %v3601_v2  ;;  %v3525_v60 = vmax.f32 %v3238_v4, %v3440_v14 }
 0x21f   : > { %4129 = vst.msk [vmem:[%s5663_s19 + $0x2c] sm:$0xf] %vm3543_vm2, %v3608_v41  ;;  %v3617_v29 = vmax.f32 %v3526_v58, %v3527_v53 }
 0x220   : > { %4128 = vst.msk [vmem:[%s5663_s19 + $0x28] sm:$0xf] %vm3543_vm2, %v3602_v28  ;;  %v3611_v32 = vmax.f32 %v3524_v12, %v3525_v60 }
 0x221   : > { %v3618_v40 = vadd.f32 %v5655_v27, %v3617_v29 }
 0x222   : > { %v3612_v50 = vadd.f32 %v5655_v27, %v3611_v32  ;;  %v4407_v16 = vpop.f32.mrb[28].mxu0  ;;  %v4441_v34 = vpop.f32.mrb[28].mxu1 }
 0x223   : > { %v3619_v33 = vmax.f32 %v3618_v40, 0.0  ;;  %v3530_v42 = vmax.f32 %v4407_v16, %v4441_v34  ;;  %v3251_v8 = vpop.f32.mrb[29].mxu0  ;;  %v3453_v13 = vpop.f32.mrb[29].mxu1 }
 0x224   : > { %v3613_v44 = vmax.f32 %v3612_v50, 0.0  ;;  %v3528_v45 = vmax.f32 %v3251_v8, %v3453_v13  ;;  %v4408_v46 = vpop.f32.mrb[30].mxu0  ;;  %v4442_v31 = vpop.f32.mrb[30].mxu1 }
 0x225   : > { %v3620_v36 = vpack.c.bf16 %v3619_v33, %v3619_v33  ;;  %v3531_v55 = vmax.f32 %v4408_v46, %v4442_v31  ;;  %v3254_v47 = vpop.f32.mrb[31].mxu0  ;;  %v3456_v59 = vpop.f32.mrb[31].mxu1 }
 0x226   : > { %v3614_v48 = vpack.c.bf16 %v3613_v44, %v3613_v44  ;;  %v3529_v61 = vmax.f32 %v3254_v47, %v3456_v59 }
 0x227   : > { %4131 = vst.msk [vmem:[%s5663_s19 + $0x34] sm:$0xf] %vm3543_vm2, %v3620_v36  ;;  %v3629_v51 = vmax.f32 %v3530_v42, %v3531_v55 }
 0x228   : > { %4130 = vst.msk [vmem:[%s5663_s19 + $0x30] sm:$0xf] %vm3543_vm2, %v3614_v48  ;;  %v3623_v30 = vmax.f32 %v3528_v45, %v3529_v61 }
 0x229   : > { %v3630_v39 = vadd.f32 %v5655_v27, %v3629_v51 }
 0x22a   : > { %v3624_v18 = vadd.f32 %v5655_v27, %v3623_v30 }
 0x22b   : > { %v3631_v23 = vmax.f32 %v3630_v39, 0.0 }
 0x22c   : > { %v3625_v56 = vmax.f32 %v3624_v18, 0.0 }
 0x22d   : > { %v3632_v54 = vpack.c.bf16 %v3631_v23, %v3631_v23 }
 0x22e   : > { %v3626_v62 = vpack.c.bf16 %v3625_v56, %v3625_v56 }
 0x22f   : > { %4133 = vst.msk [vmem:[%s5663_s19 + $0x3c] sm:$0xf] %vm3543_vm2, %v3632_v54 }
 0x230   : > { %4132 = vst.msk [vmem:[%s5663_s19 + $0x38] sm:$0xf] %vm3543_vm2, %v3626_v62 }
 0x231 PF: > { %s13_s14 = sadd.s32 1, %s4789_s14   ;;  %s5724_s12 = smov %s4785_s13 }
 0x232   : > { %p10_p5 = scmp.ge.s32.totalorder %s13_s14, 4   ;;  %s5725_s13 = smov %s5727_s15 }
 0x234   :  { %12 = sbr.rel (!%p10_p5) target bundleno = 2 (0x2), region = 85 }

// kernel: vgg_feature_extractor.14
= control target key start
LH: loop header
LB: loop body
LE: loop exit
PB: predicated region body
PF: predicated region fallthrough
CT: control target
= control target key end

     0   :  { %s435_s12 = smov 0   ;;  %s437_s13 = smov 0   ;;  %s474_s0 = inlined_call_operand.vmem [shape: bf16[2,4,4,32], index: 0, kind: input, shape index: {}]   ;;  %s475_s1 = inlined_call_operand.vmem [shape: f32[1,32], index: 1, kind: input, shape index: {}]   ;;  %s476_s2 = inlined_call_operand.vmem [shape: f32[1,32], index: 2, kind: input, shape index: {}]   ;;  %s477_s3 = inlined_call_operand.vmem [shape: bf16[2,4,4,32], index: 3, kind: output, shape index: {}]  }
   0x1   :  { %s439_s14 = smov 0  }
   0x2 LB: > { %s25_s15 = sadd.s32 1, %s409_s13  ;;  %p350_p0 = scmp.ge.s32.totalorder %s413_s14, 1  ;;  %s413_s14 = sphi %s439_s14, %s13_s14   ;;  %s409_s13 = sphi %s437_s13, %s479_s13   ;;  %s405_s12 = sphi %s435_s12, %s478_s12  }
   0x3   : > { %p27_p1 = scmp.ge.s32.totalorder %s25_s15, 2  ;;  %p158_p2 = scmp.lt.s32.totalorder %s413_s14, 3 }
   0x5   : > { %s481_s15 = smov (%p27_p1, %s25_s15), 0  ;;  %p159_p3 = pnand %p350_p0, %p158_p2 }
   0x6   : > { %p191_p4 = scmp.lt.s32.totalorder (!%p159_p3), %s405_s12, 1  ;;  %v355_v0 = vld [vmem:[%s475_s1] ss:$0 sm:$0xff] (!%p159_p3)  ;;  %vm230_vm0 = vcmask (!%p159_p3), 254976  }
   0x7   : > { %162 = sbr.rel (%p159_p3) target bundleno = 30 (0x1e), region = 32  ;;  %v356_v8 = vld [vmem:[%s476_s2] ss:$0 sm:$0xff] (!%p159_p3) }
   0xe   : > { %s483_s12 = smov (!%p191_p4, %s405_s12), 1 }
   0xf   : > { %s365_s16 = sshll.u32 %s483_s12, 3 }
  0x10   : > { %s198_s19 = scalar_lea.vmem %s474_s0, %s365_s16  ;;  %s208_s26 = scalar_lea.vmem %s477_s3, %s365_s16 }
  0x11   : > { %v212_v1 = vld [vmem:[%s198_s19] sm:$0x3]  ;;  %v357_v2 = vld [vmem:[%s198_s19 + $0x2] sm:$0x3]  ;;  %v359_v3 = vld [vmem:[%s198_s19 + $0x4] sm:$0x3] }
  0x12   : > { %v213_v4 = vunpack.c.l.bf16 %v212_v1  ;;  %v234_v5 = vunpack.c.l.bf16 %v357_v2  ;;  %v243_v6 = vunpack.c.l.bf16 %v359_v3  ;;  %v361_v7 = vld [vmem:[%s198_s19 + $0x6] sm:$0x3] }
  0x13   : > { %v252_v9 = vunpack.c.l.bf16 %v361_v7 }
  0x14   : > { %v220_v10 = vmul.f32 %v355_v0, %v213_v4  ;;  %v235_v11 = vmul.f32 %v355_v0, %v234_v5  ;;  %v244_v12 = vmul.f32 %v355_v0, %v243_v6 }
  0x15   : > { %v253_v13 = vmul.f32 %v355_v0, %v252_v9 }
  0x16   : > { %v227_v14 = vadd.f32 %v356_v8, %v220_v10  ;;  %v236_v15 = vadd.f32 %v356_v8, %v235_v11  ;;  %v245_v16 = vadd.f32 %v356_v8, %v244_v12 }
  0x17   : > { %v254_v17 = vadd.f32 %v356_v8, %v253_v13 }
  0x18   : > { %v228_v18 = vmax.f32 %v227_v14, 0.0  ;;  %v237_v19 = vmax.f32 %v236_v15, 0.0  ;;  %v246_v20 = vmax.f32 %v245_v16, 0.0 }
  0x19   : > { %v255_v21 = vmax.f32 %v254_v17, 0.0 }
  0x1a   : > { %v229_v22 = vpack.c.bf16 %v228_v18, %v228_v18  ;;  %v238_v23 = vpack.c.bf16 %v237_v19, %v237_v19  ;;  %v247_v24 = vpack.c.bf16 %v246_v20, %v246_v20 }
  0x1b   : > { %v256_v25 = vpack.c.bf16 %v255_v21, %v255_v21 }
  0x1c   : > { %231 = vst.msk [vmem:[%s208_s26] sm:$0x3] %vm230_vm0, %v229_v22  ;;  %358 = vst.msk [vmem:[%s208_s26 + $0x2] sm:$0x3] %vm230_vm0, %v238_v23 }
  0x1d   : > { %360 = vst.msk [vmem:[%s208_s26 + $0x4] sm:$0x3] %vm230_vm0, %v247_v24  ;;  %362 = vst.msk [vmem:[%s208_s26 + $0x6] sm:$0x3] %vm230_vm0, %v256_v25 }
  0x1e PF: > { %s13_s14 = sadd.s32 1, %s413_s14   ;;  %s478_s12 = smov %s409_s13 }
  0x1f   : > { %p10_p5 = scmp.ge.s32.totalorder %s13_s14, 4   ;;  %s479_s13 = smov %s481_s15 }
  0x21   :  { %12 = sbr.rel (!%p10_p5) target bundleno = 2 (0x2), region = 68 }

// kernel: vgg_feature_extractor.13
= control target key start
LH: loop header
LB: loop body
LE: loop exit
PB: predicated region body
PF: predicated region fallthrough
CT: control target
= control target key end

     0   :  { %s1141_s12 = smov 0   ;;  %s1143_s13 = smov 0   ;;  %s1392_s0 = inlined_call_operand.vmem [shape: bf16[2,6,6,16], index: 0, kind: input, shape index: {}]   ;;  %s1393_s1 = inlined_call_operand.vmem [shape: bf16[3,1,48,32], index: 1, kind: input, shape index: {}]   ;;  %s1394_s2 = inlined_call_operand.vmem [shape: bf16[2,4,4,32], index: 2, kind: output, shape index: {0}]   ;;  %s1395_s3 = inlined_call_operand.vmem [shape: f32[2,1,2,32], index: 3, kind: output, shape index: {1}]  }
   0x1   :  { %s1145_s14 = smov 0  }
   0x2 LB: > { %s26_s15 = sadd.s32 1, %s1110_s13  ;;  %p938_p0 = scmp.ge.s32.totalorder %s1114_s14, 1  ;;  %s1114_s14 = sphi %s1145_s14, %s14_s14   ;;  %s1110_s13 = sphi %s1143_s13, %s1397_s13   ;;  %s1106_s12 = sphi %s1141_s12, %s1396_s12  }
   0x3   : > { %p28_p1 = scmp.ge.s32.totalorder %s26_s15, 2  ;;  %p156_p2 = scmp.lt.s32.totalorder %s1114_s14, 3 }
   0x5   : > { %s1399_s15 = smov (%p28_p1, %s26_s15), 0  ;;  %p157_p3 = pnand %p938_p0, %p156_p2 }
   0x6   : > { %p191_p4 = scmp.lt.s32.totalorder (!%p157_p3), %s1106_s12, 1  ;;  %v1083_v0 = vld [vmem:[%s1393_s1] sm:$0xff] (!%p157_p3)   ;;  %v1116_v4 = vmov (!%p157_p3), 0.0   ;;  %s1117_s22 = smov (!%p157_p3), 32   ;;  %v1084_v28 = vld [vmem:[%s1393_s1 + $0x8] sm:$0xff] (!%p157_p3)   ;;  %v1085_v35 = vld [vmem:[%s1393_s1 + $0x10] sm:$0xff] (!%p157_p3)  }
   0x7   : > { %160 = sbr.rel (%p157_p3) target bundleno = 423 (0x1a7), region = 28  ;;  %1015 = vmatprep.subr.bf16.mxu0 (!%p157_p3), %v1116_v4  ;;  %1005 = vmatprep.subr.bf16.mxu1 (!%p157_p3), %v1116_v4  ;;  %s1118_s27 = smov (!%p157_p3), 16   ;;  %vm1119_vm0 = vmmov (!%p157_p3), 0   ;;  %vm281_vm1 = vcmask (!%p157_p3), 130048   ;;  %vm294_vm2 = vcmask (!%p157_p3), 261120   ;;  %vm442_vm3 = vcmask (!%p157_p3), 392192  }
   0x8   : > { %1016 = vmatpush3.bf16.msra.mxu0 (!%p157_p3), %v1083_v0  ;;  %1021 = vmatprep.mubr.msk.bf16.mxu0 (!%p157_p3), %vm1119_vm0, %v1116_v4  ;;  %vm750_vm4 = vcmask (!%p157_p3), 254976   ;;  %vm788_vm5 = vcmask (!%p157_p3), 253952  }
   0x9   : > { %1017 = vmatprep.subr.bf16.mxu0 (!%p157_p3), %v1116_v4  ;;  %1011 = vmatprep.mubr.msk.bf16.mxu1 (!%p157_p3), %vm1119_vm0, %v1116_v4 }
   0xc   : > { %1018 = vmatpush3.bf16.msra.mxu0 (!%p157_p3), %v1084_v28 }
   0xd   : > { %1019 = vmatprep.subr.bf16.mxu0 (!%p157_p3), %v1116_v4 }
   0xe   : > { %s1401_s12 = smov (!%p191_p4, %s1106_s12), 1 }
   0xf   : > { %s1041_s16 = smul.u32 24, %s1401_s12  ;;  %s992_s17 = sshll.u32 %s1401_s12, 3 }
  0x10   : > { %1020 = vmatpush3.bf16.msra.mxu0 %v1085_v35  ;;  %s204_s20 = scalar_lea.vmem %s1394_s2, %s992_s17  ;;  %s942_s21 = sshll.u32 %s1401_s12, 1 }
  0x11   : > { %s1165_s19 = scalar_lea.vmem %s1392_s0, %s1041_s16  ;;  %1025 = vmatprep.subr.bf16.mxu0 %v1116_v4  ;;  %s212_s24 = scalar_lea.vmem %s1395_s3, %s942_s21 }
  0x12   : > { %v1171_v1 = vld [vmem:[%s1165_s19 + $0x4] sm:$0x7]  ;;  %v1174_v2 = vld [vmem:[%s1165_s19] sm:$0x7]  ;;  %v1177_v3 = vld [vmem:[%s1165_s19 + $0xc] sm:$0x7] }
  0x13   : > { %v944_v5 = vcombine.low %v1171_v1, %v1171_v1  ;;  %v943_v6 = vcombine.low %v1174_v2, %v1174_v2  ;;  %v946_v7 = vcombine.low %v1177_v3, %v1177_v3  ;;  %v1188_v8 = vld [vmem:[%s1165_s19 + $0x8] sm:$0x7]  ;;  %v1194_v10 = vld [vmem:[%s1165_s19 + $0x4] sm:$0x7]  ;;  %v1210_v24 = vld [vmem:[%s1165_s19 + $0x10] sm:$0x7] }
  0x14   : > { %v1191_v9 = vld [vmem:[%s1165_s19 + $0x8] sm:$0x7]  ;;  %v945_v11 = vcombine.low %v1188_v8, %v1188_v8  ;;  %v1205_v15 = vcombine.low %v1194_v10, %v1194_v10  ;;  %v1213_v27 = vld [vmem:[%s1165_s19 + $0xc] sm:$0x7]  ;;  %v1222_v34 = vcombine.low %v1210_v24, %v1210_v24  ;;  %v1253_v52 = vld [vmem:[%s1165_s19 + $0x14] sm:$0x7] }
  0x15   : > { %v270_v12 = vrot.slane %v944_v5, 1  ;;  %v269_v13 = vrot.slane %v943_v6, 1  ;;  %v1201_v14 = vcombine.low %v1191_v9, %v1191_v9  ;;  %v272_v16 = vrot.slane %v946_v7, 1  ;;  %v1234_v40 = vld [vmem:[%s1165_s19 + $0xc] sm:$0x7] }
  0x16   : > { %v250_v17 = vshll.u32 %v945_v11, 16  ;;  %v234_v18 = vshrl.u32 %v943_v6, 16  ;;  %v236_v19 = vshll.u32 %v943_v6, 16  ;;  %v271_v20 = vrot.slane %v945_v11, 1  ;;  %v1237_v41 = vld [vmem:[%s1165_s19 + $0x8] sm:$0x7] }
  0x17   : > { %275 = vrot.lane.b32.xlu1 %v270_v12, %s1117_s22  ;;  %273 = vrot.lane.b32.xlu0 %v269_v13, %s1117_s22  ;;  %v248_v21 = vshrl.u32 %v945_v11, 16  ;;  %v257_v22 = vshll.u32 %v946_v7, 16  ;;  %v243_v23 = vshll.u32 %v944_v5, 16  ;;  %v255_v29 = vshrl.u32 %v946_v7, 16  ;;  %v1256_v53 = vld [vmem:[%s1165_s19 + $0x10] sm:$0x7] }
  0x18   : > { %v252_v25 = vrot.slane %v250_v17, 1  ;;  %v238_v26 = vrot.slane %v236_v19, 1  ;;  %v241_v31 = vshrl.u32 %v944_v5, 16  ;;  %v338_v32 = vshll.u32 %v1201_v14, 16  ;;  %v1086_v17 = vld [vmem:[%s1393_s1 + $0x18] sm:$0xff]  }
  0x19   : > { %v259_v30 = vrot.slane %v257_v22, 1  ;;  %v331_v33 = vshll.u32 %v1205_v15, 16  ;;  %v245_v38 = vrot.slane %v243_v23, 1  ;;  %v1231_v39 = vcombine.low %v1213_v27, %v1213_v27  ;;  %1006 = vmatpush3.bf16.msra.mxu1 %v1086_v17 }
  0x1a   : > { %v253_v36 = vor.u32 %v252_v25, %v248_v21  ;;  %v239_v37 = vor.u32 %v238_v26, %v234_v18  ;;  %v336_v42 = vshrl.u32 %v1201_v14, 16  ;;  %v340_v43 = vrot.slane %v338_v32, 1  ;;  %1007 = vmatprep.subr.bf16.mxu1 %v1116_v4  ;;  %v1087_v25 = vld [vmem:[%s1393_s1 + $0x20] sm:$0xff]  }
  0x1b   : > { %279 = vrot.lane.b32.xlu1 %v272_v16, %s1117_s22  ;;  %277 = vrot.lane.b32.xlu0 %v271_v20, %s1117_s22  ;;  %v329_v44 = vshrl.u32 %v1205_v15, 16  ;;  %v333_v45 = vrot.slane %v331_v33, 1  ;;  %v352_v46 = vshll.u32 %v1222_v34, 16  ;;  %v1245_v47 = vcombine.low %v1234_v40, %v1234_v40 }
  0x1c   : > { %v260_v48 = vor.u32 %v259_v30, %v255_v29  ;;  %v246_v49 = vor.u32 %v245_v38, %v241_v31  ;;  %v345_v50 = vshll.u32 %v1231_v39, 16  ;;  %v973_v51 = vcombine.low %v1237_v41, %v1237_v41  ;;  %v1089_v29 = vld [vmem:[%s1393_s1 + $0x28] sm:$0xff]  }
  0x1d   : > { %v341_v54 = vor.u32 %v340_v43, %v336_v42  ;;  %v350_v55 = vshrl.u32 %v1222_v34, 16  ;;  %v334_v56 = vor.u32 %v333_v45, %v329_v44  ;;  %v354_v57 = vrot.slane %v352_v46, 1  ;;  %1008 = vmatpush3.bf16.msra.mxu1 %v1087_v25 }
  0x1e   : > { %v343_v58 = vshrl.u32 %v1231_v39, 16  ;;  %v599_v59 = vshll.u32 %v1245_v47, 16  ;;  %v347_v60 = vrot.slane %v345_v50, 1  ;;  %v592_v61 = vshll.u32 %v973_v51, 16  ;;  %1009 = vmatprep.subr.bf16.mxu1 %v1116_v4 }
  0x1f   : > { %265 = vrot.lane.b32.xlu1 %v253_v36, %s1118_s27  ;;  %261 = vrot.lane.b32.xlu0 %v239_v37, %s1118_s27  ;;  %v976_v62 = vcombine.low %v1253_v52, %v1253_v52  ;;  %v975_v63 = vcombine.low %v1256_v53, %v1256_v53  ;;  %v597_v0 = vshrl.u32 %v1245_v47, 16  ;;  %v355_v5 = vor.u32 %v354_v57, %v350_v55 }
  0x20   : > { %v601_v6 = vrot.slane %v599_v59, 1  ;;  %v590_v7 = vshrl.u32 %v973_v51, 16  ;;  %v348_v11 = vor.u32 %v347_v60, %v343_v58  ;;  %v594_v12 = vrot.slane %v592_v61, 1 }
  0x21   : > { %v613_v13 = vshll.u32 %v976_v62, 16  ;;  %v606_v16 = vshll.u32 %v975_v63, 16  ;;  %v611_v18 = vshrl.u32 %v976_v62, 16  ;;  %v604_v19 = vshrl.u32 %v975_v63, 16  ;;  %1010 = vmatpush3.bf16.msra.mxu1 %v1089_v29 }
  0x22   : > { %v602_v20 = vor.u32 %v601_v6, %v597_v0  ;;  %v595_v21 = vor.u32 %v594_v12, %v590_v7  ;;  %v365_v30 = vrot.slane %v1201_v14, 1  ;;  %v364_v31 = vrot.slane %v1205_v15, 1 }
  0x23   : > { %267 = vrot.lane.b32.xlu1 %v260_v48, %s1118_s27  ;;  %263 = vrot.lane.b32.xlu0 %v246_v49, %s1118_s27  ;;  %v615_v22 = vrot.slane %v613_v13, 1  ;;  %v608_v23 = vrot.slane %v606_v16, 1  ;;  %v367_v32 = vrot.slane %v1222_v34, 1  ;;  %v366_v33 = vrot.slane %v1231_v39, 1  ;;  %v1091_v16 = vld [vmem:[%s1393_s1 + $0x40] sm:$0xff]  }
  0x24   : > { %v626_v35 = vrot.slane %v1245_v47, 1  ;;  %v625_v36 = vrot.slane %v973_v51, 1  ;;  %v628_v14 = vrot.slane %v976_v62, 1  ;;  %v627_v15 = vrot.slane %v975_v63, 1 }
  0x25   : > { %v616_v26 = vor.u32 %v615_v22, %v611_v18  ;;  %v609_v28 = vor.u32 %v608_v23, %v604_v19  ;;  %v1120_v42 = vmov 1983009808   ;;  %v412_v44 = vlaneseq }
  0x26   : > { %v410_v43 = vunpack.c.l.s4 %v1120_v42 }
  0x27   : > { %358 = vrot.lane.b32.xlu1 %v341_v54, %s1118_s27  ;;  %356 = vrot.lane.b32.xlu0 %v334_v56, %s1118_s27  ;;  %v413_v48 = vshrl.u32 %v412_v44, 7 }
  0x28   : > { %v411_v47 = vunpack.c.0.s8 %v410_v43 }
  0x2a   : > { %v1309_v55 = vsub.s32 %v411_v47, %v413_v48 }
  0x2b   : > { %362 = vrot.lane.b32.xlu1 %v355_v5, %s1118_s27  ;;  %360 = vrot.lane.b32.xlu0 %v348_v11, %s1118_s27  ;;  %v1090_v11 = vld [vmem:[%s1393_s1 + $0x38] sm:$0xff]  }
  0x2f   : > { %619 = vrot.lane.b32.xlu1 %v602_v20, %s1118_s27  ;;  %617 = vrot.lane.b32.xlu0 %v595_v21, %s1118_s27 }
  0x33   : > { %623 = vrot.lane.b32.xlu1 %v616_v26, %s1118_s27  ;;  %621 = vrot.lane.b32.xlu0 %v609_v28, %s1118_s27 }
  0x37   : > { %370 = vrot.lane.b32.xlu1 %v365_v30, %s1117_s22  ;;  %368 = vrot.lane.b32.xlu0 %v364_v31, %s1117_s22 }
  0x3b   : > { %374 = vrot.lane.b32.xlu1 %v367_v32, %s1117_s22  ;;  %372 = vrot.lane.b32.xlu0 %v366_v33, %s1117_s22 }
  0x3f   : > { %631 = vrot.lane.b32.xlu1 %v626_v35, %s1117_s22  ;;  %629 = vrot.lane.b32.xlu0 %v625_v36, %s1117_s22 }
  0x43   : > { %635 = vrot.lane.b32.xlu1 %v628_v14, %s1117_s22  ;;  %633 = vrot.lane.b32.xlu0 %v627_v15, %s1117_s22 }
  0x89   : > { %v276_v34 = vpop.permute.xlu1 %275  ;;  %v274_v37 = vpop.permute.xlu0 %273 }
  0x8d   : > { %v280_v38 = vpop.permute.xlu1 %279  ;;  %v278_v39 = vpop.permute.xlu0 %277 }
  0x91   : > { %v266_v45 = vpop.permute.xlu1 %265  ;;  %v262_v46 = vpop.permute.xlu0 %261 }
  0x92   : > { %v290_v49 = vsel %vm281_vm1, %v1188_v8, %v266_v45  ;;  %v284_v50 = vsel %vm281_vm1, %v1174_v2, %v262_v46 }
  0x93   : > { %v300_v58 = vsel %vm294_vm2, %v290_v49, %v278_v39  ;;  %v296_v59 = vsel %vm294_vm2, %v284_v50, %v274_v37 }
  0x95   : > { %v268_v51 = vpop.permute.xlu1 %267  ;;  %v264_v54 = vpop.permute.xlu0 %263 }
  0x96   : > { %v293_v56 = vsel %vm281_vm1, %v1177_v3, %v268_v51  ;;  %v287_v57 = vsel %vm281_vm1, %v1171_v1, %v264_v54  ;;  %v1088_v1 = vld [vmem:[%s1393_s1 + $0x30] sm:$0xff]  }
  0x97   : > { %v302_v60 = vsel %vm294_vm2, %v293_v56, %v280_v38  ;;  %v298_v8 = vsel %vm294_vm2, %v287_v57, %v276_v34 }
  0x98   : > { %v492_v61 = vcombine.low %v300_v58, %v302_v60  ;;  %v491_v2 = vcombine.low %v296_v59, %v298_v8 }
  0x99   : > { %v359_v62 = vpop.permute.xlu1 %358  ;;  %v357_v63 = vpop.permute.xlu0 %356 }
  0x9a   : > { %v506_v0 = vrot.slane %v492_v61, %v1309_v55  ;;  %v499_v5 = vrot.slane %v491_v2, %v1309_v55  ;;  %v381_v19 = vsel %vm281_vm1, %v1191_v9, %v359_v62  ;;  %v378_v20 = vsel %vm281_vm1, %v1194_v10, %v357_v63 }
  0x9c   : > { %v507_v3 = vcombine.low %v499_v5, %v506_v0 }
  0x9d   : > { %v363_v6 = vpop.permute.xlu1 %362  ;;  %v361_v7 = vpop.permute.xlu0 %360 }
  0x9e   : > { %1022 = vmatmul.mubr.msk.bf16.vlgmr.msra.gmra.mrb[0].mxu0 %vm442_vm3, %v507_v3  ;;  %v387_v26 = vsel %vm281_vm1, %v1210_v24, %v363_v6 }
  0x9f   : > { %1026 = vmatpush3.bf16.msra.mxu0 %v1088_v1  ;;  %1031 = vmatprep.mubr.msk.bf16.mxu0 %vm1119_vm0, %v1116_v4 }
  0xa0   : > { %1027 = vmatprep.subr.bf16.mxu0 %v1116_v4 }
  0xa1   : > { %v620_v12 = vpop.permute.xlu1 %619  ;;  %v618_v13 = vpop.permute.xlu0 %617 }
  0xa2   : > { %v642_v32 = vsel %vm281_vm1, %v1234_v40, %v620_v12  ;;  %v639_v33 = vsel %vm281_vm1, %v1237_v41, %v618_v13 }
  0xa3   : > { %1028 = vmatpush3.bf16.msra.mxu0 %v1090_v11 }
  0xa4   : > { %1029 = vmatprep.subr.bf16.mxu0 %v1116_v4  ;;  %v384_v4 = vsel %vm281_vm1, %v1213_v27, %v361_v7 }
  0xa5   : > { %v624_v17 = vpop.permute.xlu1 %623  ;;  %v622_v18 = vpop.permute.xlu0 %621 }
  0xa6   : > { %v648_v37 = vsel %vm281_vm1, %v1253_v52, %v624_v17  ;;  %v645_v40 = vsel %vm281_vm1, %v1256_v53, %v622_v18 }
  0xa7   : > { %1030 = vmatpush3.bf16.msra.mxu0 %v1091_v16 }
  0xa9   : > { %v371_v21 = vpop.permute.xlu1 %370  ;;  %v369_v22 = vpop.permute.xlu0 %368 }
  0xaa   : > { %v391_v23 = vsel %vm294_vm2, %v381_v19, %v371_v21  ;;  %v389_v25 = vsel %vm294_vm2, %v378_v20, %v369_v22 }
  0xab   : > { %v407_v28 = vcombine.low %v389_v25, %v391_v23 }
  0xad   : > { %v375_v29 = vpop.permute.xlu1 %374  ;;  %v373_v30 = vpop.permute.xlu0 %372  ;;  %v415_v35 = vrot.slane %v407_v28, %v1309_v55 }
  0xae   : > { %v395_v9 = vsel %vm294_vm2, %v387_v26, %v375_v29  ;;  %v393_v31 = vsel %vm294_vm2, %v384_v4, %v373_v30 }
  0xaf   : > { %v408_v10 = vcombine.low %v393_v31, %v395_v9 }
  0xb1   : > { %v422_v24 = vrot.slane %v408_v10, %v1309_v55  ;;  %v632_v36 = vpop.permute.xlu1 %631  ;;  %v630_v27 = vpop.permute.xlu0 %629 }
  0xb2   : > { %v652_v14 = vsel %vm294_vm2, %v642_v32, %v632_v36  ;;  %v650_v15 = vsel %vm294_vm2, %v639_v33, %v630_v27 }
  0xb3   : > { %v423_v34 = vcombine.low %v415_v35, %v422_v24  ;;  %v668_v38 = vcombine.low %v650_v15, %v652_v14 }
  0xb5   : > { %v636_v41 = vpop.permute.xlu1 %635  ;;  %1012 = vmatmul.mubr.msk.bf16.vlgmr.msra.gmra.mrb[0].mxu1 %vm442_vm3, %v423_v34  ;;  %v634_v39 = vpop.permute.xlu0 %633  ;;  %v676_v45 = vrot.slane %v668_v38, %v1309_v55 }
  0xb6   : > { %v656_v42 = vsel %vm294_vm2, %v648_v37, %v636_v41  ;;  %v654_v43 = vsel %vm294_vm2, %v645_v40, %v634_v39 }
  0xb7   : > { %v669_v44 = vcombine.low %v654_v43, %v656_v42 }
  0xb9   : > { %v683_v46 = vrot.slane %v669_v44, %v1309_v55 }
  0xbb   : > { %v684_v47 = vcombine.low %v676_v45, %v683_v46 }
  0xbd   : > { %1032 = vmatmul.mubr.msk.bf16.vlgmr.msra.gmra.mrb[0].mxu0 %vm442_vm3, %v684_v47 }
 0x188   : > { %v480_v52 = vpop.f32.mrb[0].mxu1 }
 0x189   : > { %v1013_v53 = vpop.f32.mrb[1].mxu1 }
 0x18a   : > { %v483_v48 = vpop.f32.mrb[2].mxu1 }
 0x18b   : > { %v1014_v49 = vpop.f32.mrb[3].mxu1 }
 0x190   : > { %v740_v50 = vpop.f32.mrb[0].mxu0 }
 0x191   : > { %v1035_v51 = vadd.f32 %v740_v50, %v480_v52  ;;  %v1033_v54 = vpop.f32.mrb[1].mxu0 }
 0x192   : > { %v743_v56 = vpop.f32.mrb[2].mxu0 }
 0x193   : > { %v749_v57 = vpack.c.bf16 %v1035_v51, %v1035_v51  ;;  %v1036_v58 = vadd.f32 %v743_v56, %v483_v48  ;;  %v1034_v59 = vpop.f32.mrb[3].mxu0  ;;  %v790_v60 = vmul.f32 %v1035_v51, %v1035_v51  ;;  %v779_v61 = vsel %vm294_vm2, %v1035_v51, 0.0 }
 0x195   : > { %751 = vst.msk [vmem:[%s204_s20] sm:$0x3] %vm750_vm4, %v749_v57  ;;  %v759_v8 = vrot.slane %v749_v57, %v1309_v55  ;;  %v764_v2 = vpack.c.bf16 %v1036_v58, %v1036_v58  ;;  %v780_v62 = vsel %vm294_vm2, %v1036_v58, 0.0  ;;  %v791_v0 = vmul.f32 %v1036_v58, %v1036_v58 }
 0x196   : > { %v781_v63 = vadd.f32 %v780_v62, %v779_v61  ;;  %v792_v3 = vsel %vm294_vm2, %v790_v60, 0.0 }
 0x197   : > { %v760_v5 = vcombine.high %v759_v8, %v759_v8  ;;  %988 = vst.msk [vmem:[%s204_s20 + $0x4] sm:$0x3] %vm750_vm4, %v764_v2  ;;  %v774_v1 = vrot.slane %v764_v2, %v1309_v55  ;;  %v793_v7 = vsel %vm294_vm2, %v791_v0, 0.0 }
 0x198   : > { %v782_v6 = vrot.slane %v781_v63, 4  ;;  %v794_v12 = vadd.f32 %v793_v7, %v792_v3 }
 0x199   : > { %987 = vst.msk [vmem:[%s204_s20 + $0x2] sm:$0x3] %vm750_vm4, %v760_v5  ;;  %v775_v11 = vcombine.high %v774_v1, %v774_v1 }
 0x19a   : > { %v783_v13 = vadd.f32 %v782_v6, %v781_v63  ;;  %v795_v16 = vrot.slane %v794_v12, 4 }
 0x19b   : > { %989 = vst.msk [vmem:[%s204_s20 + $0x6] sm:$0x3] %vm750_vm4, %v775_v11 }
 0x19c   : > { %v784_v17 = vrot.slane %v783_v13, 2  ;;  %v796_v18 = vadd.f32 %v795_v16, %v794_v12 }
 0x19e   : > { %v785_v19 = vadd.f32 %v784_v17, %v783_v13  ;;  %v797_v20 = vrot.slane %v796_v18, 2 }
 0x1a0   : > { %v786_v21 = vrot.slane %v785_v19, 1  ;;  %v798_v55 = vadd.f32 %v797_v20, %v796_v18 }
 0x1a2   : > { %v787_v22 = vadd.f32 %v786_v21, %v785_v19  ;;  %v799_v23 = vrot.slane %v798_v55, 1 }
 0x1a4   : > { %789 = vst.msk [vmem:[%s212_s24] sm:$0x1] %vm788_vm5, %v787_v22  ;;  %v800_v25 = vadd.f32 %v799_v23, %v798_v55 }
 0x1a6   : > { %801 = vst.msk [vmem:[%s212_s24 + $0x1] sm:$0x1] %vm788_vm5, %v800_v25 }
 0x1a7 PF: > { %s14_s14 = sadd.s32 1, %s1114_s14   ;;  %s1396_s12 = smov %s1110_s13 }
 0x1a8   : > { %p11_p5 = scmp.ge.s32.totalorder %s14_s14, 4   ;;  %s1397_s13 = smov %s1399_s15 }
 0x1aa   :  { %13 = sbr.rel (!%p11_p5) target bundleno = 2 (0x2), region = 78 }

// kernel: vgg_feature_extractor.16
= control target key start
LH: loop header
LB: loop body
LE: loop exit
PB: predicated region body
PF: predicated region fallthrough
CT: control target
= control target key end

     0   :  { %s429_s12 = smov 0   ;;  %s431_s13 = smov 0   ;;  %s468_s0 = inlined_call_operand.vmem [shape: bf16[2,4,4,32], index: 0, kind: input, shape index: {}]   ;;  %s469_s1 = inlined_call_operand.vmem [shape: f32[1,32], index: 1, kind: input, shape index: {}]   ;;  %s470_s2 = inlined_call_operand.vmem [shape: f32[1,32], index: 2, kind: input, shape index: {}]   ;;  %s471_s3 = inlined_call_operand.vmem [shape: bf16[2,2,4,32], index: 3, kind: output, shape index: {}]  }
   0x1   :  { %s433_s14 = smov 0  }
   0x2 LB: > { %s25_s15 = sadd.s32 1, %s403_s13  ;;  %p346_p0 = scmp.ge.s32.totalorder %s407_s14, 1  ;;  %s407_s14 = sphi %s433_s14, %s13_s14   ;;  %s403_s13 = sphi %s431_s13, %s473_s13   ;;  %s399_s12 = sphi %s429_s12, %s472_s12  }
   0x3   : > { %p27_p1 = scmp.ge.s32.totalorder %s25_s15, 2  ;;  %p158_p2 = scmp.lt.s32.totalorder %s407_s14, 3 }
   0x5   : > { %s475_s15 = smov (%p27_p1, %s25_s15), 0  ;;  %p159_p3 = pnand %p346_p0, %p158_p2 }
   0x6   : > { %p191_p4 = scmp.lt.s32.totalorder (!%p159_p3), %s399_s12, 1  ;;  %v351_v0 = vld [vmem:[%s469_s1] ss:$0 sm:$0xff] (!%p159_p3)  ;;  %vm237_vm0 = vcmask (!%p159_p3), 254976  }
   0x7   : > { %162 = sbr.rel (%p159_p3) target bundleno = 32 (0x20), region = 32  ;;  %v352_v8 = vld [vmem:[%s470_s2] ss:$0 sm:$0xff] (!%p159_p3) }
   0xe   : > { %s477_s12 = smov (!%p191_p4, %s399_s12), 1 }
   0xf   : > { %s359_s16 = sshll.u32 %s477_s12, 3  ;;  %s360_s24 = sshll.u32 %s477_s12, 2 }
  0x10   : > { %s198_s19 = scalar_lea.vmem %s468_s0, %s359_s16  ;;  %s208_s27 = scalar_lea.vmem %s471_s3, %s360_s24 }
  0x11   : > { %v212_v1 = vld [vmem:[%s198_s19] sm:$0x3]  ;;  %v353_v2 = vld [vmem:[%s198_s19 + $0x2] sm:$0x3]  ;;  %v354_v3 = vld [vmem:[%s198_s19 + $0x4] sm:$0x3] }
  0x12   : > { %v213_v4 = vunpack.c.l.bf16 %v212_v1  ;;  %v231_v5 = vunpack.c.l.bf16 %v353_v2  ;;  %v241_v6 = vunpack.c.l.bf16 %v354_v3  ;;  %v355_v7 = vld [vmem:[%s198_s19 + $0x6] sm:$0x3] }
  0x13   : > { %v247_v9 = vunpack.c.l.bf16 %v355_v7 }
  0x14   : > { %v220_v10 = vmul.f32 %v351_v0, %v213_v4  ;;  %v232_v11 = vmul.f32 %v351_v0, %v231_v5  ;;  %v242_v12 = vmul.f32 %v351_v0, %v241_v6 }
  0x15   : > { %v248_v13 = vmul.f32 %v351_v0, %v247_v9 }
  0x16   : > { %v227_v14 = vadd.f32 %v352_v8, %v220_v10  ;;  %v233_v15 = vadd.f32 %v352_v8, %v232_v11  ;;  %v243_v16 = vadd.f32 %v352_v8, %v242_v12 }
  0x17   : > { %v249_v17 = vadd.f32 %v352_v8, %v248_v13 }
  0x18   : > { %v228_v18 = vmax.f32 %v227_v14, 0.0  ;;  %v234_v19 = vmax.f32 %v233_v15, 0.0  ;;  %v244_v20 = vmax.f32 %v243_v16, 0.0 }
  0x19   : > { %v250_v21 = vmax.f32 %v249_v17, 0.0 }
  0x1a   : > { %v235_v22 = vmax.f32 %v228_v18, %v234_v19 }
  0x1b   : > { %v251_v23 = vmax.f32 %v244_v20, %v250_v21 }
  0x1c   : > { %v236_v24 = vpack.c.bf16 %v235_v22, %v235_v22 }
  0x1d   : > { %v252_v25 = vpack.c.bf16 %v251_v23, %v251_v23 }
  0x1e   : > { %238 = vst.msk [vmem:[%s208_s27] sm:$0x3] %vm237_vm0, %v236_v24 }
  0x1f   : > { %356 = vst.msk [vmem:[%s208_s27 + $0x2] sm:$0x3] %vm237_vm0, %v252_v25 }
  0x20 PF: > { %s13_s14 = sadd.s32 1, %s407_s14   ;;  %s472_s12 = smov %s403_s13 }
  0x21   : > { %p10_p5 = scmp.ge.s32.totalorder %s13_s14, 4   ;;  %s473_s13 = smov %s475_s15 }
  0x23   :  { %12 = sbr.rel (!%p10_p5) target bundleno = 2 (0x2), region = 66 }

// kernel: vgg_feature_extractor.15
= control target key start
LH: loop header
LB: loop body
LE: loop exit
PB: predicated region body
PF: predicated region fallthrough
CT: control target
= control target key end

     0   :  { %s1270_s12 = smov 0   ;;  %s1272_s13 = smov 0   ;;  %s1562_s0 = inlined_call_operand.vmem [shape: bf16[2,6,6,32], index: 0, kind: input, shape index: {}]   ;;  %s1563_s1 = inlined_call_operand.vmem [shape: bf16[3,1,96,32], index: 1, kind: input, shape index: {}]   ;;  %s1564_s2 = inlined_call_operand.vmem [shape: bf16[2,4,4,32], index: 2, kind: output, shape index: {0}]   ;;  %s1565_s3 = inlined_call_operand.vmem [shape: f32[2,1,2,32], index: 3, kind: output, shape index: {1}]  }
   0x1   :  { %s1274_s14 = smov 0  }
   0x2 LB: > { %s26_s15 = sadd.s32 1, %s1239_s13  ;;  %p1010_p0 = scmp.ge.s32.totalorder %s1243_s14, 1  ;;  %s1243_s14 = sphi %s1274_s14, %s14_s14   ;;  %s1239_s13 = sphi %s1272_s13, %s1567_s13   ;;  %s1235_s12 = sphi %s1270_s12, %s1566_s12  }
   0x3   : > { %p28_p1 = scmp.ge.s32.totalorder %s26_s15, 2  ;;  %p156_p2 = scmp.lt.s32.totalorder %s1243_s14, 3 }
   0x5   : > { %s1569_s15 = smov (%p28_p1, %s26_s15), 0  ;;  %p157_p3 = pnand %p1010_p0, %p156_p2 }
   0x6   : > { %p191_p4 = scmp.lt.s32.totalorder (!%p157_p3), %s1235_s12, 1  ;;  %v1203_v0 = vld [vmem:[%s1563_s1] sm:$0xff] (!%p157_p3)   ;;  %v1245_v1 = vmov (!%p157_p3), 0.0   ;;  %v1204_v2 = vld [vmem:[%s1563_s1 + $0x8] sm:$0xff] (!%p157_p3)   ;;  %v1205_v3 = vld [vmem:[%s1563_s1 + $0x10] sm:$0xff] (!%p157_p3)   ;;  %s1246_s28 = smov (!%p157_p3), 64  }
   0x7   : > { %160 = sbr.rel (%p157_p3) target bundleno = 423 (0x1a7), region = 28  ;;  %1123 = vmatprep.subr.bf16.mxu0 (!%p157_p3), %v1245_v1  ;;  %1107 = vmatprep.subr.bf16.mxu1 (!%p157_p3), %v1245_v1  ;;  %v1206_v18 = vld [vmem:[%s1563_s1 + $0x18] sm:$0xff] (!%p157_p3)   ;;  %v1207_v35 = vld [vmem:[%s1563_s1 + $0x20] sm:$0xff] (!%p157_p3)   ;;  %v1209_v45 = vld [vmem:[%s1563_s1 + $0x30] sm:$0xff] (!%p157_p3)   ;;  %s1247_s8 = smov (!%p157_p3), 32   ;;  %vm1248_vm0 = vmmov (!%p157_p3), 0  }
   0x8   : > { %1124 = vmatpush3.bf16.msra.mxu0 (!%p157_p3), %v1203_v0  ;;  %v1208_v48 = vld [vmem:[%s1563_s1 + $0x28] sm:$0xff] (!%p157_p3)   ;;  %1108 = vmatpush3.bf16.msra.mxu1 (!%p157_p3), %v1209_v45  ;;  %v1210_v58 = vld [vmem:[%s1563_s1 + $0x38] sm:$0xff] (!%p157_p3)   ;;  %vm281_vm1 = vcmask (!%p157_p3), 261120   ;;  %vm294_vm2 = vcmask (!%p157_p3), 523264   ;;  %vm472_vm3 = vcmask (!%p157_p3), 785408   ;;  %vm822_vm4 = vcmask (!%p157_p3), 254976  }
   0x9   : > { %1125 = vmatprep.subr.bf16.mxu0 (!%p157_p3), %v1245_v1  ;;  %1109 = vmatprep.subr.bf16.mxu1 (!%p157_p3), %v1245_v1  ;;  %vm860_vm5 = vcmask (!%p157_p3), 253952  }
   0xa   : > { %1135 = vmatprep.mubr.msk.bf16.mxu0 (!%p157_p3), %vm1248_vm0, %v1245_v1  ;;  %1119 = vmatprep.mubr.msk.bf16.mxu1 (!%p157_p3), %vm1248_vm0, %v1245_v1 }
   0xc   : > { %1126 = vmatpush3.bf16.msra.mxu0 (!%p157_p3), %v1204_v2  ;;  %1110 = vmatpush3.bf16.msra.mxu1 (!%p157_p3), %v1210_v58 }
   0xd   : > { %1127 = vmatprep.subr.bf16.mxu0 (!%p157_p3), %v1245_v1  ;;  %1111 = vmatprep.subr.bf16.mxu1 (!%p157_p3), %v1245_v1 }
   0xe   : > { %s1571_s12 = smov (!%p191_p4, %s1235_s12), 1 }
   0xf   : > { %s1161_s20 = smul.u32 24, %s1571_s12  ;;  %s1014_s16 = sshll.u32 %s1571_s12, 1 }
  0x10   : > { %1128 = vmatpush3.bf16.msra.mxu0 %v1205_v3  ;;  %s212_s19 = scalar_lea.vmem %s1565_s3, %s1014_s16 }
  0x11   : > { %s1303_s23 = scalar_lea.vmem %s1562_s0, %s1161_s20  ;;  %1129 = vmatprep.subr.bf16.mxu0 %v1245_v1 }
  0x12   : > { %v1309_v4 = vld [vmem:[%s1303_s23 + $0x4] sm:$0x7]  ;;  %v1312_v5 = vld [vmem:[%s1303_s23] sm:$0x7]  ;;  %v1315_v6 = vld [vmem:[%s1303_s23 + $0xc] sm:$0x7] }
  0x13   : > { %v1016_v7 = vcombine.low %v1309_v4, %v1309_v4  ;;  %v1015_v8 = vcombine.low %v1312_v5, %v1312_v5  ;;  %v1018_v9 = vcombine.low %v1315_v6, %v1315_v6  ;;  %v1325_v10 = vld [vmem:[%s1303_s23 + $0x8] sm:$0x7]  ;;  %v1331_v12 = vld [vmem:[%s1303_s23 + $0x4] sm:$0x7]  ;;  %v1350_v29 = vld [vmem:[%s1303_s23 + $0x10] sm:$0x7] }
  0x14   : > { %v1328_v11 = vld [vmem:[%s1303_s23 + $0x8] sm:$0x7]  ;;  %v1017_v13 = vcombine.low %v1325_v10, %v1325_v10  ;;  %v1341_v17 = vcombine.low %v1331_v12, %v1331_v12  ;;  %v1353_v30 = vld [vmem:[%s1303_s23 + $0xc] sm:$0x7]  ;;  %1130 = vmatpush3.bf16.msra.mxu0 %v1206_v18  ;;  %v1368_v41 = vcombine.low %v1350_v29, %v1350_v29  ;;  %v1399_v56 = vld [vmem:[%s1303_s23 + $0x14] sm:$0x7] }
  0x15   : > { %v270_v14 = vrot.slane %v1016_v7, 1  ;;  %v269_v15 = vrot.slane %v1015_v8, 1  ;;  %v1337_v16 = vcombine.low %v1328_v11, %v1328_v11  ;;  %v272_v19 = vrot.slane %v1018_v9, 1  ;;  %v1357_v34 = vld [vmem:[%s1303_s23 + $0xc] sm:$0x7]  ;;  %1131 = vmatprep.subr.bf16.mxu0 %v1245_v1 }
  0x16   : > { %v248_v20 = vshrl.u32 %v1017_v13, 16  ;;  %v250_v21 = vshll.u32 %v1017_v13, 16  ;;  %v236_v22 = vshll.u32 %v1015_v8, 16  ;;  %v271_v23 = vrot.slane %v1017_v13, 1  ;;  %v1376_v44 = vld [vmem:[%s1303_s23 + $0x8] sm:$0x7] }
  0x17   : > { %275 = vrot.lane.b32.xlu1 %v270_v14, %s1246_s28  ;;  %273 = vrot.lane.b32.xlu0 %v269_v15, %s1246_s28  ;;  %v234_v24 = vshrl.u32 %v1015_v8, 16  ;;  %v257_v25 = vshll.u32 %v1018_v9, 16  ;;  %v243_v26 = vshll.u32 %v1016_v7, 16  ;;  %v255_v31 = vshrl.u32 %v1018_v9, 16  ;;  %v1402_v57 = vld [vmem:[%s1303_s23 + $0x10] sm:$0x7] }
  0x18   : > { %v252_v27 = vrot.slane %v250_v21, 1  ;;  %v238_v28 = vrot.slane %v236_v22, 1  ;;  %v241_v32 = vshrl.u32 %v1016_v7, 16  ;;  %v344_v33 = vshll.u32 %v1337_v16, 16  ;;  %1132 = vmatpush3.bf16.msra.mxu0 %v1207_v35  ;;  %v1211_v9 = vld [vmem:[%s1563_s1 + $0x40] sm:$0xff]  }
  0x19   : > { %v259_v37 = vrot.slane %v257_v25, 1  ;;  %v337_v38 = vshll.u32 %v1341_v17, 16  ;;  %v245_v40 = vrot.slane %v243_v26, 1  ;;  %v1372_v42 = vcombine.low %v1353_v30, %v1353_v30  ;;  %1133 = vmatprep.subr.bf16.mxu0 %v1245_v1  ;;  %1112 = vmatpush3.bf16.msra.mxu1 %v1211_v9 }
  0x1a   : > { %v253_v36 = vor.u32 %v252_v27, %v248_v20  ;;  %v239_v39 = vor.u32 %v238_v28, %v234_v24  ;;  %v342_v43 = vshrl.u32 %v1337_v16, 16  ;;  %v346_v46 = vrot.slane %v344_v33, 1  ;;  %1113 = vmatprep.subr.bf16.mxu1 %v1245_v1 }
  0x1b   : > { %279 = vrot.lane.b32.xlu1 %v272_v19, %s1246_s28  ;;  %277 = vrot.lane.b32.xlu0 %v271_v23, %s1246_s28  ;;  %v1383_v47 = vcombine.low %v1357_v34, %v1357_v34  ;;  %v260_v49 = vor.u32 %v259_v37, %v255_v31  ;;  %v335_v50 = vshrl.u32 %v1341_v17, 16  ;;  %v339_v51 = vrot.slane %v337_v38, 1  ;;  %v1213_v23 = vld [vmem:[%s1563_s1 + $0x48] sm:$0xff]  }
  0x1c   : > { %v246_v52 = vor.u32 %v245_v40, %v241_v32  ;;  %v358_v53 = vshll.u32 %v1368_v41, 16  ;;  %v351_v54 = vshll.u32 %v1372_v42, 16  ;;  %v1396_v55 = vcombine.low %v1376_v44, %v1376_v44  ;;  %1134 = vmatpush3.bf16.msra.mxu0 %v1208_v48  ;;  %v1215_v32 = vld [vmem:[%s1563_s1 + $0x50] sm:$0xff]  }
  0x1d   : > { %v347_v59 = vor.u32 %v346_v46, %v342_v43  ;;  %v647_v60 = vshll.u32 %v1383_v47, 16  ;;  %v340_v61 = vor.u32 %v339_v51, %v335_v50  ;;  %v356_v62 = vshrl.u32 %v1368_v41, 16  ;;  %1139 = vmatprep.subr.bf16.mxu0 %v1245_v1  ;;  %1114 = vmatpush3.bf16.msra.mxu1 %v1213_v23 }
  0x1e   : > { %v349_v63 = vshrl.u32 %v1372_v42, 16  ;;  %v1060_v0 = vcombine.low %v1399_v56, %v1399_v56  ;;  %v360_v2 = vrot.slane %v358_v53, 1  ;;  %v353_v3 = vrot.slane %v351_v54, 1  ;;  %1115 = vmatprep.subr.bf16.mxu1 %v1245_v1 }
  0x1f   : > { %265 = vrot.lane.b32.xlu1 %v253_v36, %s1247_s8  ;;  %261 = vrot.lane.b32.xlu0 %v239_v39, %s1247_s8  ;;  %v640_v7 = vshll.u32 %v1396_v55, 16  ;;  %v1059_v8 = vcombine.low %v1402_v57, %v1402_v57  ;;  %v645_v13 = vshrl.u32 %v1383_v47, 16  ;;  %v649_v14 = vrot.slane %v647_v60, 1  ;;  %v1217_v36 = vld [vmem:[%s1563_s1 + $0x58] sm:$0xff]  }
  0x20   : > { %v638_v15 = vshrl.u32 %v1396_v55, 16  ;;  %v661_v18 = vshll.u32 %v1060_v0, 16  ;;  %v361_v19 = vor.u32 %v360_v2, %v356_v62  ;;  %v354_v20 = vor.u32 %v353_v3, %v349_v63 }
  0x21   : > { %v642_v21 = vrot.slane %v640_v7, 1  ;;  %v654_v22 = vshll.u32 %v1059_v8, 16  ;;  %v659_v24 = vshrl.u32 %v1060_v0, 16  ;;  %v652_v25 = vshrl.u32 %v1059_v8, 16  ;;  %1116 = vmatpush3.bf16.msra.mxu1 %v1215_v32 }
  0x22   : > { %v650_v26 = vor.u32 %v649_v14, %v645_v13  ;;  %v663_v28 = vrot.slane %v661_v18, 1  ;;  %1117 = vmatprep.subr.bf16.mxu1 %v1245_v1  ;;  %v371_v37 = vrot.slane %v1337_v16, 1  ;;  %v370_v38 = vrot.slane %v1341_v17, 1 }
  0x23   : > { %267 = vrot.lane.b32.xlu1 %v260_v49, %s1247_s8  ;;  %263 = vrot.lane.b32.xlu0 %v246_v52, %s1247_s8  ;;  %v643_v27 = vor.u32 %v642_v21, %v638_v15  ;;  %v656_v31 = vrot.slane %v654_v22, 1  ;;  %v373_v39 = vrot.slane %v1368_v41, 1  ;;  %v372_v40 = vrot.slane %v1372_v42, 1  ;;  %v1216_v22 = vld [vmem:[%s1563_s1 + $0x70] sm:$0xff]  }
  0x24   : > { %v664_v33 = vor.u32 %v663_v28, %v659_v24  ;;  %v674_v43 = vrot.slane %v1383_v47, 1  ;;  %v673_v45 = vrot.slane %v1396_v55, 1  ;;  %v676_v16 = vrot.slane %v1060_v0, 1 }
  0x25   : > { %v657_v35 = vor.u32 %v656_v31, %v652_v25  ;;  %1118 = vmatpush3.bf16.msra.mxu1 %v1217_v36  ;;  %v675_v17 = vrot.slane %v1059_v8, 1  ;;  %v1249_v49 = vmov 1983009808   ;;  %v424_v51 = vlaneseq  ;;  %v1218_v25 = vld [vmem:[%s1563_s1 + $0x78] sm:$0xff]  }
  0x26   : > { %v422_v50 = vunpack.c.l.s4 %v1249_v49 }
  0x27   : > { %364 = vrot.lane.b32.xlu1 %v347_v59, %s1247_s8  ;;  %362 = vrot.lane.b32.xlu0 %v340_v61, %s1247_s8  ;;  %v425_v54 = vshrl.u32 %v424_v51, 7 }
  0x28   : > { %v423_v53 = vunpack.c.0.s8 %v422_v50 }
  0x2a   : > { %v1467_v61 = vsub.s32 %v423_v53, %v425_v54 }
  0x2b   : > { %368 = vrot.lane.b32.xlu1 %v361_v19, %s1247_s8  ;;  %366 = vrot.lane.b32.xlu0 %v354_v20, %s1247_s8  ;;  %v1214_v19 = vld [vmem:[%s1563_s1 + $0x68] sm:$0xff]  }
  0x2f   : > { %667 = vrot.lane.b32.xlu1 %v650_v26, %s1247_s8  ;;  %665 = vrot.lane.b32.xlu0 %v643_v27, %s1247_s8 }
  0x33   : > { %671 = vrot.lane.b32.xlu1 %v664_v33, %s1247_s8  ;;  %669 = vrot.lane.b32.xlu0 %v657_v35, %s1247_s8  ;;  %v1219_v35 = vld [vmem:[%s1563_s1 + $0x80] sm:$0xff]   ;;  %s1085_s8 = sshll.u32 %s1571_s12, 3 }
  0x34   : > { %s204_s11 = scalar_lea.vmem %s1564_s2, %s1085_s8 }
  0x37   : > { %376 = vrot.lane.b32.xlu1 %v371_v37, %s1246_s28  ;;  %374 = vrot.lane.b32.xlu0 %v370_v38, %s1246_s28 }
  0x3b   : > { %380 = vrot.lane.b32.xlu1 %v373_v39, %s1246_s28  ;;  %378 = vrot.lane.b32.xlu0 %v372_v40, %s1246_s28 }
  0x3f   : > { %679 = vrot.lane.b32.xlu1 %v674_v43, %s1246_s28  ;;  %677 = vrot.lane.b32.xlu0 %v673_v45, %s1246_s28  ;;  %v1220_v45 = vld [vmem:[%s1563_s1 + $0x88] sm:$0xff]  }
  0x43   : > { %683 = vrot.lane.b32.xlu1 %v676_v16, %s1246_s28  ;;  %681 = vrot.lane.b32.xlu0 %v675_v17, %s1246_s28 }
  0x89   : > { %v276_v41 = vpop.permute.xlu1 %275  ;;  %v274_v42 = vpop.permute.xlu0 %273 }
  0x8d   : > { %v280_v46 = vpop.permute.xlu1 %279  ;;  %v278_v48 = vpop.permute.xlu0 %277 }
  0x91   : > { %v266_v47 = vpop.permute.xlu1 %265  ;;  %v262_v52 = vpop.permute.xlu0 %261 }
  0x92   : > { %v290_v55 = vsel %vm281_vm1, %v1325_v10, %v266_v47  ;;  %v284_v58 = vsel %vm281_vm1, %v1312_v5, %v262_v52 }
  0x93   : > { %v300_v0 = vsel %vm294_vm2, %v290_v55, %v278_v48  ;;  %v296_v2 = vsel %vm294_vm2, %v284_v58, %v274_v42 }
  0x95   : > { %v268_v59 = vpop.permute.xlu1 %267  ;;  %v264_v60 = vpop.permute.xlu0 %263 }
  0x96   : > { %v293_v62 = vsel %vm281_vm1, %v1315_v6, %v268_v59  ;;  %v287_v63 = vsel %vm281_vm1, %v1309_v4, %v264_v60  ;;  %v1212_v4 = vld [vmem:[%s1563_s1 + $0x60] sm:$0xff]  }
  0x97   : > { %v302_v3 = vsel %vm294_vm2, %v293_v62, %v280_v46  ;;  %v298_v10 = vsel %vm294_vm2, %v287_v63, %v276_v41 }
  0x98   : > { %v522_v7 = vcombine.low %v300_v0, %v302_v3  ;;  %v521_v5 = vcombine.low %v296_v2, %v298_v10 }
  0x99   : > { %v365_v8 = vpop.permute.xlu1 %364  ;;  %v363_v9 = vpop.permute.xlu0 %362 }
  0x9a   : > { %v536_v13 = vrot.slane %v522_v7, %v1467_v61  ;;  %v529_v14 = vrot.slane %v521_v5, %v1467_v61  ;;  %v387_v26 = vsel %vm281_vm1, %v1328_v11, %v365_v8  ;;  %v384_v27 = vsel %vm281_vm1, %v1331_v12, %v363_v9 }
  0x9c   : > { %v537_v6 = vcombine.low %v529_v14, %v536_v13 }
  0x9d   : > { %v369_v15 = vpop.permute.xlu1 %368  ;;  %v367_v18 = vpop.permute.xlu0 %366 }
  0x9e   : > { %1136 = vmatmul.mubr.msk.bf16.vlgmr.msra.gmra.mrb[0].mxu0 %vm472_vm3, %v537_v6  ;;  %v393_v36 = vsel %vm281_vm1, %v1350_v29, %v369_v15  ;;  %v390_v11 = vsel %vm281_vm1, %v1353_v30, %v367_v18 }
  0x9f   : > { %1140 = vmatpush3.bf16.msra.mxu0 %v1212_v4  ;;  %1151 = vmatprep.mubr.msk.bf16.mxu0 %vm1248_vm0, %v1245_v1 }
  0xa0   : > { %1141 = vmatprep.subr.bf16.mxu0 %v1245_v1 }
  0xa1   : > { %v668_v20 = vpop.permute.xlu1 %667  ;;  %v666_v21 = vpop.permute.xlu0 %665 }
  0xa2   : > { %v690_v29 = vsel %vm281_vm1, %v1357_v34, %v668_v20  ;;  %v687_v30 = vsel %vm281_vm1, %v1376_v44, %v666_v21 }
  0xa3   : > { %1142 = vmatpush3.bf16.msra.mxu0 %v1214_v19 }
  0xa4   : > { %1143 = vmatprep.subr.bf16.mxu0 %v1245_v1 }
  0xa5   : > { %v672_v23 = vpop.permute.xlu1 %671  ;;  %v670_v24 = vpop.permute.xlu0 %669 }
  0xa6   : > { %v693_v34 = vsel %vm281_vm1, %v1402_v57, %v670_v24 }
  0xa7   : > { %1144 = vmatpush3.bf16.msra.mxu0 %v1216_v22 }
  0xa8   : > { %1145 = vmatprep.subr.bf16.mxu0 %v1245_v1 }
  0xa9   : > { %v377_v28 = vpop.permute.xlu1 %376  ;;  %v375_v31 = vpop.permute.xlu0 %374 }
  0xaa   : > { %v397_v32 = vsel %vm294_vm2, %v387_v26, %v377_v28  ;;  %v395_v33 = vsel %vm294_vm2, %v384_v27, %v375_v31 }
  0xab   : > { %1146 = vmatpush3.bf16.msra.mxu0 %v1218_v25  ;;  %v419_v12 = vcombine.low %v395_v33, %v397_v32 }
  0xac   : > { %1147 = vmatprep.subr.bf16.mxu0 %v1245_v1 }
  0xad   : > { %v381_v37 = vpop.permute.xlu1 %380  ;;  %v379_v38 = vpop.permute.xlu0 %378  ;;  %v427_v16 = vrot.slane %v419_v12, %v1467_v61 }
  0xae   : > { %v401_v39 = vsel %vm294_vm2, %v393_v36, %v381_v37  ;;  %v399_v40 = vsel %vm294_vm2, %v390_v11, %v379_v38 }
  0xaf   : > { %v420_v43 = vcombine.low %v399_v40, %v401_v39  ;;  %1148 = vmatpush3.bf16.msra.mxu0 %v1219_v35 }
  0xb0   : > { %1149 = vmatprep.subr.bf16.mxu0 %v1245_v1  ;;  %v696_v1 = vsel %vm281_vm1, %v1399_v56, %v672_v23 }
  0xb1   : > { %v434_v17 = vrot.slane %v420_v43, %v1467_v61  ;;  %v680_v41 = vpop.permute.xlu1 %679  ;;  %v678_v42 = vpop.permute.xlu0 %677 }
  0xb2   : > { %v700_v46 = vsel %vm294_vm2, %v690_v29, %v680_v41  ;;  %v698_v48 = vsel %vm294_vm2, %v687_v30, %v678_v42 }
  0xb3   : > { %v435_v49 = vcombine.low %v427_v16, %v434_v17  ;;  %1150 = vmatpush3.bf16.msra.mxu0 %v1220_v45  ;;  %v722_v44 = vcombine.low %v698_v48, %v700_v46 }
  0xb5   : > { %v684_v50 = vpop.permute.xlu1 %683  ;;  %1120 = vmatmul.mubr.msk.bf16.vlgmr.msra.gmra.mrb[0].mxu1 %vm472_vm3, %v435_v49  ;;  %v682_v51 = vpop.permute.xlu0 %681  ;;  %v730_v54 = vrot.slane %v722_v44, %v1467_v61 }
  0xb6   : > { %v704_v47 = vsel %vm294_vm2, %v696_v1, %v684_v50  ;;  %v702_v52 = vsel %vm294_vm2, %v693_v34, %v682_v51 }
  0xb7   : > { %v723_v53 = vcombine.low %v702_v52, %v704_v47 }
  0xb9   : > { %v737_v55 = vrot.slane %v723_v53, %v1467_v61 }
  0xbb   : > { %v738_v58 = vcombine.low %v730_v54, %v737_v55 }
  0xbd   : > { %1152 = vmatmul.mubr.msk.bf16.vlgmr.msra.gmra.mrb[0].mxu0 %vm472_vm3, %v738_v58 }
 0x188   : > { %v510_v56 = vpop.f32.mrb[0].mxu1 }
 0x189   : > { %v1121_v57 = vpop.f32.mrb[1].mxu1 }
 0x18a   : > { %v513_v59 = vpop.f32.mrb[2].mxu1 }
 0x18b   : > { %v1122_v60 = vpop.f32.mrb[3].mxu1 }
 0x190   : > { %v812_v62 = vpop.f32.mrb[0].mxu0 }
 0x191   : > { %v1155_v63 = vadd.f32 %v812_v62, %v510_v56  ;;  %v1153_v0 = vpop.f32.mrb[1].mxu0 }
 0x192   : > { %v815_v2 = vpop.f32.mrb[2].mxu0 }
 0x193   : > { %v821_v3 = vpack.c.bf16 %v1155_v63, %v1155_v63  ;;  %v1156_v10 = vadd.f32 %v815_v2, %v513_v59  ;;  %v1154_v7 = vpop.f32.mrb[3].mxu0  ;;  %v862_v5 = vmul.f32 %v1155_v63, %v1155_v63  ;;  %v851_v9 = vsel %vm281_vm1, %v1155_v63, 0.0 }
 0x195   : > { %823 = vst.msk [vmem:[%s204_s11] sm:$0x3] %vm822_vm4, %v821_v3  ;;  %v831_v8 = vrot.slane %v821_v3, %v1467_v61  ;;  %v836_v13 = vpack.c.bf16 %v1156_v10, %v1156_v10  ;;  %v852_v14 = vsel %vm281_vm1, %v1156_v10, 0.0  ;;  %v863_v6 = vmul.f32 %v1156_v10, %v1156_v10 }
 0x196   : > { %v853_v4 = vadd.f32 %v852_v14, %v851_v9  ;;  %v864_v19 = vsel %vm281_vm1, %v862_v5, 0.0 }
 0x197   : > { %v832_v15 = vcombine.high %v831_v8, %v831_v8  ;;  %1081 = vst.msk [vmem:[%s204_s11 + $0x4] sm:$0x3] %vm822_vm4, %v836_v13  ;;  %v846_v18 = vrot.slane %v836_v13, %v1467_v61  ;;  %v865_v21 = vsel %vm281_vm1, %v863_v6, 0.0 }
 0x198   : > { %v854_v20 = vrot.slane %v853_v4, 4  ;;  %v866_v23 = vadd.f32 %v865_v21, %v864_v19 }
 0x199   : > { %1080 = vst.msk [vmem:[%s204_s11 + $0x2] sm:$0x3] %vm822_vm4, %v832_v15  ;;  %v847_v22 = vcombine.high %v846_v18, %v846_v18 }
 0x19a   : > { %v855_v24 = vadd.f32 %v854_v20, %v853_v4  ;;  %v867_v25 = vrot.slane %v866_v23, 4 }
 0x19b   : > { %1082 = vst.msk [vmem:[%s204_s11 + $0x6] sm:$0x3] %vm822_vm4, %v847_v22 }
 0x19c   : > { %v856_v26 = vrot.slane %v855_v24, 2  ;;  %v868_v27 = vadd.f32 %v867_v25, %v866_v23 }
 0x19e   : > { %v857_v28 = vadd.f32 %v856_v26, %v855_v24  ;;  %v869_v31 = vrot.slane %v868_v27, 2 }
 0x1a0   : > { %v858_v32 = vrot.slane %v857_v28, 1  ;;  %v870_v61 = vadd.f32 %v869_v31, %v868_v27 }
 0x1a2   : > { %v859_v33 = vadd.f32 %v858_v32, %v857_v28  ;;  %v871_v35 = vrot.slane %v870_v61, 1 }
 0x1a4   : > { %861 = vst.msk [vmem:[%s212_s19] sm:$0x1] %vm860_vm5, %v859_v33  ;;  %v872_v36 = vadd.f32 %v871_v35, %v870_v61 }
 0x1a6   : > { %873 = vst.msk [vmem:[%s212_s19 + $0x1] sm:$0x1] %vm860_vm5, %v872_v36 }
 0x1a7 PF: > { %s14_s14 = sadd.s32 1, %s1243_s14   ;;  %s1566_s12 = smov %s1239_s13 }
 0x1a8   : > { %p11_p5 = scmp.ge.s32.totalorder %s14_s14, 4   ;;  %s1567_s13 = smov %s1569_s15 }
 0x1aa   :  { %13 = sbr.rel (!%p11_p5) target bundleno = 2 (0x2), region = 78 }

// kernel: vgg_feature_extractor.17
= control target key start
LH: loop header
LB: loop body
LE: loop exit
PB: predicated region body
PF: predicated region fallthrough
CT: control target
= control target key end

     0   :  { %s624_s12 = smov 0   ;;  %s626_s13 = smov 0   ;;  %s691_s0 = inlined_call_operand.vmem [shape: bf16[2,2,4,32], index: 0, kind: input, shape index: {}]   ;;  %s692_s1 = inlined_call_operand.vmem [shape: bf16[2,1,64,32], index: 1, kind: input, shape index: {}]   ;;  %s693_s2 = inlined_call_operand.vmem [shape: f32[1,32], index: 2, kind: input, shape index: {}]   ;;  %s694_s3 = inlined_call_operand.vmem [shape: f32[2,1,3,32], index: 3, kind: output, shape index: {}]  }
   0x1   :  { %s628_s14 = smov 0  }
   0x2 LB: > { %s25_s15 = sadd.s32 1, %s594_s13  ;;  %p479_p0 = scmp.ge.s32.totalorder %s598_s14, 1  ;;  %s598_s14 = sphi %s628_s14, %s13_s14   ;;  %s594_s13 = sphi %s626_s13, %s696_s13   ;;  %s590_s12 = sphi %s624_s12, %s695_s12  }
   0x3   : > { %p27_p1 = scmp.ge.s32.totalorder %s25_s15, 2  ;;  %p151_p2 = scmp.lt.s32.totalorder %s598_s14, 3 }
   0x5   : > { %s698_s15 = smov (%p27_p1, %s25_s15), 0  ;;  %p152_p3 = pnand %p479_p0, %p151_p2 }
   0x6   : > { %p177_p4 = scmp.lt.s32.totalorder (!%p152_p3), %s590_s12, 1  ;;  %v197_v0 = vlaneseq (!%p152_p3)  ;;  %v568_v1 = vld [vmem:[%s692_s1] sm:$0xff] (!%p152_p3)   ;;  %v600_v2 = vmov (!%p152_p3), 1983009808   ;;  %v601_v4 = vmov (!%p152_p3), 0.0   ;;  %v570_v7 = vld [vmem:[%s692_s1 + $0x8] sm:$0xff] (!%p152_p3)  }
   0x7   : > { %155 = sbr.rel (%p152_p3) target bundleno = 365 (0x16d), region = 32  ;;  %v195_v3 = vunpack.c.l.s4 (!%p152_p3), %v600_v2  ;;  %528 = vmatprep.subr.bf16.mxu1 (!%p152_p3), %v601_v4  ;;  %516 = vmatprep.subr.bf16.mxu0 (!%p152_p3), %v601_v4  ;;  %v569_v6 = vld [vmem:[%s692_s1 + $0x20] sm:$0xff] (!%p152_p3)   ;;  %v571_v9 = vld [vmem:[%s692_s1 + $0x28] sm:$0xff] (!%p152_p3)   ;;  %v572_v11 = vld [vmem:[%s692_s1 + $0x10] sm:$0xff] (!%p152_p3)   ;;  %vm602_vm0 = vmmov (!%p152_p3), 0   ;;  %s603_s9 = smov (!%p152_p3), 32  }
   0x8   : > { %v198_v5 = vshrl.u32 (!%p152_p3), %v197_v0, 7  ;;  %529 = vmatpush3.bf16.msra.mxu1 (!%p152_p3), %v568_v1  ;;  %517 = vmatpush3.bf16.msra.mxu0 (!%p152_p3), %v569_v6  ;;  %v573_v16 = vld [vmem:[%s692_s1 + $0x30] sm:$0xff] (!%p152_p3)   ;;  %v574_v20 = vld [vmem:[%s692_s1 + $0x18] sm:$0xff] (!%p152_p3)   ;;  %vm210_vm1 = vcmask (!%p152_p3), 261120   ;;  %vm279_vm2 = vcmask (!%p152_p3), 523264   ;;  %vm397_vm3 = vcmask (!%p152_p3), 256000  }
   0x9   : > { %v196_v8 = vunpack.c.0.s8 (!%p152_p3), %v195_v3  ;;  %530 = vmatprep.subr.bf16.mxu1 (!%p152_p3), %v601_v4  ;;  %518 = vmatprep.subr.bf16.mxu0 (!%p152_p3), %v601_v4  ;;  %v575_v24 = vld [vmem:[%s692_s1 + $0x38] sm:$0xff] (!%p152_p3)   ;;  %v502_v36 = vld [vmem:[%s693_s2] ss:$0 sm:$0xff] (!%p152_p3) }
   0xa   : > { %536 = vmatprep.mubr.msk.bf16.mxu1 (!%p152_p3), %vm602_vm0, %v601_v4  ;;  %524 = vmatprep.mubr.msk.bf16.mxu0 (!%p152_p3), %vm602_vm0, %v601_v4 }
   0xb   : > { %v199_v10 = vsub.s32 (!%p152_p3), %v196_v8, %v198_v5 }
   0xc   : > { %531 = vmatpush3.bf16.msra.mxu1 (!%p152_p3), %v570_v7  ;;  %519 = vmatpush3.bf16.msra.mxu0 (!%p152_p3), %v571_v9 }
   0xd   : > { %532 = vmatprep.subr.bf16.mxu1 (!%p152_p3), %v601_v4  ;;  %520 = vmatprep.subr.bf16.mxu0 (!%p152_p3), %v601_v4 }
   0xe   : > { %s700_s12 = smov (!%p177_p4, %s590_s12), 1 }
   0xf   : > { %s505_s22 = sshll.u32 %s700_s12, 2 }
  0x10   : > { %s181_s27 = scalar_lea.vmem %s691_s0, %s505_s22  ;;  %533 = vmatpush3.bf16.msra.mxu1 %v572_v11  ;;  %521 = vmatpush3.bf16.msra.mxu0 %v573_v16  ;;  %s188_s18 = scalar_lea.vmem %s694_s3, %s505_s22 }
  0x11   : > { %v192_v12 = vld [vmem:[%s181_s27] sm:$0x3]  ;;  %v483_v13 = vld [vmem:[%s181_s27 + $0x2] sm:$0x3]  ;;  %534 = vmatprep.subr.bf16.mxu1 %v601_v4  ;;  %522 = vmatprep.subr.bf16.mxu0 %v601_v4 }
  0x12   : > { %v200_v14 = vrot.slane %v192_v12, %v199_v10  ;;  %v233_v15 = vrot.slane %v483_v13, %v199_v10 }
  0x14   : > { %v202_v17 = vshrl.u32 %v200_v14, 16  ;;  %v204_v18 = vshll.u32 %v200_v14, 16  ;;  %v237_v19 = vshll.u32 %v233_v15, 16  ;;  %v235_v22 = vshrl.u32 %v233_v15, 16  ;;  %535 = vmatpush3.bf16.msra.mxu1 %v574_v20  ;;  %523 = vmatpush3.bf16.msra.mxu0 %v575_v24 }
  0x16   : > { %v206_v21 = vrot.slane %v204_v18, 1  ;;  %v239_v23 = vrot.slane %v237_v19, 1 }
  0x18   : > { %v207_v25 = vor.u32 %v206_v21, %v202_v17  ;;  %v240_v26 = vor.u32 %v239_v23, %v235_v22 }
  0x1a   : > { %208 = vrot.lane.b32.xlu0 %v207_v25, %s603_s9 }
  0x1e   : > { %241 = vrot.lane.b32.xlu0 %v240_v26, %s603_s9 }
  0x8c   : > { %v209_v27 = vpop.permute.xlu0 %208 }
  0x8d   : > { %v213_v28 = vsel %vm210_vm1, %v192_v12, %v209_v27 }
  0x8e   : > { %537 = vmatmul.mubr.msk.bf16.vlgmr.msra.gmra.mrb[0].mxu1 %vm279_vm2, %v213_v28 }
  0x90   : > { %v242_v29 = vpop.permute.xlu0 %241 }
  0x91   : > { %v245_v30 = vsel %vm210_vm1, %v483_v13, %v242_v29 }
  0x92   : > { %525 = vmatmul.mubr.msk.bf16.vlgmr.msra.gmra.mrb[0].mxu0 %vm279_vm2, %v245_v30 }
 0x161   : > { %v382_v31 = vpop.f32.mrb[0].mxu1 }
 0x162   : > { %v538_v32 = vpop.f32.mrb[1].mxu1 }
 0x163   : > { %v385_v33 = vpop.f32.mrb[2].mxu1 }
 0x164   : > { %v539_v34 = vpop.f32.mrb[3].mxu1 }
 0x165   : > { %v316_v35 = vpop.f32.mrb[0].mxu0 }
 0x166   : > { %v383_v37 = vadd.f32 %v382_v31, %v316_v35  ;;  %v526_v38 = vpop.f32.mrb[1].mxu0 }
 0x167   : > { %v319_v39 = vpop.f32.mrb[2].mxu0 }
 0x168   : > { %v395_v40 = vadd.f32 %v502_v36, %v383_v37  ;;  %v527_v41 = vpop.f32.mrb[3].mxu0 }
 0x16a   : > { %v396_v42 = vmax.f32 %v395_v40, 0.0 }
 0x16c   : > { %398 = vst.msk [vmem:[%s188_s18] sm:$0x7] %vm397_vm3, %v396_v42 }
 0x16d PF: > { %s13_s14 = sadd.s32 1, %s598_s14   ;;  %s695_s12 = smov %s594_s13 }
 0x16e   : > { %p10_p5 = scmp.ge.s32.totalorder %s13_s14, 4   ;;  %s696_s13 = smov %s698_s15 }
 0x170   :  { %12 = sbr.rel (!%p10_p5) target bundleno = 2 (0x2), region = 65 }

</bundles_post_ra>
